<compile_context>
chip_gen: v5e
topology: v5e:2x2
jax: 0.10.0
libtpu: 0.0.40
codegen_flags: <defaults>
</compile_context>

<pallas_src>
import jax
import jax.numpy as jnp
from jax.experimental import pallas as pl
from jax.experimental.pallas import tpu as pltpu

INPUT = 1
HIDDEN = 50
FC1 = 25
NUM_LAYERS = 2
HP = 128            # per-gate lane-padded width (hidden padded 50 -> 128)
B_BLK = 8           # batch rows per grid step (sublane-aligned)


def stock_lstm_kernel(x_ref, wih0_ref, whh0_ref, b0_ref,
                      wih1_ref, whh1_ref, b1_ref,
                      wout_ref, bout_ref, out_ref):
    # x_ref:    (B, T)        compact input (batch on sublanes, time on lanes)
    # wih0_ref: (1, 4*HP)     layer-0 input weights (gate blocks lane-padded)
    # whh0_ref: (HP, 4*HP)    layer-0 recurrent weights
    # b0_ref:   (1, 4*HP)     layer-0 bias (b_ih + b_hh)
    # wih1_ref: (HP, 4*HP)    layer-1 input (from h0) weights
    # whh1_ref: (HP, 4*HP)    layer-1 recurrent weights
    # b1_ref:   (1, 4*HP)     layer-1 bias
    # wout_ref: (1, HP), bout_ref: (1, 1)   fused fc->fc2 output row + bias
    B, T = x_ref.shape
    hp = whh0_ref.shape[0]          # 128
    g4 = whh0_ref.shape[1]          # 512

    xv = x_ref[...]                                             # (B, T)
    wih0 = wih0_ref[...]                                        # (1, g4)
    whh0 = whh0_ref[...]                                        # (hp, g4)
    wih1 = wih1_ref[...]                                        # (hp, g4)
    whh1 = whh1_ref[...]                                        # (hp, g4)
    b0 = jnp.broadcast_to(b0_ref[...], (B, g4))                 # hoisted broadcasts
    b1 = jnp.broadcast_to(b1_ref[...], (B, g4))

    def gates_to_hc(gates, c):
        # Lane-aligned 128-wide gate slices, PyTorch order (i, f, g, o).
        i = jax.nn.sigmoid(gates[:, 0 * hp:1 * hp])
        f = jax.nn.sigmoid(gates[:, 1 * hp:2 * hp])
        g = jnp.tanh(gates[:, 2 * hp:3 * hp])
        o = jax.nn.sigmoid(gates[:, 3 * hp:4 * hp])
        c_new = f * c + i * g
        h_new = o * jnp.tanh(c_new)
        return h_new, c_new

    zeros = jnp.zeros((B, hp), jnp.float32)
    h0, c0, h1, c1 = zeros, zeros, zeros, zeros

    # T is compile-time static -> fully unrolled recurrence.
    for t in range(T):
        # Layer 0: INPUT == 1 -> outer-product input projection (VPU) + 1 dot.
        g0 = (xv[:, t:t + 1] * wih0 + b0
              + jnp.dot(h0, whh0, preferred_element_type=jnp.float32))
        h0, c0 = gates_to_hc(g0, c0)
        # Layer 1: two accumulating K=128 dots, no lane concat.  h1@Whh1 only
        # depends on h1[t-1], so it can issue before h0[t] is ready.
        g1 = (jnp.dot(h1, whh1, preferred_element_type=jnp.float32)
              + jnp.dot(h0, wih1, preferred_element_type=jnp.float32)
              + b1)
        h1, c1 = gates_to_hc(g1, c1)

    # fc + fc2 folded offline to a single row; N=1 matvec as VPU mul + lane
    # reduce (keeps the epilogue off the MXU).
    out = jnp.sum(h1 * wout_ref[...], axis=-1, keepdims=True) + bout_ref[...]
    out_ref[...] = out.astype(out_ref.dtype)


def init_params(key):
    """Deterministic params, shapes matching nn.LSTM / nn.Linear in StockLSTM."""
    ks = jax.random.split(key, 12)

    def uni(k, shape, bound):
        return jax.random.uniform(k, shape, jnp.float32, -bound, bound)

    bh = 1.0 / (HIDDEN ** 0.5)
    bf = 1.0 / (FC1 ** 0.5)
    return dict(
        w_ih0=uni(ks[0], (4 * HIDDEN, INPUT), bh),
        w_hh0=uni(ks[1], (4 * HIDDEN, HIDDEN), bh),
        b_ih0=uni(ks[2], (4 * HIDDEN,), bh),
        b_hh0=uni(ks[3], (4 * HIDDEN,), bh),
        w_ih1=uni(ks[4], (4 * HIDDEN, HIDDEN), bh),
        w_hh1=uni(ks[5], (4 * HIDDEN, HIDDEN), bh),
        b_ih1=uni(ks[6], (4 * HIDDEN,), bh),
        b_hh1=uni(ks[7], (4 * HIDDEN,), bh),
        fcw=uni(ks[8], (FC1, HIDDEN), bh),
        fcb=uni(ks[9], (FC1,), bh),
        fc2w=uni(ks[10], (1, FC1), bf),
        fc2b=uni(ks[11], (1,), bf),
    )


def _pad_gate_blocks(w, H):
    """w: (rows, 4H), gates stacked on columns in torch order (i,f,g,o).
    Returns (rows, 4*HP) with each gate block zero-padded to HP lanes."""
    blocks = [jnp.pad(w[:, g * H:(g + 1) * H], ((0, 0), (0, HP - H)))
              for g in range(4)]
    return jnp.concatenate(blocks, axis=1)


def _pack_params(p):
    f32 = jnp.float32
    H = HIDDEN
    # layer 0
    wih0 = _pad_gate_blocks(p["w_ih0"].T.astype(f32), H)                    # (1, 512)
    whh0 = _pad_gate_blocks(p["w_hh0"].T.astype(f32), H)                    # (50, 512)
    whh0 = jnp.pad(whh0, ((0, HP - H), (0, 0)))                             # (128, 512)
    b0 = _pad_gate_blocks((p["b_ih0"] + p["b_hh0"])[None, :].astype(f32), H)  # (1, 512)
    # layer 1: kept as two separate (HP, 4*HP) weights (no concat in kernel)
    wih1 = _pad_gate_blocks(p["w_ih1"].T.astype(f32), H)
    wih1 = jnp.pad(wih1, ((0, HP - H), (0, 0)))                             # (128, 512)
    whh1 = _pad_gate_blocks(p["w_hh1"].T.astype(f32), H)
    whh1 = jnp.pad(whh1, ((0, HP - H), (0, 0)))                             # (128, 512)
    b1 = _pad_gate_blocks((p["b_ih1"] + p["b_hh1"])[None, :].astype(f32), H)  # (1, 512)
    # fc -> fc2 folded offline into one output row (exact: no nonlinearity between)
    w_out = p["fc2w"].astype(f32) @ p["fcw"].astype(f32)                    # (1, 50)
    w_out = jnp.pad(w_out, ((0, 0), (0, HP - H)))                           # (1, 128)
    b_out = (p["fcb"].astype(f32) @ p["fc2w"].T.astype(f32)
             + p["fc2b"].astype(f32))[None, :]                              # (1, 1)
    return wih0, whh0, b0, wih1, whh1, b1, w_out, b_out


def stock_lstm_forward(x, p):
    """x: (B, T, INPUT) batch-first, like the PyTorch module. Returns (B, 1)."""
    B, T, _ = x.shape
    # TODO(synk): for long sequences, stream x over an 'arbitrary' T-chunked
    # grid axis with h/c carried in VMEM scratch and a bounded-unroll
    # lax.fori_loop body (needed on v7x's 64 MiB VMEM / for compile time);
    # the fully-unrolled path below is only for short T.
    assert T <= 128, "long-T streaming path not implemented"

    # Compact time-major-free layout: drop the trailing size-1 input dim.
    xc = x[..., 0].astype(jnp.float32)                      # (B, T)
    # Pad batch to a multiple of the sublane-aligned block size.
    B_pad = ((B + B_BLK - 1) // B_BLK) * B_BLK
    if B_pad != B:
        xc = jnp.pad(xc, ((0, B_pad - B), (0, 0)))
    nb = B_pad // B_BLK

    args = (xc,) + _pack_params(p)

    in_specs = [
        pl.BlockSpec((B_BLK, T), lambda b: (b, 0)),          # x   (batch-sharded)
        pl.BlockSpec((1, 4 * HP), lambda b: (0, 0)),         # wih0
        pl.BlockSpec((HP, 4 * HP), lambda b: (0, 0)),        # whh0
        pl.BlockSpec((1, 4 * HP), lambda b: (0, 0)),         # b0
        pl.BlockSpec((HP, 4 * HP), lambda b: (0, 0)),        # wih1
        pl.BlockSpec((HP, 4 * HP), lambda b: (0, 0)),        # whh1
        pl.BlockSpec((1, 4 * HP), lambda b: (0, 0)),         # b1
        pl.BlockSpec((1, HP), lambda b: (0, 0)),             # wout row
        pl.BlockSpec((1, 1), lambda b: (0, 0)),              # bout
    ]
    out_specs = pl.BlockSpec((B_BLK, 1), lambda b: (b, 0))

    out = pl.pallas_call(
        stock_lstm_kernel,
        out_shape=jax.ShapeDtypeStruct((B_pad, 1), jnp.float32),
        grid=(nb,),
        in_specs=in_specs,
        out_specs=out_specs,
        compiler_params=pltpu.CompilerParams(
            dimension_semantics=("parallel",)),   # batch blocks -> both v7x TCs
    )(*args)
    return out[:B]


def reference_forward(x, p):
    """Pure-JAX reference mirroring torch.nn.LSTM + two Linear layers."""
    B, T, _ = x.shape
    H = HIDDEN

    def cell(xin, h, c, w_ih, w_hh, b_ih, b_hh):
        g = xin @ w_ih.T + h @ w_hh.T + b_ih + b_hh
        i = jax.nn.sigmoid(g[:, 0:H])
        f = jax.nn.sigmoid(g[:, H:2 * H])
        gg = jnp.tanh(g[:, 2 * H:3 * H])
        o = jax.nn.sigmoid(g[:, 3 * H:4 * H])
        c_new = f * c + i * gg
        h_new = o * jnp.tanh(c_new)
        return h_new, c_new

    h0 = c0 = h1 = c1 = jnp.zeros((B, H), jnp.float32)
    for t in range(T):
        xt = x[:, t, :]
        h0, c0 = cell(xt, h0, c0, p["w_ih0"], p["w_hh0"], p["b_ih0"], p["b_hh0"])
        h1, c1 = cell(h0, h1, c1, p["w_ih1"], p["w_hh1"], p["b_ih1"], p["b_hh1"])
    out = h1 @ p["fcw"].T + p["fcb"]
    out = out @ p["fc2w"].T + p["fc2b"]
    return out


if __name__ == "__main__":
    key = jax.random.PRNGKey(0)
    k_x, k_p = jax.random.split(key)

    B, T = 8, 8          # B multiple of 8 (sublanes) per the perf review
    x = jax.random.normal(k_x, (B, T, INPUT), jnp.float32)
    params = init_params(k_p)

    out = stock_lstm_forward(x, params)
    out = jax.block_until_ready(out)

    ref = reference_forward(x, params)
    assert out.shape == (B, 1), out.shape
    assert jnp.allclose(out, ref, atol=1e-4, rtol=1e-4), (out, ref)

    print("KERNEL_OK")
</pallas_src>

<mosaic_0001>
module attributes {stable_mosaic.version = 11 : i64} {
  func.func @stock_lstm_kernel(%arg0: i32, %arg1: memref<8x8xf32, #tpu.memory_space<vmem>>, %arg2: memref<1x512xf32, #tpu.memory_space<vmem>>, %arg3: memref<128x512xf32, #tpu.memory_space<vmem>>, %arg4: memref<1x512xf32, #tpu.memory_space<vmem>>, %arg5: memref<128x512xf32, #tpu.memory_space<vmem>>, %arg6: memref<128x512xf32, #tpu.memory_space<vmem>>, %arg7: memref<1x512xf32, #tpu.memory_space<vmem>>, %arg8: memref<1x128xf32, #tpu.memory_space<vmem>>, %arg9: memref<1x1xf32, #tpu.memory_space<vmem>>, %arg10: memref<8x1xf32, #tpu.memory_space<vmem>>) attributes {dimension_semantics = [#tpu.dimension_semantics<parallel>], iteration_bounds = array<i64: 1>, scalar_prefetch = 0 : i64, scratch_operands = 0 : i64, tpu.core_type = #tpu.core_type<tc>, window_params = [{transform_indices = @transform_0, window_bounds = array<i64: 8, 8>}, {pipeline_mode = #tpu.pipeline_mode<synchronous>, transform_indices = @transform_1, window_bounds = array<i64: 1, 512>}, {pipeline_mode = #tpu.pipeline_mode<synchronous>, transform_indices = @transform_2, window_bounds = array<i64: 128, 512>}, {pipeline_mode = #tpu.pipeline_mode<synchronous>, transform_indices = @transform_3, window_bounds = array<i64: 1, 512>}, {pipeline_mode = #tpu.pipeline_mode<synchronous>, transform_indices = @transform_4, window_bounds = array<i64: 128, 512>}, {pipeline_mode = #tpu.pipeline_mode<synchronous>, transform_indices = @transform_5, window_bounds = array<i64: 128, 512>}, {pipeline_mode = #tpu.pipeline_mode<synchronous>, transform_indices = @transform_6, window_bounds = array<i64: 1, 512>}, {pipeline_mode = #tpu.pipeline_mode<synchronous>, transform_indices = @transform_7, window_bounds = array<i64: 1, 128>}, {pipeline_mode = #tpu.pipeline_mode<synchronous>, transform_indices = @transform_8, window_bounds = array<i64: 1, 1>}, {transform_indices = @transform_9, window_bounds = array<i64: 8, 1>}]} {
    %c0 = arith.constant 0 : index
    %c0_0 = arith.constant 0 : index
    %0 = vector.load %arg1[%c0, %c0_0] : memref<8x8xf32, #tpu.memory_space<vmem>>, vector<8x8xf32>
    %c0_1 = arith.constant 0 : index
    %c0_2 = arith.constant 0 : index
    %1 = vector.load %arg2[%c0_1, %c0_2] : memref<1x512xf32, #tpu.memory_space<vmem>>, vector<1x512xf32>
    %c0_3 = arith.constant 0 : index
    %c0_4 = arith.constant 0 : index
    %2 = vector.load %arg3[%c0_3, %c0_4] : memref<128x512xf32, #tpu.memory_space<vmem>>, vector<128x512xf32>
    %c0_5 = arith.constant 0 : index
    %c0_6 = arith.constant 0 : index
    %3 = vector.load %arg5[%c0_5, %c0_6] : memref<128x512xf32, #tpu.memory_space<vmem>>, vector<128x512xf32>
    %c0_7 = arith.constant 0 : index
    %c0_8 = arith.constant 0 : index
    %4 = vector.load %arg6[%c0_7, %c0_8] : memref<128x512xf32, #tpu.memory_space<vmem>>, vector<128x512xf32>
    %c0_9 = arith.constant 0 : index
    %c0_10 = arith.constant 0 : index
    %5 = vector.load %arg4[%c0_9, %c0_10] : memref<1x512xf32, #tpu.memory_space<vmem>>, vector<1x512xf32>
    %6 = vector.shape_cast %5 : vector<1x512xf32> to vector<1x512xf32>
    %7 = vector.broadcast %6 : vector<1x512xf32> to vector<8x512xf32>
    %c0_11 = arith.constant 0 : index
    %c0_12 = arith.constant 0 : index
    %8 = vector.load %arg7[%c0_11, %c0_12] : memref<1x512xf32, #tpu.memory_space<vmem>>, vector<1x512xf32>
    %9 = vector.shape_cast %8 : vector<1x512xf32> to vector<1x512xf32>
    %10 = vector.broadcast %9 : vector<1x512xf32> to vector<8x512xf32>
    %cst = arith.constant 0.000000e+00 : f32
    %11 = vector.broadcast %cst : f32 to vector<8x128xf32>
    %12 = vector.extract_strided_slice %0 {offsets = [0, 0], sizes = [8, 1], strides = [1, 1]} : vector<8x8xf32> to vector<8x1xf32>
    %13 = vector.broadcast %12 : vector<8x1xf32> to vector<8x512xf32>
    %14 = vector.broadcast %1 : vector<1x512xf32> to vector<8x512xf32>
    %15 = arith.mulf %13, %14 : vector<8x512xf32>
    %16 = arith.addf %15, %7 : vector<8x512xf32>
    %cst_13 = arith.constant dense<0.000000e+00> : vector<8x512xf32>
    %17 = tpu.matmul %11, %2, %cst_13 {dimension_numbers = #tpu.dot_dimension_numbers<[1], [0], [0], [1], [0, 0, 1, 1], [], []>} : vector<8x128xf32>, vector<128x512xf32>, vector<8x512xf32> -> vector<8x512xf32>
    %18 = arith.addf %16, %17 : vector<8x512xf32>
    %19 = vector.extract_strided_slice %18 {offsets = [0, 0], sizes = [8, 128], strides = [1, 1]} : vector<8x512xf32> to vector<8x128xf32>
    %20 = arith.negf %19 : vector<8x128xf32>
    %21 = math.exp %20 : vector<8x128xf32>
    %cst_14 = arith.constant 1.000000e+00 : f32
    %22 = vector.broadcast %cst_14 : f32 to vector<8x128xf32>
    %23 = arith.addf %22, %21 : vector<8x128xf32>
    %24 = arith.divf %22, %23 : vector<8x128xf32>
    %25 = vector.extract_strided_slice %18 {offsets = [0, 128], sizes = [8, 128], strides = [1, 1]} : vector<8x512xf32> to vector<8x128xf32>
    %26 = arith.negf %25 : vector<8x128xf32>
    %27 = math.exp %26 : vector<8x128xf32>
    %cst_15 = arith.constant 1.000000e+00 : f32
    %28 = vector.broadcast %cst_15 : f32 to vector<8x128xf32>
    %29 = arith.addf %28, %27 : vector<8x128xf32>
    %30 = arith.divf %28, %29 : vector<8x128xf32>
    %31 = vector.extract_strided_slice %18 {offsets = [0, 256], sizes = [8, 128], strides = [1, 1]} : vector<8x512xf32> to vector<8x128xf32>
    %32 = math.tanh %31 : vector<8x128xf32>
    %33 = vector.extract_strided_slice %18 {offsets = [0, 384], sizes = [8, 128], strides = [1, 1]} : vector<8x512xf32> to vector<8x128xf32>
    %34 = arith.negf %33 : vector<8x128xf32>
    %35 = math.exp %34 : vector<8x128xf32>
    %cst_16 = arith.constant 1.000000e+00 : f32
    %36 = vector.broadcast %cst_16 : f32 to vector<8x128xf32>
    %37 = arith.addf %36, %35 : vector<8x128xf32>
    %38 = arith.divf %36, %37 : vector<8x128xf32>
    %39 = arith.mulf %30, %11 : vector<8x128xf32>
    %40 = arith.mulf %24, %32 : vector<8x128xf32>
    %41 = arith.addf %39, %40 : vector<8x128xf32>
    %42 = math.tanh %41 : vector<8x128xf32>
    %43 = arith.mulf %38, %42 : vector<8x128xf32>
    %cst_17 = arith.constant dense<0.000000e+00> : vector<8x512xf32>
    %44 = tpu.matmul %11, %4, %cst_17 {dimension_numbers = #tpu.dot_dimension_numbers<[1], [0], [0], [1], [0, 0, 1, 1], [], []>} : vector<8x128xf32>, vector<128x512xf32>, vector<8x512xf32> -> vector<8x512xf32>
    %cst_18 = arith.constant dense<0.000000e+00> : vector<8x512xf32>
    %45 = tpu.matmul %43, %3, %cst_18 {dimension_numbers = #tpu.dot_dimension_numbers<[1], [0], [0], [1], [0, 0, 1, 1], [], []>} : vector<8x128xf32>, vector<128x512xf32>, vector<8x512xf32> -> vector<8x512xf32>
    %46 = arith.addf %44, %45 : vector<8x512xf32>
    %47 = arith.addf %46, %10 : vector<8x512xf32>
    %48 = vector.extract_strided_slice %47 {offsets = [0, 0], sizes = [8, 128], strides = [1, 1]} : vector<8x512xf32> to vector<8x128xf32>
    %49 = arith.negf %48 : vector<8x128xf32>
    %50 = math.exp %49 : vector<8x128xf32>
    %cst_19 = arith.constant 1.000000e+00 : f32
    %51 = vector.broadcast %cst_19 : f32 to vector<8x128xf32>
    %52 = arith.addf %51, %50 : vector<8x128xf32>
    %53 = arith.divf %51, %52 : vector<8x128xf32>
    %54 = vector.extract_strided_slice %47 {offsets = [0, 128], sizes = [8, 128], strides = [1, 1]} : vector<8x512xf32> to vector<8x128xf32>
    %55 = arith.negf %54 : vector<8x128xf32>
    %56 = math.exp %55 : vector<8x128xf32>
    %cst_20 = arith.constant 1.000000e+00 : f32
    %57 = vector.broadcast %cst_20 : f32 to vector<8x128xf32>
    %58 = arith.addf %57, %56 : vector<8x128xf32>
    %59 = arith.divf %57, %58 : vector<8x128xf32>
    %60 = vector.extract_strided_slice %47 {offsets = [0, 256], sizes = [8, 128], strides = [1, 1]} : vector<8x512xf32> to vector<8x128xf32>
    %61 = math.tanh %60 : vector<8x128xf32>
    %62 = vector.extract_strided_slice %47 {offsets = [0, 384], sizes = [8, 128], strides = [1, 1]} : vector<8x512xf32> to vector<8x128xf32>
    %63 = arith.negf %62 : vector<8x128xf32>
    %64 = math.exp %63 : vector<8x128xf32>
    %cst_21 = arith.constant 1.000000e+00 : f32
    %65 = vector.broadcast %cst_21 : f32 to vector<8x128xf32>
    %66 = arith.addf %65, %64 : vector<8x128xf32>
    %67 = arith.divf %65, %66 : vector<8x128xf32>
    %68 = arith.mulf %59, %11 : vector<8x128xf32>
    %69 = arith.mulf %53, %61 : vector<8x128xf32>
    %70 = arith.addf %68, %69 : vector<8x128xf32>
    %71 = math.tanh %70 : vector<8x128xf32>
    %72 = arith.mulf %67, %71 : vector<8x128xf32>
    %73 = vector.extract_strided_slice %0 {offsets = [0, 1], sizes = [8, 1], strides = [1, 1]} : vector<8x8xf32> to vector<8x1xf32>
    %74 = vector.broadcast %73 : vector<8x1xf32> to vector<8x512xf32>
    %75 = vector.broadcast %1 : vector<1x512xf32> to vector<8x512xf32>
    %76 = arith.mulf %74, %75 : vector<8x512xf32>
    %77 = arith.addf %76, %7 : vector<8x512xf32>
    %cst_22 = arith.constant dense<0.000000e+00> : vector<8x512xf32>
    %78 = tpu.matmul %43, %2, %cst_22 {dimension_numbers = #tpu.dot_dimension_numbers<[1], [0], [0], [1], [0, 0, 1, 1], [], []>} : vector<8x128xf32>, vector<128x512xf32>, vector<8x512xf32> -> vector<8x512xf32>
    %79 = arith.addf %77, %78 : vector<8x512xf32>
    %80 = vector.extract_strided_slice %79 {offsets = [0, 0], sizes = [8, 128], strides = [1, 1]} : vector<8x512xf32> to vector<8x128xf32>
    %81 = arith.negf %80 : vector<8x128xf32>
    %82 = math.exp %81 : vector<8x128xf32>
    %cst_23 = arith.constant 1.000000e+00 : f32
    %83 = vector.broadcast %cst_23 : f32 to vector<8x128xf32>
    %84 = arith.addf %83, %82 : vector<8x128xf32>
    %85 = arith.divf %83, %84 : vector<8x128xf32>
    %86 = vector.extract_strided_slice %79 {offsets = [0, 128], sizes = [8, 128], strides = [1, 1]} : vector<8x512xf32> to vector<8x128xf32>
    %87 = arith.negf %86 : vector<8x128xf32>
    %88 = math.exp %87 : vector<8x128xf32>
    %cst_24 = arith.constant 1.000000e+00 : f32
    %89 = vector.broadcast %cst_24 : f32 to vector<8x128xf32>
    %90 = arith.addf %89, %88 : vector<8x128xf32>
    %91 = arith.divf %89, %90 : vector<8x128xf32>
    %92 = vector.extract_strided_slice %79 {offsets = [0, 256], sizes = [8, 128], strides = [1, 1]} : vector<8x512xf32> to vector<8x128xf32>
    %93 = math.tanh %92 : vector<8x128xf32>
    %94 = vector.extract_strided_slice %79 {offsets = [0, 384], sizes = [8, 128], strides = [1, 1]} : vector<8x512xf32> to vector<8x128xf32>
    %95 = arith.negf %94 : vector<8x128xf32>
    %96 = math.exp %95 : vector<8x128xf32>
    %cst_25 = arith.constant 1.000000e+00 : f32
    %97 = vector.broadcast %cst_25 : f32 to vector<8x128xf32>
    %98 = arith.addf %97, %96 : vector<8x128xf32>
    %99 = arith.divf %97, %98 : vector<8x128xf32>
    %100 = arith.mulf %91, %41 : vector<8x128xf32>
    %101 = arith.mulf %85, %93 : vector<8x128xf32>
    %102 = arith.addf %100, %101 : vector<8x128xf32>
    %103 = math.tanh %102 : vector<8x128xf32>
    %104 = arith.mulf %99, %103 : vector<8x128xf32>
    %cst_26 = arith.constant dense<0.000000e+00> : vector<8x512xf32>
    %105 = tpu.matmul %72, %4, %cst_26 {dimension_numbers = #tpu.dot_dimension_numbers<[1], [0], [0], [1], [0, 0, 1, 1], [], []>} : vector<8x128xf32>, vector<128x512xf32>, vector<8x512xf32> -> vector<8x512xf32>
    %cst_27 = arith.constant dense<0.000000e+00> : vector<8x512xf32>
    %106 = tpu.matmul %104, %3, %cst_27 {dimension_numbers = #tpu.dot_dimension_numbers<[1], [0], [0], [1], [0, 0, 1, 1], [], []>} : vector<8x128xf32>, vector<128x512xf32>, vector<8x512xf32> -> vector<8x512xf32>
    %107 = arith.addf %105, %106 : vector<8x512xf32>
    %108 = arith.addf %107, %10 : vector<8x512xf32>
    %109 = vector.extract_strided_slice %108 {offsets = [0, 0], sizes = [8, 128], strides = [1, 1]} : vector<8x512xf32> to vector<8x128xf32>
    %110 = arith.negf %109 : vector<8x128xf32>
    %111 = math.exp %110 : vector<8x128xf32>
    %cst_28 = arith.constant 1.000000e+00 : f32
    %112 = vector.broadcast %cst_28 : f32 to vector<8x128xf32>
    %113 = arith.addf %112, %111 : vector<8x128xf32>
    %114 = arith.divf %112, %113 : vector<8x128xf32>
    %115 = vector.extract_strided_slice %108 {offsets = [0, 128], sizes = [8, 128], strides = [1, 1]} : vector<8x512xf32> to vector<8x128xf32>
    %116 = arith.negf %115 : vector<8x128xf32>
    %117 = math.exp %116 : vector<8x128xf32>
    %cst_29 = arith.constant 1.000000e+00 : f32
    %118 = vector.broadcast %cst_29 : f32 to vector<8x128xf32>
    %119 = arith.addf %118, %117 : vector<8x128xf32>
    %120 = arith.divf %118, %119 : vector<8x128xf32>
    %121 = vector.extract_strided_slice %108 {offsets = [0, 256], sizes = [8, 128], strides = [1, 1]} : vector<8x512xf32> to vector<8x128xf32>
    %122 = math.tanh %121 : vector<8x128xf32>
    %123 = vector.extract_strided_slice %108 {offsets = [0, 384], sizes = [8, 128], strides = [1, 1]} : vector<8x512xf32> to vector<8x128xf32>
    %124 = arith.negf %123 : vector<8x128xf32>
    %125 = math.exp %124 : vector<8x128xf32>
    %cst_30 = arith.constant 1.000000e+00 : f32
    %126 = vector.broadcast %cst_30 : f32 to vector<8x128xf32>
    %127 = arith.addf %126, %125 : vector<8x128xf32>
    %128 = arith.divf %126, %127 : vector<8x128xf32>
    %129 = arith.mulf %120, %70 : vector<8x128xf32>
    %130 = arith.mulf %114, %122 : vector<8x128xf32>
    %131 = arith.addf %129, %130 : vector<8x128xf32>
    %132 = math.tanh %131 : vector<8x128xf32>
    %133 = arith.mulf %128, %132 : vector<8x128xf32>
    %134 = vector.extract_strided_slice %0 {offsets = [0, 2], sizes = [8, 1], strides = [1, 1]} : vector<8x8xf32> to vector<8x1xf32>
    %135 = vector.broadcast %134 : vector<8x1xf32> to vector<8x512xf32>
    %136 = vector.broadcast %1 : vector<1x512xf32> to vector<8x512xf32>
    %137 = arith.mulf %135, %136 : vector<8x512xf32>
    %138 = arith.addf %137, %7 : vector<8x512xf32>
    %cst_31 = arith.constant dense<0.000000e+00> : vector<8x512xf32>
    %139 = tpu.matmul %104, %2, %cst_31 {dimension_numbers = #tpu.dot_dimension_numbers<[1], [0], [0], [1], [0, 0, 1, 1], [], []>} : vector<8x128xf32>, vector<128x512xf32>, vector<8x512xf32> -> vector<8x512xf32>
    %140 = arith.addf %138, %139 : vector<8x512xf32>
    %141 = vector.extract_strided_slice %140 {offsets = [0, 0], sizes = [8, 128], strides = [1, 1]} : vector<8x512xf32> to vector<8x128xf32>
    %142 = arith.negf %141 : vector<8x128xf32>
    %143 = math.exp %142 : vector<8x128xf32>
    %cst_32 = arith.constant 1.000000e+00 : f32
    %144 = vector.broadcast %cst_32 : f32 to vector<8x128xf32>
    %145 = arith.addf %144, %143 : vector<8x128xf32>
    %146 = arith.divf %144, %145 : vector<8x128xf32>
    %147 = vector.extract_strided_slice %140 {offsets = [0, 128], sizes = [8, 128], strides = [1, 1]} : vector<8x512xf32> to vector<8x128xf32>
    %148 = arith.negf %147 : vector<8x128xf32>
    %149 = math.exp %148 : vector<8x128xf32>
    %cst_33 = arith.constant 1.000000e+00 : f32
    %150 = vector.broadcast %cst_33 : f32 to vector<8x128xf32>
    %151 = arith.addf %150, %149 : vector<8x128xf32>
    %152 = arith.divf %150, %151 : vector<8x128xf32>
    %153 = vector.extract_strided_slice %140 {offsets = [0, 256], sizes = [8, 128], strides = [1, 1]} : vector<8x512xf32> to vector<8x128xf32>
    %154 = math.tanh %153 : vector<8x128xf32>
    %155 = vector.extract_strided_slice %140 {offsets = [0, 384], sizes = [8, 128], strides = [1, 1]} : vector<8x512xf32> to vector<8x128xf32>
    %156 = arith.negf %155 : vector<8x128xf32>
    %157 = math.exp %156 : vector<8x128xf32>
    %cst_34 = arith.constant 1.000000e+00 : f32
    %158 = vector.broadcast %cst_34 : f32 to vector<8x128xf32>
    %159 = arith.addf %158, %157 : vector<8x128xf32>
    %160 = arith.divf %158, %159 : vector<8x128xf32>
    %161 = arith.mulf %152, %102 : vector<8x128xf32>
    %162 = arith.mulf %146, %154 : vector<8x128xf32>
    %163 = arith.addf %161, %162 : vector<8x128xf32>
    %164 = math.tanh %163 : vector<8x128xf32>
    %165 = arith.mulf %160, %164 : vector<8x128xf32>
    %cst_35 = arith.constant dense<0.000000e+00> : vector<8x512xf32>
    %166 = tpu.matmul %133, %4, %cst_35 {dimension_numbers = #tpu.dot_dimension_numbers<[1], [0], [0], [1], [0, 0, 1, 1], [], []>} : vector<8x128xf32>, vector<128x512xf32>, vector<8x512xf32> -> vector<8x512xf32>
    %cst_36 = arith.constant dense<0.000000e+00> : vector<8x512xf32>
    %167 = tpu.matmul %165, %3, %cst_36 {dimension_numbers = #tpu.dot_dimension_numbers<[1], [0], [0], [1], [0, 0, 1, 1], [], []>} : vector<8x128xf32>, vector<128x512xf32>, vector<8x512xf32> -> vector<8x512xf32>
    %168 = arith.addf %166, %167 : vector<8x512xf32>
    %169 = arith.addf %168, %10 : vector<8x512xf32>
    %170 = vector.extract_strided_slice %169 {offsets = [0, 0], sizes = [8, 128], strides = [1, 1]} : vector<8x512xf32> to vector<8x128xf32>
    %171 = arith.negf %170 : vector<8x128xf32>
    %172 = math.exp %171 : vector<8x128xf32>
    %cst_37 = arith.constant 1.000000e+00 : f32
    %173 = vector.broadcast %cst_37 : f32 to vector<8x128xf32>
    %174 = arith.addf %173, %172 : vector<8x128xf32>
    %175 = arith.divf %173, %174 : vector<8x128xf32>
    %176 = vector.extract_strided_slice %169 {offsets = [0, 128], sizes = [8, 128], strides = [1, 1]} : vector<8x512xf32> to vector<8x128xf32>
    %177 = arith.negf %176 : vector<8x128xf32>
    %178 = math.exp %177 : vector<8x128xf32>
    %cst_38 = arith.constant 1.000000e+00 : f32
    %179 = vector.broadcast %cst_38 : f32 to vector<8x128xf32>
    %180 = arith.addf %179, %178 : vector<8x128xf32>
    %181 = arith.divf %179, %180 : vector<8x128xf32>
    %182 = vector.extract_strided_slice %169 {offsets = [0, 256], sizes = [8, 128], strides = [1, 1]} : vector<8x512xf32> to vector<8x128xf32>
    %183 = math.tanh %182 : vector<8x128xf32>
    %184 = vector.extract_strided_slice %169 {offsets = [0, 384], sizes = [8, 128], strides = [1, 1]} : vector<8x512xf32> to vector<8x128xf32>
    %185 = arith.negf %184 : vector<8x128xf32>
    %186 = math.exp %185 : vector<8x128xf32>
    %cst_39 = arith.constant 1.000000e+00 : f32
    %187 = vector.broadcast %cst_39 : f32 to vector<8x128xf32>
    %188 = arith.addf %187, %186 : vector<8x128xf32>
    %189 = arith.divf %187, %188 : vector<8x128xf32>
    %190 = arith.mulf %181, %131 : vector<8x128xf32>
    %191 = arith.mulf %175, %183 : vector<8x128xf32>
    %192 = arith.addf %190, %191 : vector<8x128xf32>
    %193 = math.tanh %192 : vector<8x128xf32>
    %194 = arith.mulf %189, %193 : vector<8x128xf32>
    %195 = vector.extract_strided_slice %0 {offsets = [0, 3], sizes = [8, 1], strides = [1, 1]} : vector<8x8xf32> to vector<8x1xf32>
    %196 = vector.broadcast %195 : vector<8x1xf32> to vector<8x512xf32>
    %197 = vector.broadcast %1 : vector<1x512xf32> to vector<8x512xf32>
    %198 = arith.mulf %196, %197 : vector<8x512xf32>
    %199 = arith.addf %198, %7 : vector<8x512xf32>
    %cst_40 = arith.constant dense<0.000000e+00> : vector<8x512xf32>
    %200 = tpu.matmul %165, %2, %cst_40 {dimension_numbers = #tpu.dot_dimension_numbers<[1], [0], [0], [1], [0, 0, 1, 1], [], []>} : vector<8x128xf32>, vector<128x512xf32>, vector<8x512xf32> -> vector<8x512xf32>
    %201 = arith.addf %199, %200 : vector<8x512xf32>
    %202 = vector.extract_strided_slice %201 {offsets = [0, 0], sizes = [8, 128], strides = [1, 1]} : vector<8x512xf32> to vector<8x128xf32>
    %203 = arith.negf %202 : vector<8x128xf32>
    %204 = math.exp %203 : vector<8x128xf32>
    %cst_41 = arith.constant 1.000000e+00 : f32
    %205 = vector.broadcast %cst_41 : f32 to vector<8x128xf32>
    %206 = arith.addf %205, %204 : vector<8x128xf32>
    %207 = arith.divf %205, %206 : vector<8x128xf32>
    %208 = vector.extract_strided_slice %201 {offsets = [0, 128], sizes = [8, 128], strides = [1, 1]} : vector<8x512xf32> to vector<8x128xf32>
    %209 = arith.negf %208 : vector<8x128xf32>
    %210 = math.exp %209 : vector<8x128xf32>
    %cst_42 = arith.constant 1.000000e+00 : f32
    %211 = vector.broadcast %cst_42 : f32 to vector<8x128xf32>
    %212 = arith.addf %211, %210 : vector<8x128xf32>
    %213 = arith.divf %211, %212 : vector<8x128xf32>
    %214 = vector.extract_strided_slice %201 {offsets = [0, 256], sizes = [8, 128], strides = [1, 1]} : vector<8x512xf32> to vector<8x128xf32>
    %215 = math.tanh %214 : vector<8x128xf32>
    %216 = vector.extract_strided_slice %201 {offsets = [0, 384], sizes = [8, 128], strides = [1, 1]} : vector<8x512xf32> to vector<8x128xf32>
    %217 = arith.negf %216 : vector<8x128xf32>
    %218 = math.exp %217 : vector<8x128xf32>
    %cst_43 = arith.constant 1.000000e+00 : f32
    %219 = vector.broadcast %cst_43 : f32 to vector<8x128xf32>
    %220 = arith.addf %219, %218 : vector<8x128xf32>
    %221 = arith.divf %219, %220 : vector<8x128xf32>
    %222 = arith.mulf %213, %163 : vector<8x128xf32>
    %223 = arith.mulf %207, %215 : vector<8x128xf32>
    %224 = arith.addf %222, %223 : vector<8x128xf32>
    %225 = math.tanh %224 : vector<8x128xf32>
    %226 = arith.mulf %221, %225 : vector<8x128xf32>
    %cst_44 = arith.constant dense<0.000000e+00> : vector<8x512xf32>
    %227 = tpu.matmul %194, %4, %cst_44 {dimension_numbers = #tpu.dot_dimension_numbers<[1], [0], [0], [1], [0, 0, 1, 1], [], []>} : vector<8x128xf32>, vector<128x512xf32>, vector<8x512xf32> -> vector<8x512xf32>
    %cst_45 = arith.constant dense<0.000000e+00> : vector<8x512xf32>
    %228 = tpu.matmul %226, %3, %cst_45 {dimension_numbers = #tpu.dot_dimension_numbers<[1], [0], [0], [1], [0, 0, 1, 1], [], []>} : vector<8x128xf32>, vector<128x512xf32>, vector<8x512xf32> -> vector<8x512xf32>
    %229 = arith.addf %227, %228 : vector<8x512xf32>
    %230 = arith.addf %229, %10 : vector<8x512xf32>
    %231 = vector.extract_strided_slice %230 {offsets = [0, 0], sizes = [8, 128], strides = [1, 1]} : vector<8x512xf32> to vector<8x128xf32>
    %232 = arith.negf %231 : vector<8x128xf32>
    %233 = math.exp %232 : vector<8x128xf32>
    %cst_46 = arith.constant 1.000000e+00 : f32
    %234 = vector.broadcast %cst_46 : f32 to vector<8x128xf32>
    %235 = arith.addf %234, %233 : vector<8x128xf32>
    %236 = arith.divf %234, %235 : vector<8x128xf32>
    %237 = vector.extract_strided_slice %230 {offsets = [0, 128], sizes = [8, 128], strides = [1, 1]} : vector<8x512xf32> to vector<8x128xf32>
    %238 = arith.negf %237 : vector<8x128xf32>
    %239 = math.exp %238 : vector<8x128xf32>
    %cst_47 = arith.constant 1.000000e+00 : f32
    %240 = vector.broadcast %cst_47 : f32 to vector<8x128xf32>
    %241 = arith.addf %240, %239 : vector<8x128xf32>
    %242 = arith.divf %240, %241 : vector<8x128xf32>
    %243 = vector.extract_strided_slice %230 {offsets = [0, 256], sizes = [8, 128], strides = [1, 1]} : vector<8x512xf32> to vector<8x128xf32>
    %244 = math.tanh %243 : vector<8x128xf32>
    %245 = vector.extract_strided_slice %230 {offsets = [0, 384], sizes = [8, 128], strides = [1, 1]} : vector<8x512xf32> to vector<8x128xf32>
    %246 = arith.negf %245 : vector<8x128xf32>
    %247 = math.exp %246 : vector<8x128xf32>
    %cst_48 = arith.constant 1.000000e+00 : f32
    %248 = vector.broadcast %cst_48 : f32 to vector<8x128xf32>
    %249 = arith.addf %248, %247 : vector<8x128xf32>
    %250 = arith.divf %248, %249 : vector<8x128xf32>
    %251 = arith.mulf %242, %192 : vector<8x128xf32>
    %252 = arith.mulf %236, %244 : vector<8x128xf32>
    %253 = arith.addf %251, %252 : vector<8x128xf32>
    %254 = math.tanh %253 : vector<8x128xf32>
    %255 = arith.mulf %250, %254 : vector<8x128xf32>
    %256 = vector.extract_strided_slice %0 {offsets = [0, 4], sizes = [8, 1], strides = [1, 1]} : vector<8x8xf32> to vector<8x1xf32>
    %257 = vector.broadcast %256 : vector<8x1xf32> to vector<8x512xf32>
    %258 = vector.broadcast %1 : vector<1x512xf32> to vector<8x512xf32>
    %259 = arith.mulf %257, %258 : vector<8x512xf32>
    %260 = arith.addf %259, %7 : vector<8x512xf32>
    %cst_49 = arith.constant dense<0.000000e+00> : vector<8x512xf32>
    %261 = tpu.matmul %226, %2, %cst_49 {dimension_numbers = #tpu.dot_dimension_numbers<[1], [0], [0], [1], [0, 0, 1, 1], [], []>} : vector<8x128xf32>, vector<128x512xf32>, vector<8x512xf32> -> vector<8x512xf32>
    %262 = arith.addf %260, %261 : vector<8x512xf32>
    %263 = vector.extract_strided_slice %262 {offsets = [0, 0], sizes = [8, 128], strides = [1, 1]} : vector<8x512xf32> to vector<8x128xf32>
    %264 = arith.negf %263 : vector<8x128xf32>
    %265 = math.exp %264 : vector<8x128xf32>
    %cst_50 = arith.constant 1.000000e+00 : f32
    %266 = vector.broadcast %cst_50 : f32 to vector<8x128xf32>
    %267 = arith.addf %266, %265 : vector<8x128xf32>
    %268 = arith.divf %266, %267 : vector<8x128xf32>
    %269 = vector.extract_strided_slice %262 {offsets = [0, 128], sizes = [8, 128], strides = [1, 1]} : vector<8x512xf32> to vector<8x128xf32>
    %270 = arith.negf %269 : vector<8x128xf32>
    %271 = math.exp %270 : vector<8x128xf32>
    %cst_51 = arith.constant 1.000000e+00 : f32
    %272 = vector.broadcast %cst_51 : f32 to vector<8x128xf32>
    %273 = arith.addf %272, %271 : vector<8x128xf32>
    %274 = arith.divf %272, %273 : vector<8x128xf32>
    %275 = vector.extract_strided_slice %262 {offsets = [0, 256], sizes = [8, 128], strides = [1, 1]} : vector<8x512xf32> to vector<8x128xf32>
    %276 = math.tanh %275 : vector<8x128xf32>
    %277 = vector.extract_strided_slice %262 {offsets = [0, 384], sizes = [8, 128], strides = [1, 1]} : vector<8x512xf32> to vector<8x128xf32>
    %278 = arith.negf %277 : vector<8x128xf32>
    %279 = math.exp %278 : vector<8x128xf32>
    %cst_52 = arith.constant 1.000000e+00 : f32
    %280 = vector.broadcast %cst_52 : f32 to vector<8x128xf32>
    %281 = arith.addf %280, %279 : vector<8x128xf32>
    %282 = arith.divf %280, %281 : vector<8x128xf32>
    %283 = arith.mulf %274, %224 : vector<8x128xf32>
    %284 = arith.mulf %268, %276 : vector<8x128xf32>
    %285 = arith.addf %283, %284 : vector<8x128xf32>
    %286 = math.tanh %285 : vector<8x128xf32>
    %287 = arith.mulf %282, %286 : vector<8x128xf32>
    %cst_53 = arith.constant dense<0.000000e+00> : vector<8x512xf32>
    %288 = tpu.matmul %255, %4, %cst_53 {dimension_numbers = #tpu.dot_dimension_numbers<[1], [0], [0], [1], [0, 0, 1, 1], [], []>} : vector<8x128xf32>, vector<128x512xf32>, vector<8x512xf32> -> vector<8x512xf32>
    %cst_54 = arith.constant dense<0.000000e+00> : vector<8x512xf32>
    %289 = tpu.matmul %287, %3, %cst_54 {dimension_numbers = #tpu.dot_dimension_numbers<[1], [0], [0], [1], [0, 0, 1, 1], [], []>} : vector<8x128xf32>, vector<128x512xf32>, vector<8x512xf32> -> vector<8x512xf32>
    %290 = arith.addf %288, %289 : vector<8x512xf32>
    %291 = arith.addf %290, %10 : vector<8x512xf32>
    %292 = vector.extract_strided_slice %291 {offsets = [0, 0], sizes = [8, 128], strides = [1, 1]} : vector<8x512xf32> to vector<8x128xf32>
    %293 = arith.negf %292 : vector<8x128xf32>
    %294 = math.exp %293 : vector<8x128xf32>
    %cst_55 = arith.constant 1.000000e+00 : f32
    %295 = vector.broadcast %cst_55 : f32 to vector<8x128xf32>
    %296 = arith.addf %295, %294 : vector<8x128xf32>
    %297 = arith.divf %295, %296 : vector<8x128xf32>
    %298 = vector.extract_strided_slice %291 {offsets = [0, 128], sizes = [8, 128], strides = [1, 1]} : vector<8x512xf32> to vector<8x128xf32>
    %299 = arith.negf %298 : vector<8x128xf32>
    %300 = math.exp %299 : vector<8x128xf32>
    %cst_56 = arith.constant 1.000000e+00 : f32
    %301 = vector.broadcast %cst_56 : f32 to vector<8x128xf32>
    %302 = arith.addf %301, %300 : vector<8x128xf32>
    %303 = arith.divf %301, %302 : vector<8x128xf32>
    %304 = vector.extract_strided_slice %291 {offsets = [0, 256], sizes = [8, 128], strides = [1, 1]} : vector<8x512xf32> to vector<8x128xf32>
    %305 = math.tanh %304 : vector<8x128xf32>
    %306 = vector.extract_strided_slice %291 {offsets = [0, 384], sizes = [8, 128], strides = [1, 1]} : vector<8x512xf32> to vector<8x128xf32>
    %307 = arith.negf %306 : vector<8x128xf32>
    %308 = math.exp %307 : vector<8x128xf32>
    %cst_57 = arith.constant 1.000000e+00 : f32
    %309 = vector.broadcast %cst_57 : f32 to vector<8x128xf32>
    %310 = arith.addf %309, %308 : vector<8x128xf32>
    %311 = arith.divf %309, %310 : vector<8x128xf32>
    %312 = arith.mulf %303, %253 : vector<8x128xf32>
    %313 = arith.mulf %297, %305 : vector<8x128xf32>
    %314 = arith.addf %312, %313 : vector<8x128xf32>
    %315 = math.tanh %314 : vector<8x128xf32>
    %316 = arith.mulf %311, %315 : vector<8x128xf32>
    %317 = vector.extract_strided_slice %0 {offsets = [0, 5], sizes = [8, 1], strides = [1, 1]} : vector<8x8xf32> to vector<8x1xf32>
    %318 = vector.broadcast %317 : vector<8x1xf32> to vector<8x512xf32>
    %319 = vector.broadcast %1 : vector<1x512xf32> to vector<8x512xf32>
    %320 = arith.mulf %318, %319 : vector<8x512xf32>
    %321 = arith.addf %320, %7 : vector<8x512xf32>
    %cst_58 = arith.constant dense<0.000000e+00> : vector<8x512xf32>
    %322 = tpu.matmul %287, %2, %cst_58 {dimension_numbers = #tpu.dot_dimension_numbers<[1], [0], [0], [1], [0, 0, 1, 1], [], []>} : vector<8x128xf32>, vector<128x512xf32>, vector<8x512xf32> -> vector<8x512xf32>
    %323 = arith.addf %321, %322 : vector<8x512xf32>
    %324 = vector.extract_strided_slice %323 {offsets = [0, 0], sizes = [8, 128], strides = [1, 1]} : vector<8x512xf32> to vector<8x128xf32>
    %325 = arith.negf %324 : vector<8x128xf32>
    %326 = math.exp %325 : vector<8x128xf32>
    %cst_59 = arith.constant 1.000000e+00 : f32
    %327 = vector.broadcast %cst_59 : f32 to vector<8x128xf32>
    %328 = arith.addf %327, %326 : vector<8x128xf32>
    %329 = arith.divf %327, %328 : vector<8x128xf32>
    %330 = vector.extract_strided_slice %323 {offsets = [0, 128], sizes = [8, 128], strides = [1, 1]} : vector<8x512xf32> to vector<8x128xf32>
    %331 = arith.negf %330 : vector<8x128xf32>
    %332 = math.exp %331 : vector<8x128xf32>
    %cst_60 = arith.constant 1.000000e+00 : f32
    %333 = vector.broadcast %cst_60 : f32 to vector<8x128xf32>
    %334 = arith.addf %333, %332 : vector<8x128xf32>
    %335 = arith.divf %333, %334 : vector<8x128xf32>
    %336 = vector.extract_strided_slice %323 {offsets = [0, 256], sizes = [8, 128], strides = [1, 1]} : vector<8x512xf32> to vector<8x128xf32>
    %337 = math.tanh %336 : vector<8x128xf32>
    %338 = vector.extract_strided_slice %323 {offsets = [0, 384], sizes = [8, 128], strides = [1, 1]} : vector<8x512xf32> to vector<8x128xf32>
    %339 = arith.negf %338 : vector<8x128xf32>
    %340 = math.exp %339 : vector<8x128xf32>
    %cst_61 = arith.constant 1.000000e+00 : f32
    %341 = vector.broadcast %cst_61 : f32 to vector<8x128xf32>
    %342 = arith.addf %341, %340 : vector<8x128xf32>
    %343 = arith.divf %341, %342 : vector<8x128xf32>
    %344 = arith.mulf %335, %285 : vector<8x128xf32>
    %345 = arith.mulf %329, %337 : vector<8x128xf32>
    %346 = arith.addf %344, %345 : vector<8x128xf32>
    %347 = math.tanh %346 : vector<8x128xf32>
    %348 = arith.mulf %343, %347 : vector<8x128xf32>
    %cst_62 = arith.constant dense<0.000000e+00> : vector<8x512xf32>
    %349 = tpu.matmul %316, %4, %cst_62 {dimension_numbers = #tpu.dot_dimension_numbers<[1], [0], [0], [1], [0, 0, 1, 1], [], []>} : vector<8x128xf32>, vector<128x512xf32>, vector<8x512xf32> -> vector<8x512xf32>
    %cst_63 = arith.constant dense<0.000000e+00> : vector<8x512xf32>
    %350 = tpu.matmul %348, %3, %cst_63 {dimension_numbers = #tpu.dot_dimension_numbers<[1], [0], [0], [1], [0, 0, 1, 1], [], []>} : vector<8x128xf32>, vector<128x512xf32>, vector<8x512xf32> -> vector<8x512xf32>
    %351 = arith.addf %349, %350 : vector<8x512xf32>
    %352 = arith.addf %351, %10 : vector<8x512xf32>
    %353 = vector.extract_strided_slice %352 {offsets = [0, 0], sizes = [8, 128], strides = [1, 1]} : vector<8x512xf32> to vector<8x128xf32>
    %354 = arith.negf %353 : vector<8x128xf32>
    %355 = math.exp %354 : vector<8x128xf32>
    %cst_64 = arith.constant 1.000000e+00 : f32
    %356 = vector.broadcast %cst_64 : f32 to vector<8x128xf32>
    %357 = arith.addf %356, %355 : vector<8x128xf32>
    %358 = arith.divf %356, %357 : vector<8x128xf32>
    %359 = vector.extract_strided_slice %352 {offsets = [0, 128], sizes = [8, 128], strides = [1, 1]} : vector<8x512xf32> to vector<8x128xf32>
    %360 = arith.negf %359 : vector<8x128xf32>
    %361 = math.exp %360 : vector<8x128xf32>
    %cst_65 = arith.constant 1.000000e+00 : f32
    %362 = vector.broadcast %cst_65 : f32 to vector<8x128xf32>
    %363 = arith.addf %362, %361 : vector<8x128xf32>
    %364 = arith.divf %362, %363 : vector<8x128xf32>
    %365 = vector.extract_strided_slice %352 {offsets = [0, 256], sizes = [8, 128], strides = [1, 1]} : vector<8x512xf32> to vector<8x128xf32>
    %366 = math.tanh %365 : vector<8x128xf32>
    %367 = vector.extract_strided_slice %352 {offsets = [0, 384], sizes = [8, 128], strides = [1, 1]} : vector<8x512xf32> to vector<8x128xf32>
    %368 = arith.negf %367 : vector<8x128xf32>
    %369 = math.exp %368 : vector<8x128xf32>
    %cst_66 = arith.constant 1.000000e+00 : f32
    %370 = vector.broadcast %cst_66 : f32 to vector<8x128xf32>
    %371 = arith.addf %370, %369 : vector<8x128xf32>
    %372 = arith.divf %370, %371 : vector<8x128xf32>
    %373 = arith.mulf %364, %314 : vector<8x128xf32>
    %374 = arith.mulf %358, %366 : vector<8x128xf32>
    %375 = arith.addf %373, %374 : vector<8x128xf32>
    %376 = math.tanh %375 : vector<8x128xf32>
    %377 = arith.mulf %372, %376 : vector<8x128xf32>
    %378 = vector.extract_strided_slice %0 {offsets = [0, 6], sizes = [8, 1], strides = [1, 1]} : vector<8x8xf32> to vector<8x1xf32>
    %379 = vector.broadcast %378 : vector<8x1xf32> to vector<8x512xf32>
    %380 = vector.broadcast %1 : vector<1x512xf32> to vector<8x512xf32>
    %381 = arith.mulf %379, %380 : vector<8x512xf32>
    %382 = arith.addf %381, %7 : vector<8x512xf32>
    %cst_67 = arith.constant dense<0.000000e+00> : vector<8x512xf32>
    %383 = tpu.matmul %348, %2, %cst_67 {dimension_numbers = #tpu.dot_dimension_numbers<[1], [0], [0], [1], [0, 0, 1, 1], [], []>} : vector<8x128xf32>, vector<128x512xf32>, vector<8x512xf32> -> vector<8x512xf32>
    %384 = arith.addf %382, %383 : vector<8x512xf32>
    %385 = vector.extract_strided_slice %384 {offsets = [0, 0], sizes = [8, 128], strides = [1, 1]} : vector<8x512xf32> to vector<8x128xf32>
    %386 = arith.negf %385 : vector<8x128xf32>
    %387 = math.exp %386 : vector<8x128xf32>
    %cst_68 = arith.constant 1.000000e+00 : f32
    %388 = vector.broadcast %cst_68 : f32 to vector<8x128xf32>
    %389 = arith.addf %388, %387 : vector<8x128xf32>
    %390 = arith.divf %388, %389 : vector<8x128xf32>
    %391 = vector.extract_strided_slice %384 {offsets = [0, 128], sizes = [8, 128], strides = [1, 1]} : vector<8x512xf32> to vector<8x128xf32>
    %392 = arith.negf %391 : vector<8x128xf32>
    %393 = math.exp %392 : vector<8x128xf32>
    %cst_69 = arith.constant 1.000000e+00 : f32
    %394 = vector.broadcast %cst_69 : f32 to vector<8x128xf32>
    %395 = arith.addf %394, %393 : vector<8x128xf32>
    %396 = arith.divf %394, %395 : vector<8x128xf32>
    %397 = vector.extract_strided_slice %384 {offsets = [0, 256], sizes = [8, 128], strides = [1, 1]} : vector<8x512xf32> to vector<8x128xf32>
    %398 = math.tanh %397 : vector<8x128xf32>
    %399 = vector.extract_strided_slice %384 {offsets = [0, 384], sizes = [8, 128], strides = [1, 1]} : vector<8x512xf32> to vector<8x128xf32>
    %400 = arith.negf %399 : vector<8x128xf32>
    %401 = math.exp %400 : vector<8x128xf32>
    %cst_70 = arith.constant 1.000000e+00 : f32
    %402 = vector.broadcast %cst_70 : f32 to vector<8x128xf32>
    %403 = arith.addf %402, %401 : vector<8x128xf32>
    %404 = arith.divf %402, %403 : vector<8x128xf32>
    %405 = arith.mulf %396, %346 : vector<8x128xf32>
    %406 = arith.mulf %390, %398 : vector<8x128xf32>
    %407 = arith.addf %405, %406 : vector<8x128xf32>
    %408 = math.tanh %407 : vector<8x128xf32>
    %409 = arith.mulf %404, %408 : vector<8x128xf32>
    %cst_71 = arith.constant dense<0.000000e+00> : vector<8x512xf32>
    %410 = tpu.matmul %377, %4, %cst_71 {dimension_numbers = #tpu.dot_dimension_numbers<[1], [0], [0], [1], [0, 0, 1, 1], [], []>} : vector<8x128xf32>, vector<128x512xf32>, vector<8x512xf32> -> vector<8x512xf32>
    %cst_72 = arith.constant dense<0.000000e+00> : vector<8x512xf32>
    %411 = tpu.matmul %409, %3, %cst_72 {dimension_numbers = #tpu.dot_dimension_numbers<[1], [0], [0], [1], [0, 0, 1, 1], [], []>} : vector<8x128xf32>, vector<128x512xf32>, vector<8x512xf32> -> vector<8x512xf32>
    %412 = arith.addf %410, %411 : vector<8x512xf32>
    %413 = arith.addf %412, %10 : vector<8x512xf32>
    %414 = vector.extract_strided_slice %413 {offsets = [0, 0], sizes = [8, 128], strides = [1, 1]} : vector<8x512xf32> to vector<8x128xf32>
    %415 = arith.negf %414 : vector<8x128xf32>
    %416 = math.exp %415 : vector<8x128xf32>
    %cst_73 = arith.constant 1.000000e+00 : f32
    %417 = vector.broadcast %cst_73 : f32 to vector<8x128xf32>
    %418 = arith.addf %417, %416 : vector<8x128xf32>
    %419 = arith.divf %417, %418 : vector<8x128xf32>
    %420 = vector.extract_strided_slice %413 {offsets = [0, 128], sizes = [8, 128], strides = [1, 1]} : vector<8x512xf32> to vector<8x128xf32>
    %421 = arith.negf %420 : vector<8x128xf32>
    %422 = math.exp %421 : vector<8x128xf32>
    %cst_74 = arith.constant 1.000000e+00 : f32
    %423 = vector.broadcast %cst_74 : f32 to vector<8x128xf32>
    %424 = arith.addf %423, %422 : vector<8x128xf32>
    %425 = arith.divf %423, %424 : vector<8x128xf32>
    %426 = vector.extract_strided_slice %413 {offsets = [0, 256], sizes = [8, 128], strides = [1, 1]} : vector<8x512xf32> to vector<8x128xf32>
    %427 = math.tanh %426 : vector<8x128xf32>
    %428 = vector.extract_strided_slice %413 {offsets = [0, 384], sizes = [8, 128], strides = [1, 1]} : vector<8x512xf32> to vector<8x128xf32>
    %429 = arith.negf %428 : vector<8x128xf32>
    %430 = math.exp %429 : vector<8x128xf32>
    %cst_75 = arith.constant 1.000000e+00 : f32
    %431 = vector.broadcast %cst_75 : f32 to vector<8x128xf32>
    %432 = arith.addf %431, %430 : vector<8x128xf32>
    %433 = arith.divf %431, %432 : vector<8x128xf32>
    %434 = arith.mulf %425, %375 : vector<8x128xf32>
    %435 = arith.mulf %419, %427 : vector<8x128xf32>
    %436 = arith.addf %434, %435 : vector<8x128xf32>
    %437 = math.tanh %436 : vector<8x128xf32>
    %438 = arith.mulf %433, %437 : vector<8x128xf32>
    %439 = vector.extract_strided_slice %0 {offsets = [0, 7], sizes = [8, 1], strides = [1, 1]} : vector<8x8xf32> to vector<8x1xf32>
    %440 = vector.broadcast %439 : vector<8x1xf32> to vector<8x512xf32>
    %441 = vector.broadcast %1 : vector<1x512xf32> to vector<8x512xf32>
    %442 = arith.mulf %440, %441 : vector<8x512xf32>
    %443 = arith.addf %442, %7 : vector<8x512xf32>
    %cst_76 = arith.constant dense<0.000000e+00> : vector<8x512xf32>
    %444 = tpu.matmul %409, %2, %cst_76 {dimension_numbers = #tpu.dot_dimension_numbers<[1], [0], [0], [1], [0, 0, 1, 1], [], []>} : vector<8x128xf32>, vector<128x512xf32>, vector<8x512xf32> -> vector<8x512xf32>
    %445 = arith.addf %443, %444 : vector<8x512xf32>
    %446 = vector.extract_strided_slice %445 {offsets = [0, 0], sizes = [8, 128], strides = [1, 1]} : vector<8x512xf32> to vector<8x128xf32>
    %447 = arith.negf %446 : vector<8x128xf32>
    %448 = math.exp %447 : vector<8x128xf32>
    %cst_77 = arith.constant 1.000000e+00 : f32
    %449 = vector.broadcast %cst_77 : f32 to vector<8x128xf32>
    %450 = arith.addf %449, %448 : vector<8x128xf32>
    %451 = arith.divf %449, %450 : vector<8x128xf32>
    %452 = vector.extract_strided_slice %445 {offsets = [0, 128], sizes = [8, 128], strides = [1, 1]} : vector<8x512xf32> to vector<8x128xf32>
    %453 = arith.negf %452 : vector<8x128xf32>
    %454 = math.exp %453 : vector<8x128xf32>
    %cst_78 = arith.constant 1.000000e+00 : f32
    %455 = vector.broadcast %cst_78 : f32 to vector<8x128xf32>
    %456 = arith.addf %455, %454 : vector<8x128xf32>
    %457 = arith.divf %455, %456 : vector<8x128xf32>
    %458 = vector.extract_strided_slice %445 {offsets = [0, 256], sizes = [8, 128], strides = [1, 1]} : vector<8x512xf32> to vector<8x128xf32>
    %459 = math.tanh %458 : vector<8x128xf32>
    %460 = vector.extract_strided_slice %445 {offsets = [0, 384], sizes = [8, 128], strides = [1, 1]} : vector<8x512xf32> to vector<8x128xf32>
    %461 = arith.negf %460 : vector<8x128xf32>
    %462 = math.exp %461 : vector<8x128xf32>
    %cst_79 = arith.constant 1.000000e+00 : f32
    %463 = vector.broadcast %cst_79 : f32 to vector<8x128xf32>
    %464 = arith.addf %463, %462 : vector<8x128xf32>
    %465 = arith.divf %463, %464 : vector<8x128xf32>
    %466 = arith.mulf %457, %407 : vector<8x128xf32>
    %467 = arith.mulf %451, %459 : vector<8x128xf32>
    %468 = arith.addf %466, %467 : vector<8x128xf32>
    %469 = math.tanh %468 : vector<8x128xf32>
    %470 = arith.mulf %465, %469 : vector<8x128xf32>
    %cst_80 = arith.constant dense<0.000000e+00> : vector<8x512xf32>
    %471 = tpu.matmul %438, %4, %cst_80 {dimension_numbers = #tpu.dot_dimension_numbers<[1], [0], [0], [1], [0, 0, 1, 1], [], []>} : vector<8x128xf32>, vector<128x512xf32>, vector<8x512xf32> -> vector<8x512xf32>
    %cst_81 = arith.constant dense<0.000000e+00> : vector<8x512xf32>
    %472 = tpu.matmul %470, %3, %cst_81 {dimension_numbers = #tpu.dot_dimension_numbers<[1], [0], [0], [1], [0, 0, 1, 1], [], []>} : vector<8x128xf32>, vector<128x512xf32>, vector<8x512xf32> -> vector<8x512xf32>
    %473 = arith.addf %471, %472 : vector<8x512xf32>
    %474 = arith.addf %473, %10 : vector<8x512xf32>
    %475 = vector.extract_strided_slice %474 {offsets = [0, 0], sizes = [8, 128], strides = [1, 1]} : vector<8x512xf32> to vector<8x128xf32>
    %476 = arith.negf %475 : vector<8x128xf32>
    %477 = math.exp %476 : vector<8x128xf32>
    %cst_82 = arith.constant 1.000000e+00 : f32
    %478 = vector.broadcast %cst_82 : f32 to vector<8x128xf32>
    %479 = arith.addf %478, %477 : vector<8x128xf32>
    %480 = arith.divf %478, %479 : vector<8x128xf32>
    %481 = vector.extract_strided_slice %474 {offsets = [0, 128], sizes = [8, 128], strides = [1, 1]} : vector<8x512xf32> to vector<8x128xf32>
    %482 = arith.negf %481 : vector<8x128xf32>
    %483 = math.exp %482 : vector<8x128xf32>
    %cst_83 = arith.constant 1.000000e+00 : f32
    %484 = vector.broadcast %cst_83 : f32 to vector<8x128xf32>
    %485 = arith.addf %484, %483 : vector<8x128xf32>
    %486 = arith.divf %484, %485 : vector<8x128xf32>
    %487 = vector.extract_strided_slice %474 {offsets = [0, 256], sizes = [8, 128], strides = [1, 1]} : vector<8x512xf32> to vector<8x128xf32>
    %488 = math.tanh %487 : vector<8x128xf32>
    %489 = vector.extract_strided_slice %474 {offsets = [0, 384], sizes = [8, 128], strides = [1, 1]} : vector<8x512xf32> to vector<8x128xf32>
    %490 = arith.negf %489 : vector<8x128xf32>
    %491 = math.exp %490 : vector<8x128xf32>
    %cst_84 = arith.constant 1.000000e+00 : f32
    %492 = vector.broadcast %cst_84 : f32 to vector<8x128xf32>
    %493 = arith.addf %492, %491 : vector<8x128xf32>
    %494 = arith.divf %492, %493 : vector<8x128xf32>
    %495 = arith.mulf %486, %436 : vector<8x128xf32>
    %496 = arith.mulf %480, %488 : vector<8x128xf32>
    %497 = arith.addf %495, %496 : vector<8x128xf32>
    %498 = math.tanh %497 : vector<8x128xf32>
    %499 = arith.mulf %494, %498 : vector<8x128xf32>
    %c0_85 = arith.constant 0 : index
    %c0_86 = arith.constant 0 : index
    %500 = vector.load %arg8[%c0_85, %c0_86] : memref<1x128xf32, #tpu.memory_space<vmem>>, vector<1x128xf32>
    %501 = vector.broadcast %500 : vector<1x128xf32> to vector<8x128xf32>
    %502 = arith.mulf %499, %501 : vector<8x128xf32>
    %cst_87 = arith.constant dense<0.000000e+00> : vector<8xf32>
    %503 = vector.multi_reduction <add>, %502, %cst_87 [1] : vector<8x128xf32> to vector<8xf32>
    %504 = vector.shape_cast %503 : vector<8xf32> to vector<8x1xf32>
    %c0_88 = arith.constant 0 : index
    %c0_89 = arith.constant 0 : index
    %505 = vector.load %arg9[%c0_88, %c0_89] : memref<1x1xf32, #tpu.memory_space<vmem>>, vector<1x1xf32>
    %506 = vector.broadcast %505 : vector<1x1xf32> to vector<8x1xf32>
    %507 = arith.addf %504, %506 : vector<8x1xf32>
    %c0_90 = arith.constant 0 : index
    %c0_91 = arith.constant 0 : index
    %508 = vector.load %arg10[%c0_90, %c0_91] : memref<8x1xf32, #tpu.memory_space<vmem>>, vector<8x1xf32>
    tpu.vector_store %arg10[%c0_90, %c0_91], %507 {strides = array<i32>} : memref<8x1xf32, #tpu.memory_space<vmem>>, vector<8x1xf32>,
    return
  }
  func.func @transform_0(%arg0: i32) -> (i32, i32) {
    %c0_i32 = arith.constant 0 : i32
    %c0_i32_0 = arith.constant 0 : i32
    return %arg0, %c0_i32 : i32, i32
  }
  func.func @transform_1(%arg0: i32) -> (i32, i32) {
    %c0_i32 = arith.constant 0 : i32
    %c0_i32_0 = arith.constant 0 : i32
    %c0_i32_1 = arith.constant 0 : i32
    return %c0_i32, %c0_i32_0 : i32, i32
  }
  func.func @transform_2(%arg0: i32) -> (i32, i32) {
    %c0_i32 = arith.constant 0 : i32
    %c0_i32_0 = arith.constant 0 : i32
    %c0_i32_1 = arith.constant 0 : i32
    return %c0_i32, %c0_i32_0 : i32, i32
  }
  func.func @transform_3(%arg0: i32) -> (i32, i32) {
    %c0_i32 = arith.constant 0 : i32
    %c0_i32_0 = arith.constant 0 : i32
    %c0_i32_1 = arith.constant 0 : i32
    return %c0_i32, %c0_i32_0 : i32, i32
  }
  func.func @transform_4(%arg0: i32) -> (i32, i32) {
    %c0_i32 = arith.constant 0 : i32
    %c0_i32_0 = arith.constant 0 : i32
    %c0_i32_1 = arith.constant 0 : i32
    return %c0_i32, %c0_i32_0 : i32, i32
  }
  func.func @transform_5(%arg0: i32) -> (i32, i32) {
    %c0_i32 = arith.constant 0 : i32
    %c0_i32_0 = arith.constant 0 : i32
    %c0_i32_1 = arith.constant 0 : i32
    return %c0_i32, %c0_i32_0 : i32, i32
  }
  func.func @transform_6(%arg0: i32) -> (i32, i32) {
    %c0_i32 = arith.constant 0 : i32
    %c0_i32_0 = arith.constant 0 : i32
    %c0_i32_1 = arith.constant 0 : i32
    return %c0_i32, %c0_i32_0 : i32, i32
  }
  func.func @transform_7(%arg0: i32) -> (i32, i32) {
    %c0_i32 = arith.constant 0 : i32
    %c0_i32_0 = arith.constant 0 : i32
    %c0_i32_1 = arith.constant 0 : i32
    return %c0_i32, %c0_i32_0 : i32, i32
  }
  func.func @transform_8(%arg0: i32) -> (i32, i32) {
    %c0_i32 = arith.constant 0 : i32
    %c0_i32_0 = arith.constant 0 : i32
    %c0_i32_1 = arith.constant 0 : i32
    return %c0_i32, %c0_i32_0 : i32, i32
  }
  func.func @transform_9(%arg0: i32) -> (i32, i32) {
    %c0_i32 = arith.constant 0 : i32
    %c0_i32_0 = arith.constant 0 : i32
    return %arg0, %c0_i32 : i32, i32
  }
}

</mosaic_0001>

<bundles_post_ra>
// kernel: tpu_custom_call.1
= control target key start
LH: loop header
LB: loop body
LE: loop exit
PB: predicated region body
PF: predicated region fallthrough
CT: control target
= control target key end

     0   :  { %s8582_s0 = inlined_call_operand.hbm [shape: f32[8,8], index: 0, kind: input, shape index: {}]   ;;  %s8583_s1 = inlined_call_operand.hbm [shape: f32[1,512], index: 1, kind: input, shape index: {}]   ;;  %s8584_s2 = inlined_call_operand.hbm [shape: f32[128,512], index: 2, kind: input, shape index: {}]   ;;  %s8585_s3 = inlined_call_operand.vmem [shape: f32[1,512], index: 3, kind: input, shape index: {}]   ;;  %s8586_s4 = inlined_call_operand.hbm [shape: f32[128,512], index: 4, kind: input, shape index: {}]   ;;  %s8587_s5 = inlined_call_operand.hbm [shape: f32[128,512], index: 5, kind: input, shape index: {}]   ;;  %s8588_s6 = inlined_call_operand.hbm [shape: f32[1,512], index: 6, kind: input, shape index: {}]   ;;  %s8589_s7 = inlined_call_operand.vmem [shape: f32[1,128], index: 7, kind: input, shape index: {}]   ;;  %s8590_s8 = inlined_call_operand.<no memory space> [shape: f32[1,1], index: 8, kind: input, shape index: {}]   ;;  %s8591_s9 = inlined_call_operand.vmem [shape: f32[8,1], index: 9, kind: output, shape index: {}]  }
   0x1   :  { %v14_v0 = vstv %s8590_s8 }
   0x2   :  { %15 = vst [vmem:[#allocation2] sm:$0x1] %v14_v0 }
   0x3   :  { %16 = vsyncpa [#allocation4], 0 }
   0x4   :  { %17 = vsyncpa [#allocation6], 0 }
   0x5   :  { %18 = vsyncpa [#allocation9], 0  ;;  %s36_s13 = sshll.u32 %s8583_s1, 4  ;;  %s37_s13 = int_to_ptr.hbm [resolvable:$true] %s36_s13 }
   0x6   :  { %19 = vsyncpa [#allocation12], 0  ;;  %s4519_s14 = smov [#allocation5]   ;;  %s61_s18 = sshll.u32 %s8586_s4, 4  ;;  %s62_s18 = int_to_ptr.hbm [resolvable:$true] %s61_s18 }
   0x7   :  { %s38_s15 = sshll.u32 %s4519_s14, 4  ;;  %s4520_s8 = smov [#allocation8]   ;;  %s39_s15 = int_to_ptr.vmem [resolvable:$true] %s38_s15 }
   0x8   :  { %41 = dma.hbm_to_vmem [thread:$0]  %s37_s13, 64, %s39_s15, [#allocation6]  }
   0x9   :  { %s63_s19 = sshll.u32 %s4520_s8, 4  ;;  %s25_s22 = sshll.u32 %s8582_s0, 4  ;;  %s64_s19 = int_to_ptr.vmem [resolvable:$true] %s63_s19  ;;  %s26_s22 = int_to_ptr.hbm [resolvable:$true] %s25_s22 }
   0xa   :  { %s4521_s1 = smov 512   ;;  %s4522_s23 = smov 32  }
   0xb   :  { %69 = dma.hbm_to_vmem [thread:$0]  %s62_s18, 8192, %s64_s19, [#allocation9], %s4521_s1, %s4521_s1, %s4522_s23  }
   0xc   :  { %s46_s26 = sshll.u32 %s8584_s2, 4  ;;  %s4523_s27 = smov [#allocation3]   ;;  %s47_s26 = int_to_ptr.hbm [resolvable:$true] %s46_s26 }
   0xd   :  { %s27_s28 = sshll.u32 %s4523_s27, 4  ;;  %s4524_s4 = smov [#allocation7]   ;;  %s28_s28 = int_to_ptr.vmem [resolvable:$true] %s27_s28 }
   0xe   :  { %30 = dma.hbm_to_vmem [thread:$0]  %s26_s22, 128, %s28_s28, [#allocation4]  }
   0xf   :  { %s48_s29 = sshll.u32 %s4524_s4, 4  ;;  %s74_s0 = sshll.u32 %s8587_s5, 4  ;;  %s49_s29 = int_to_ptr.vmem [resolvable:$true] %s48_s29  ;;  %s75_s0 = int_to_ptr.hbm [resolvable:$true] %s74_s0 }
  0x10   :  { %54 = dma.hbm_to_vmem [thread:$0]  %s47_s26, 8192, %s49_s29, [#allocation6], %s4521_s1, %s4521_s1, %s4522_s23  }
  0x11   :  { %s88_s13 = sshll.u32 %s8588_s6, 4  ;;  %s4525_s14 = smov [#allocation10]   ;;  %s89_s13 = int_to_ptr.hbm [resolvable:$true] %s88_s13 }
  0x12   :  { %s76_s2 = sshll.u32 %s4525_s14, 4  ;;  %s4526_s15 = smov [#allocation11]   ;;  %s77_s2 = int_to_ptr.vmem [resolvable:$true] %s76_s2 }
  0x13   :  { %82 = dma.hbm_to_vmem [thread:$0]  %s75_s0, 8192, %s77_s2, [#allocation9], %s4521_s1, %s4521_s1, %s4522_s23  }
  0x14   :  { %s90_s16 = sshll.u32 %s4526_s15, 4  ;;  %s91_s16 = int_to_ptr.vmem [resolvable:$true] %s90_s16 }
  0x15   :  { %93 = dma.hbm_to_vmem [thread:$0]  %s89_s13, 64, %s91_s16, [#allocation12]  }
  0x16   :  { %4511 = dma.done.wait [#allocation4], 128  }
  0x17   :  { %4512 = vsyncadd [#allocation4], 4294967168 }
  0x18   :  { %4513 = dma.done.wait [#allocation6], 8256  }
  0x19   :  { %4514 = vsyncadd [#allocation6], 4294959040 }
  0x1a   :  { %4515 = dma.done.wait [#allocation9], 16384  }
  0x1b   :  { %4516 = vsyncadd [#allocation9], 4294950912 }
  0x1c   :  { %4517 = dma.done.wait [#allocation12], 64  }
  0x1d   :  { %4518 = vsyncadd [#allocation12], 4294967232  ;;  %v4607_v1 = vld [vmem:[#allocation7 + $0x1e0] sm:$0xff]  ;;  %v4609_v2 = vld [vmem:[#allocation7 + $0x1e8] sm:$0xff] }
  0x1e   :  { %v4611_v3 = vld [vmem:[#allocation7 + $0x1f0] sm:$0xff]  ;;  %358 = vmatpush.msra.mxu0 %v4607_v1  ;;  %378 = vmatpush.msra.mxu1 %v4609_v2  ;;  %v4615_v4 = vld [vmem:[#allocation7 + $0x1f8] sm:$0xff]  ;;  %v4617_v5 = vld [vmem:[#allocation7 + $0x1c0] sm:$0xff] }
  0x1f   :  { %v4619_v6 = vld [vmem:[#allocation7 + $0x1c8] sm:$0xff]  ;;  %398 = vmatpush.msra.mxu2 %v4611_v3  ;;  %418 = vmatpush.msra.mxu3 %v4615_v4  ;;  %v4623_v7 = vld [vmem:[#allocation7 + $0x1d0] sm:$0xff]  ;;  %v4625_v8 = vld [vmem:[#allocation7 + $0x1d8] sm:$0xff] }
  0x20   :  { %v4627_v9 = vld [vmem:[#allocation7 + $0x1a0] sm:$0xff]  ;;  %359 = vmatpush.msra.mxu0 %v4617_v5  ;;  %379 = vmatpush.msra.mxu1 %v4619_v6  ;;  %v4631_v10 = vld [vmem:[#allocation7 + $0x1a8] sm:$0xff]  ;;  %v4633_v11 = vld [vmem:[#allocation7 + $0x1b0] sm:$0xff] }
  0x21   :  { %v4635_v12 = vld [vmem:[#allocation7 + $0x1b8] sm:$0xff]  ;;  %399 = vmatpush.msra.mxu2 %v4623_v7  ;;  %419 = vmatpush.msra.mxu3 %v4625_v8  ;;  %v4639_v13 = vld [vmem:[#allocation7 + $0x180] sm:$0xff]  ;;  %v4641_v14 = vld [vmem:[#allocation7 + $0x188] sm:$0xff] }
  0x22   :  { %360 = vmatpush.msra.mxu0 %v4627_v9  ;;  %380 = vmatpush.msra.mxu1 %v4631_v10  ;;  %v4645_v15 = vld [vmem:[#allocation7 + $0x190] sm:$0xff]  ;;  %v4647_v16 = vld [vmem:[#allocation7 + $0x198] sm:$0xff]  ;;  %v4651_v17 = vld [vmem:[#allocation7 + $0x160] sm:$0xff] }
  0x23   :  { %400 = vmatpush.msra.mxu2 %v4633_v11  ;;  %420 = vmatpush.msra.mxu3 %v4635_v12  ;;  %v4653_v18 = vld [vmem:[#allocation7 + $0x168] sm:$0xff]  ;;  %v4657_v19 = vld [vmem:[#allocation7 + $0x170] sm:$0xff]  ;;  %v4659_v20 = vld [vmem:[#allocation7 + $0x178] sm:$0xff] }
  0x24   :  { %361 = vmatpush.msra.mxu0 %v4639_v13  ;;  %381 = vmatpush.msra.mxu1 %v4641_v14  ;;  %v4663_v21 = vld [vmem:[#allocation7 + $0x140] sm:$0xff]  ;;  %v4665_v22 = vld [vmem:[#allocation7 + $0x148] sm:$0xff]  ;;  %v4669_v23 = vld [vmem:[#allocation7 + $0x150] sm:$0xff] }
  0x25   :  { %401 = vmatpush.msra.mxu2 %v4645_v15  ;;  %421 = vmatpush.msra.mxu3 %v4647_v16  ;;  %v4671_v24 = vld [vmem:[#allocation7 + $0x158] sm:$0xff]  ;;  %v4675_v25 = vld [vmem:[#allocation7 + $0x120] sm:$0xff]  ;;  %v4677_v26 = vld [vmem:[#allocation7 + $0x128] sm:$0xff] }
  0x26   :  { %362 = vmatpush.msra.mxu0 %v4651_v17  ;;  %382 = vmatpush.msra.mxu1 %v4653_v18  ;;  %v4681_v27 = vld [vmem:[#allocation7 + $0x130] sm:$0xff]  ;;  %v4683_v28 = vld [vmem:[#allocation7 + $0x138] sm:$0xff]  ;;  %v4687_v29 = vld [vmem:[#allocation7 + $0x100] sm:$0xff] }
  0x27   :  { %402 = vmatpush.msra.mxu2 %v4657_v19  ;;  %422 = vmatpush.msra.mxu3 %v4659_v20  ;;  %v4689_v30 = vld [vmem:[#allocation7 + $0x108] sm:$0xff]  ;;  %v4693_v31 = vld [vmem:[#allocation7 + $0x110] sm:$0xff]  ;;  %v4695_v32 = vld [vmem:[#allocation7 + $0x118] sm:$0xff] }
  0x28   :  { %363 = vmatpush.msra.mxu0 %v4663_v21  ;;  %383 = vmatpush.msra.mxu1 %v4665_v22  ;;  %v4699_v33 = vld [vmem:[#allocation7 + $0xe0] sm:$0xff]  ;;  %v4701_v34 = vld [vmem:[#allocation7 + $0xe8] sm:$0xff]  ;;  %v4705_v35 = vld [vmem:[#allocation7 + $0xf0] sm:$0xff] }
  0x29   :  { %403 = vmatpush.msra.mxu2 %v4669_v23  ;;  %423 = vmatpush.msra.mxu3 %v4671_v24  ;;  %v4707_v36 = vld [vmem:[#allocation7 + $0xf8] sm:$0xff]  ;;  %v4711_v37 = vld [vmem:[#allocation7 + $0xc0] sm:$0xff]  ;;  %v4713_v38 = vld [vmem:[#allocation7 + $0xc8] sm:$0xff] }
  0x2a   :  { %364 = vmatpush.msra.mxu0 %v4675_v25  ;;  %384 = vmatpush.msra.mxu1 %v4677_v26  ;;  %v4717_v39 = vld [vmem:[#allocation7 + $0xd0] sm:$0xff]  ;;  %v4719_v40 = vld [vmem:[#allocation7 + $0xd8] sm:$0xff]  ;;  %v4723_v41 = vld [vmem:[#allocation7 + $0xa0] sm:$0xff] }
  0x2b   :  { %404 = vmatpush.msra.mxu2 %v4681_v27  ;;  %424 = vmatpush.msra.mxu3 %v4683_v28  ;;  %9300 = vst [vmem:[#allocation17_spill] sm:$0xff] %v4717_v39  ;;  %v4725_v42 = vld [vmem:[#allocation7 + $0xa8] sm:$0xff]  ;;  %v4729_v43 = vld [vmem:[#allocation7 + $0xb0] sm:$0xff]  ;;  %v4731_v44 = vld [vmem:[#allocation7 + $0xb8] sm:$0xff] }
  0x2c   :  { %365 = vmatpush.msra.mxu0 %v4687_v29  ;;  %385 = vmatpush.msra.mxu1 %v4689_v30  ;;  %9301 = vst [vmem:[#allocation18_spill] sm:$0xff] %v4719_v40  ;;  %v4735_v45 = vld [vmem:[#allocation7 + $0x80] sm:$0xff]  ;;  %v4737_v46 = vld [vmem:[#allocation7 + $0x88] sm:$0xff]  ;;  %v4741_v47 = vld [vmem:[#allocation7 + $0x90] sm:$0xff] }
  0x2d   :  { %405 = vmatpush.msra.mxu2 %v4693_v31  ;;  %425 = vmatpush.msra.mxu3 %v4695_v32  ;;  %9302 = vst [vmem:[#allocation19_spill] sm:$0xff] %v4723_v41  ;;  %v4743_v48 = vld [vmem:[#allocation7 + $0x98] sm:$0xff]  ;;  %v4747_v49 = vld [vmem:[#allocation7 + $0x60] sm:$0xff]  ;;  %v4749_v50 = vld [vmem:[#allocation7 + $0x68] sm:$0xff] }
  0x2e   :  { %366 = vmatpush.msra.mxu0 %v4699_v33  ;;  %386 = vmatpush.msra.mxu1 %v4701_v34  ;;  %9303 = vst [vmem:[#allocation20_spill] sm:$0xff] %v4725_v42  ;;  %v4753_v51 = vld [vmem:[#allocation7 + $0x70] sm:$0xff]  ;;  %v4755_v52 = vld [vmem:[#allocation7 + $0x78] sm:$0xff]  ;;  %v4759_v53 = vld [vmem:[#allocation7 + $0x40] sm:$0xff] }
  0x2f   :  { %406 = vmatpush.msra.mxu2 %v4705_v35  ;;  %426 = vmatpush.msra.mxu3 %v4707_v36  ;;  %9304 = vst [vmem:[#allocation21_spill] sm:$0xff] %v4729_v43  ;;  %v4761_v54 = vld [vmem:[#allocation7 + $0x48] sm:$0xff]  ;;  %v4765_v55 = vld [vmem:[#allocation7 + $0x50] sm:$0xff]  ;;  %v4767_v56 = vld [vmem:[#allocation7 + $0x58] sm:$0xff] }
  0x30   :  { %367 = vmatpush.msra.mxu0 %v4711_v37  ;;  %387 = vmatpush.msra.mxu1 %v4713_v38  ;;  %9305 = vst [vmem:[#allocation22_spill] sm:$0xff] %v4731_v44  ;;  %v4771_v57 = vld [vmem:[#allocation7 + $0x20] sm:$0xff]  ;;  %v4773_v58 = vld [vmem:[#allocation7 + $0x28] sm:$0xff]  ;;  %v4777_v59 = vld [vmem:[#allocation7 + $0x30] sm:$0xff] }
  0x31   :  { %407 = vmatpush.msra.mxu2 %v4717_v39  ;;  %427 = vmatpush.msra.mxu3 %v4719_v40  ;;  %9306 = vst [vmem:[#allocation23_spill] sm:$0xff] %v4735_v45  ;;  %v4779_v60 = vld [vmem:[#allocation7 + $0x38] sm:$0xff]  ;;  %v4783_v61 = vld [vmem:[#allocation7] sm:$0xff]  ;;  %v4785_v62 = vld [vmem:[#allocation7 + $0x8] sm:$0xff] }
  0x32   :  { %9307 = vst [vmem:[#allocation24_spill] sm:$0xff] %v4737_v46  ;;  %368 = vmatpush.msra.mxu0 %v4723_v41  ;;  %388 = vmatpush.msra.mxu1 %v4725_v42  ;;  %v4789_v63 = vld [vmem:[#allocation7 + $0x10] sm:$0xff]  ;;  %v4791_v0 = vld [vmem:[#allocation7 + $0x18] sm:$0xff] }
  0x33   :  { %9308 = vst [vmem:[#allocation25_spill] sm:$0xff] %v4741_v47  ;;  %408 = vmatpush.msra.mxu2 %v4729_v43  ;;  %428 = vmatpush.msra.mxu3 %v4731_v44 }
  0x34   :  { %9309 = vst [vmem:[#allocation26_spill] sm:$0xff] %v4743_v48  ;;  %369 = vmatpush.msra.mxu0 %v4735_v45  ;;  %389 = vmatpush.msra.mxu1 %v4737_v46  ;;  %v5113_v46 = vld [vmem:[#allocation10 + $0x118] sm:$0xff] }
  0x35   :  { %9310 = vst [vmem:[#allocation27_spill] sm:$0xff] %v4747_v49  ;;  %409 = vmatpush.msra.mxu2 %v4741_v47  ;;  %429 = vmatpush.msra.mxu3 %v4743_v48  ;;  %v5094_v48 = vld [vmem:[#allocation10 + $0x128] sm:$0xff]  ;;  %v5099_v47 = vld [vmem:[#allocation10 + $0x138] sm:$0xff] }
  0x36   :  { %9311 = vst [vmem:[#allocation28_spill] sm:$0xff] %v4749_v50  ;;  %370 = vmatpush.msra.mxu0 %v4747_v49  ;;  %390 = vmatpush.msra.mxu1 %v4749_v50  ;;  %v5092_v49 = vld [vmem:[#allocation10 + $0x120] sm:$0xff] }
  0x37   :  { %9312 = vst [vmem:[#allocation29_spill] sm:$0xff] %v4753_v51  ;;  %410 = vmatpush.msra.mxu2 %v4753_v51  ;;  %430 = vmatpush.msra.mxu3 %v4755_v52  ;;  %v5065_v51 = vld [vmem:[#allocation10 + $0x178] sm:$0xff] }
  0x38   :  { %9313 = vst [vmem:[#allocation30_spill] sm:$0xff] %v4755_v52  ;;  %371 = vmatpush.msra.mxu0 %v4759_v53  ;;  %391 = vmatpush.msra.mxu1 %v4761_v54  ;;  %v5061_v52 = vld [vmem:[#allocation10 + $0x170] sm:$0xff] }
  0x39   :  { %9314 = vst [vmem:[#allocation31_spill] sm:$0xff] %v4759_v53  ;;  %411 = vmatpush.msra.mxu2 %v4765_v55  ;;  %431 = vmatpush.msra.mxu3 %v4767_v56  ;;  %v5059_v53 = vld [vmem:[#allocation10 + $0x168] sm:$0xff] }
  0x3a   :  { %9315 = vst [vmem:[#allocation32_spill] sm:$0xff] %v4761_v54  ;;  %372 = vmatpush.msra.mxu0 %v4771_v57  ;;  %392 = vmatpush.msra.mxu1 %v4773_v58  ;;  %v4822_v54 = vld [vmem:[#allocation8 + $0x1d8] sm:$0xff] }
  0x3b   :  { %9316 = vst [vmem:[#allocation33_spill] sm:$0xff] %v4765_v55  ;;  %412 = vmatpush.msra.mxu2 %v4777_v59  ;;  %432 = vmatpush.msra.mxu3 %v4779_v60  ;;  %v4820_v55 = vld [vmem:[#allocation8 + $0x1d0] sm:$0xff] }
  0x3c   :  { %9317 = vst [vmem:[#allocation34_spill] sm:$0xff] %v4767_v56  ;;  %373 = vmatpush.msra.mxu0 %v4783_v61  ;;  %393 = vmatpush.msra.mxu1 %v4785_v62  ;;  %v4799_v56 = vld [vmem:[#allocation8 + $0x1e0] sm:$0xff] }
  0x3d   :  { %9318 = vst [vmem:[#allocation35_spill] sm:$0xff] %v4771_v57  ;;  %413 = vmatpush.msra.mxu2 %v4789_v63  ;;  %433 = vmatpush.msra.mxu3 %v4791_v0  ;;  %v8603_v57 = vmov 0.0  }
  0x3e   :  { %9319 = vst [vmem:[#allocation36_spill] sm:$0xff] %v4773_v58  ;;  %374 = vmatmul.f32.vlgmr.msra.gmra.mxu0 %v8603_v57  ;;  %394 = vmatmul.f32.vlgmr.msra.gmra.mxu1 %v8603_v57  ;;  %v4803_v58 = vld [vmem:[#allocation3] sm:$0xff] }
  0x3f   :  { %9320 = vst [vmem:[#allocation37_spill] sm:$0xff] %v4777_v59  ;;  %v4805_v59 = vld [vmem:[#allocation8 + $0x1e8] sm:$0xff]  ;;  %414 = vmatmul.f32.vlgmr.msra.gmra.mxu2 %v8603_v57  ;;  %434 = vmatmul.f32.vlgmr.msra.gmra.mxu3 %v8603_v57  ;;  %v4826_v57 = vld [vmem:[#allocation8 + $0x1a0] sm:$0xff] }
  0x40   :  { %9321 = vst [vmem:[#allocation38_spill] sm:$0xff] %v4779_v60  ;;  %505 = vmatpush.msrb.mxu0 %v4799_v56  ;;  %v4816_v60 = vld [vmem:[#allocation8 + $0x1c8] sm:$0xff]  ;;  %525 = vmatpush.msrb.mxu1 %v4805_v59 }
  0x41   :  { %9322 = vst [vmem:[#allocation39_spill] sm:$0xff] %v4783_v61  ;;  %v4814_v61 = vld [vmem:[#allocation8 + $0x1c0] sm:$0xff] }
  0x42   :  { %9323 = vst [vmem:[#allocation40_spill] sm:$0xff] %v4785_v62  ;;  %v4809_v62 = vld [vmem:[#allocation8 + $0x1f0] sm:$0xff]  ;;  %506 = vmatpush.msrb.mxu0 %v4814_v61  ;;  %526 = vmatpush.msrb.mxu1 %v4816_v60 }
  0x43   :  { %9324 = vst [vmem:[#allocation41_spill] sm:$0xff] %v4789_v63  ;;  %v4811_v63 = vld [vmem:[#allocation8 + $0x1f8] sm:$0xff]  ;;  %545 = vmatpush.msrb.mxu2 %v4809_v62 }
  0x44   :  { %9325 = vst [vmem:[#allocation42_spill] sm:$0xff] %v4791_v0  ;;  %v4528_v0 = vmov 0   ;;  %565 = vmatpush.msrb.mxu3 %v4811_v63  ;;  %507 = vmatpush.msrb.mxu0 %v4826_v57 }
  0x45   :  { %9326 = vst [vmem:[#allocation43_spill] sm:$0xff] %v4799_v56  ;;  %3521 = vset.pattern.permute.xlu0 %v4528_v0  ;;  %v4828_v0 = vld [vmem:[#allocation8 + $0x1a8] sm:$0xff]  ;;  %v4832_v56 = vld [vmem:[#allocation8 + $0x1b0] sm:$0xff]  ;;  %546 = vmatpush.msrb.mxu2 %v4820_v55 }
  0x46   :  { %9327 = vst [vmem:[#allocation44_spill] sm:$0xff] %v4803_v58  ;;  %338 = vperm.xlu0 %3521, %v4803_v58   ;;  %v4834_v58 = vld [vmem:[#allocation8 + $0x1b8] sm:$0xff]  ;;  %566 = vmatpush.msrb.mxu3 %v4822_v54 }
  0x47   :  { %9328 = vst [vmem:[#allocation45_spill] sm:$0xff] %v4805_v59  ;;  %v4838_v59 = vld [vmem:[#allocation8 + $0x180] sm:$0xff]  ;;  %527 = vmatpush.msrb.mxu1 %v4828_v0  ;;  %547 = vmatpush.msrb.mxu2 %v4832_v56 }
  0x48   :  { %9329 = vst [vmem:[#allocation46_spill] sm:$0xff] %v4809_v62  ;;  %v4840_v62 = vld [vmem:[#allocation8 + $0x188] sm:$0xff]  ;;  %567 = vmatpush.msrb.mxu3 %v4834_v58  ;;  %508 = vmatpush.msrb.mxu0 %v4838_v59 }
  0x49   :  { %9330 = vst [vmem:[#allocation47_spill] sm:$0xff] %v4811_v63  ;;  %v4844_v63 = vld [vmem:[#allocation8 + $0x190] sm:$0xff]  ;;  %528 = vmatpush.msrb.mxu1 %v4840_v62 }
  0x4a   :  { %9331 = vst [vmem:[#allocation48_spill] sm:$0xff] %v4814_v61  ;;  %v4846_v61 = vld [vmem:[#allocation8 + $0x198] sm:$0xff]  ;;  %548 = vmatpush.msrb.mxu2 %v4844_v63 }
  0x4b   :  { %9332 = vst [vmem:[#allocation49_spill] sm:$0xff] %v4816_v60  ;;  %v4850_v60 = vld [vmem:[#allocation8 + $0x160] sm:$0xff]  ;;  %568 = vmatpush.msrb.mxu3 %v4846_v61 }
  0x4c   :  { %9333 = vst [vmem:[#allocation50_spill] sm:$0xff] %v4820_v55  ;;  %v4852_v55 = vld [vmem:[#allocation8 + $0x168] sm:$0xff]  ;;  %509 = vmatpush.msrb.mxu0 %v4850_v60 }
  0x4d   :  { %9334 = vst [vmem:[#allocation51_spill] sm:$0xff] %v4822_v54  ;;  %v4856_v54 = vld [vmem:[#allocation8 + $0x170] sm:$0xff]  ;;  %529 = vmatpush.msrb.mxu1 %v4852_v55 }
  0x4e   :  { %9335 = vst [vmem:[#allocation52_spill] sm:$0xff] %v4826_v57  ;;  %v4858_v57 = vld [vmem:[#allocation8 + $0x178] sm:$0xff]  ;;  %549 = vmatpush.msrb.mxu2 %v4856_v54 }
  0x4f   :  { %9336 = vst [vmem:[#allocation53_spill] sm:$0xff] %v4828_v0  ;;  %v4862_v0 = vld [vmem:[#allocation8 + $0x140] sm:$0xff]  ;;  %569 = vmatpush.msrb.mxu3 %v4858_v57 }
  0x50   :  { %9337 = vst [vmem:[#allocation54_spill] sm:$0xff] %v4832_v56  ;;  %v4864_v56 = vld [vmem:[#allocation8 + $0x148] sm:$0xff]  ;;  %510 = vmatpush.msrb.mxu0 %v4862_v0 }
  0x51   :  { %9338 = vst [vmem:[#allocation55_spill] sm:$0xff] %v4834_v58  ;;  %v4868_v58 = vld [vmem:[#allocation8 + $0x150] sm:$0xff]  ;;  %530 = vmatpush.msrb.mxu1 %v4864_v56 }
  0x52   :  { %9339 = vst [vmem:[#allocation56_spill] sm:$0xff] %v4838_v59  ;;  %v4870_v59 = vld [vmem:[#allocation8 + $0x158] sm:$0xff]  ;;  %550 = vmatpush.msrb.mxu2 %v4868_v58 }
  0x53   :  { %9340 = vst [vmem:[#allocation57_spill] sm:$0xff] %v4840_v62  ;;  %v4874_v62 = vld [vmem:[#allocation8 + $0x120] sm:$0xff]  ;;  %570 = vmatpush.msrb.mxu3 %v4870_v59 }
  0x54   :  { %9341 = vst [vmem:[#allocation58_spill] sm:$0xff] %v4844_v63  ;;  %v4876_v63 = vld [vmem:[#allocation8 + $0x128] sm:$0xff]  ;;  %511 = vmatpush.msrb.mxu0 %v4874_v62 }
  0x55   :  { %9342 = vst [vmem:[#allocation59_spill] sm:$0xff] %v4846_v61  ;;  %v4880_v61 = vld [vmem:[#allocation8 + $0x130] sm:$0xff]  ;;  %531 = vmatpush.msrb.mxu1 %v4876_v63 }
  0x56   :  { %9343 = vst [vmem:[#allocation60_spill] sm:$0xff] %v4850_v60  ;;  %v4882_v60 = vld [vmem:[#allocation8 + $0x138] sm:$0xff]  ;;  %551 = vmatpush.msrb.mxu2 %v4880_v61 }
  0x57   :  { %9344 = vst [vmem:[#allocation61_spill] sm:$0xff] %v4852_v55  ;;  %v4886_v55 = vld [vmem:[#allocation8 + $0x100] sm:$0xff]  ;;  %571 = vmatpush.msrb.mxu3 %v4882_v60 }
  0x58   :  { %9345 = vst [vmem:[#allocation62_spill] sm:$0xff] %v4856_v54  ;;  %v4888_v54 = vld [vmem:[#allocation8 + $0x108] sm:$0xff]  ;;  %512 = vmatpush.msrb.mxu0 %v4886_v55 }
  0x59   :  { %9346 = vst [vmem:[#allocation63_spill] sm:$0xff] %v4858_v57  ;;  %v4892_v57 = vld [vmem:[#allocation8 + $0x110] sm:$0xff]  ;;  %532 = vmatpush.msrb.mxu1 %v4888_v54 }
  0x5a   :  { %9347 = vst [vmem:[#allocation64_spill] sm:$0xff] %v4862_v0  ;;  %v4894_v0 = vld [vmem:[#allocation8 + $0x118] sm:$0xff]  ;;  %552 = vmatpush.msrb.mxu2 %v4892_v57 }
  0x5b   :  { %9348 = vst [vmem:[#allocation65_spill] sm:$0xff] %v4864_v56  ;;  %572 = vmatpush.msrb.mxu3 %v4894_v0  ;;  %v5030_v56 = vld [vmem:[#allocation10 + $0x1b8] sm:$0xff] }
  0x5c   :  { %9349 = vst [vmem:[#allocation66_spill] sm:$0xff] %v4868_v58  ;;  %v5014_v58 = vld [vmem:[#allocation5] sm:$0xf] }
  0x5d   :  { %9350 = vst [vmem:[#allocation67_spill] sm:$0xff] %v4870_v59  ;;  %v4902_v59 = vld [vmem:[#allocation8 + $0xe0] sm:$0xff] }
  0x5e   :  { %9351 = vst [vmem:[#allocation68_spill] sm:$0xff] %v4874_v62  ;;  %v4904_v62 = vld [vmem:[#allocation8 + $0xe8] sm:$0xff]  ;;  %513 = vmatpush.msrb.mxu0 %v4902_v59 }
  0x5f   :  { %9352 = vst [vmem:[#allocation69_spill] sm:$0xff] %v4876_v63  ;;  %v4906_v63 = vld [vmem:[#allocation8 + $0xf0] sm:$0xff]  ;;  %533 = vmatpush.msrb.mxu1 %v4904_v62 }
  0x60   :  { %9353 = vst [vmem:[#allocation70_spill] sm:$0xff] %v4880_v61  ;;  %v4910_v61 = vld [vmem:[#allocation8 + $0xf8] sm:$0xff]  ;;  %553 = vmatpush.msrb.mxu2 %v4906_v63 }
  0x61   :  { %9354 = vst [vmem:[#allocation71_spill] sm:$0xff] %v4882_v60  ;;  %573 = vmatpush.msrb.mxu3 %v4910_v61  ;;  %v5012_v60 = vld [vmem:[#allocation10 + $0x1d0] sm:$0xff] }
  0x62   :  { %9355 = vst [vmem:[#allocation72_spill] sm:$0xff] %v4886_v55  ;;  %v4922_v55 = vld [vmem:[#allocation8 + $0xd8] sm:$0xff] }
  0x63   :  { %9356 = vst [vmem:[#allocation73_spill] sm:$0xff] %v4888_v54  ;;  %v4914_v54 = vld [vmem:[#allocation8 + $0xc0] sm:$0xff]  ;;  %574 = vmatpush.msrb.mxu3 %v4922_v55 }
  0x64   :  { %9357 = vst [vmem:[#allocation74_spill] sm:$0xff] %v4892_v57  ;;  %v4916_v57 = vld [vmem:[#allocation8 + $0xc8] sm:$0xff]  ;;  %514 = vmatpush.msrb.mxu0 %v4914_v54 }
  0x65   :  { %9358 = vst [vmem:[#allocation75_spill] sm:$0xff] %v4894_v0  ;;  %v4918_v0 = vld [vmem:[#allocation8 + $0xd0] sm:$0xff]  ;;  %534 = vmatpush.msrb.mxu1 %v4916_v57 }
  0x66   :  { %9359 = vst [vmem:[#allocation76_spill] sm:$0xff] %v4902_v59  ;;  %554 = vmatpush.msrb.mxu2 %v4918_v0  ;;  %v4934_v59 = vld [vmem:[#allocation8 + $0xb8] sm:$0xff] }
  0x67   :  { %9360 = vst [vmem:[#allocation77_spill] sm:$0xff] %v4904_v62  ;;  %v4926_v62 = vld [vmem:[#allocation8 + $0xa0] sm:$0xff]  ;;  %575 = vmatpush.msrb.mxu3 %v4934_v59 }
  0x68   :  { %9361 = vst [vmem:[#allocation78_spill] sm:$0xff] %v4906_v63  ;;  %v4928_v63 = vld [vmem:[#allocation8 + $0xa8] sm:$0xff]  ;;  %515 = vmatpush.msrb.mxu0 %v4926_v62 }
  0x69   :  { %9362 = vst [vmem:[#allocation79_spill] sm:$0xff] %v4910_v61  ;;  %v4930_v61 = vld [vmem:[#allocation8 + $0xb0] sm:$0xff]  ;;  %535 = vmatpush.msrb.mxu1 %v4928_v63 }
  0x6a   :  { %9363 = vst [vmem:[#allocation80_spill] sm:$0xff] %v4914_v54  ;;  %555 = vmatpush.msrb.mxu2 %v4930_v61  ;;  %v4946_v54 = vld [vmem:[#allocation8 + $0x98] sm:$0xff] }
  0x6b   :  { %9364 = vst [vmem:[#allocation81_spill] sm:$0xff] %v4916_v57  ;;  %v4938_v57 = vld [vmem:[#allocation8 + $0x80] sm:$0xff]  ;;  %576 = vmatpush.msrb.mxu3 %v4946_v54 }
  0x6c   :  { %9365 = vst [vmem:[#allocation82_spill] sm:$0xff] %v4918_v0  ;;  %v4940_v0 = vld [vmem:[#allocation8 + $0x88] sm:$0xff]  ;;  %516 = vmatpush.msrb.mxu0 %v4938_v57 }
  0x6d   :  { %9366 = vst [vmem:[#allocation83_spill] sm:$0xff] %v4922_v55  ;;  %v4942_v55 = vld [vmem:[#allocation8 + $0x90] sm:$0xff]  ;;  %536 = vmatpush.msrb.mxu1 %v4940_v0 }
  0x6e   :  { %9367 = vst [vmem:[#allocation84_spill] sm:$0xff] %v4926_v62  ;;  %556 = vmatpush.msrb.mxu2 %v4942_v55  ;;  %v4958_v62 = vld [vmem:[#allocation8 + $0x78] sm:$0xff] }
  0x6f   :  { %9368 = vst [vmem:[#allocation85_spill] sm:$0xff] %v4928_v63  ;;  %v4950_v63 = vld [vmem:[#allocation8 + $0x60] sm:$0xff]  ;;  %577 = vmatpush.msrb.mxu3 %v4958_v62 }
  0x70   :  { %9369 = vst [vmem:[#allocation86_spill] sm:$0xff] %v4930_v61  ;;  %v4952_v61 = vld [vmem:[#allocation8 + $0x68] sm:$0xff]  ;;  %517 = vmatpush.msrb.mxu0 %v4950_v63 }
  0x71   :  { %9370 = vst [vmem:[#allocation87_spill] sm:$0xff] %v4934_v59  ;;  %v4954_v59 = vld [vmem:[#allocation8 + $0x70] sm:$0xff]  ;;  %537 = vmatpush.msrb.mxu1 %v4952_v61 }
  0x72   :  { %9371 = vst [vmem:[#allocation88_spill] sm:$0xff] %v4938_v57  ;;  %557 = vmatpush.msrb.mxu2 %v4954_v59  ;;  %v4970_v57 = vld [vmem:[#allocation8 + $0x58] sm:$0xff] }
  0x73   :  { %9372 = vst [vmem:[#allocation89_spill] sm:$0xff] %v4940_v0  ;;  %v4962_v0 = vld [vmem:[#allocation8 + $0x40] sm:$0xff]  ;;  %578 = vmatpush.msrb.mxu3 %v4970_v57 }
  0x74   :  { %9373 = vst [vmem:[#allocation90_spill] sm:$0xff] %v4942_v55  ;;  %v4964_v55 = vld [vmem:[#allocation8 + $0x48] sm:$0xff]  ;;  %518 = vmatpush.msrb.mxu0 %v4962_v0 }
  0x75   :  { %9374 = vst [vmem:[#allocation91_spill] sm:$0xff] %v4946_v54  ;;  %v4966_v54 = vld [vmem:[#allocation8 + $0x50] sm:$0xff]  ;;  %538 = vmatpush.msrb.mxu1 %v4964_v55 }
  0x76   :  { %9375 = vst [vmem:[#allocation92_spill] sm:$0xff] %v4950_v63  ;;  %558 = vmatpush.msrb.mxu2 %v4966_v54  ;;  %v4982_v63 = vld [vmem:[#allocation8 + $0x38] sm:$0xff] }
  0x77   :  { %9376 = vst [vmem:[#allocation93_spill] sm:$0xff] %v4952_v61  ;;  %v4974_v61 = vld [vmem:[#allocation8 + $0x20] sm:$0xff]  ;;  %579 = vmatpush.msrb.mxu3 %v4982_v63 }
  0x78   :  { %9377 = vst [vmem:[#allocation94_spill] sm:$0xff] %v4954_v59  ;;  %v4976_v59 = vld [vmem:[#allocation8 + $0x28] sm:$0xff]  ;;  %519 = vmatpush.msrb.mxu0 %v4974_v61 }
  0x79   :  { %9378 = vst [vmem:[#allocation95_spill] sm:$0xff] %v4958_v62  ;;  %v4978_v62 = vld [vmem:[#allocation8 + $0x30] sm:$0xff]  ;;  %539 = vmatpush.msrb.mxu1 %v4976_v59 }
  0x7a   :  { %9379 = vst [vmem:[#allocation96_spill] sm:$0xff] %v4962_v0  ;;  %559 = vmatpush.msrb.mxu2 %v4978_v62  ;;  %v4994_v0 = vld [vmem:[#allocation8 + $0x18] sm:$0xff] }
  0x7b   :  { %9380 = vst [vmem:[#allocation97_spill] sm:$0xff] %v4964_v55  ;;  %v4986_v55 = vld [vmem:[#allocation8] sm:$0xff]  ;;  %580 = vmatpush.msrb.mxu3 %v4994_v0 }
  0x7c   :  { %9381 = vst [vmem:[#allocation98_spill] sm:$0xff] %v4966_v54  ;;  %v4988_v54 = vld [vmem:[#allocation8 + $0x8] sm:$0xff]  ;;  %520 = vmatpush.msrb.mxu0 %v4986_v55 }
  0x7d   :  { %9382 = vst [vmem:[#allocation99_spill] sm:$0xff] %v4970_v57  ;;  %v4990_v57 = vld [vmem:[#allocation8 + $0x10] sm:$0xff]  ;;  %540 = vmatpush.msrb.mxu1 %v4988_v54 }
  0x7e   :  { %9383 = vst [vmem:[#allocation100_spill] sm:$0xff] %v4974_v61  ;;  %v4996_v61 = vld [vmem:[#allocation10 + $0x1e0] sm:$0xff]  ;;  %560 = vmatpush.msrb.mxu2 %v4990_v57 }
  0x7f   :  { %9384 = vst [vmem:[#allocation101_spill] sm:$0xff] %v4976_v59  ;;  %v4998_v59 = vld [vmem:[#allocation10 + $0x1e8] sm:$0xff]  ;;  %585 = vmatpush.msra.mxu0 %v4996_v61 }
  0x80   :  { %9385 = vst [vmem:[#allocation102_spill] sm:$0xff] %v4978_v62  ;;  %v5004_v62 = vld [vmem:[#allocation10 + $0x1f8] sm:$0xff]  ;;  %605 = vmatpush.msra.mxu1 %v4998_v59 }
  0x81   :  { %9386 = vst [vmem:[#allocation103_spill] sm:$0xff] %v4982_v63  ;;  %v5002_v63 = vld [vmem:[#allocation10 + $0x1f0] sm:$0xff]  ;;  %645 = vmatpush.msra.mxu3 %v5004_v62 }
  0x82   :  { %9387 = vst [vmem:[#allocation104_spill] sm:$0xff] %v4986_v55  ;;  %v5008_v55 = vld [vmem:[#allocation10 + $0x1c0] sm:$0xff]  ;;  %625 = vmatpush.msra.mxu2 %v5002_v63 }
  0x83   :  { %9388 = vst [vmem:[#allocation105_spill] sm:$0xff] %v4988_v54  ;;  %v5010_v54 = vld [vmem:[#allocation10 + $0x1c8] sm:$0xff]  ;;  %586 = vmatpush.msra.mxu0 %v5008_v55 }
  0x84   :  { %9389 = vst [vmem:[#allocation106_spill] sm:$0xff] %v4990_v57  ;;  %606 = vmatpush.msra.mxu1 %v5010_v54  ;;  %v5026_v57 = vld [vmem:[#allocation10 + $0x1b0] sm:$0xff]  ;;  %626 = vmatpush.msra.mxu2 %v5012_v60 }
  0x85   :  { %9390 = vst [vmem:[#allocation107_spill] sm:$0xff] %v4994_v0  ;;  %v5018_v0 = vld [vmem:[#allocation10 + $0x1d8] sm:$0xff] }
  0x86   :  { %9391 = vst [vmem:[#allocation108_spill] sm:$0xff] %v4996_v61  ;;  %v5022_v61 = vld [vmem:[#allocation10 + $0x1a0] sm:$0xff]  ;;  %646 = vmatpush.msra.mxu3 %v5018_v0  ;;  %627 = vmatpush.msra.mxu2 %v5026_v57 }
  0x87   :  { %9392 = vst [vmem:[#allocation109_spill] sm:$0xff] %v4998_v59  ;;  %v5024_v59 = vld [vmem:[#allocation10 + $0x1a8] sm:$0xff]  ;;  %587 = vmatpush.msra.mxu0 %v5022_v61 }
  0x88   :  { %9393 = vst [vmem:[#allocation110_spill] sm:$0xff] %v5002_v63  ;;  %607 = vmatpush.msra.mxu1 %v5024_v59  ;;  %v5043_v63 = vld [vmem:[%s8585_s3] sm:$0xf]  ;;  %647 = vmatpush.msra.mxu3 %v5030_v56 }
  0x89   :  { %9394 = vst [vmem:[#allocation111_spill] sm:$0xff] %v5004_v62  ;;  %v5034_v62 = vld [vmem:[#allocation10 + $0x180] sm:$0xff]  ;;  %v5143_v44 = vperm.slane %v5043_v63, 3 }
  0x8a   :  { %9395 = vst [vmem:[#allocation112_spill] sm:$0xff] %v5008_v55  ;;  %v5036_v55 = vld [vmem:[#allocation10 + $0x188] sm:$0xff]  ;;  %588 = vmatpush.msra.mxu0 %v5034_v62 }
  0x8b   :  { %9396 = vst [vmem:[#allocation113_spill] sm:$0xff] %v5010_v54  ;;  %v5038_v54 = vld [vmem:[#allocation10 + $0x190] sm:$0xff]  ;;  %608 = vmatpush.msra.mxu1 %v5036_v55 }
  0x8c   :  { %9397 = vst [vmem:[#allocation114_spill] sm:$0xff] %v5012_v60  ;;  %v5046_v60 = vperm.slane %v5014_v58, 0  ;;  %628 = vmatpush.msra.mxu2 %v5038_v54 }
  0x8d   :  { %9398 = vst [vmem:[#allocation115_spill] sm:$0xff] %v5018_v0  ;;  %v5049_v0 = vperm.slane %v5014_v58, 1  ;;  %609 = vmatpush.msra.mxu1 %v5059_v53 }
  0x8e   :  { %9399 = vst [vmem:[#allocation116_spill] sm:$0xff] %v5022_v61  ;;  %v5057_v61 = vld [vmem:[#allocation10 + $0x160] sm:$0xff]  ;;  %629 = vmatpush.msra.mxu2 %v5061_v52 }
  0x8f   :  { %9400 = vst [vmem:[#allocation117_spill] sm:$0xff] %v5024_v59  ;;  %v5053_v59 = vld [vmem:[#allocation10 + $0x198] sm:$0xff]  ;;  %589 = vmatpush.msra.mxu0 %v5057_v61 }
  0x90   :  { %9401 = vst [vmem:[#allocation118_spill] sm:$0xff] %v5026_v57  ;;  %648 = vmatpush.msra.mxu3 %v5053_v59 }
  0x91   :  { %9402 = vst [vmem:[#allocation119_spill] sm:$0xff] %v5030_v56  ;;  %v5076_v56 = vperm.slane %v5043_v63, 0 }
  0x92   :  { %9403 = vst [vmem:[#allocation120_spill] sm:$0xff] %v5034_v62  ;;  %v5071_v62 = vld [vmem:[#allocation10 + $0x140] sm:$0xff]  ;;  %649 = vmatpush.msra.mxu3 %v5065_v51 }
  0x93   :  { %9404 = vst [vmem:[#allocation121_spill] sm:$0xff] %v5036_v55  ;;  %v5073_v55 = vld [vmem:[#allocation10 + $0x148] sm:$0xff]  ;;  %590 = vmatpush.msra.mxu0 %v5071_v62 }
  0x94   :  { %9405 = vst [vmem:[#allocation122_spill] sm:$0xff] %v5038_v54  ;;  %610 = vmatpush.msra.mxu1 %v5073_v55 }
  0x95   :  { %9406 = vst [vmem:[#allocation123_spill] sm:$0xff] %v5046_v60  ;;  %591 = vmatpush.msra.mxu0 %v5092_v49 }
  0x96   :  { %9407 = vst [vmem:[#allocation124_spill] sm:$0xff] %v5049_v0  ;;  %611 = vmatpush.msra.mxu1 %v5094_v48 }
  0x97   :  { %9408 = vst [vmem:[#allocation125_spill] sm:$0xff] %v5053_v59  ;;  %v5081_v59 = vperm.slane %v5043_v63, 1 }
  0x98   :  { %9409 = vst [vmem:[#allocation126_spill] sm:$0xff] %v5057_v61  ;;  %v5086_v61 = vld [vmem:[#allocation10 + $0x150] sm:$0xff] }
  0x99   :  { %9410 = vst [vmem:[#allocation127_spill] sm:$0xff] %v5059_v53  ;;  %v5088_v53 = vld [vmem:[#allocation10 + $0x158] sm:$0xff]  ;;  %630 = vmatpush.msra.mxu2 %v5086_v61 }
  0x9a   :  { %9411 = vst [vmem:[#allocation128_spill] sm:$0xff] %v5061_v52  ;;  %650 = vmatpush.msra.mxu3 %v5088_v53  ;;  %v5105_v52 = vld [vmem:[#allocation10 + $0x108] sm:$0xff] }
  0x9b   :  { %9412 = vst [vmem:[#allocation129_spill] sm:$0xff] %v5065_v51  ;;  %612 = vmatpush.msra.mxu1 %v5105_v52 }
  0x9c   :  { %9413 = vst [vmem:[#allocation130_spill] sm:$0xff] %v5071_v62  ;;  %651 = vmatpush.msra.mxu3 %v5099_v47 }
  0x9d   :  { %9414 = vst [vmem:[#allocation131_spill] sm:$0xff] %v5073_v55  ;;  %v5111_v55 = vld [vmem:[#allocation10 + $0x110] sm:$0xff] }
  0x9e   :  { %9415 = vst [vmem:[#allocation132_spill] sm:$0xff] %v5076_v56  ;;  %652 = vmatpush.msra.mxu3 %v5113_v46 }
  0x9f   :  { %9416 = vst [vmem:[#allocation133_spill] sm:$0xff] %v5081_v59 }
  0xa0   :  { %9417 = vst [vmem:[#allocation134_spill] sm:$0xff] %v5086_v61  ;;  %v5116_v61 = vperm.slane %v5014_v58, 3 }
  0xa1   :  { %9418 = vst [vmem:[#allocation135_spill] sm:$0xff] %v5088_v53  ;;  %v5120_v53 = vld [vmem:[#allocation10 + $0xe0] sm:$0xff] }
  0xa2   :  { %9419 = vst [vmem:[#allocation136_spill] sm:$0xff] %v5092_v49 }
  0xa3   :  { %9420 = vst [vmem:[#allocation137_spill] sm:$0xff] %v5094_v48 }
  0xa4   :  { %9422 = vst [vmem:[#allocation139_spill] sm:$0xff] %v5099_v47  ;;  %v5134_v47 = vld [vmem:[#allocation10 + $0xc8] sm:$0xff] }
  0xa5   :  { %9424 = vst [vmem:[#allocation141_spill] sm:$0xff] %v5105_v52  ;;  %v5138_v52 = vld [vmem:[#allocation10 + $0xd0] sm:$0xff] }
  0xa6   :  { %9425 = vst [vmem:[#allocation142_spill] sm:$0xff] %v5111_v55 }
  0xa7   :  { %9426 = vst [vmem:[#allocation143_spill] sm:$0xff] %v5113_v46 }
  0xa8   :  { %9427 = vst [vmem:[#allocation144_spill] sm:$0xff] %v5116_v61 }
  0xa9   :  { %9428 = vst [vmem:[#allocation145_spill] sm:$0xff] %v5120_v53 }
  0xaa   :  { %9433 = vst [vmem:[#allocation150_spill] sm:$0xff] %v5134_v47 }
  0xab   :  { %9434 = vst [vmem:[#allocation151_spill] sm:$0xff] %v5138_v52 }
  0xac   :  { %9436 = vst [vmem:[#allocation153_spill] sm:$0xff] %v5143_v44 }
  0xb8   :  { %v5067_v57 = vpop.permute.xlu0 %338 }
  0xb9   :  { %v350_v54 = vmul.f32 %v5046_v60, %v5067_v57  ;;  %v351_v50 = vmul.f32 %v5049_v0, %v5067_v57  ;;  %v5097_v60 = vld [vmem:[#allocation10 + $0x130] sm:$0xff]  ;;  %v5103_v0 = vld [vmem:[#allocation10 + $0x100] sm:$0xff]  ;;  %v353_v46 = vmul.f32 %v5116_v61, %v5067_v57 }
  0xba   :  { %9421 = vst [vmem:[#allocation138_spill] sm:$0xff] %v5097_v60  ;;  %631 = vmatpush.msra.mxu2 %v5097_v60  ;;  %592 = vmatpush.msra.mxu0 %v5103_v0  ;;  %v5132_v60 = vld [vmem:[#allocation10 + $0xc0] sm:$0xff] }
  0xbb   :  { %9423 = vst [vmem:[#allocation140_spill] sm:$0xff] %v5103_v0  ;;  %v354_v62 = vadd.f32 %v350_v54, %v5076_v56  ;;  %v355_v51 = vadd.f32 %v351_v50, %v5081_v59  ;;  %v5122_v54 = vld [vmem:[#allocation10 + $0xe8] sm:$0xff]  ;;  %v5126_v50 = vld [vmem:[#allocation10 + $0xf0] sm:$0xff]  ;;  %v5128_v59 = vld [vmem:[#allocation10 + $0xf8] sm:$0xff]  ;;  %v375_v56 = vpop.f32.mrf.mxu0  ;;  %v395_v48 = vpop.f32.mrf.mxu1 }
  0xbc   :  { %9429 = vst [vmem:[#allocation146_spill] sm:$0xff] %v5122_v54  ;;  %632 = vmatpush.msra.mxu2 %v5111_v55  ;;  %593 = vmatpush.msra.mxu0 %v5120_v53  ;;  %v5140_v0 = vld [vmem:[#allocation10 + $0xd8] sm:$0xff]  ;;  %v5161_v61 = vld [vmem:[#allocation10 + $0x80] sm:$0xff] }
  0xbd   :  { %9430 = vst [vmem:[#allocation147_spill] sm:$0xff] %v5126_v50  ;;  %v438_v49 = vadd.f32 %v375_v56, %v354_v62  ;;  %v439_v45 = vadd.f32 %v395_v48, %v355_v51  ;;  %613 = vmatpush.msra.mxu1 %v5122_v54  ;;  %653 = vmatpush.msra.mxu3 %v5128_v59  ;;  %v5149_v56 = vld [vmem:[#allocation10 + $0xa0] sm:$0xff]  ;;  %v5151_v48 = vld [vmem:[#allocation10 + $0xa8] sm:$0xff]  ;;  %v5155_v54 = vld [vmem:[#allocation10 + $0xb0] sm:$0xff] }
  0xbe   :  { %9431 = vst [vmem:[#allocation148_spill] sm:$0xff] %v5128_v59  ;;  %633 = vmatpush.msra.mxu2 %v5126_v50  ;;  %594 = vmatpush.msra.mxu0 %v5132_v60  ;;  %v5157_v53 = vld [vmem:[#allocation10 + $0xb8] sm:$0xff]  ;;  %v5163_v59 = vld [vmem:[#allocation10 + $0x88] sm:$0xff] }
  0xbf   :  { %9432 = vst [vmem:[#allocation149_spill] sm:$0xff] %v5132_v60  ;;  %v3456_v51 = vmul.f32 -1.442695, %v438_v49  ;;  %v3457_v62 = vmul.f32 -1.442695, %v439_v45  ;;  %614 = vmatpush.msra.mxu1 %v5134_v47  ;;  %654 = vmatpush.msra.mxu3 %v5140_v0  ;;  %v5167_v45 = vld [vmem:[#allocation10 + $0x90] sm:$0xff]  ;;  %v357_v47 = vadd.f32 %v353_v46, %v5143_v44 }
  0xc0   :  { %9435 = vst [vmem:[#allocation152_spill] sm:$0xff] %v5140_v0  ;;  %634 = vmatpush.msra.mxu2 %v5138_v52  ;;  %595 = vmatpush.msra.mxu0 %v5149_v56  ;;  %v5169_v49 = vld [vmem:[#allocation10 + $0x98] sm:$0xff]  ;;  %v5174_v0 = vld [vmem:[#allocation10 + $0x60] sm:$0xff]  ;;  %v5176_v52 = vld [vmem:[#allocation10 + $0x68] sm:$0xff] }
  0xc1   :  { %9437 = vst [vmem:[#allocation154_spill] sm:$0xff] %v5149_v56  ;;  %3532 = vpow2.f32 %v3456_v51  ;;  %615 = vmatpush.msra.mxu1 %v5151_v48  ;;  %655 = vmatpush.msra.mxu3 %v5157_v53  ;;  %v5182_v56 = vld [vmem:[#allocation10 + $0x78] sm:$0xff]  ;;  %v5186_v46 = vld [vmem:[#allocation10 + $0x40] sm:$0xff]  ;;  %v5188_v44 = vld [vmem:[#allocation10 + $0x48] sm:$0xff] }
  0xc2   :  { %9438 = vst [vmem:[#allocation155_spill] sm:$0xff] %v5151_v48  ;;  %3534 = vpow2.f32 %v3457_v62  ;;  %635 = vmatpush.msra.mxu2 %v5155_v54  ;;  %v435_v51 = vpop.f32.mrf.mxu3  ;;  %596 = vmatpush.msra.mxu0 %v5161_v61  ;;  %v5180_v48 = vld [vmem:[#allocation10 + $0x70] sm:$0xff] }
  0xc3   :  { %9439 = vst [vmem:[#allocation156_spill] sm:$0xff] %v5155_v54  ;;  %616 = vmatpush.msra.mxu1 %v5163_v59  ;;  %v441_v62 = vadd.f32 %v435_v51, %v357_v47  ;;  %656 = vmatpush.msra.mxu3 %v5169_v49  ;;  %v5201_v51 = vld [vmem:[#allocation10 + $0x20] sm:$0xff] }
  0xc4   :  { %9440 = vst [vmem:[#allocation157_spill] sm:$0xff] %v5157_v53  ;;  %636 = vmatpush.msra.mxu2 %v5167_v45  ;;  %597 = vmatpush.msra.mxu0 %v5174_v0  ;;  %v5197_v53 = vperm.slane %v5014_v58, 2 }
  0xc5   :  { %9441 = vst [vmem:[#allocation158_spill] sm:$0xff] %v5161_v61  ;;  %617 = vmatpush.msra.mxu1 %v5176_v52  ;;  %v5192_v61 = vld [vmem:[#allocation10 + $0x50] sm:$0xff]  ;;  %v3458_v47 = vmul.f32 -1.442695, %v441_v62  ;;  %657 = vmatpush.msra.mxu3 %v5182_v56  ;;  %v5213_v62 = vld [vmem:[#allocation10] sm:$0xff] }
  0xc6   :  { %9442 = vst [vmem:[#allocation159_spill] sm:$0xff] %v5163_v59  ;;  %v5194_v59 = vld [vmem:[#allocation10 + $0x58] sm:$0xff]  ;;  %637 = vmatpush.msra.mxu2 %v5180_v48  ;;  %598 = vmatpush.msra.mxu0 %v5186_v46 }
  0xc7   :  { %9443 = vst [vmem:[#allocation160_spill] sm:$0xff] %v5167_v45  ;;  %v3533_v45 = vpop.eup %3532  ;;  %618 = vmatpush.msra.mxu1 %v5188_v44  ;;  %3536 = vpow2.f32 %v3458_v47  ;;  %658 = vmatpush.msra.mxu3 %v5194_v59  ;;  %v352_v47 = vmul.f32 %v5197_v53, %v5067_v57 }
  0xc8   :  { %9444 = vst [vmem:[#allocation161_spill] sm:$0xff] %v5169_v49  ;;  %v5203_v49 = vld [vmem:[#allocation10 + $0x28] sm:$0xff]  ;;  %v3535_v58 = vpop.eup %3534  ;;  %v445_v54 = vadd.f32 1.0, %v3533_v45  ;;  %638 = vmatpush.msra.mxu2 %v5192_v61  ;;  %599 = vmatpush.msra.mxu0 %v5201_v51  ;;  %v5224_v45 = vperm.slane %v5043_v63, 2 }
  0xc9   :  { %9445 = vst [vmem:[#allocation162_spill] sm:$0xff] %v5174_v0  ;;  %v5209_v0 = vld [vmem:[#allocation10 + $0x38] sm:$0xff]  ;;  %619 = vmatpush.msra.mxu1 %v5203_v49 }
  0xca   :  { %9446 = vst [vmem:[#allocation163_spill] sm:$0xff] %v5176_v52  ;;  %v5207_v52 = vld [vmem:[#allocation10 + $0x30] sm:$0xff]  ;;  %3538 = vrcp.f32 %v445_v54  ;;  %659 = vmatpush.msra.mxu3 %v5209_v0  ;;  %600 = vmatpush.msra.mxu0 %v5213_v62  ;;  %v356_v63 = vadd.f32 %v352_v47, %v5224_v45  ;;  %vm451_vm2 = vweird.f32 %v445_v54 }
  0xcb   :  { %9447 = vst [vmem:[#allocation164_spill] sm:$0xff] %v5180_v48  ;;  %v464_v48 = vadd.f32 1.0, %v3535_v58  ;;  %639 = vmatpush.msra.mxu2 %v5207_v52  ;;  %v415_v58 = vpop.f32.mrf.mxu2 }
  0xcc   :  { %9448 = vst [vmem:[#allocation165_spill] sm:$0xff] %v5182_v56  ;;  %v5215_v56 = vld [vmem:[#allocation10 + $0x8] sm:$0xff]  ;;  %v440_v57 = vadd.f32 %v415_v58, %v356_v63 }
  0xcd   :  { %9449 = vst [vmem:[#allocation166_spill] sm:$0xff] %v5186_v46  ;;  %v5221_v46 = vld [vmem:[#allocation10 + $0x18] sm:$0xff]  ;;  %3540 = vrcp.f32 %v464_v48  ;;  %620 = vmatpush.msra.mxu1 %v5215_v56  ;;  %v474_v55 = vand.u32 2147483647, %v464_v48  ;;  %vm470_vm3 = vweird.f32 %v464_v48 }
  0xce   :  { %9450 = vst [vmem:[#allocation167_spill] sm:$0xff] %v5188_v44  ;;  %v5219_v44 = vld [vmem:[#allocation10 + $0x10] sm:$0xff]  ;;  %660 = vmatpush.msra.mxu3 %v5221_v46 }
  0xcf   :  { %9451 = vst [vmem:[#allocation168_spill] sm:$0xff] %v5192_v61  ;;  %640 = vmatpush.msra.mxu2 %v5219_v44  ;;  %vm475_vm7 = vcmp.eq.f32.partialorder %v474_v55, 8.507059e+37 }
  0xd0   :  { %9452 = vst [vmem:[#allocation169_spill] sm:$0xff] %v5194_v59 }
  0xd1   :  { %9453 = vst [vmem:[#allocation170_spill] sm:$0xff] %v5197_v53 }
  0xd2   :  { %9454 = vst [vmem:[#allocation171_spill] sm:$0xff] %v5201_v51 }
  0xd3   :  { %9455 = vst [vmem:[#allocation172_spill] sm:$0xff] %v5203_v49  ;;  %v3537_v49 = vpop.eup %3536 }
  0xd4   :  { %9456 = vst [vmem:[#allocation173_spill] sm:$0xff] %v5207_v52  ;;  %v484_v51 = vadd.f32 1.0, %v3537_v49  ;;  %v3539_v59 = vpop.eup %3538 }
  0xd5   :  { %9457 = vst [vmem:[#allocation174_spill] sm:$0xff] %v5209_v0  ;;  %v3541_v53 = vpop.eup %3540  ;;  %v447_v52 = vmul.f32 %v3539_v59, %v445_v54  ;;  %vm452_vm0 = vweird.f32 %v3539_v59 }
  0xd6   :  { %9458 = vst [vmem:[#allocation175_spill] sm:$0xff] %v5213_v62  ;;  %3542 = vrcp.f32 %v484_v51  ;;  %v466_v0 = vmul.f32 %v3541_v53, %v464_v48  ;;  %v457_v62 = vand.u32 2147483648, %v445_v54  ;;  %vm471_vm1 = vweird.f32 %v3541_v53  ;;  %vm453_vm4 = vmor %vm451_vm2, %vm452_vm0 }
  0xd7   :  { %9459 = vst [vmem:[#allocation176_spill] sm:$0xff] %v5215_v56  ;;  %v448_v61 = vsub.f32 1.0, %v447_v52  ;;  %3544 = vtanh.f32 %v440_v57  ;;  %v476_v56 = vand.u32 2147483648, %v464_v48  ;;  %vm472_vm6 = vmor %vm470_vm3, %vm471_vm1  ;;  %v496_v48 = vand.u32 2147483648, %v484_v51 }
  0xd8   :  { %9460 = vst [vmem:[#allocation177_spill] sm:$0xff] %v5219_v44  ;;  %v467_v60 = vsub.f32 1.0, %v466_v0  ;;  %v455_v44 = vand.u32 2147483647, %v445_v54  ;;  %v458_v49 = vor.u32 1.1754944e-38, %v457_v62  ;;  %vm490_vm9 = vweird.f32 %v484_v51  ;;  %v9506_v62 = vld [vmem:[#allocation59_spill] sm:$0xff] }
  0xd9   :  { %9461 = vst [vmem:[#allocation178_spill] sm:$0xff] %v5221_v46  ;;  %v449_v50 = vmul.f32 %v3539_v59, %v448_v61 }
  0xda   :  { %9462 = vst [vmem:[#allocation179_spill] sm:$0xff] %v5224_v45  ;;  %v468_v46 = vmul.f32 %v3541_v53, %v467_v60  ;;  %v477_v45 = vor.u32 1.1754944e-38, %v476_v56  ;;  %vm456_vm5 = vcmp.eq.f32.partialorder %v455_v44, 8.507059e+37  ;;  %v497_v56 = vor.u32 1.1754944e-38, %v496_v48  ;;  %v9518_v48 = vld [vmem:[#allocation71_spill] sm:$0xff] }
  0xdb   :  { %v450_v47 = vadd.f32 %v3539_v59, %v449_v50 }
  0xdc   :  { %v3543_v43 = vpop.eup %3542  ;;  %v469_v58 = vadd.f32 %v3541_v53, %v468_v46 }
  0xdd   :  { %v486_v63 = vmul.f32 %v3543_v43, %v484_v51  ;;  %v454_v52 = vsel %vm453_vm4, %v3539_v59, %v450_v47  ;;  %v3545_v0 = vpop.eup %3544  ;;  %vm491_vm8 = vweird.f32 %v3543_v43  ;;  %v494_v59 = vand.u32 2147483647, %v484_v51  ;;  %v9505_v51 = vld [vmem:[#allocation58_spill] sm:$0xff]  ;;  %v9508_v47 = vld [vmem:[#allocation61_spill] sm:$0xff] }
  0xde   :  { %v459_v57 = vsel %vm456_vm5, %v458_v49, %v454_v52  ;;  %v473_v61 = vsel %vm472_vm6, %v3541_v53, %v469_v58  ;;  %vm492_vm10 = vmor %vm490_vm9, %vm491_vm8  ;;  %v9509_v49 = vld [vmem:[#allocation62_spill] sm:$0xff]  ;;  %v9510_v58 = vld [vmem:[#allocation63_spill] sm:$0xff] }
  0xdf   :  { %v487_v42 = vsub.f32 1.0, %v486_v63  ;;  %v478_v60 = vsel %vm475_vm7, %v477_v45, %v473_v61  ;;  %v501_v41 = vmul.f32 %v3545_v0, %v459_v57  ;;  %vm495_vm11 = vcmp.eq.f32.partialorder %v494_v59, 8.507059e+37  ;;  %v9507_v45 = vld [vmem:[#allocation60_spill] sm:$0xff]  ;;  %v9512_v52 = vld [vmem:[#allocation65_spill] sm:$0xff]  ;;  %v9513_v0 = vld [vmem:[#allocation66_spill] sm:$0xff] }
  0xe0   :  { %v500_v40 = vmul.f32 0.0, %v478_v60  ;;  %v9511_v63 = vld [vmem:[#allocation64_spill] sm:$0xff]  ;;  %v9514_v57 = vld [vmem:[#allocation67_spill] sm:$0xff]  ;;  %v9516_v60 = vld [vmem:[#allocation69_spill] sm:$0xff] }
  0xe1   :  { %v488_v39 = vmul.f32 %v3543_v43, %v487_v42  ;;  %v9503_v42 = vld [vmem:[#allocation56_spill] sm:$0xff] }
  0xe2   :  { %v5235_v50 = vadd.f32 %v501_v41, %v500_v40  ;;  %v9501_v40 = vld [vmem:[#allocation54_spill] sm:$0xff]  ;;  %v9502_v41 = vld [vmem:[#allocation55_spill] sm:$0xff]  ;;  %v9515_v61 = vld [vmem:[#allocation68_spill] sm:$0xff] }
  0xe3   :  { %v489_v54 = vadd.f32 %v3543_v43, %v488_v39  ;;  %v9500_v39 = vld [vmem:[#allocation53_spill] sm:$0xff]  ;;  %v9519_v59 = vld [vmem:[#allocation72_spill] sm:$0xff] }
  0xe4   :  { %3546 = vtanh.f32 %v5235_v50 }
  0xe5   :  { %v493_v44 = vsel %vm492_vm10, %v3543_v43, %v489_v54  ;;  %v9504_v43 = vld [vmem:[#allocation57_spill] sm:$0xff]  ;;  %v9517_v54 = vld [vmem:[#allocation70_spill] sm:$0xff] }
  0xe6   :  { %v498_v55 = vsel %vm495_vm11, %v497_v56, %v493_v44  ;;  %v9520_v44 = vld [vmem:[#allocation73_spill] sm:$0xff]  ;;  %v9521_v56 = vld [vmem:[#allocation74_spill] sm:$0xff] }
  0xea   :  { %v3547_v53 = vpop.eup %3546 }
  0xeb   :  { %v5238_v46 = vmul.f32 %v3547_v53, %v498_v55  ;;  %v9522_v53 = vld [vmem:[#allocation75_spill] sm:$0xff]  ;;  %v9523_v55 = vld [vmem:[#allocation76_spill] sm:$0xff] }
  0xed   :  { %521 = vmatmul.f32.vlgmr.msrb.gmra.mxu0 %v5238_v46  ;;  %541 = vmatmul.f32.vlgmr.msrb.gmra.mxu1 %v5238_v46 }
  0xee   :  { %561 = vmatmul.f32.vlgmr.msrb.gmra.mxu2 %v5238_v46  ;;  %581 = vmatmul.f32.vlgmr.msrb.gmra.mxu3 %v5238_v46 }
  0xef   :  { %744 = vmatpush.msrb.mxu0 %v4607_v1  ;;  %764 = vmatpush.msrb.mxu1 %v4609_v2  ;;  %v9463_v1 = vmov 0.0   ;;  %v9464_v2 = vld [vmem:[#allocation17_spill] sm:$0xff] }
  0xf0   :  { %784 = vmatpush.msrb.mxu2 %v4611_v3  ;;  %804 = vmatpush.msrb.mxu3 %v4615_v4  ;;  %v9465_v3 = vld [vmem:[#allocation18_spill] sm:$0xff]  ;;  %v9466_v4 = vld [vmem:[#allocation19_spill] sm:$0xff] }
  0xf1   :  { %745 = vmatpush.msrb.mxu0 %v4617_v5  ;;  %765 = vmatpush.msrb.mxu1 %v4619_v6  ;;  %v9467_v5 = vld [vmem:[#allocation20_spill] sm:$0xff]  ;;  %v9468_v6 = vld [vmem:[#allocation21_spill] sm:$0xff] }
  0xf2   :  { %785 = vmatpush.msrb.mxu2 %v4623_v7  ;;  %805 = vmatpush.msrb.mxu3 %v4625_v8  ;;  %v9469_v7 = vld [vmem:[#allocation22_spill] sm:$0xff]  ;;  %v9470_v8 = vld [vmem:[#allocation23_spill] sm:$0xff] }
  0xf3   :  { %746 = vmatpush.msrb.mxu0 %v4627_v9  ;;  %766 = vmatpush.msrb.mxu1 %v4631_v10  ;;  %v9471_v9 = vld [vmem:[#allocation24_spill] sm:$0xff]  ;;  %v9472_v10 = vld [vmem:[#allocation25_spill] sm:$0xff] }
  0xf4   :  { %786 = vmatpush.msrb.mxu2 %v4633_v11  ;;  %806 = vmatpush.msrb.mxu3 %v4635_v12  ;;  %v9473_v11 = vld [vmem:[#allocation26_spill] sm:$0xff]  ;;  %v9474_v12 = vld [vmem:[#allocation27_spill] sm:$0xff] }
  0xf5   :  { %747 = vmatpush.msrb.mxu0 %v4639_v13  ;;  %767 = vmatpush.msrb.mxu1 %v4641_v14  ;;  %v9475_v13 = vld [vmem:[#allocation28_spill] sm:$0xff]  ;;  %v9476_v14 = vld [vmem:[#allocation29_spill] sm:$0xff] }
  0xf6   :  { %787 = vmatpush.msrb.mxu2 %v4645_v15  ;;  %807 = vmatpush.msrb.mxu3 %v4647_v16  ;;  %v9477_v15 = vld [vmem:[#allocation30_spill] sm:$0xff]  ;;  %v9478_v16 = vld [vmem:[#allocation31_spill] sm:$0xff] }
  0xf7   :  { %601 = vmatmul.f32.vlgmr.msra.gmra.mxu0 %v9463_v1  ;;  %621 = vmatmul.f32.vlgmr.msra.gmra.mxu1 %v9463_v1 }
  0xf8   :  { %641 = vmatmul.f32.vlgmr.msra.gmra.mxu2 %v9463_v1  ;;  %661 = vmatmul.f32.vlgmr.msra.gmra.mxu3 %v9463_v1  ;;  %v9525_v1 = vld [vmem:[#allocation78_spill] sm:$0xff] }
  0xf9   :  { %748 = vmatpush.msrb.mxu0 %v4651_v17  ;;  %768 = vmatpush.msrb.mxu1 %v4653_v18  ;;  %v9479_v17 = vld [vmem:[#allocation32_spill] sm:$0xff]  ;;  %v9480_v18 = vld [vmem:[#allocation33_spill] sm:$0xff] }
  0xfa   :  { %788 = vmatpush.msrb.mxu2 %v4657_v19  ;;  %808 = vmatpush.msrb.mxu3 %v4659_v20  ;;  %v9481_v19 = vld [vmem:[#allocation34_spill] sm:$0xff]  ;;  %v9482_v20 = vld [vmem:[#allocation35_spill] sm:$0xff] }
  0xfb   :  { %749 = vmatpush.msrb.mxu0 %v4663_v21  ;;  %769 = vmatpush.msrb.mxu1 %v4665_v22  ;;  %v9483_v21 = vld [vmem:[#allocation36_spill] sm:$0xff]  ;;  %v9484_v22 = vld [vmem:[#allocation37_spill] sm:$0xff] }
  0xfc   :  { %789 = vmatpush.msrb.mxu2 %v4669_v23  ;;  %809 = vmatpush.msrb.mxu3 %v4671_v24  ;;  %v9485_v23 = vld [vmem:[#allocation38_spill] sm:$0xff]  ;;  %v9486_v24 = vld [vmem:[#allocation39_spill] sm:$0xff] }
  0xfd   :  { %750 = vmatpush.msrb.mxu0 %v4675_v25  ;;  %770 = vmatpush.msrb.mxu1 %v4677_v26  ;;  %v9487_v25 = vld [vmem:[#allocation40_spill] sm:$0xff]  ;;  %v9488_v26 = vld [vmem:[#allocation41_spill] sm:$0xff] }
  0xfe   :  { %790 = vmatpush.msrb.mxu2 %v4681_v27  ;;  %810 = vmatpush.msrb.mxu3 %v4683_v28  ;;  %v9489_v27 = vld [vmem:[#allocation42_spill] sm:$0xff]  ;;  %v4529_v28 = vmov 1  }
  0xff   :  { %751 = vmatpush.msrb.mxu0 %v4687_v29  ;;  %771 = vmatpush.msrb.mxu1 %v4689_v30  ;;  %v9490_v29 = vld [vmem:[#allocation43_spill] sm:$0xff]  ;;  %v9491_v30 = vld [vmem:[#allocation44_spill] sm:$0xff] }
 0x100   :  { %791 = vmatpush.msrb.mxu2 %v4693_v31  ;;  %811 = vmatpush.msrb.mxu3 %v4695_v32  ;;  %v9492_v31 = vld [vmem:[#allocation45_spill] sm:$0xff]  ;;  %v9493_v32 = vld [vmem:[#allocation46_spill] sm:$0xff] }
 0x101   :  { %752 = vmatpush.msrb.mxu0 %v4699_v33  ;;  %772 = vmatpush.msrb.mxu1 %v4701_v34  ;;  %v9494_v33 = vld [vmem:[#allocation47_spill] sm:$0xff]  ;;  %v9495_v34 = vld [vmem:[#allocation48_spill] sm:$0xff] }
 0x102   :  { %792 = vmatpush.msrb.mxu2 %v4705_v35  ;;  %812 = vmatpush.msrb.mxu3 %v4707_v36  ;;  %v9496_v35 = vld [vmem:[#allocation49_spill] sm:$0xff]  ;;  %v9497_v36 = vld [vmem:[#allocation50_spill] sm:$0xff] }
 0x103   :  { %753 = vmatpush.msrb.mxu0 %v4711_v37  ;;  %773 = vmatpush.msrb.mxu1 %v4713_v38  ;;  %v9498_v37 = vld [vmem:[#allocation51_spill] sm:$0xff]  ;;  %v9499_v38 = vld [vmem:[#allocation52_spill] sm:$0xff] }
 0x104   :  { %793 = vmatpush.msrb.mxu2 %v9464_v2  ;;  %813 = vmatpush.msrb.mxu3 %v9465_v3  ;;  %v9526_v2 = vld [vmem:[#allocation79_spill] sm:$0xff]  ;;  %v9527_v3 = vld [vmem:[#allocation80_spill] sm:$0xff] }
 0x105   :  { %754 = vmatpush.msrb.mxu0 %v9466_v4  ;;  %774 = vmatpush.msrb.mxu1 %v9467_v5  ;;  %v9528_v4 = vld [vmem:[#allocation81_spill] sm:$0xff]  ;;  %v9529_v5 = vld [vmem:[#allocation82_spill] sm:$0xff] }
 0x106   :  { %794 = vmatpush.msrb.mxu2 %v9468_v6  ;;  %814 = vmatpush.msrb.mxu3 %v9469_v7  ;;  %v9530_v6 = vld [vmem:[#allocation83_spill] sm:$0xff]  ;;  %v9531_v7 = vld [vmem:[#allocation84_spill] sm:$0xff] }
 0x107   :  { %755 = vmatpush.msrb.mxu0 %v9470_v8  ;;  %775 = vmatpush.msrb.mxu1 %v9471_v9  ;;  %v9532_v8 = vld [vmem:[#allocation85_spill] sm:$0xff]  ;;  %v9533_v9 = vld [vmem:[#allocation86_spill] sm:$0xff] }
 0x108   :  { %795 = vmatpush.msrb.mxu2 %v9472_v10  ;;  %815 = vmatpush.msrb.mxu3 %v9473_v11  ;;  %v9534_v10 = vld [vmem:[#allocation87_spill] sm:$0xff]  ;;  %v9535_v11 = vld [vmem:[#allocation88_spill] sm:$0xff] }
 0x109   :  { %756 = vmatpush.msrb.mxu0 %v9474_v12  ;;  %776 = vmatpush.msrb.mxu1 %v9475_v13  ;;  %v9536_v12 = vld [vmem:[#allocation89_spill] sm:$0xff]  ;;  %v9537_v13 = vld [vmem:[#allocation90_spill] sm:$0xff] }
 0x10a   :  { %796 = vmatpush.msrb.mxu2 %v9476_v14  ;;  %816 = vmatpush.msrb.mxu3 %v9477_v15  ;;  %v9538_v14 = vld [vmem:[#allocation91_spill] sm:$0xff]  ;;  %v9539_v15 = vld [vmem:[#allocation92_spill] sm:$0xff] }
 0x10b   :  { %757 = vmatpush.msrb.mxu0 %v9478_v16  ;;  %777 = vmatpush.msrb.mxu1 %v9479_v17  ;;  %v9540_v16 = vld [vmem:[#allocation93_spill] sm:$0xff]  ;;  %v9541_v17 = vld [vmem:[#allocation94_spill] sm:$0xff] }
 0x10c   :  { %797 = vmatpush.msrb.mxu2 %v9480_v18  ;;  %817 = vmatpush.msrb.mxu3 %v9481_v19  ;;  %v9542_v18 = vld [vmem:[#allocation95_spill] sm:$0xff]  ;;  %v9543_v19 = vld [vmem:[#allocation96_spill] sm:$0xff] }
 0x10d   :  { %758 = vmatpush.msrb.mxu0 %v9482_v20  ;;  %778 = vmatpush.msrb.mxu1 %v9483_v21  ;;  %v9544_v20 = vld [vmem:[#allocation97_spill] sm:$0xff]  ;;  %v9545_v21 = vld [vmem:[#allocation98_spill] sm:$0xff] }
 0x10e   :  { %798 = vmatpush.msrb.mxu2 %v9484_v22  ;;  %818 = vmatpush.msrb.mxu3 %v9485_v23  ;;  %v9546_v22 = vld [vmem:[#allocation99_spill] sm:$0xff]  ;;  %v9547_v23 = vld [vmem:[#allocation100_spill] sm:$0xff] }
 0x10f   :  { %759 = vmatpush.msrb.mxu0 %v9486_v24  ;;  %779 = vmatpush.msrb.mxu1 %v9487_v25  ;;  %v9548_v24 = vld [vmem:[#allocation101_spill] sm:$0xff]  ;;  %v9549_v25 = vld [vmem:[#allocation102_spill] sm:$0xff] }
 0x110   :  { %799 = vmatpush.msrb.mxu2 %v9488_v26  ;;  %819 = vmatpush.msrb.mxu3 %v9489_v27  ;;  %v9550_v26 = vld [vmem:[#allocation103_spill] sm:$0xff]  ;;  %v9551_v27 = vld [vmem:[#allocation104_spill] sm:$0xff] }
 0x111   :  { %760 = vmatmul.f32.vlgmr.msrb.gmra.mxu0 %v5238_v46  ;;  %780 = vmatmul.f32.vlgmr.msrb.gmra.mxu1 %v5238_v46 }
 0x112   :  { %800 = vmatmul.f32.vlgmr.msrb.gmra.mxu2 %v5238_v46  ;;  %820 = vmatmul.f32.vlgmr.msrb.gmra.mxu3 %v5238_v46  ;;  %v9524_v46 = vld [vmem:[#allocation77_spill] sm:$0xff] }
 0x113   :  { %3522 = vset.pattern.permute.xlu0 %v4529_v28  ;;  %891 = vmatpush.msra.mxu0 %v9490_v29  ;;  %v9552_v28 = vld [vmem:[#allocation105_spill] sm:$0xff]  ;;  %v9553_v29 = vld [vmem:[#allocation106_spill] sm:$0xff] }
 0x114   :  { %733 = vperm.xlu0 %3522, %v9491_v30   ;;  %911 = vmatpush.msra.mxu1 %v9492_v31  ;;  %v9554_v30 = vld [vmem:[#allocation107_spill] sm:$0xff]  ;;  %v9555_v31 = vld [vmem:[#allocation108_spill] sm:$0xff] }
 0x115   :  { %931 = vmatpush.msra.mxu2 %v9493_v32  ;;  %951 = vmatpush.msra.mxu3 %v9494_v33  ;;  %v9556_v32 = vld [vmem:[#allocation109_spill] sm:$0xff]  ;;  %v9557_v33 = vld [vmem:[#allocation110_spill] sm:$0xff] }
 0x116   :  { %892 = vmatpush.msra.mxu0 %v9495_v34  ;;  %912 = vmatpush.msra.mxu1 %v9496_v35  ;;  %v9558_v34 = vld [vmem:[#allocation111_spill] sm:$0xff]  ;;  %v9559_v35 = vld [vmem:[#allocation112_spill] sm:$0xff] }
 0x117   :  { %932 = vmatpush.msra.mxu2 %v9497_v36  ;;  %952 = vmatpush.msra.mxu3 %v9498_v37  ;;  %v9560_v36 = vld [vmem:[#allocation113_spill] sm:$0xff]  ;;  %v9561_v37 = vld [vmem:[#allocation114_spill] sm:$0xff] }
 0x118   :  { %893 = vmatpush.msra.mxu0 %v9499_v38  ;;  %913 = vmatpush.msra.mxu1 %v9500_v39  ;;  %v9562_v38 = vld [vmem:[#allocation115_spill] sm:$0xff]  ;;  %v9563_v39 = vld [vmem:[#allocation116_spill] sm:$0xff] }
 0x119   :  { %933 = vmatpush.msra.mxu2 %v9501_v40  ;;  %953 = vmatpush.msra.mxu3 %v9502_v41  ;;  %v9564_v40 = vld [vmem:[#allocation117_spill] sm:$0xff]  ;;  %v9565_v41 = vld [vmem:[#allocation118_spill] sm:$0xff] }
 0x11a   :  { %894 = vmatpush.msra.mxu0 %v9503_v42  ;;  %914 = vmatpush.msra.mxu1 %v9504_v43  ;;  %v9566_v42 = vld [vmem:[#allocation119_spill] sm:$0xff]  ;;  %v9567_v43 = vld [vmem:[#allocation120_spill] sm:$0xff] }
 0x11b   :  { %934 = vmatpush.msra.mxu2 %v9505_v51  ;;  %954 = vmatpush.msra.mxu3 %v9506_v62  ;;  %v9568_v51 = vld [vmem:[#allocation121_spill] sm:$0xff]  ;;  %v9569_v62 = vld [vmem:[#allocation122_spill] sm:$0xff] }
 0x11c   :  { %895 = vmatpush.msra.mxu0 %v9507_v45  ;;  %915 = vmatpush.msra.mxu1 %v9508_v47  ;;  %v9570_v45 = vld [vmem:[#allocation125_spill] sm:$0xff]  ;;  %v9571_v47 = vld [vmem:[#allocation126_spill] sm:$0xff] }
 0x11d   :  { %935 = vmatpush.msra.mxu2 %v9509_v49  ;;  %955 = vmatpush.msra.mxu3 %v9510_v58  ;;  %v9572_v49 = vld [vmem:[#allocation127_spill] sm:$0xff]  ;;  %v9573_v58 = vld [vmem:[#allocation128_spill] sm:$0xff] }
 0x11e   :  { %896 = vmatpush.msra.mxu0 %v9511_v63  ;;  %916 = vmatpush.msra.mxu1 %v9512_v52  ;;  %v9574_v63 = vld [vmem:[#allocation129_spill] sm:$0xff]  ;;  %v9575_v52 = vld [vmem:[#allocation130_spill] sm:$0xff] }
 0x11f   :  { %936 = vmatpush.msra.mxu2 %v9513_v0  ;;  %956 = vmatpush.msra.mxu3 %v9514_v57  ;;  %v9576_v0 = vld [vmem:[#allocation131_spill] sm:$0xff]  ;;  %v9577_v57 = vld [vmem:[#allocation134_spill] sm:$0xff] }
 0x120   :  { %897 = vmatpush.msra.mxu0 %v9515_v61  ;;  %917 = vmatpush.msra.mxu1 %v9516_v60  ;;  %v9578_v61 = vld [vmem:[#allocation135_spill] sm:$0xff]  ;;  %v9579_v60 = vld [vmem:[#allocation136_spill] sm:$0xff] }
 0x121   :  { %937 = vmatpush.msra.mxu2 %v9517_v54  ;;  %957 = vmatpush.msra.mxu3 %v9518_v48  ;;  %v9580_v54 = vld [vmem:[#allocation137_spill] sm:$0xff]  ;;  %v9581_v48 = vld [vmem:[#allocation138_spill] sm:$0xff] }
 0x122   :  { %898 = vmatpush.msra.mxu0 %v9519_v59  ;;  %918 = vmatpush.msra.mxu1 %v9520_v44  ;;  %v9582_v59 = vld [vmem:[#allocation139_spill] sm:$0xff]  ;;  %v9583_v44 = vld [vmem:[#allocation140_spill] sm:$0xff] }
 0x123   :  { %938 = vmatpush.msra.mxu2 %v9521_v56  ;;  %958 = vmatpush.msra.mxu3 %v9522_v53  ;;  %v9584_v56 = vld [vmem:[#allocation141_spill] sm:$0xff]  ;;  %v9585_v53 = vld [vmem:[#allocation142_spill] sm:$0xff] }
 0x124   :  { %899 = vmatpush.msra.mxu0 %v9523_v55  ;;  %919 = vmatpush.msra.mxu1 %v9524_v46  ;;  %v9586_v55 = vld [vmem:[#allocation143_spill] sm:$0xff]  ;;  %v9587_v46 = vld [vmem:[#allocation145_spill] sm:$0xff] }
 0x125   :  { %939 = vmatpush.msra.mxu2 %v9525_v1  ;;  %959 = vmatpush.msra.mxu3 %v9526_v2  ;;  %v9588_v1 = vld [vmem:[#allocation146_spill] sm:$0xff]  ;;  %v9589_v2 = vld [vmem:[#allocation147_spill] sm:$0xff] }
 0x126   :  { %900 = vmatpush.msra.mxu0 %v9527_v3  ;;  %920 = vmatpush.msra.mxu1 %v9528_v4  ;;  %v9590_v3 = vld [vmem:[#allocation148_spill] sm:$0xff]  ;;  %v9591_v4 = vld [vmem:[#allocation149_spill] sm:$0xff] }
 0x127   :  { %940 = vmatpush.msra.mxu2 %v9529_v5  ;;  %960 = vmatpush.msra.mxu3 %v9530_v6  ;;  %v9592_v5 = vld [vmem:[#allocation150_spill] sm:$0xff]  ;;  %v9593_v6 = vld [vmem:[#allocation151_spill] sm:$0xff] }
 0x128   :  { %901 = vmatpush.msra.mxu0 %v9531_v7  ;;  %921 = vmatpush.msra.mxu1 %v9532_v8  ;;  %v9594_v7 = vld [vmem:[#allocation152_spill] sm:$0xff]  ;;  %v9595_v8 = vld [vmem:[#allocation154_spill] sm:$0xff] }
 0x129   :  { %941 = vmatpush.msra.mxu2 %v9533_v9  ;;  %961 = vmatpush.msra.mxu3 %v9534_v10  ;;  %v9596_v9 = vld [vmem:[#allocation155_spill] sm:$0xff]  ;;  %v9597_v10 = vld [vmem:[#allocation156_spill] sm:$0xff] }
 0x12a   :  { %902 = vmatpush.msra.mxu0 %v9535_v11  ;;  %922 = vmatpush.msra.mxu1 %v9536_v12  ;;  %v9598_v11 = vld [vmem:[#allocation157_spill] sm:$0xff]  ;;  %v9599_v12 = vld [vmem:[#allocation158_spill] sm:$0xff] }
 0x12b   :  { %942 = vmatpush.msra.mxu2 %v9537_v13  ;;  %962 = vmatpush.msra.mxu3 %v9538_v14  ;;  %v9600_v13 = vld [vmem:[#allocation159_spill] sm:$0xff]  ;;  %v9601_v14 = vld [vmem:[#allocation160_spill] sm:$0xff] }
 0x12c   :  { %903 = vmatpush.msra.mxu0 %v9539_v15  ;;  %923 = vmatpush.msra.mxu1 %v9540_v16  ;;  %v9602_v15 = vld [vmem:[#allocation161_spill] sm:$0xff]  ;;  %v9603_v16 = vld [vmem:[#allocation162_spill] sm:$0xff] }
 0x12d   :  { %943 = vmatpush.msra.mxu2 %v9541_v17  ;;  %963 = vmatpush.msra.mxu3 %v9542_v18  ;;  %v9604_v17 = vld [vmem:[#allocation163_spill] sm:$0xff]  ;;  %v9605_v18 = vld [vmem:[#allocation164_spill] sm:$0xff] }
 0x12e   :  { %904 = vmatpush.msra.mxu0 %v9543_v19  ;;  %924 = vmatpush.msra.mxu1 %v9544_v20  ;;  %v9606_v19 = vld [vmem:[#allocation165_spill] sm:$0xff]  ;;  %v9607_v20 = vld [vmem:[#allocation166_spill] sm:$0xff] }
 0x12f   :  { %944 = vmatpush.msra.mxu2 %v9545_v21  ;;  %964 = vmatpush.msra.mxu3 %v9546_v22  ;;  %v9608_v21 = vld [vmem:[#allocation167_spill] sm:$0xff]  ;;  %v9609_v22 = vld [vmem:[#allocation168_spill] sm:$0xff] }
 0x130   :  { %905 = vmatpush.msra.mxu0 %v9547_v23  ;;  %925 = vmatpush.msra.mxu1 %v9548_v24  ;;  %v9610_v23 = vld [vmem:[#allocation169_spill] sm:$0xff]  ;;  %v9611_v24 = vld [vmem:[#allocation171_spill] sm:$0xff] }
 0x131   :  { %945 = vmatpush.msra.mxu2 %v9549_v25  ;;  %965 = vmatpush.msra.mxu3 %v9550_v26  ;;  %v9612_v25 = vld [vmem:[#allocation172_spill] sm:$0xff]  ;;  %v9613_v26 = vld [vmem:[#allocation173_spill] sm:$0xff] }
 0x132   :  { %906 = vmatpush.msra.mxu0 %v9551_v27  ;;  %926 = vmatpush.msra.mxu1 %v9552_v28  ;;  %v9614_v27 = vld [vmem:[#allocation174_spill] sm:$0xff]  ;;  %v9615_v28 = vld [vmem:[#allocation175_spill] sm:$0xff] }
 0x133   :  { %946 = vmatpush.msra.mxu2 %v9553_v29  ;;  %966 = vmatpush.msra.mxu3 %v9554_v30  ;;  %v9616_v29 = vld [vmem:[#allocation176_spill] sm:$0xff]  ;;  %v9617_v30 = vld [vmem:[#allocation177_spill] sm:$0xff] }
 0x134   :  { %971 = vmatpush.msrb.mxu0 %v9555_v31  ;;  %991 = vmatpush.msrb.mxu1 %v9556_v32  ;;  %v9618_v31 = vld [vmem:[#allocation178_spill] sm:$0xff] }
 0x135   :  { %1011 = vmatpush.msrb.mxu2 %v9557_v33  ;;  %1031 = vmatpush.msrb.mxu3 %v9558_v34  ;;  %v326_v34 = vld [vmem:[#allocation11] sm:$0xf] }
 0x136   :  { %972 = vmatpush.msrb.mxu0 %v9559_v35  ;;  %992 = vmatpush.msrb.mxu1 %v9560_v36 }
 0x137   :  { %1012 = vmatpush.msrb.mxu2 %v9561_v37  ;;  %1032 = vmatpush.msrb.mxu3 %v9562_v38  ;;  %v5445_v37 = vperm.slane %v326_v34, 0 }
 0x138   :  { %973 = vmatpush.msrb.mxu0 %v9563_v39  ;;  %993 = vmatpush.msrb.mxu1 %v9564_v40  ;;  %v5447_v39 = vperm.slane %v326_v34, 1 }
 0x139   :  { %1013 = vmatpush.msrb.mxu2 %v9565_v41  ;;  %1033 = vmatpush.msrb.mxu3 %v9566_v42  ;;  %9619 = vst [vmem:[#allocation17_spill] sm:$0xff] %v5445_v37 }
 0x13a   :  { %974 = vmatpush.msrb.mxu0 %v9567_v43  ;;  %994 = vmatpush.msrb.mxu1 %v9568_v51  ;;  %9620 = vst [vmem:[#allocation18_spill] sm:$0xff] %v5447_v39 }
 0x13b   :  { %1014 = vmatpush.msrb.mxu2 %v9569_v62  ;;  %1034 = vmatpush.msrb.mxu3 %v9570_v45 }
 0x13c   :  { %975 = vmatpush.msrb.mxu0 %v9571_v47  ;;  %995 = vmatpush.msrb.mxu1 %v9572_v49  ;;  %v9621_v47 = vld [vmem:[#allocation123_spill] sm:$0xff] }
 0x13d   :  { %1015 = vmatpush.msrb.mxu2 %v9573_v58  ;;  %1035 = vmatpush.msrb.mxu3 %v9574_v63  ;;  %v9622_v58 = vld [vmem:[#allocation124_spill] sm:$0xff] }
 0x13e   :  { %976 = vmatpush.msrb.mxu0 %v9575_v52  ;;  %996 = vmatpush.msrb.mxu1 %v9576_v0 }
 0x13f   :  { %1016 = vmatpush.msrb.mxu2 %v9577_v57  ;;  %1036 = vmatpush.msrb.mxu3 %v9578_v61  ;;  %v9623_v61 = vld [vmem:[#allocation132_spill] sm:$0xff] }
 0x140   :  { %977 = vmatpush.msrb.mxu0 %v9579_v60  ;;  %997 = vmatpush.msrb.mxu1 %v9580_v54  ;;  %v9624_v54 = vld [vmem:[#allocation133_spill] sm:$0xff] }
 0x141   :  { %1017 = vmatpush.msrb.mxu2 %v9581_v48  ;;  %1037 = vmatpush.msrb.mxu3 %v9582_v59 }
 0x142   :  { %978 = vmatpush.msrb.mxu0 %v9583_v44  ;;  %998 = vmatpush.msrb.mxu1 %v9584_v56  ;;  %v5455_v44 = vperm.slane %v326_v34, 3 }
 0x143   :  { %1018 = vmatpush.msrb.mxu2 %v9585_v53  ;;  %1038 = vmatpush.msrb.mxu3 %v9586_v55 }
 0x144   :  { %979 = vmatpush.msrb.mxu0 %v9587_v46  ;;  %999 = vmatpush.msrb.mxu1 %v9588_v1  ;;  %9625 = vst [vmem:[#allocation19_spill] sm:$0xff] %v5455_v44 }
 0x145   :  { %1019 = vmatpush.msrb.mxu2 %v9589_v2  ;;  %1039 = vmatpush.msrb.mxu3 %v9590_v3 }
 0x146   :  { %980 = vmatpush.msrb.mxu0 %v9591_v4  ;;  %1000 = vmatpush.msrb.mxu1 %v9592_v5  ;;  %v9626_v5 = vld [vmem:[#allocation144_spill] sm:$0xff] }
 0x147   :  { %1020 = vmatpush.msrb.mxu2 %v9593_v6  ;;  %1040 = vmatpush.msrb.mxu3 %v9594_v7 }
 0x148   :  { %981 = vmatpush.msrb.mxu0 %v9595_v8  ;;  %1001 = vmatpush.msrb.mxu1 %v9596_v9 }
 0x149   :  { %1021 = vmatpush.msrb.mxu2 %v9597_v10  ;;  %1041 = vmatpush.msrb.mxu3 %v9598_v11  ;;  %v9627_v10 = vld [vmem:[#allocation153_spill] sm:$0xff] }
 0x14a   :  { %982 = vmatpush.msrb.mxu0 %v9599_v12  ;;  %1002 = vmatpush.msrb.mxu1 %v9600_v13 }
 0x14b   :  { %1022 = vmatpush.msrb.mxu2 %v9601_v14  ;;  %1042 = vmatpush.msrb.mxu3 %v9602_v15 }
 0x14c   :  { %983 = vmatpush.msrb.mxu0 %v9603_v16  ;;  %1003 = vmatpush.msrb.mxu1 %v9604_v17 }
 0x14d   :  { %1023 = vmatpush.msrb.mxu2 %v9605_v18  ;;  %1043 = vmatpush.msrb.mxu3 %v9606_v19  ;;  %v5470_v19 = vperm.slane %v326_v34, 2 }
 0x14e   :  { %984 = vmatpush.msrb.mxu0 %v9607_v20  ;;  %1004 = vmatpush.msrb.mxu1 %v9608_v21 }
 0x14f   :  { %1024 = vmatpush.msrb.mxu2 %v9609_v22  ;;  %1044 = vmatpush.msrb.mxu3 %v9610_v23  ;;  %9628 = vst [vmem:[#allocation20_spill] sm:$0xff] %v5470_v19 }
 0x150   :  { %985 = vmatpush.msrb.mxu0 %v9611_v24  ;;  %1005 = vmatpush.msrb.mxu1 %v9612_v25 }
 0x151   :  { %1025 = vmatpush.msrb.mxu2 %v9613_v26  ;;  %1045 = vmatpush.msrb.mxu3 %v9614_v27  ;;  %v9629_v26 = vld [vmem:[#allocation170_spill] sm:$0xff] }
 0x152   :  { %986 = vmatpush.msrb.mxu0 %v9615_v28  ;;  %1006 = vmatpush.msrb.mxu1 %v9616_v29 }
 0x153   :  { %1026 = vmatpush.msrb.mxu2 %v9617_v30  ;;  %1046 = vmatpush.msrb.mxu3 %v9618_v31 }
 0x16a   :  { %v522_v32 = vpop.f32.mrf.mxu0  ;;  %v542_v33 = vpop.f32.mrf.mxu1 }
 0x171   :  { %v582_v43 = vpop.f32.mrf.mxu3  ;;  %v562_v59 = vpop.f32.mrf.mxu2 }
 0x174   :  { %v602_v35 = vpop.f32.mrf.mxu0  ;;  %v622_v36 = vpop.f32.mrf.mxu1 }
 0x175   :  { %v603_v38 = vadd.f32 %v602_v35, %v522_v32  ;;  %v623_v40 = vadd.f32 %v622_v36, %v542_v33  ;;  %v9630_v33 = vld [vmem:[#allocation179_spill] sm:$0xff] }
 0x177   :  { %v665_v41 = vadd.f32 %v603_v38, %v5445_v37  ;;  %v666_v42 = vadd.f32 %v623_v40, %v5447_v39 }
 0x179   :  { %v3459_v51 = vmul.f32 -1.442695, %v665_v41  ;;  %v3460_v62 = vmul.f32 -1.442695, %v666_v42 }
 0x17b   :  { %3548 = vpow2.f32 %v3459_v51  ;;  %v662_v52 = vpop.f32.mrf.mxu3  ;;  %v642_v13 = vpop.f32.mrf.mxu2 }
 0x17c   :  { %3550 = vpow2.f32 %v3460_v62  ;;  %v663_v56 = vadd.f32 %v662_v52, %v582_v43  ;;  %v643_v20 = vadd.f32 %v642_v13, %v562_v59 }
 0x17e   :  { %v668_v4 = vadd.f32 %v663_v56, %v5455_v44  ;;  %v667_v28 = vadd.f32 %v643_v20, %v5470_v19 }
 0x180   :  { %v3461_v9 = vmul.f32 -1.442695, %v668_v4 }
 0x181   :  { %v3549_v0 = vpop.eup %3548 }
 0x182   :  { %v3551_v57 = vpop.eup %3550  ;;  %v5457_v53 = vadd.f32 1.0, %v3549_v0 }
 0x183   :  { %v5459_v55 = vadd.f32 1.0, %v3551_v57 }
 0x184   :  { %3552 = vrcp.f32 %v5457_v53  ;;  %vm678_vm12 = vweird.f32 %v5457_v53  ;;  %v682_v51 = vand.u32 2147483647, %v5457_v53  ;;  %v684_v62 = vand.u32 2147483648, %v5457_v53 }
 0x185   :  { %3554 = vrcp.f32 %v5459_v55  ;;  %vm697_vm13 = vweird.f32 %v5459_v55 }
 0x186   :  { %v734_v45 = vpop.permute.xlu0 %733  ;;  %vm683_vm10 = vcmp.eq.f32.partialorder %v682_v51, 8.507059e+37 }
 0x187   :  { %v736_v49 = vmul.f32 %v734_v45, %v9621_v47  ;;  %v737_v63 = vmul.f32 %v734_v45, %v9622_v58  ;;  %v739_v6 = vmul.f32 %v734_v45, %v9626_v5  ;;  %v738_v27 = vmul.f32 %v734_v45, %v9629_v26 }
 0x189   :  { %v740_v60 = vadd.f32 %v736_v49, %v9623_v61  ;;  %v741_v48 = vadd.f32 %v737_v63, %v9624_v54  ;;  %v743_v11 = vadd.f32 %v739_v6, %v9627_v10  ;;  %v742_v34 = vadd.f32 %v738_v27, %v9630_v33 }
 0x18a   :  { %v5466_v15 = vpop.eup %3552  ;;  %v703_v63 = vand.u32 2147483648, %v5459_v55 }
 0x18b   :  { %v5468_v16 = vpop.eup %3554  ;;  %v674_v22 = vmul.f32 %v5466_v15, %v5457_v53  ;;  %vm679_vm14 = vweird.f32 %v5466_v15  ;;  %v701_v53 = vand.u32 2147483647, %v5459_v55 }
 0x18c   :  { %v693_v25 = vmul.f32 %v5468_v16, %v5459_v55  ;;  %vm698_vm15 = vweird.f32 %v5468_v16  ;;  %vm5508_vm1 = vmor %vm678_vm12, %vm679_vm14 }
 0x18d   :  { %v675_v30 = vsub.f32 1.0, %v674_v22  ;;  %vm5518_vm3 = vmor %vm697_vm13, %vm698_vm15  ;;  %vm702_vm11 = vcmp.eq.f32.partialorder %v701_v53, 8.507059e+37  ;;  %v5590_v53 = vld [vmem:[#allocation7 + $0x1a0] sm:$0xff] }
 0x18e   :  { %v761_v46 = vpop.f32.mrf.mxu0  ;;  %v781_v1 = vpop.f32.mrf.mxu1  ;;  %v694_v32 = vsub.f32 1.0, %v693_v25 }
 0x18f   :  { %v824_v2 = vadd.f32 %v761_v46, %v740_v60  ;;  %v825_v3 = vadd.f32 %v781_v1, %v741_v48  ;;  %v676_v40 = vmul.f32 %v5466_v15, %v675_v30 }
 0x190   :  { %v695_v49 = vmul.f32 %v5468_v16, %v694_v32 }
 0x191   :  { %v3462_v7 = vmul.f32 -1.442695, %v824_v2  ;;  %v3463_v8 = vmul.f32 -1.442695, %v825_v3  ;;  %v677_v57 = vadd.f32 %v5466_v15, %v676_v40  ;;  %v5575_v2 = vld [vmem:[#allocation7 + $0x1c0] sm:$0xff] }
 0x192   :  { %v696_v3 = vadd.f32 %v5468_v16, %v695_v49 }
 0x193   :  { %3556 = vpow2.f32 %v3462_v7  ;;  %v685_v7 = vor.u32 1.1754944e-38, %v684_v62 }
 0x194   :  { %3558 = vpow2.f32 %v3463_v8  ;;  %v700_v22 = vsel %vm5518_vm3, %v5468_v16, %v696_v3  ;;  %v5578_v3 = vld [vmem:[#allocation7 + $0x1c8] sm:$0xff] }
 0x195   :  { %v821_v12 = vpop.f32.mrf.mxu3  ;;  %3560 = vpow2.f32 %v3461_v9  ;;  %v801_v31 = vpop.f32.mrf.mxu2 }
 0x196   :  { %v827_v14 = vadd.f32 %v821_v12, %v743_v11  ;;  %v826_v41 = vadd.f32 %v801_v31, %v742_v34  ;;  %v681_v12 = vsel %vm5508_vm1, %v5466_v15, %v677_v57 }
 0x197   :  { %v686_v30 = vsel %vm683_vm10, %v685_v7, %v681_v12  ;;  %v5587_v7 = vld [vmem:[#allocation7 + $0x1d8] sm:$0xff] }
 0x198   :  { %v3464_v17 = vmul.f32 -1.442695, %v827_v14  ;;  %v5599_v12 = vld [vmem:[#allocation7 + $0x1b8] sm:$0xff] }
 0x199   :  { %v3557_v18 = vpop.eup %3556 }
 0x19a   :  { %v3559_v21 = vpop.eup %3558  ;;  %v5474_v23 = vadd.f32 1.0, %v3557_v18  ;;  %3562 = vpow2.f32 %v3464_v17 }
 0x19b   :  { %v5476_v24 = vadd.f32 1.0, %v3559_v21  ;;  %v3561_v29 = vpop.eup %3560 }
 0x19c   :  { %3564 = vrcp.f32 %v5474_v23  ;;  %v5485_v36 = vadd.f32 1.0, %v3561_v29  ;;  %v843_v48 = vand.u32 2147483648, %v5474_v23  ;;  %v841_v1 = vand.u32 2147483647, %v5474_v23 }
 0x19d   :  { %3566 = vrcp.f32 %v5476_v24  ;;  %v862_v56 = vand.u32 2147483648, %v5476_v24  ;;  %v860_v6 = vand.u32 2147483647, %v5476_v24  ;;  %vm837_vm4 = vweird.f32 %v5474_v23 }
 0x19e   :  { %3568 = vtanh.f32 %v667_v28  ;;  %vm856_vm5 = vweird.f32 %v5476_v24  ;;  %v844_v13 = vor.u32 1.1754944e-38, %v843_v48  ;;  %vm842_vm8 = vcmp.eq.f32.partialorder %v841_v1, 8.507059e+37  ;;  %v5560_v48 = vld [vmem:[#allocation7 + $0x1e8] sm:$0xff]  ;;  %v5695_v1 = vld [vmem:[#allocation7 + $0xb8] sm:$0xff] }
 0x19f   :  { %v863_v18 = vor.u32 1.1754944e-38, %v862_v56  ;;  %vm861_vm9 = vcmp.eq.f32.partialorder %v860_v6, 8.507059e+37  ;;  %v723_v57 = vand.u32 2147483648, %v5485_v36  ;;  %vm717_vm1 = vweird.f32 %v5485_v36  ;;  %v5565_v56 = vld [vmem:[#allocation7 + $0x1f0] sm:$0xff]  ;;  %9652 = vst [vmem:[#allocation36_spill] sm:$0xff] %v5695_v1 }
 0x1a0   :  { %v3563_v35 = vpop.eup %3562  ;;  %v5584_v6 = vld [vmem:[#allocation7 + $0x1d0] sm:$0xff] }
 0x1a1   :  { %v5489_v42 = vadd.f32 1.0, %v3563_v35  ;;  %v724_v8 = vor.u32 1.1754944e-38, %v723_v57  ;;  %v5689_v57 = vld [vmem:[#allocation7 + $0xa8] sm:$0xff] }
 0x1a2   :  { %v3565_v38 = vpop.eup %3564  ;;  %9650 = vst [vmem:[#allocation34_spill] sm:$0xff] %v5689_v57 }
 0x1a3   :  { %v3567_v43 = vpop.eup %3566  ;;  %v833_v45 = vmul.f32 %v3565_v38, %v5474_v23  ;;  %3570 = vrcp.f32 %v5489_v42  ;;  %vm838_vm0 = vweird.f32 %v3565_v38  ;;  %vm876_vm13 = vweird.f32 %v5489_v42 }
 0x1a4   :  { %v852_v52 = vmul.f32 %v3567_v43, %v5476_v24  ;;  %3572 = vrcp.f32 %v5485_v36  ;;  %v3569_v59 = vpop.eup %3568  ;;  %vm857_vm2 = vweird.f32 %v3567_v43  ;;  %vm839_vm6 = vmor %vm837_vm4, %vm838_vm0  ;;  %v704_v24 = vor.u32 1.1754944e-38, %v703_v63 }
 0x1a5   :  { %v834_v0 = vsub.f32 1.0, %v833_v45  ;;  %3574 = vtanh.f32 %v826_v41  ;;  %vm858_vm7 = vmor %vm856_vm5, %vm857_vm2  ;;  %v728_v40 = vmul.f32 %v3569_v59, %v686_v30  ;;  %v882_v41 = vand.u32 2147483648, %v5489_v42  ;;  %v5641_v30 = vld [vmem:[#allocation7 + $0x128] sm:$0xff] }
 0x1a6   :  { %v853_v60 = vsub.f32 1.0, %v852_v52  ;;  %v705_v31 = vsel %vm702_vm11, %v704_v24, %v700_v22  ;;  %v721_v59 = vand.u32 2147483647, %v5485_v36  ;;  %v5617_v22 = vld [vmem:[#allocation7 + $0x168] sm:$0xff]  ;;  %v5626_v24 = vld [vmem:[#allocation7 + $0x140] sm:$0xff] }
 0x1a7   :  { %v835_v46 = vmul.f32 %v3565_v38, %v834_v0  ;;  %v883_v45 = vor.u32 1.1754944e-38, %v882_v41  ;;  %v5662_v41 = vld [vmem:[#allocation7 + $0xe0] sm:$0xff] }
 0x1a8   :  { %v854_v4 = vmul.f32 %v3567_v43, %v853_v60  ;;  %v5557_v60 = vld [vmem:[#allocation7 + $0x1e0] sm:$0xff]  ;;  %vm722_vm3 = vcmp.eq.f32.partialorder %v721_v59, 8.507059e+37  ;;  %9641 = vst [vmem:[#allocation25_spill] sm:$0xff] %v5662_v41  ;;  %v5692_v59 = vld [vmem:[#allocation7 + $0xb0] sm:$0xff] }
 0x1a9   :  { %v836_v9 = vadd.f32 %v3565_v38, %v835_v46  ;;  %v3571_v11 = vpop.eup %3570  ;;  %v5568_v46 = vld [vmem:[#allocation7 + $0x1f8] sm:$0xff]  ;;  %9651 = vst [vmem:[#allocation35_spill] sm:$0xff] %v5692_v59 }
 0x1aa   :  { %v855_v14 = vadd.f32 %v3567_v43, %v854_v4  ;;  %v5529_v17 = vpop.eup %3572  ;;  %v872_v55 = vmul.f32 %v3571_v11, %v5489_v42  ;;  %vm877_vm12 = vweird.f32 %v3571_v11 }
 0x1ab   :  { %v840_v20 = vsel %vm839_vm6, %v3565_v38, %v836_v9  ;;  %v3575_v21 = vpop.eup %3574  ;;  %v713_v32 = vmul.f32 %v5529_v17, %v5485_v36  ;;  %v727_v38 = vmul.f32 0.0, %v705_v31  ;;  %vm878_vm14 = vmor %vm876_vm13, %vm877_vm12  ;;  %vm718_vm0 = vweird.f32 %v5529_v17  ;;  %v5593_v9 = vld [vmem:[#allocation7 + $0x1a8] sm:$0xff]  ;;  %v5644_v31 = vld [vmem:[#allocation7 + $0x130] sm:$0xff] }
 0x1ac   :  { %v845_v15 = vsel %vm842_vm8, %v844_v13, %v840_v20  ;;  %v859_v23 = vsel %vm858_vm7, %v3567_v43, %v855_v14  ;;  %v873_v28 = vsub.f32 1.0, %v872_v55  ;;  %vm5571_vm2 = vmor %vm717_vm1, %vm718_vm0  ;;  %v5602_v14 = vld [vmem:[#allocation7 + $0x180] sm:$0xff]  ;;  %v5608_v20 = vld [vmem:[#allocation7 + $0x190] sm:$0xff] }
 0x1ad   :  { %v864_v25 = vsel %vm861_vm9, %v863_v18, %v859_v23  ;;  %v887_v27 = vmul.f32 %v3575_v21, %v845_v15  ;;  %v714_v43 = vsub.f32 1.0, %v713_v32  ;;  %v5544_v62 = vadd.f32 %v728_v40, %v727_v38  ;;  %v5611_v55 = vld [vmem:[#allocation7 + $0x198] sm:$0xff]  ;;  %v5614_v21 = vld [vmem:[#allocation7 + $0x160] sm:$0xff]  ;;  %v5620_v15 = vld [vmem:[#allocation7 + $0x170] sm:$0xff] }
 0x1ae   :  { %v886_v29 = vmul.f32 %v864_v25, %v5235_v50  ;;  %v874_v34 = vmul.f32 %v3571_v11, %v873_v28  ;;  %v880_v50 = vand.u32 2147483647, %v5489_v42  ;;  %v5623_v23 = vld [vmem:[#allocation7 + $0x178] sm:$0xff]  ;;  %v5629_v25 = vld [vmem:[#allocation7 + $0x148] sm:$0xff]  ;;  %v5656_v38 = vld [vmem:[#allocation7 + $0x110] sm:$0xff] }
 0x1af   :  { %v715_v49 = vmul.f32 %v5529_v17, %v714_v43  ;;  %v5635_v28 = vld [vmem:[#allocation7 + $0x158] sm:$0xff]  ;;  %9639 = vst [vmem:[#allocation23_spill] sm:$0xff] %v5656_v38  ;;  %v5665_v43 = vld [vmem:[#allocation7 + $0xe8] sm:$0xff] }
 0x1b0   :  { %v5538_v35 = vadd.f32 %v887_v27, %v886_v29  ;;  %v875_v16 = vadd.f32 %v3571_v11, %v874_v34  ;;  %vm881_vm15 = vcmp.eq.f32.partialorder %v880_v50, 8.507059e+37  ;;  %v5632_v27 = vld [vmem:[#allocation7 + $0x150] sm:$0xff]  ;;  %v5638_v29 = vld [vmem:[#allocation7 + $0x120] sm:$0xff]  ;;  %v5647_v32 = vld [vmem:[#allocation7 + $0x138] sm:$0xff]  ;;  %9642 = vst [vmem:[#allocation26_spill] sm:$0xff] %v5665_v43 }
 0x1b1   :  { %v716_v42 = vadd.f32 %v5529_v17, %v715_v49  ;;  %v5650_v34 = vld [vmem:[#allocation7 + $0x100] sm:$0xff]  ;;  %v5659_v40 = vld [vmem:[#allocation7 + $0x118] sm:$0xff]  ;;  %v5668_v50 = vld [vmem:[#allocation7 + $0xf0] sm:$0xff] }
 0x1b2   :  { %3576 = vtanh.f32 %v5538_v35  ;;  %v879_v51 = vsel %vm878_vm14, %v3571_v11, %v875_v16  ;;  %v5596_v11 = vld [vmem:[#allocation7 + $0x1b0] sm:$0xff]  ;;  %9637 = vst [vmem:[#allocation21_spill] sm:$0xff] %v5650_v34  ;;  %v5653_v16 = vld [vmem:[#allocation7 + $0x108] sm:$0xff] }
 0x1b3   :  { %v884_v52 = vsel %vm881_vm15, %v883_v45, %v879_v51  ;;  %3578 = vtanh.f32 %v5544_v62  ;;  %v720_v36 = vsel %vm5571_vm2, %v5529_v17, %v716_v42  ;;  %v5605_v17 = vld [vmem:[#allocation7 + $0x188] sm:$0xff]  ;;  %9638 = vst [vmem:[#allocation22_spill] sm:$0xff] %v5653_v16  ;;  %v5671_v51 = vld [vmem:[#allocation7 + $0xf8] sm:$0xff]  ;;  %v5674_v45 = vld [vmem:[#allocation7 + $0xc0] sm:$0xff] }
 0x1b4   :  { %v725_v13 = vsel %vm722_vm3, %v724_v8, %v720_v36  ;;  %9640 = vst [vmem:[#allocation24_spill] sm:$0xff] %v5659_v40  ;;  %v5677_v49 = vld [vmem:[#allocation7 + $0xc8] sm:$0xff]  ;;  %v5686_v42 = vld [vmem:[#allocation7 + $0xa0] sm:$0xff]  ;;  %v5704_v8 = vld [vmem:[#allocation7 + $0x90] sm:$0xff] }
 0x1b5   :  { %9643 = vst [vmem:[#allocation27_spill] sm:$0xff] %v5668_v50  ;;  %v5698_v36 = vld [vmem:[#allocation7 + $0x80] sm:$0xff] }
 0x1b6   :  { %9644 = vst [vmem:[#allocation28_spill] sm:$0xff] %v5671_v51 }
 0x1b7   :  { %9645 = vst [vmem:[#allocation29_spill] sm:$0xff] %v5674_v45 }
 0x1b8   :  { %v3577_v63 = vpop.eup %3576  ;;  %9646 = vst [vmem:[#allocation30_spill] sm:$0xff] %v5677_v49 }
 0x1b9   :  { %v5547_v0 = vmul.f32 %v3577_v63, %v884_v52  ;;  %v3579_v4 = vpop.eup %3578  ;;  %v5680_v63 = vld [vmem:[#allocation7 + $0xd0] sm:$0xff]  ;;  %v5683_v52 = vld [vmem:[#allocation7 + $0xd8] sm:$0xff]  ;;  %9649 = vst [vmem:[#allocation33_spill] sm:$0xff] %v5686_v42 }
 0x1ba   :  { %v731_v18 = vmul.f32 %v3579_v4, %v725_v13  ;;  %9647 = vst [vmem:[#allocation31_spill] sm:$0xff] %v5680_v63  ;;  %v5701_v4 = vld [vmem:[#allocation7 + $0x88] sm:$0xff]  ;;  %v5707_v13 = vld [vmem:[#allocation7 + $0x98] sm:$0xff] }
 0x1bb   :  { %907 = vmatmul.f32.vlgmr.msra.gmra.mxu0 %v5547_v0  ;;  %927 = vmatmul.f32.vlgmr.msra.gmra.mxu1 %v5547_v0  ;;  %9648 = vst [vmem:[#allocation32_spill] sm:$0xff] %v5683_v52 }
 0x1bc   :  { %947 = vmatmul.f32.vlgmr.msra.gmra.mxu2 %v5547_v0  ;;  %967 = vmatmul.f32.vlgmr.msra.gmra.mxu3 %v5547_v0  ;;  %9653 = vst [vmem:[#allocation37_spill] sm:$0xff] %v5698_v36 }
 0x1bd   :  { %1130 = vmatpush.msra.mxu0 %v5557_v60  ;;  %1150 = vmatpush.msra.mxu1 %v5560_v48  ;;  %9654 = vst [vmem:[#allocation38_spill] sm:$0xff] %v5701_v4 }
 0x1be   :  { %1170 = vmatpush.msra.mxu2 %v5565_v56  ;;  %1190 = vmatpush.msra.mxu3 %v5568_v46  ;;  %9655 = vst [vmem:[#allocation39_spill] sm:$0xff] %v5704_v8 }
 0x1bf   :  { %1131 = vmatpush.msra.mxu0 %v5575_v2  ;;  %1151 = vmatpush.msra.mxu1 %v5578_v3  ;;  %9656 = vst [vmem:[#allocation40_spill] sm:$0xff] %v5707_v13 }
 0x1c0   :  { %1171 = vmatpush.msra.mxu2 %v5584_v6  ;;  %1191 = vmatpush.msra.mxu3 %v5587_v7 }
 0x1c1   :  { %1132 = vmatpush.msra.mxu0 %v5590_v53  ;;  %1152 = vmatpush.msra.mxu1 %v5593_v9 }
 0x1c2   :  { %1172 = vmatpush.msra.mxu2 %v5596_v11  ;;  %1192 = vmatpush.msra.mxu3 %v5599_v12 }
 0x1c3   :  { %1133 = vmatpush.msra.mxu0 %v5602_v14  ;;  %1153 = vmatpush.msra.mxu1 %v5605_v17 }
 0x1c4   :  { %1173 = vmatpush.msra.mxu2 %v5608_v20  ;;  %1193 = vmatpush.msra.mxu3 %v5611_v55 }
 0x1c5   :  { %987 = vmatmul.f32.vlgmr.msrb.gmra.mxu0 %v731_v18  ;;  %1007 = vmatmul.f32.vlgmr.msrb.gmra.mxu1 %v731_v18 }
 0x1c6   :  { %1027 = vmatmul.f32.vlgmr.msrb.gmra.mxu2 %v731_v18  ;;  %1047 = vmatmul.f32.vlgmr.msrb.gmra.mxu3 %v731_v18  ;;  %v5710_v18 = vld [vmem:[#allocation7 + $0x60] sm:$0xff] }
 0x1c7   :  { %1134 = vmatpush.msra.mxu0 %v5614_v21  ;;  %1154 = vmatpush.msra.mxu1 %v5617_v22  ;;  %9657 = vst [vmem:[#allocation41_spill] sm:$0xff] %v5710_v18 }
 0x1c8   :  { %1174 = vmatpush.msra.mxu2 %v5620_v15  ;;  %1194 = vmatpush.msra.mxu3 %v5623_v23 }
 0x1c9   :  { %1135 = vmatpush.msra.mxu0 %v5626_v24  ;;  %1155 = vmatpush.msra.mxu1 %v5629_v25 }
 0x1ca   :  { %1175 = vmatpush.msra.mxu2 %v5632_v27  ;;  %1195 = vmatpush.msra.mxu3 %v5635_v28 }
 0x1cb   :  { %1136 = vmatpush.msra.mxu0 %v5638_v29  ;;  %1156 = vmatpush.msra.mxu1 %v5641_v30 }
 0x1cc   :  { %1176 = vmatpush.msra.mxu2 %v5644_v31  ;;  %1196 = vmatpush.msra.mxu3 %v5647_v32 }
 0x1cd   :  { %1137 = vmatpush.msra.mxu0 %v5650_v34  ;;  %1157 = vmatpush.msra.mxu1 %v5653_v16 }
 0x1ce   :  { %1177 = vmatpush.msra.mxu2 %v5656_v38  ;;  %1197 = vmatpush.msra.mxu3 %v5659_v40 }
 0x1cf   :  { %1138 = vmatpush.msra.mxu0 %v5662_v41  ;;  %1158 = vmatpush.msra.mxu1 %v5665_v43 }
 0x1d0   :  { %1178 = vmatpush.msra.mxu2 %v5668_v50  ;;  %1198 = vmatpush.msra.mxu3 %v5671_v51 }
 0x1d1   :  { %1139 = vmatpush.msra.mxu0 %v5674_v45  ;;  %1159 = vmatpush.msra.mxu1 %v5677_v49 }
 0x1d2   :  { %1179 = vmatpush.msra.mxu2 %v5680_v63  ;;  %1199 = vmatpush.msra.mxu3 %v5683_v52 }
 0x1d3   :  { %1140 = vmatpush.msra.mxu0 %v5686_v42  ;;  %1160 = vmatpush.msra.mxu1 %v5689_v57 }
 0x1d4   :  { %1180 = vmatpush.msra.mxu2 %v5692_v59  ;;  %1200 = vmatpush.msra.mxu3 %v5695_v1  ;;  %v5713_v1 = vld [vmem:[#allocation7 + $0x68] sm:$0xff] }
 0x1d5   :  { %1141 = vmatpush.msra.mxu0 %v5698_v36  ;;  %1161 = vmatpush.msra.mxu1 %v5701_v4  ;;  %9658 = vst [vmem:[#allocation42_spill] sm:$0xff] %v5713_v1  ;;  %v5716_v36 = vld [vmem:[#allocation7 + $0x70] sm:$0xff]  ;;  %v5719_v4 = vld [vmem:[#allocation7 + $0x78] sm:$0xff] }
 0x1d6   :  { %1181 = vmatpush.msra.mxu2 %v5704_v8  ;;  %1201 = vmatpush.msra.mxu3 %v5707_v13  ;;  %9659 = vst [vmem:[#allocation43_spill] sm:$0xff] %v5716_v36  ;;  %v5722_v8 = vld [vmem:[#allocation7 + $0x40] sm:$0xff]  ;;  %v5725_v13 = vld [vmem:[#allocation7 + $0x48] sm:$0xff] }
 0x1d7   :  { %1142 = vmatpush.msra.mxu0 %v5710_v18  ;;  %1162 = vmatpush.msra.mxu1 %v5713_v1  ;;  %9660 = vst [vmem:[#allocation44_spill] sm:$0xff] %v5719_v4  ;;  %v5728_v18 = vld [vmem:[#allocation7 + $0x50] sm:$0xff]  ;;  %v5731_v1 = vld [vmem:[#allocation7 + $0x58] sm:$0xff] }
 0x1d8   :  { %1182 = vmatpush.msra.mxu2 %v5716_v36  ;;  %1202 = vmatpush.msra.mxu3 %v5719_v4  ;;  %9661 = vst [vmem:[#allocation45_spill] sm:$0xff] %v5722_v8  ;;  %v5734_v36 = vld [vmem:[#allocation7 + $0x20] sm:$0xff]  ;;  %v5737_v4 = vld [vmem:[#allocation7 + $0x28] sm:$0xff] }
 0x1d9   :  { %1143 = vmatpush.msra.mxu0 %v5722_v8  ;;  %9662 = vst [vmem:[#allocation46_spill] sm:$0xff] %v5725_v13  ;;  %1163 = vmatpush.msra.mxu1 %v5725_v13  ;;  %v5740_v8 = vld [vmem:[#allocation7 + $0x30] sm:$0xff]  ;;  %v5743_v13 = vld [vmem:[#allocation7 + $0x38] sm:$0xff] }
 0x1da   :  { %9663 = vst [vmem:[#allocation47_spill] sm:$0xff] %v5728_v18  ;;  %1183 = vmatpush.msra.mxu2 %v5728_v18  ;;  %1203 = vmatpush.msra.mxu3 %v5731_v1  ;;  %v5746_v18 = vld [vmem:[#allocation7] sm:$0xff] }
 0x1db   :  { %9664 = vst [vmem:[#allocation48_spill] sm:$0xff] %v5731_v1  ;;  %1144 = vmatpush.msra.mxu0 %v5734_v36  ;;  %1164 = vmatpush.msra.mxu1 %v5737_v4  ;;  %v5749_v1 = vld [vmem:[#allocation7 + $0x8] sm:$0xff] }
 0x1dc   :  { %9665 = vst [vmem:[#allocation49_spill] sm:$0xff] %v5734_v36  ;;  %1184 = vmatpush.msra.mxu2 %v5740_v8  ;;  %1204 = vmatpush.msra.mxu3 %v5743_v13  ;;  %v5752_v36 = vld [vmem:[#allocation7 + $0x10] sm:$0xff] }
 0x1dd   :  { %9666 = vst [vmem:[#allocation50_spill] sm:$0xff] %v5737_v4  ;;  %1145 = vmatpush.msra.mxu0 %v5746_v18  ;;  %1165 = vmatpush.msra.mxu1 %v5749_v1  ;;  %v5755_v4 = vld [vmem:[#allocation7 + $0x18] sm:$0xff] }
 0x1de   :  { %9667 = vst [vmem:[#allocation51_spill] sm:$0xff] %v5740_v8  ;;  %1185 = vmatpush.msra.mxu2 %v5752_v36  ;;  %1205 = vmatpush.msra.mxu3 %v5755_v4  ;;  %v5774_v8 = vld [vmem:[#allocation8 + $0x1f8] sm:$0xff] }
 0x1df   :  { %9668 = vst [vmem:[#allocation52_spill] sm:$0xff] %v5743_v13  ;;  %1146 = vmatmul.f32.vlgmr.msra.gmra.mxu0 %v5547_v0  ;;  %1166 = vmatmul.f32.vlgmr.msra.gmra.mxu1 %v5547_v0  ;;  %v5762_v13 = vld [vmem:[#allocation8 + $0x1e0] sm:$0xff] }
 0x1e0   :  { %9669 = vst [vmem:[#allocation53_spill] sm:$0xff] %v5746_v18  ;;  %1186 = vmatmul.f32.vlgmr.msra.gmra.mxu2 %v5547_v0  ;;  %1206 = vmatmul.f32.vlgmr.msra.gmra.mxu3 %v5547_v0  ;;  %v4530_v18 = vmov 2   ;;  %v5777_v0 = vld [vmem:[#allocation8 + $0x1c0] sm:$0xff] }
 0x1e1   :  { %9670 = vst [vmem:[#allocation54_spill] sm:$0xff] %v5749_v1  ;;  %3523 = vset.pattern.permute.xlu1 %v4530_v18  ;;  %1277 = vmatpush.msrb.mxu0 %v5762_v13  ;;  %v5765_v1 = vld [vmem:[#allocation3] sm:$0xff]  ;;  %v5780_v18 = vld [vmem:[#allocation8 + $0x1c8] sm:$0xff] }
 0x1e2   :  { %9671 = vst [vmem:[#allocation55_spill] sm:$0xff] %v5752_v36  ;;  %1119 = vperm.xlu1 %3523, %v5765_v1   ;;  %v5768_v36 = vld [vmem:[#allocation8 + $0x1e8] sm:$0xff]  ;;  %1337 = vmatpush.msrb.mxu3 %v5774_v8 }
 0x1e3   :  { %9672 = vst [vmem:[#allocation56_spill] sm:$0xff] %v5755_v4  ;;  %1297 = vmatpush.msrb.mxu1 %v5768_v36  ;;  %v5771_v4 = vld [vmem:[#allocation8 + $0x1f0] sm:$0xff]  ;;  %1278 = vmatpush.msrb.mxu0 %v5777_v0 }
 0x1e4   :  { %9673 = vst [vmem:[#allocation57_spill] sm:$0xff] %v5762_v13  ;;  %1317 = vmatpush.msrb.mxu2 %v5771_v4 }
 0x1e5   :  { %9674 = vst [vmem:[#allocation58_spill] sm:$0xff] %v5765_v1  ;;  %1298 = vmatpush.msrb.mxu1 %v5780_v18  ;;  %v5783_v1 = vld [vmem:[#allocation8 + $0x1d0] sm:$0xff] }
 0x1e6   :  { %9675 = vst [vmem:[#allocation59_spill] sm:$0xff] %v5768_v36  ;;  %1318 = vmatpush.msrb.mxu2 %v5783_v1  ;;  %v5786_v36 = vld [vmem:[#allocation8 + $0x1d8] sm:$0xff] }
 0x1e7   :  { %9676 = vst [vmem:[#allocation60_spill] sm:$0xff] %v5771_v4  ;;  %1338 = vmatpush.msrb.mxu3 %v5786_v36  ;;  %v5789_v4 = vld [vmem:[#allocation8 + $0x1a0] sm:$0xff] }
 0x1e8   :  { %9677 = vst [vmem:[#allocation61_spill] sm:$0xff] %v5774_v8  ;;  %1279 = vmatpush.msrb.mxu0 %v5789_v4  ;;  %v5792_v8 = vld [vmem:[#allocation8 + $0x1a8] sm:$0xff] }
 0x1e9   :  { %9678 = vst [vmem:[#allocation62_spill] sm:$0xff] %v5777_v0  ;;  %1299 = vmatpush.msrb.mxu1 %v5792_v8  ;;  %v5795_v0 = vld [vmem:[#allocation8 + $0x1b0] sm:$0xff] }
 0x1ea   :  { %9679 = vst [vmem:[#allocation63_spill] sm:$0xff] %v5780_v18  ;;  %1319 = vmatpush.msrb.mxu2 %v5795_v0  ;;  %v5798_v18 = vld [vmem:[#allocation8 + $0x1b8] sm:$0xff] }
 0x1eb   :  { %9680 = vst [vmem:[#allocation64_spill] sm:$0xff] %v5783_v1  ;;  %1339 = vmatpush.msrb.mxu3 %v5798_v18  ;;  %v5801_v1 = vld [vmem:[#allocation8 + $0x180] sm:$0xff] }
 0x1ec   :  { %9681 = vst [vmem:[#allocation65_spill] sm:$0xff] %v5786_v36  ;;  %1280 = vmatpush.msrb.mxu0 %v5801_v1  ;;  %v5804_v36 = vld [vmem:[#allocation8 + $0x188] sm:$0xff] }
 0x1ed   :  { %9682 = vst [vmem:[#allocation66_spill] sm:$0xff] %v5789_v4  ;;  %1300 = vmatpush.msrb.mxu1 %v5804_v36  ;;  %v5807_v4 = vld [vmem:[#allocation8 + $0x190] sm:$0xff] }
 0x1ee   :  { %9683 = vst [vmem:[#allocation67_spill] sm:$0xff] %v5792_v8  ;;  %1320 = vmatpush.msrb.mxu2 %v5807_v4  ;;  %v5810_v8 = vld [vmem:[#allocation8 + $0x198] sm:$0xff] }
 0x1ef   :  { %9684 = vst [vmem:[#allocation68_spill] sm:$0xff] %v5795_v0  ;;  %1340 = vmatpush.msrb.mxu3 %v5810_v8  ;;  %v5813_v0 = vld [vmem:[#allocation8 + $0x160] sm:$0xff] }
 0x1f0   :  { %9685 = vst [vmem:[#allocation69_spill] sm:$0xff] %v5798_v18  ;;  %1281 = vmatpush.msrb.mxu0 %v5813_v0  ;;  %v5816_v18 = vld [vmem:[#allocation8 + $0x168] sm:$0xff] }
 0x1f1   :  { %9686 = vst [vmem:[#allocation70_spill] sm:$0xff] %v5801_v1  ;;  %1301 = vmatpush.msrb.mxu1 %v5816_v18  ;;  %v5819_v1 = vld [vmem:[#allocation8 + $0x170] sm:$0xff] }
 0x1f2   :  { %9687 = vst [vmem:[#allocation71_spill] sm:$0xff] %v5804_v36  ;;  %1321 = vmatpush.msrb.mxu2 %v5819_v1  ;;  %v5822_v36 = vld [vmem:[#allocation8 + $0x178] sm:$0xff] }
 0x1f3   :  { %9688 = vst [vmem:[#allocation72_spill] sm:$0xff] %v5807_v4  ;;  %1341 = vmatpush.msrb.mxu3 %v5822_v36  ;;  %v5825_v4 = vld [vmem:[#allocation8 + $0x140] sm:$0xff] }
 0x1f4   :  { %9689 = vst [vmem:[#allocation73_spill] sm:$0xff] %v5810_v8  ;;  %1282 = vmatpush.msrb.mxu0 %v5825_v4  ;;  %v5828_v8 = vld [vmem:[#allocation8 + $0x148] sm:$0xff] }
 0x1f5   :  { %9690 = vst [vmem:[#allocation74_spill] sm:$0xff] %v5813_v0  ;;  %1302 = vmatpush.msrb.mxu1 %v5828_v8  ;;  %v5831_v0 = vld [vmem:[#allocation8 + $0x150] sm:$0xff] }
 0x1f6   :  { %9691 = vst [vmem:[#allocation75_spill] sm:$0xff] %v5816_v18  ;;  %1322 = vmatpush.msrb.mxu2 %v5831_v0  ;;  %v5834_v18 = vld [vmem:[#allocation8 + $0x158] sm:$0xff] }
 0x1f7   :  { %9692 = vst [vmem:[#allocation76_spill] sm:$0xff] %v5819_v1  ;;  %1342 = vmatpush.msrb.mxu3 %v5834_v18  ;;  %v5837_v1 = vld [vmem:[#allocation8 + $0x120] sm:$0xff] }
 0x1f8   :  { %9693 = vst [vmem:[#allocation77_spill] sm:$0xff] %v5822_v36  ;;  %1283 = vmatpush.msrb.mxu0 %v5837_v1  ;;  %v5840_v36 = vld [vmem:[#allocation8 + $0x128] sm:$0xff] }
 0x1f9   :  { %9694 = vst [vmem:[#allocation78_spill] sm:$0xff] %v5825_v4  ;;  %1303 = vmatpush.msrb.mxu1 %v5840_v36  ;;  %v5843_v4 = vld [vmem:[#allocation8 + $0x130] sm:$0xff] }
 0x1fa   :  { %9695 = vst [vmem:[#allocation79_spill] sm:$0xff] %v5828_v8  ;;  %1323 = vmatpush.msrb.mxu2 %v5843_v4  ;;  %v5846_v8 = vld [vmem:[#allocation8 + $0x138] sm:$0xff] }
 0x1fb   :  { %9696 = vst [vmem:[#allocation80_spill] sm:$0xff] %v5831_v0  ;;  %1343 = vmatpush.msrb.mxu3 %v5846_v8  ;;  %v5849_v0 = vld [vmem:[#allocation8 + $0x100] sm:$0xff] }
 0x1fc   :  { %9697 = vst [vmem:[#allocation81_spill] sm:$0xff] %v5834_v18  ;;  %1284 = vmatpush.msrb.mxu0 %v5849_v0  ;;  %v5852_v18 = vld [vmem:[#allocation8 + $0x108] sm:$0xff] }
 0x1fd   :  { %9698 = vst [vmem:[#allocation82_spill] sm:$0xff] %v5837_v1  ;;  %1304 = vmatpush.msrb.mxu1 %v5852_v18  ;;  %v5855_v1 = vld [vmem:[#allocation8 + $0x110] sm:$0xff] }
 0x1fe   :  { %9699 = vst [vmem:[#allocation83_spill] sm:$0xff] %v5840_v36  ;;  %1324 = vmatpush.msrb.mxu2 %v5855_v1  ;;  %v5858_v36 = vld [vmem:[#allocation8 + $0x118] sm:$0xff] }
 0x1ff   :  { %9700 = vst [vmem:[#allocation84_spill] sm:$0xff] %v5843_v4  ;;  %1344 = vmatpush.msrb.mxu3 %v5858_v36  ;;  %v5861_v4 = vld [vmem:[#allocation8 + $0xe0] sm:$0xff] }
 0x200   :  { %9701 = vst [vmem:[#allocation85_spill] sm:$0xff] %v5846_v8  ;;  %1285 = vmatpush.msrb.mxu0 %v5861_v4  ;;  %v5864_v8 = vld [vmem:[#allocation8 + $0xe8] sm:$0xff] }
 0x201   :  { %9702 = vst [vmem:[#allocation86_spill] sm:$0xff] %v5849_v0  ;;  %1305 = vmatpush.msrb.mxu1 %v5864_v8  ;;  %v5867_v0 = vld [vmem:[#allocation8 + $0xf0] sm:$0xff] }
 0x202   :  { %9703 = vst [vmem:[#allocation87_spill] sm:$0xff] %v5852_v18  ;;  %1325 = vmatpush.msrb.mxu2 %v5867_v0  ;;  %v5870_v18 = vld [vmem:[#allocation8 + $0xf8] sm:$0xff] }
 0x203   :  { %9704 = vst [vmem:[#allocation88_spill] sm:$0xff] %v5855_v1  ;;  %1345 = vmatpush.msrb.mxu3 %v5870_v18  ;;  %v5873_v1 = vld [vmem:[#allocation8 + $0xc0] sm:$0xff] }
 0x204   :  { %9705 = vst [vmem:[#allocation89_spill] sm:$0xff] %v5858_v36  ;;  %1286 = vmatpush.msrb.mxu0 %v5873_v1  ;;  %v5876_v36 = vld [vmem:[#allocation8 + $0xc8] sm:$0xff] }
 0x205   :  { %9706 = vst [vmem:[#allocation90_spill] sm:$0xff] %v5861_v4  ;;  %1306 = vmatpush.msrb.mxu1 %v5876_v36  ;;  %v5879_v4 = vld [vmem:[#allocation8 + $0xd0] sm:$0xff] }
 0x206   :  { %9707 = vst [vmem:[#allocation91_spill] sm:$0xff] %v5864_v8  ;;  %1326 = vmatpush.msrb.mxu2 %v5879_v4  ;;  %v5882_v8 = vld [vmem:[#allocation8 + $0xd8] sm:$0xff] }
 0x207   :  { %9708 = vst [vmem:[#allocation92_spill] sm:$0xff] %v5867_v0  ;;  %1346 = vmatpush.msrb.mxu3 %v5882_v8  ;;  %v5885_v0 = vld [vmem:[#allocation8 + $0xa0] sm:$0xff] }
 0x208   :  { %9709 = vst [vmem:[#allocation93_spill] sm:$0xff] %v5870_v18  ;;  %1287 = vmatpush.msrb.mxu0 %v5885_v0  ;;  %v5888_v18 = vld [vmem:[#allocation8 + $0xa8] sm:$0xff] }
 0x209   :  { %9710 = vst [vmem:[#allocation94_spill] sm:$0xff] %v5873_v1  ;;  %1307 = vmatpush.msrb.mxu1 %v5888_v18  ;;  %v5891_v1 = vld [vmem:[#allocation8 + $0xb0] sm:$0xff] }
 0x20a   :  { %9711 = vst [vmem:[#allocation95_spill] sm:$0xff] %v5876_v36  ;;  %1327 = vmatpush.msrb.mxu2 %v5891_v1  ;;  %v5894_v36 = vld [vmem:[#allocation8 + $0xb8] sm:$0xff] }
 0x20b   :  { %9712 = vst [vmem:[#allocation96_spill] sm:$0xff] %v5879_v4  ;;  %1347 = vmatpush.msrb.mxu3 %v5894_v36  ;;  %v5897_v4 = vld [vmem:[#allocation8 + $0x80] sm:$0xff] }
 0x20c   :  { %9713 = vst [vmem:[#allocation97_spill] sm:$0xff] %v5882_v8  ;;  %1288 = vmatpush.msrb.mxu0 %v5897_v4  ;;  %v5900_v8 = vld [vmem:[#allocation8 + $0x88] sm:$0xff] }
 0x20d   :  { %9714 = vst [vmem:[#allocation98_spill] sm:$0xff] %v5885_v0  ;;  %1308 = vmatpush.msrb.mxu1 %v5900_v8  ;;  %v5903_v0 = vld [vmem:[#allocation8 + $0x90] sm:$0xff] }
 0x20e   :  { %9715 = vst [vmem:[#allocation99_spill] sm:$0xff] %v5888_v18  ;;  %1328 = vmatpush.msrb.mxu2 %v5903_v0  ;;  %v5906_v18 = vld [vmem:[#allocation8 + $0x98] sm:$0xff] }
 0x20f   :  { %9716 = vst [vmem:[#allocation100_spill] sm:$0xff] %v5891_v1  ;;  %1348 = vmatpush.msrb.mxu3 %v5906_v18  ;;  %v5909_v1 = vld [vmem:[#allocation8 + $0x60] sm:$0xff] }
 0x210   :  { %9717 = vst [vmem:[#allocation101_spill] sm:$0xff] %v5894_v36  ;;  %1289 = vmatpush.msrb.mxu0 %v5909_v1  ;;  %v5912_v36 = vld [vmem:[#allocation8 + $0x68] sm:$0xff] }
 0x211   :  { %9718 = vst [vmem:[#allocation102_spill] sm:$0xff] %v5897_v4  ;;  %1309 = vmatpush.msrb.mxu1 %v5912_v36  ;;  %v5915_v4 = vld [vmem:[#allocation8 + $0x70] sm:$0xff] }
 0x212   :  { %9719 = vst [vmem:[#allocation103_spill] sm:$0xff] %v5900_v8  ;;  %1329 = vmatpush.msrb.mxu2 %v5915_v4  ;;  %v5918_v8 = vld [vmem:[#allocation8 + $0x78] sm:$0xff] }
 0x213   :  { %9720 = vst [vmem:[#allocation104_spill] sm:$0xff] %v5903_v0  ;;  %1349 = vmatpush.msrb.mxu3 %v5918_v8  ;;  %v5921_v0 = vld [vmem:[#allocation8 + $0x40] sm:$0xff] }
 0x214   :  { %9721 = vst [vmem:[#allocation105_spill] sm:$0xff] %v5906_v18  ;;  %1290 = vmatpush.msrb.mxu0 %v5921_v0  ;;  %v5924_v18 = vld [vmem:[#allocation8 + $0x48] sm:$0xff] }
 0x215   :  { %9722 = vst [vmem:[#allocation106_spill] sm:$0xff] %v5909_v1  ;;  %1310 = vmatpush.msrb.mxu1 %v5924_v18  ;;  %v5927_v1 = vld [vmem:[#allocation8 + $0x50] sm:$0xff] }
 0x216   :  { %9723 = vst [vmem:[#allocation107_spill] sm:$0xff] %v5912_v36  ;;  %1330 = vmatpush.msrb.mxu2 %v5927_v1  ;;  %v5930_v36 = vld [vmem:[#allocation8 + $0x58] sm:$0xff] }
 0x217   :  { %9724 = vst [vmem:[#allocation108_spill] sm:$0xff] %v5915_v4  ;;  %1350 = vmatpush.msrb.mxu3 %v5930_v36  ;;  %v5933_v4 = vld [vmem:[#allocation8 + $0x20] sm:$0xff] }
 0x218   :  { %9725 = vst [vmem:[#allocation109_spill] sm:$0xff] %v5918_v8  ;;  %1291 = vmatpush.msrb.mxu0 %v5933_v4  ;;  %v5936_v8 = vld [vmem:[#allocation8 + $0x28] sm:$0xff] }
 0x219   :  { %9726 = vst [vmem:[#allocation110_spill] sm:$0xff] %v5921_v0  ;;  %1311 = vmatpush.msrb.mxu1 %v5936_v8  ;;  %v5939_v0 = vld [vmem:[#allocation8 + $0x30] sm:$0xff] }
 0x21a   :  { %9727 = vst [vmem:[#allocation111_spill] sm:$0xff] %v5924_v18  ;;  %1331 = vmatpush.msrb.mxu2 %v5939_v0  ;;  %v5942_v18 = vld [vmem:[#allocation8 + $0x38] sm:$0xff] }
 0x21b   :  { %9728 = vst [vmem:[#allocation112_spill] sm:$0xff] %v5927_v1  ;;  %1351 = vmatpush.msrb.mxu3 %v5942_v18  ;;  %v5945_v1 = vld [vmem:[#allocation8] sm:$0xff] }
 0x21c   :  { %9729 = vst [vmem:[#allocation113_spill] sm:$0xff] %v5930_v36  ;;  %1292 = vmatpush.msrb.mxu0 %v5945_v1  ;;  %v5948_v36 = vld [vmem:[#allocation8 + $0x8] sm:$0xff] }
 0x21d   :  { %9730 = vst [vmem:[#allocation114_spill] sm:$0xff] %v5933_v4  ;;  %1312 = vmatpush.msrb.mxu1 %v5948_v36  ;;  %v5951_v4 = vld [vmem:[#allocation8 + $0x10] sm:$0xff] }
 0x21e   :  { %9731 = vst [vmem:[#allocation115_spill] sm:$0xff] %v5936_v8  ;;  %1332 = vmatpush.msrb.mxu2 %v5951_v4  ;;  %v5954_v8 = vld [vmem:[#allocation8 + $0x18] sm:$0xff] }
 0x21f   :  { %9732 = vst [vmem:[#allocation116_spill] sm:$0xff] %v5939_v0  ;;  %1352 = vmatpush.msrb.mxu3 %v5954_v8  ;;  %v5957_v0 = vld [vmem:[#allocation10 + $0x1e0] sm:$0xff] }
 0x220   :  { %9733 = vst [vmem:[#allocation117_spill] sm:$0xff] %v5942_v18  ;;  %1357 = vmatpush.msra.mxu0 %v5957_v0  ;;  %v5960_v18 = vld [vmem:[#allocation10 + $0x1e8] sm:$0xff] }
 0x221   :  { %9734 = vst [vmem:[#allocation118_spill] sm:$0xff] %v5945_v1  ;;  %1377 = vmatpush.msra.mxu1 %v5960_v18  ;;  %v5963_v1 = vld [vmem:[#allocation10 + $0x1f0] sm:$0xff] }
 0x222   :  { %9735 = vst [vmem:[#allocation119_spill] sm:$0xff] %v5948_v36  ;;  %1397 = vmatpush.msra.mxu2 %v5963_v1  ;;  %v5966_v36 = vld [vmem:[#allocation10 + $0x1f8] sm:$0xff] }
 0x223   :  { %9736 = vst [vmem:[#allocation120_spill] sm:$0xff] %v5951_v4  ;;  %1417 = vmatpush.msra.mxu3 %v5966_v36  ;;  %v5969_v4 = vld [vmem:[#allocation10 + $0x1c0] sm:$0xff] }
 0x224   :  { %9737 = vst [vmem:[#allocation121_spill] sm:$0xff] %v5954_v8  ;;  %1358 = vmatpush.msra.mxu0 %v5969_v4  ;;  %v5972_v8 = vld [vmem:[#allocation10 + $0x1c8] sm:$0xff] }
 0x225   :  { %9738 = vst [vmem:[#allocation122_spill] sm:$0xff] %v5957_v0  ;;  %1378 = vmatpush.msra.mxu1 %v5972_v8  ;;  %v5975_v0 = vld [vmem:[#allocation10 + $0x1d0] sm:$0xff] }
 0x226   :  { %9739 = vst [vmem:[#allocation125_spill] sm:$0xff] %v5960_v18  ;;  %1398 = vmatpush.msra.mxu2 %v5975_v0  ;;  %v5978_v18 = vld [vmem:[#allocation10 + $0x1d8] sm:$0xff] }
 0x227   :  { %9740 = vst [vmem:[#allocation126_spill] sm:$0xff] %v5963_v1  ;;  %1418 = vmatpush.msra.mxu3 %v5978_v18  ;;  %v5981_v1 = vld [vmem:[#allocation10 + $0x1a0] sm:$0xff] }
 0x228   :  { %9741 = vst [vmem:[#allocation127_spill] sm:$0xff] %v5966_v36  ;;  %1359 = vmatpush.msra.mxu0 %v5981_v1  ;;  %v5984_v36 = vld [vmem:[#allocation10 + $0x1a8] sm:$0xff] }
 0x229   :  { %9742 = vst [vmem:[#allocation128_spill] sm:$0xff] %v5969_v4  ;;  %1379 = vmatpush.msra.mxu1 %v5984_v36  ;;  %v5987_v4 = vld [vmem:[#allocation10 + $0x1b0] sm:$0xff] }
 0x22a   :  { %9743 = vst [vmem:[#allocation129_spill] sm:$0xff] %v5972_v8  ;;  %1399 = vmatpush.msra.mxu2 %v5987_v4  ;;  %v5990_v8 = vld [vmem:[#allocation10 + $0x1b8] sm:$0xff] }
 0x22b   :  { %9744 = vst [vmem:[#allocation130_spill] sm:$0xff] %v5975_v0  ;;  %1419 = vmatpush.msra.mxu3 %v5990_v8  ;;  %v5993_v0 = vld [vmem:[#allocation10 + $0x180] sm:$0xff] }
 0x22c   :  { %9745 = vst [vmem:[#allocation131_spill] sm:$0xff] %v5978_v18  ;;  %1360 = vmatpush.msra.mxu0 %v5993_v0  ;;  %v5996_v18 = vld [vmem:[#allocation10 + $0x188] sm:$0xff] }
 0x22d   :  { %9746 = vst [vmem:[#allocation134_spill] sm:$0xff] %v5981_v1  ;;  %1380 = vmatpush.msra.mxu1 %v5996_v18  ;;  %v5999_v1 = vld [vmem:[#allocation10 + $0x190] sm:$0xff] }
 0x22e   :  { %9747 = vst [vmem:[#allocation135_spill] sm:$0xff] %v5984_v36  ;;  %1400 = vmatpush.msra.mxu2 %v5999_v1  ;;  %v6002_v36 = vld [vmem:[#allocation10 + $0x198] sm:$0xff] }
 0x22f   :  { %9748 = vst [vmem:[#allocation136_spill] sm:$0xff] %v5987_v4  ;;  %1420 = vmatpush.msra.mxu3 %v6002_v36  ;;  %v6005_v4 = vld [vmem:[#allocation10 + $0x160] sm:$0xff] }
 0x230   :  { %9749 = vst [vmem:[#allocation137_spill] sm:$0xff] %v5990_v8  ;;  %1361 = vmatpush.msra.mxu0 %v6005_v4  ;;  %v6008_v8 = vld [vmem:[#allocation10 + $0x168] sm:$0xff] }
 0x231   :  { %9750 = vst [vmem:[#allocation138_spill] sm:$0xff] %v5993_v0  ;;  %1381 = vmatpush.msra.mxu1 %v6008_v8  ;;  %v6011_v0 = vld [vmem:[#allocation10 + $0x170] sm:$0xff] }
 0x232   :  { %9751 = vst [vmem:[#allocation139_spill] sm:$0xff] %v5996_v18  ;;  %1401 = vmatpush.msra.mxu2 %v6011_v0  ;;  %v6014_v18 = vld [vmem:[#allocation10 + $0x178] sm:$0xff] }
 0x233   :  { %9752 = vst [vmem:[#allocation140_spill] sm:$0xff] %v5999_v1  ;;  %1421 = vmatpush.msra.mxu3 %v6014_v18  ;;  %v6017_v1 = vld [vmem:[#allocation10 + $0x140] sm:$0xff] }
 0x234   :  { %9753 = vst [vmem:[#allocation141_spill] sm:$0xff] %v6002_v36  ;;  %1362 = vmatpush.msra.mxu0 %v6017_v1  ;;  %v6020_v36 = vld [vmem:[#allocation10 + $0x148] sm:$0xff] }
 0x235   :  { %9754 = vst [vmem:[#allocation142_spill] sm:$0xff] %v6005_v4  ;;  %1382 = vmatpush.msra.mxu1 %v6020_v36  ;;  %v6023_v4 = vld [vmem:[#allocation10 + $0x150] sm:$0xff] }
 0x236   :  { %9755 = vst [vmem:[#allocation143_spill] sm:$0xff] %v6008_v8  ;;  %1402 = vmatpush.msra.mxu2 %v6023_v4  ;;  %v6026_v8 = vld [vmem:[#allocation10 + $0x158] sm:$0xff] }
 0x237   :  { %9756 = vst [vmem:[#allocation145_spill] sm:$0xff] %v6011_v0  ;;  %1422 = vmatpush.msra.mxu3 %v6026_v8  ;;  %v6029_v0 = vld [vmem:[#allocation10 + $0x120] sm:$0xff] }
 0x238   :  { %9757 = vst [vmem:[#allocation146_spill] sm:$0xff] %v6014_v18  ;;  %1363 = vmatpush.msra.mxu0 %v6029_v0  ;;  %v6032_v18 = vld [vmem:[#allocation10 + $0x128] sm:$0xff]  ;;  %v928_v13 = vpop.f32.mrf.mxu1 }
 0x239   :  { %9758 = vst [vmem:[#allocation147_spill] sm:$0xff] %v6017_v1  ;;  %1383 = vmatpush.msra.mxu1 %v6032_v18  ;;  %v6035_v1 = vld [vmem:[#allocation10 + $0x130] sm:$0xff] }
 0x23a   :  { %9759 = vst [vmem:[#allocation148_spill] sm:$0xff] %v6020_v36  ;;  %1403 = vmatpush.msra.mxu2 %v6035_v1  ;;  %v6038_v36 = vld [vmem:[#allocation10 + $0x138] sm:$0xff] }
 0x23b   :  { %9760 = vst [vmem:[#allocation149_spill] sm:$0xff] %v6023_v4  ;;  %1423 = vmatpush.msra.mxu3 %v6038_v36  ;;  %v6041_v4 = vld [vmem:[#allocation10 + $0x100] sm:$0xff] }
 0x23c   :  { %9761 = vst [vmem:[#allocation150_spill] sm:$0xff] %v6026_v8  ;;  %1364 = vmatpush.msra.mxu0 %v6041_v4  ;;  %v6044_v8 = vld [vmem:[#allocation10 + $0x108] sm:$0xff] }
 0x23d   :  { %9762 = vst [vmem:[#allocation151_spill] sm:$0xff] %v6029_v0  ;;  %1384 = vmatpush.msra.mxu1 %v6044_v8  ;;  %v6047_v0 = vld [vmem:[#allocation10 + $0x110] sm:$0xff] }
 0x23e   :  { %9763 = vst [vmem:[#allocation152_spill] sm:$0xff] %v6032_v18  ;;  %1404 = vmatpush.msra.mxu2 %v6047_v0  ;;  %v6050_v18 = vld [vmem:[#allocation10 + $0x118] sm:$0xff] }
 0x23f   :  { %9764 = vst [vmem:[#allocation154_spill] sm:$0xff] %v6035_v1  ;;  %1424 = vmatpush.msra.mxu3 %v6050_v18  ;;  %v6053_v1 = vld [vmem:[#allocation10 + $0xe0] sm:$0xff]  ;;  %v968_v63 = vpop.f32.mrf.mxu3 }
 0x240   :  { %9765 = vst [vmem:[#allocation155_spill] sm:$0xff] %v6038_v36  ;;  %1365 = vmatpush.msra.mxu0 %v6053_v1  ;;  %v6056_v36 = vld [vmem:[#allocation10 + $0xe8] sm:$0xff] }
 0x241   :  { %9766 = vst [vmem:[#allocation156_spill] sm:$0xff] %v6041_v4  ;;  %1385 = vmatpush.msra.mxu1 %v6056_v36  ;;  %v6059_v4 = vld [vmem:[#allocation10 + $0xf0] sm:$0xff] }
 0x242   :  { %9767 = vst [vmem:[#allocation157_spill] sm:$0xff] %v6044_v8  ;;  %1405 = vmatpush.msra.mxu2 %v6059_v4  ;;  %v6062_v8 = vld [vmem:[#allocation10 + $0xf8] sm:$0xff] }
 0x243   :  { %9768 = vst [vmem:[#allocation158_spill] sm:$0xff] %v6047_v0  ;;  %1425 = vmatpush.msra.mxu3 %v6062_v8  ;;  %v6065_v0 = vld [vmem:[#allocation10 + $0xc0] sm:$0xff] }
 0x244   :  { %9769 = vst [vmem:[#allocation159_spill] sm:$0xff] %v6050_v18  ;;  %1366 = vmatpush.msra.mxu0 %v6065_v0  ;;  %v6068_v18 = vld [vmem:[#allocation10 + $0xc8] sm:$0xff] }
 0x245   :  { %9770 = vst [vmem:[#allocation160_spill] sm:$0xff] %v6053_v1  ;;  %1386 = vmatpush.msra.mxu1 %v6068_v18  ;;  %v6071_v1 = vld [vmem:[#allocation10 + $0xd0] sm:$0xff] }
 0x246   :  { %9771 = vst [vmem:[#allocation161_spill] sm:$0xff] %v6056_v36  ;;  %1406 = vmatpush.msra.mxu2 %v6071_v1  ;;  %v6074_v36 = vld [vmem:[#allocation10 + $0xd8] sm:$0xff] }
 0x247   :  { %9772 = vst [vmem:[#allocation162_spill] sm:$0xff] %v6059_v4  ;;  %1426 = vmatpush.msra.mxu3 %v6074_v36  ;;  %v6077_v4 = vld [vmem:[#allocation10 + $0xa0] sm:$0xff] }
 0x248   :  { %9773 = vst [vmem:[#allocation163_spill] sm:$0xff] %v6062_v8  ;;  %1367 = vmatpush.msra.mxu0 %v6077_v4  ;;  %v6080_v8 = vld [vmem:[#allocation10 + $0xa8] sm:$0xff] }
 0x249   :  { %9774 = vst [vmem:[#allocation164_spill] sm:$0xff] %v6065_v0  ;;  %1387 = vmatpush.msra.mxu1 %v6080_v8  ;;  %v6083_v0 = vld [vmem:[#allocation10 + $0xb0] sm:$0xff]  ;;  %v1048_v51 = vpop.f32.mrf.mxu3 }
 0x24a   :  { %9775 = vst [vmem:[#allocation165_spill] sm:$0xff] %v6068_v18  ;;  %1407 = vmatpush.msra.mxu2 %v6083_v0  ;;  %v6086_v18 = vld [vmem:[#allocation10 + $0xb8] sm:$0xff] }
 0x24b   :  { %9776 = vst [vmem:[#allocation166_spill] sm:$0xff] %v6071_v1  ;;  %1427 = vmatpush.msra.mxu3 %v6086_v18  ;;  %v6089_v1 = vld [vmem:[#allocation10 + $0x80] sm:$0xff] }
 0x24c   :  { %9777 = vst [vmem:[#allocation167_spill] sm:$0xff] %v6074_v36  ;;  %1368 = vmatpush.msra.mxu0 %v6089_v1  ;;  %v6092_v36 = vld [vmem:[#allocation10 + $0x88] sm:$0xff] }
 0x24d   :  { %9778 = vst [vmem:[#allocation168_spill] sm:$0xff] %v6077_v4  ;;  %1388 = vmatpush.msra.mxu1 %v6092_v36  ;;  %v6095_v4 = vld [vmem:[#allocation10 + $0x90] sm:$0xff] }
 0x24e   :  { %9779 = vst [vmem:[#allocation169_spill] sm:$0xff] %v6080_v8  ;;  %1408 = vmatpush.msra.mxu2 %v6095_v4  ;;  %v6098_v8 = vld [vmem:[#allocation10 + $0x98] sm:$0xff] }
 0x24f   :  { %9780 = vst [vmem:[#allocation171_spill] sm:$0xff] %v6083_v0  ;;  %1428 = vmatpush.msra.mxu3 %v6098_v8  ;;  %v6101_v0 = vld [vmem:[#allocation10 + $0x60] sm:$0xff] }
 0x250   :  { %9781 = vst [vmem:[#allocation172_spill] sm:$0xff] %v6086_v18  ;;  %1369 = vmatpush.msra.mxu0 %v6101_v0  ;;  %v6104_v18 = vld [vmem:[#allocation10 + $0x68] sm:$0xff] }
 0x251   :  { %9782 = vst [vmem:[#allocation173_spill] sm:$0xff] %v6089_v1  ;;  %1389 = vmatpush.msra.mxu1 %v6104_v18  ;;  %v6107_v1 = vld [vmem:[#allocation10 + $0x70] sm:$0xff] }
 0x252   :  { %9783 = vst [vmem:[#allocation174_spill] sm:$0xff] %v6092_v36  ;;  %1409 = vmatpush.msra.mxu2 %v6107_v1  ;;  %v6110_v36 = vld [vmem:[#allocation10 + $0x78] sm:$0xff] }
 0x253   :  { %9784 = vst [vmem:[#allocation175_spill] sm:$0xff] %v6095_v4  ;;  %1429 = vmatpush.msra.mxu3 %v6110_v36  ;;  %v6113_v4 = vld [vmem:[#allocation10 + $0x40] sm:$0xff] }
 0x254   :  { %9785 = vst [vmem:[#allocation176_spill] sm:$0xff] %v6098_v8  ;;  %1370 = vmatpush.msra.mxu0 %v6113_v4  ;;  %v6116_v8 = vld [vmem:[#allocation10 + $0x48] sm:$0xff] }
 0x255   :  { %9786 = vst [vmem:[#allocation177_spill] sm:$0xff] %v6101_v0  ;;  %1390 = vmatpush.msra.mxu1 %v6116_v8  ;;  %v6119_v0 = vld [vmem:[#allocation10 + $0x50] sm:$0xff] }
 0x256   :  { %9787 = vst [vmem:[#allocation178_spill] sm:$0xff] %v6104_v18  ;;  %1410 = vmatpush.msra.mxu2 %v6119_v0  ;;  %v6122_v18 = vld [vmem:[#allocation10 + $0x58] sm:$0xff] }
 0x257   :  { %9788 = vst [vmem:[#allocation180_spill] sm:$0xff] %v6107_v1  ;;  %1430 = vmatpush.msra.mxu3 %v6122_v18  ;;  %v6125_v1 = vld [vmem:[#allocation10 + $0x20] sm:$0xff] }
 0x258   :  { %9789 = vst [vmem:[#allocation181_spill] sm:$0xff] %v6110_v36  ;;  %1371 = vmatpush.msra.mxu0 %v6125_v1  ;;  %v6128_v36 = vld [vmem:[#allocation10 + $0x28] sm:$0xff] }
 0x259   :  { %9790 = vst [vmem:[#allocation182_spill] sm:$0xff] %v6113_v4  ;;  %1391 = vmatpush.msra.mxu1 %v6128_v36  ;;  %v6131_v4 = vld [vmem:[#allocation10 + $0x30] sm:$0xff] }
 0x25a   :  { %9791 = vst [vmem:[#allocation183_spill] sm:$0xff] %v6116_v8  ;;  %1411 = vmatpush.msra.mxu2 %v6131_v4  ;;  %v6134_v8 = vld [vmem:[#allocation10 + $0x38] sm:$0xff] }
 0x25b   :  { %9792 = vst [vmem:[#allocation184_spill] sm:$0xff] %v6119_v0  ;;  %1431 = vmatpush.msra.mxu3 %v6134_v8  ;;  %v6137_v0 = vld [vmem:[#allocation10] sm:$0xff] }
 0x25c   :  { %9793 = vst [vmem:[#allocation185_spill] sm:$0xff] %v6122_v18  ;;  %1372 = vmatpush.msra.mxu0 %v6137_v0  ;;  %v6140_v18 = vld [vmem:[#allocation10 + $0x8] sm:$0xff] }
 0x25d   :  { %9794 = vst [vmem:[#allocation186_spill] sm:$0xff] %v6125_v1  ;;  %1392 = vmatpush.msra.mxu1 %v6140_v18  ;;  %v6143_v1 = vld [vmem:[#allocation10 + $0x10] sm:$0xff] }
 0x25e   :  { %9795 = vst [vmem:[#allocation187_spill] sm:$0xff] %v6128_v36  ;;  %1412 = vmatpush.msra.mxu2 %v6143_v1  ;;  %v6146_v36 = vld [vmem:[#allocation10 + $0x18] sm:$0xff] }
 0x25f   :  { %9796 = vst [vmem:[#allocation188_spill] sm:$0xff] %v6131_v4  ;;  %1432 = vmatpush.msra.mxu3 %v6146_v36  ;;  %v908_v4 = vpop.f32.mrf.mxu0 }
 0x260   :  { %9797 = vst [vmem:[#allocation189_spill] sm:$0xff] %v6134_v8  ;;  %v1008_v8 = vpop.f32.mrf.mxu1 }
 0x261   :  { %9798 = vst [vmem:[#allocation190_spill] sm:$0xff] %v6137_v0  ;;  %v1009_v42 = vadd.f32 %v1008_v8, %v928_v13  ;;  %v1049_v8 = vadd.f32 %v1048_v51, %v968_v63 }
 0x262   :  { %9799 = vst [vmem:[#allocation191_spill] sm:$0xff] %v6140_v18 }
 0x263   :  { %9800 = vst [vmem:[#allocation192_spill] sm:$0xff] %v6143_v1  ;;  %v1052_v52 = vadd.f32 %v1009_v42, %v5447_v39  ;;  %v1120_v1 = vpop.permute.xlu1 %1119 }
 0x264   :  { %9801 = vst [vmem:[#allocation193_spill] sm:$0xff] %v6146_v36  ;;  %v1122_v45 = vmul.f32 %v1120_v1, %v9621_v47  ;;  %v1123_v36 = vmul.f32 %v1120_v1, %v9622_v58  ;;  %v1054_v47 = vadd.f32 %v1049_v8, %v5455_v44  ;;  %v1125_v58 = vmul.f32 %v1120_v1, %v9626_v5 }
 0x265   :  { %v3466_v49 = vmul.f32 -1.442695, %v1052_v52 }
 0x266   :  { %v3467_v51 = vmul.f32 -1.442695, %v1054_v47 }
 0x267   :  { %v988_v59 = vpop.f32.mrf.mxu0 }
 0x268   :  { %v989_v57 = vadd.f32 %v988_v59, %v908_v4  ;;  %v1126_v59 = vadd.f32 %v1122_v45, %v9623_v61  ;;  %v1127_v4 = vadd.f32 %v1123_v36, %v9624_v54 }
 0x26a   :  { %v1051_v0 = vadd.f32 %v989_v57, %v5445_v37  ;;  %v948_v57 = vpop.f32.mrf.mxu2 }
 0x26c   :  { %v3465_v18 = vmul.f32 -1.442695, %v1051_v0 }
 0x26e   :  { %3580 = vpow2.f32 %v3465_v18 }
 0x26f   :  { %3582 = vpow2.f32 %v3466_v49  ;;  %v1147_v52 = vpop.f32.mrf.mxu0  ;;  %v1167_v49 = vpop.f32.mrf.mxu1 }
 0x270   :  { %v1210_v0 = vadd.f32 %v1147_v52, %v1126_v59  ;;  %v1211_v18 = vadd.f32 %v1167_v49, %v1127_v4 }
 0x272   :  { %v3468_v39 = vmul.f32 -1.442695, %v1210_v0  ;;  %v3469_v45 = vmul.f32 -1.442695, %v1211_v18  ;;  %v1028_v63 = vpop.f32.mrf.mxu2 }
 0x273   :  { %v1029_v49 = vadd.f32 %v1028_v63, %v948_v57 }
 0x274   :  { %v3581_v50 = vpop.eup %3580 }
 0x275   :  { %v3583_v43 = vpop.eup %3582  ;;  %v6155_v42 = vadd.f32 1.0, %v3581_v50  ;;  %v1207_v50 = vpop.f32.mrf.mxu3 }
 0x276   :  { %v6157_v13 = vadd.f32 1.0, %v3583_v43  ;;  %v1129_v43 = vadd.f32 %v1125_v58, %v9627_v10 }
 0x277   :  { %3584 = vrcp.f32 %v6155_v42  ;;  %vm1064_vm4 = vweird.f32 %v6155_v42 }
 0x278   :  { %3586 = vrcp.f32 %v6157_v13  ;;  %v1213_v36 = vadd.f32 %v1207_v50, %v1129_v43  ;;  %vm1083_vm5 = vweird.f32 %v6157_v13 }
 0x279   :  { %3588 = vpow2.f32 %v3468_v39 }
 0x27a   :  { %3590 = vpow2.f32 %v3469_v45  ;;  %v3470_v8 = vmul.f32 -1.442695, %v1213_v36  ;;  %v1124_v45 = vmul.f32 %v1120_v1, %v9629_v26  ;;  %v1187_v50 = vpop.f32.mrf.mxu2 }
 0x27b   :  { %3592 = vpow2.f32 %v3467_v51  ;;  %v1053_v51 = vadd.f32 %v1029_v49, %v5470_v19 }
 0x27c   :  { %3594 = vpow2.f32 %v3470_v8  ;;  %v1128_v36 = vadd.f32 %v1124_v45, %v9630_v33 }
 0x27d   :  { %v6164_v59 = vpop.eup %3584 }
 0x27e   :  { %v6166_v4 = vpop.eup %3586  ;;  %v1060_v18 = vmul.f32 %v6164_v59, %v6155_v42  ;;  %v1212_v1 = vadd.f32 %v1187_v50, %v1128_v36  ;;  %vm1065_vm7 = vweird.f32 %v6164_v59 }
 0x27f   :  { %v3589_v52 = vpop.eup %3588  ;;  %v1079_v58 = vmul.f32 %v6166_v4, %v6157_v13  ;;  %vm1084_vm6 = vweird.f32 %v6166_v4  ;;  %vm6204_vm9 = vmor %vm1064_vm4, %vm1065_vm7 }
 0x280   :  { %v3591_v0 = vpop.eup %3590  ;;  %v6170_v39 = vadd.f32 1.0, %v3589_v52  ;;  %v1061_v43 = vsub.f32 1.0, %v1060_v18  ;;  %v1068_v18 = vand.u32 2147483647, %v6155_v42  ;;  %vm6214_vm11 = vmor %vm1083_vm5, %vm1084_vm6 }
 0x281   :  { %v6172_v47 = vadd.f32 1.0, %v3591_v0  ;;  %v3593_v57 = vpop.eup %3592  ;;  %v1080_v63 = vsub.f32 1.0, %v1079_v58  ;;  %v1070_v58 = vand.u32 2147483648, %v6155_v42  ;;  %v1087_v42 = vand.u32 2147483647, %v6157_v13 }
 0x282   :  { %3596 = vrcp.f32 %v6170_v39  ;;  %v3595_v52 = vpop.eup %3594  ;;  %v6181_v8 = vadd.f32 1.0, %v3593_v57  ;;  %v1062_v10 = vmul.f32 %v6164_v59, %v1061_v43  ;;  %v1089_v57 = vand.u32 2147483648, %v6157_v13 }
 0x283   :  { %3598 = vrcp.f32 %v6172_v47  ;;  %v6185_v26 = vadd.f32 1.0, %v3595_v52  ;;  %v1229_v33 = vand.u32 2147483648, %v6170_v39  ;;  %v1248_v19 = vand.u32 2147483648, %v6172_v47 }
 0x284   :  { %3600 = vtanh.f32 %v1053_v51  ;;  %v1081_v51 = vmul.f32 %v6166_v4, %v1080_v63  ;;  %v1063_v36 = vadd.f32 %v6164_v59, %v1062_v10  ;;  %v1227_v44 = vand.u32 2147483647, %v6170_v39 }
 0x285   :  { %3602 = vrcp.f32 %v6185_v26  ;;  %vm1223_vm12 = vweird.f32 %v6170_v39  ;;  %vm1242_vm13 = vweird.f32 %v6172_v47  ;;  %vm1069_vm2 = vcmp.eq.f32.partialorder %v1068_v18, 8.507059e+37 }
 0x286   :  { %3604 = vrcp.f32 %v6181_v8  ;;  %vm1228_vm0 = vcmp.eq.f32.partialorder %v1227_v44, 8.507059e+37  ;;  %vm1088_vm3 = vcmp.eq.f32.partialorder %v1087_v42, 8.507059e+37  ;;  %vm1262_vm5 = vweird.f32 %v6185_v26 }
 0x287   :  { %3606 = vtanh.f32 %v1212_v1 }
 0x288   :  { %v3597_v0 = vpop.eup %3596 }
 0x289   :  { %v3599_v49 = vpop.eup %3598  ;;  %v1219_v45 = vmul.f32 %v3597_v0, %v6170_v39  ;;  %vm1224_vm8 = vweird.f32 %v3597_v0 }
 0x28a   :  { %v1238_v43 = vmul.f32 %v3599_v49, %v6172_v47  ;;  %v3601_v63 = vpop.eup %3600  ;;  %vm1243_vm10 = vweird.f32 %v3599_v49  ;;  %vm1225_vm14 = vmor %vm1223_vm12, %vm1224_vm8 }
 0x28b   :  { %v1220_v50 = vsub.f32 1.0, %v1219_v45  ;;  %v1082_v45 = vadd.f32 %v6166_v4, %v1081_v51  ;;  %v3603_v37 = vpop.eup %3602  ;;  %v1067_v51 = vsel %vm6204_vm9, %v6164_v59, %v1063_v36  ;;  %vm1244_vm15 = vmor %vm1242_vm13, %vm1243_vm10  ;;  %vm1103_vm9 = vweird.f32 %v6181_v8 }
 0x28c   :  { %v1239_v52 = vsub.f32 1.0, %v1238_v43  ;;  %v1246_v43 = vand.u32 2147483647, %v6172_v47  ;;  %v6225_v40 = vpop.eup %3604  ;;  %v1090_v47 = vor.u32 1.1754944e-38, %v1089_v57  ;;  %vm1263_vm4 = vweird.f32 %v3603_v37 }
 0x28d   :  { %v1221_v5 = vmul.f32 %v3597_v0, %v1220_v50  ;;  %v1071_v50 = vor.u32 1.1754944e-38, %v1070_v58  ;;  %v1249_v58 = vor.u32 1.1754944e-38, %v1248_v19  ;;  %v3607_v13 = vpop.eup %3606  ;;  %v1086_v54 = vsel %vm6214_vm11, %v6166_v4, %v1082_v45  ;;  %vm1264_vm6 = vmor %vm1262_vm5, %vm1263_vm4 }
 0x28e   :  { %v1240_v10 = vmul.f32 %v3599_v49, %v1239_v52  ;;  %v1230_v52 = vor.u32 1.1754944e-38, %v1229_v33  ;;  %vm1247_vm1 = vcmp.eq.f32.partialorder %v1246_v43, 8.507059e+37  ;;  %v1091_v44 = vsel %vm1088_vm3, %v1090_v47, %v1086_v54  ;;  %v9837_v54 = vld [vmem:[#allocation52_spill] sm:$0xff]  ;;  %v9840_v47 = vld [vmem:[#allocation55_spill] sm:$0xff] }
 0x28f   :  { %v1222_v61 = vadd.f32 %v3597_v0, %v1221_v5  ;;  %v1258_v5 = vmul.f32 %v3603_v37, %v6185_v26  ;;  %vm1104_vm8 = vweird.f32 %v6225_v40 }
 0x290   :  { %v1241_v41 = vadd.f32 %v3599_v49, %v1240_v10  ;;  %vm1105_vm10 = vmor %vm1103_vm9, %vm1104_vm8 }
 0x291   :  { %v1226_v38 = vsel %vm1225_vm14, %v3597_v0, %v1222_v61  ;;  %v1259_v10 = vsub.f32 1.0, %v1258_v5  ;;  %v1072_v61 = vsel %vm1069_vm2, %v1071_v50, %v1067_v51  ;;  %v1099_v0 = vmul.f32 %v6225_v40, %v6181_v8  ;;  %v9835_v5 = vld [vmem:[#allocation50_spill] sm:$0xff] }
 0x292   :  { %v1231_v59 = vsel %vm1228_vm0, %v1230_v52, %v1226_v38  ;;  %v1245_v39 = vsel %vm1244_vm15, %v3599_v49, %v1241_v41  ;;  %v1113_v38 = vmul.f32 %v1091_v44, %v5544_v62  ;;  %v1114_v41 = vmul.f32 %v3601_v63, %v1072_v61  ;;  %v9833_v52 = vld [vmem:[#allocation48_spill] sm:$0xff]  ;;  %v9844_v61 = vld [vmem:[#allocation59_spill] sm:$0xff] }
 0x293   :  { %v1250_v36 = vsel %vm1247_vm1, %v1249_v58, %v1245_v39  ;;  %v1273_v33 = vmul.f32 %v3607_v13, %v1231_v59  ;;  %v1260_v16 = vmul.f32 %v3603_v37, %v1259_v10  ;;  %v1268_v49 = vand.u32 2147483648, %v6185_v26  ;;  %v9834_v58 = vld [vmem:[#allocation49_spill] sm:$0xff]  ;;  %v9836_v13 = vld [vmem:[#allocation51_spill] sm:$0xff]  ;;  %v9839_v39 = vld [vmem:[#allocation54_spill] sm:$0xff] }
 0x294   :  { %v1272_v19 = vmul.f32 %v1250_v36, %v5538_v35  ;;  %v1100_v18 = vsub.f32 1.0, %v1099_v0  ;;  %v1266_v35 = vand.u32 2147483647, %v6185_v26  ;;  %v6241_v45 = vadd.f32 %v1114_v41, %v1113_v38  ;;  %v9838_v59 = vld [vmem:[#allocation53_spill] sm:$0xff]  ;;  %v9841_v36 = vld [vmem:[#allocation56_spill] sm:$0xff]  ;;  %v9848_v38 = vld [vmem:[#allocation63_spill] sm:$0xff] }
 0x295   :  { %v1261_v4 = vadd.f32 %v3603_v37, %v1260_v16  ;;  %v1269_v43 = vor.u32 1.1754944e-38, %v1268_v49  ;;  %v1107_v50 = vand.u32 2147483647, %v6181_v8  ;;  %v9842_v10 = vld [vmem:[#allocation57_spill] sm:$0xff]  ;;  %v9845_v44 = vld [vmem:[#allocation60_spill] sm:$0xff] }
 0x296   :  { %v6234_v34 = vadd.f32 %v1273_v33, %v1272_v19  ;;  %vm1267_vm7 = vcmp.eq.f32.partialorder %v1266_v35, 8.507059e+37  ;;  %v1101_v16 = vmul.f32 %v6225_v40, %v1100_v18  ;;  %v4531_v33 = vmov 3   ;;  %v9843_v19 = vld [vmem:[#allocation58_spill] sm:$0xff]  ;;  %v9846_v0 = vld [vmem:[#allocation61_spill] sm:$0xff]  ;;  %v9849_v41 = vld [vmem:[#allocation64_spill] sm:$0xff] }
 0x297   :  { %v1265_v57 = vsel %vm1264_vm6, %v3603_v37, %v1261_v4  ;;  %v1109_v37 = vand.u32 2147483648, %v6181_v8  ;;  %vm1108_vm11 = vcmp.eq.f32.partialorder %v1107_v50, 8.507059e+37  ;;  %v9832_v8 = vld [vmem:[#allocation47_spill] sm:$0xff]  ;;  %3524 = vset.pattern.permute.xlu1 %v4531_v33  ;;  %v9847_v4 = vld [vmem:[#allocation62_spill] sm:$0xff]  ;;  %v9850_v49 = vld [vmem:[#allocation65_spill] sm:$0xff] }
 0x298   :  { %3608 = vtanh.f32 %v6234_v34  ;;  %v1270_v62 = vsel %vm1267_vm7, %v1269_v43, %v1265_v57  ;;  %v1102_v26 = vadd.f32 %v6225_v40, %v1101_v16  ;;  %1505 = vperm.xlu1 %3524, %v9843_v19   ;;  %v9851_v18 = vld [vmem:[#allocation66_spill] sm:$0xff]  ;;  %v9852_v35 = vld [vmem:[#allocation67_spill] sm:$0xff]  ;;  %v9853_v57 = vld [vmem:[#allocation68_spill] sm:$0xff] }
 0x299   :  { %3610 = vtanh.f32 %v6241_v45  ;;  %v9854_v43 = vld [vmem:[#allocation69_spill] sm:$0xff]  ;;  %v9855_v16 = vld [vmem:[#allocation70_spill] sm:$0xff]  ;;  %v9861_v50 = vld [vmem:[#allocation76_spill] sm:$0xff] }
 0x29a   :  { %v1106_v42 = vsel %vm1105_vm10, %v6225_v40, %v1102_v26  ;;  %v9831_v40 = vld [vmem:[#allocation46_spill] sm:$0xff]  ;;  %v9905_v19 = vld [vmem:[#allocation120_spill] sm:$0xff] }
 0x29b   :  { %v9859_v26 = vld [vmem:[#allocation74_spill] sm:$0xff] }
 0x29c   :  { %v9903_v33 = vld [vmem:[#allocation118_spill] sm:$0xff] }
 0x29e   :  { %v3609_v1 = vpop.eup %3608 }
 0x29f   :  { %v6244_v63 = vmul.f32 %v3609_v1, %v1270_v62  ;;  %v3611_v51 = vpop.eup %3610  ;;  %v9856_v1 = vld [vmem:[#allocation71_spill] sm:$0xff]  ;;  %v9857_v62 = vld [vmem:[#allocation72_spill] sm:$0xff] }
 0x2a1   :  { %1293 = vmatmul.f32.vlgmr.msrb.gmra.mxu0 %v6244_v63  ;;  %1313 = vmatmul.f32.vlgmr.msrb.gmra.mxu1 %v6244_v63 }
 0x2a2   :  { %1333 = vmatmul.f32.vlgmr.msrb.gmra.mxu2 %v6244_v63  ;;  %1353 = vmatmul.f32.vlgmr.msrb.gmra.mxu3 %v6244_v63 }
 0x2a3   :  { %1516 = vmatpush.msrb.mxu0 %v5557_v60  ;;  %1536 = vmatpush.msrb.mxu1 %v5560_v48  ;;  %v1110_v60 = vor.u32 1.1754944e-38, %v1109_v37  ;;  %v9860_v37 = vld [vmem:[#allocation75_spill] sm:$0xff] }
 0x2a4   :  { %1556 = vmatpush.msrb.mxu2 %v5565_v56  ;;  %1576 = vmatpush.msrb.mxu3 %v5568_v46  ;;  %v9806_v46 = vld [vmem:[#allocation21_spill] sm:$0xff] }
 0x2a5   :  { %1517 = vmatpush.msrb.mxu0 %v5575_v2  ;;  %1537 = vmatpush.msrb.mxu1 %v5578_v3  ;;  %v1111_v48 = vsel %vm1108_vm11, %v1110_v60, %v1106_v42  ;;  %v9807_v2 = vld [vmem:[#allocation22_spill] sm:$0xff]  ;;  %v9808_v3 = vld [vmem:[#allocation23_spill] sm:$0xff]  ;;  %v9862_v42 = vld [vmem:[#allocation77_spill] sm:$0xff] }
 0x2a6   :  { %1557 = vmatpush.msrb.mxu2 %v5584_v6  ;;  %1577 = vmatpush.msrb.mxu3 %v5587_v7  ;;  %v1117_v56 = vmul.f32 %v3611_v51, %v1111_v48  ;;  %v9809_v6 = vld [vmem:[#allocation24_spill] sm:$0xff]  ;;  %v9810_v7 = vld [vmem:[#allocation25_spill] sm:$0xff]  ;;  %v9863_v51 = vld [vmem:[#allocation78_spill] sm:$0xff] }
 0x2a7   :  { %1518 = vmatpush.msrb.mxu0 %v5590_v53  ;;  %1538 = vmatpush.msrb.mxu1 %v5593_v9  ;;  %v9811_v53 = vld [vmem:[#allocation26_spill] sm:$0xff]  ;;  %v9812_v9 = vld [vmem:[#allocation27_spill] sm:$0xff]  ;;  %v9865_v48 = vld [vmem:[#allocation80_spill] sm:$0xff] }
 0x2a8   :  { %1558 = vmatpush.msrb.mxu2 %v5596_v11  ;;  %1578 = vmatpush.msrb.mxu3 %v5599_v12  ;;  %v9813_v11 = vld [vmem:[#allocation28_spill] sm:$0xff]  ;;  %v9814_v12 = vld [vmem:[#allocation29_spill] sm:$0xff]  ;;  %v9864_v60 = vld [vmem:[#allocation79_spill] sm:$0xff] }
 0x2a9   :  { %1519 = vmatpush.msrb.mxu0 %v5602_v14  ;;  %1539 = vmatpush.msrb.mxu1 %v5605_v17  ;;  %v9815_v14 = vld [vmem:[#allocation30_spill] sm:$0xff]  ;;  %v9816_v17 = vld [vmem:[#allocation31_spill] sm:$0xff] }
 0x2aa   :  { %1559 = vmatpush.msrb.mxu2 %v5608_v20  ;;  %1579 = vmatpush.msrb.mxu3 %v5611_v55  ;;  %v9817_v20 = vld [vmem:[#allocation32_spill] sm:$0xff]  ;;  %v9818_v55 = vld [vmem:[#allocation33_spill] sm:$0xff] }
 0x2ab   :  { %1373 = vmatmul.f32.vlgmr.msra.gmra.mxu0 %v1117_v56  ;;  %1393 = vmatmul.f32.vlgmr.msra.gmra.mxu1 %v1117_v56 }
 0x2ac   :  { %1413 = vmatmul.f32.vlgmr.msra.gmra.mxu2 %v1117_v56  ;;  %1433 = vmatmul.f32.vlgmr.msra.gmra.mxu3 %v1117_v56  ;;  %v9866_v56 = vld [vmem:[#allocation81_spill] sm:$0xff] }
 0x2ad   :  { %1520 = vmatpush.msrb.mxu0 %v5614_v21  ;;  %1540 = vmatpush.msrb.mxu1 %v5617_v22  ;;  %v9819_v21 = vld [vmem:[#allocation34_spill] sm:$0xff]  ;;  %v9820_v22 = vld [vmem:[#allocation35_spill] sm:$0xff] }
 0x2ae   :  { %1560 = vmatpush.msrb.mxu2 %v5620_v15  ;;  %1580 = vmatpush.msrb.mxu3 %v5623_v23  ;;  %v9821_v15 = vld [vmem:[#allocation36_spill] sm:$0xff]  ;;  %v9822_v23 = vld [vmem:[#allocation37_spill] sm:$0xff] }
 0x2af   :  { %1521 = vmatpush.msrb.mxu0 %v5626_v24  ;;  %1541 = vmatpush.msrb.mxu1 %v5629_v25  ;;  %v9823_v24 = vld [vmem:[#allocation38_spill] sm:$0xff]  ;;  %v9824_v25 = vld [vmem:[#allocation39_spill] sm:$0xff] }
 0x2b0   :  { %1561 = vmatpush.msrb.mxu2 %v5632_v27  ;;  %1581 = vmatpush.msrb.mxu3 %v5635_v28  ;;  %v9825_v27 = vld [vmem:[#allocation40_spill] sm:$0xff]  ;;  %v9826_v28 = vld [vmem:[#allocation41_spill] sm:$0xff] }
 0x2b1   :  { %1522 = vmatpush.msrb.mxu0 %v5638_v29  ;;  %1542 = vmatpush.msrb.mxu1 %v5641_v30  ;;  %v9827_v29 = vld [vmem:[#allocation42_spill] sm:$0xff]  ;;  %v9828_v30 = vld [vmem:[#allocation43_spill] sm:$0xff] }
 0x2b2   :  { %1562 = vmatpush.msrb.mxu2 %v5644_v31  ;;  %1582 = vmatpush.msrb.mxu3 %v5647_v32  ;;  %v9829_v31 = vld [vmem:[#allocation44_spill] sm:$0xff]  ;;  %v9830_v32 = vld [vmem:[#allocation45_spill] sm:$0xff] }
 0x2b3   :  { %1523 = vmatpush.msrb.mxu0 %v9806_v46  ;;  %1543 = vmatpush.msrb.mxu1 %v9807_v2  ;;  %v9867_v46 = vld [vmem:[#allocation82_spill] sm:$0xff]  ;;  %v9868_v2 = vld [vmem:[#allocation83_spill] sm:$0xff] }
 0x2b4   :  { %1563 = vmatpush.msrb.mxu2 %v9808_v3  ;;  %1583 = vmatpush.msrb.mxu3 %v9809_v6  ;;  %v9869_v3 = vld [vmem:[#allocation84_spill] sm:$0xff]  ;;  %v9870_v6 = vld [vmem:[#allocation85_spill] sm:$0xff] }
 0x2b5   :  { %1524 = vmatpush.msrb.mxu0 %v9810_v7  ;;  %1544 = vmatpush.msrb.mxu1 %v9811_v53  ;;  %v9871_v7 = vld [vmem:[#allocation86_spill] sm:$0xff]  ;;  %v9872_v53 = vld [vmem:[#allocation87_spill] sm:$0xff] }
 0x2b6   :  { %1564 = vmatpush.msrb.mxu2 %v9812_v9  ;;  %1584 = vmatpush.msrb.mxu3 %v9813_v11  ;;  %v9873_v9 = vld [vmem:[#allocation88_spill] sm:$0xff]  ;;  %v9874_v11 = vld [vmem:[#allocation89_spill] sm:$0xff] }
 0x2b7   :  { %1525 = vmatpush.msrb.mxu0 %v9814_v12  ;;  %1545 = vmatpush.msrb.mxu1 %v9815_v14  ;;  %v9875_v12 = vld [vmem:[#allocation90_spill] sm:$0xff]  ;;  %v9876_v14 = vld [vmem:[#allocation91_spill] sm:$0xff] }
 0x2b8   :  { %1565 = vmatpush.msrb.mxu2 %v9816_v17  ;;  %1585 = vmatpush.msrb.mxu3 %v9817_v20  ;;  %v9877_v17 = vld [vmem:[#allocation92_spill] sm:$0xff]  ;;  %v9878_v20 = vld [vmem:[#allocation93_spill] sm:$0xff] }
 0x2b9   :  { %1526 = vmatpush.msrb.mxu0 %v9818_v55  ;;  %1546 = vmatpush.msrb.mxu1 %v9819_v21  ;;  %v9879_v55 = vld [vmem:[#allocation94_spill] sm:$0xff]  ;;  %v9880_v21 = vld [vmem:[#allocation95_spill] sm:$0xff] }
 0x2ba   :  { %1566 = vmatpush.msrb.mxu2 %v9820_v22  ;;  %1586 = vmatpush.msrb.mxu3 %v9821_v15  ;;  %v9881_v22 = vld [vmem:[#allocation96_spill] sm:$0xff]  ;;  %v9882_v15 = vld [vmem:[#allocation97_spill] sm:$0xff] }
 0x2bb   :  { %1527 = vmatpush.msrb.mxu0 %v9822_v23  ;;  %1547 = vmatpush.msrb.mxu1 %v9823_v24  ;;  %v9883_v23 = vld [vmem:[#allocation98_spill] sm:$0xff]  ;;  %v9884_v24 = vld [vmem:[#allocation99_spill] sm:$0xff] }
 0x2bc   :  { %1567 = vmatpush.msrb.mxu2 %v9824_v25  ;;  %1587 = vmatpush.msrb.mxu3 %v9825_v27  ;;  %v9885_v25 = vld [vmem:[#allocation100_spill] sm:$0xff]  ;;  %v9886_v27 = vld [vmem:[#allocation101_spill] sm:$0xff] }
 0x2bd   :  { %1528 = vmatpush.msrb.mxu0 %v9826_v28  ;;  %1548 = vmatpush.msrb.mxu1 %v9827_v29  ;;  %v9887_v28 = vld [vmem:[#allocation102_spill] sm:$0xff]  ;;  %v9888_v29 = vld [vmem:[#allocation103_spill] sm:$0xff] }
 0x2be   :  { %1568 = vmatpush.msrb.mxu2 %v9828_v30  ;;  %1588 = vmatpush.msrb.mxu3 %v9829_v31  ;;  %v9889_v30 = vld [vmem:[#allocation104_spill] sm:$0xff]  ;;  %v9890_v31 = vld [vmem:[#allocation105_spill] sm:$0xff] }
 0x2bf   :  { %1529 = vmatpush.msrb.mxu0 %v9830_v32  ;;  %1549 = vmatpush.msrb.mxu1 %v9831_v40  ;;  %v9891_v32 = vld [vmem:[#allocation106_spill] sm:$0xff]  ;;  %v9892_v40 = vld [vmem:[#allocation107_spill] sm:$0xff] }
 0x2c0   :  { %1569 = vmatpush.msrb.mxu2 %v9832_v8  ;;  %1589 = vmatpush.msrb.mxu3 %v9833_v52  ;;  %v9893_v8 = vld [vmem:[#allocation108_spill] sm:$0xff]  ;;  %v9894_v52 = vld [vmem:[#allocation109_spill] sm:$0xff] }
 0x2c1   :  { %1530 = vmatpush.msrb.mxu0 %v9834_v58  ;;  %1550 = vmatpush.msrb.mxu1 %v9835_v5  ;;  %v9895_v58 = vld [vmem:[#allocation110_spill] sm:$0xff]  ;;  %v9896_v5 = vld [vmem:[#allocation111_spill] sm:$0xff] }
 0x2c2   :  { %1570 = vmatpush.msrb.mxu2 %v9836_v13  ;;  %1590 = vmatpush.msrb.mxu3 %v9837_v54  ;;  %v9897_v13 = vld [vmem:[#allocation112_spill] sm:$0xff]  ;;  %v9898_v54 = vld [vmem:[#allocation113_spill] sm:$0xff] }
 0x2c3   :  { %1531 = vmatpush.msrb.mxu0 %v9838_v59  ;;  %1551 = vmatpush.msrb.mxu1 %v9839_v39  ;;  %v9899_v59 = vld [vmem:[#allocation114_spill] sm:$0xff]  ;;  %v9900_v39 = vld [vmem:[#allocation115_spill] sm:$0xff] }
 0x2c4   :  { %1571 = vmatpush.msrb.mxu2 %v9840_v47  ;;  %1591 = vmatpush.msrb.mxu3 %v9841_v36  ;;  %v9901_v47 = vld [vmem:[#allocation116_spill] sm:$0xff]  ;;  %v9902_v36 = vld [vmem:[#allocation117_spill] sm:$0xff] }
 0x2c5   :  { %1532 = vmatmul.f32.vlgmr.msrb.gmra.mxu0 %v6244_v63  ;;  %1552 = vmatmul.f32.vlgmr.msrb.gmra.mxu1 %v6244_v63 }
 0x2c6   :  { %1572 = vmatmul.f32.vlgmr.msrb.gmra.mxu2 %v6244_v63  ;;  %1592 = vmatmul.f32.vlgmr.msrb.gmra.mxu3 %v6244_v63  ;;  %v9858_v63 = vld [vmem:[#allocation73_spill] sm:$0xff] }
 0x2c7   :  { %1663 = vmatpush.msra.mxu0 %v9842_v10  ;;  %1683 = vmatpush.msra.mxu1 %v9844_v61  ;;  %v9904_v10 = vld [vmem:[#allocation119_spill] sm:$0xff]  ;;  %v9906_v61 = vld [vmem:[#allocation121_spill] sm:$0xff] }
 0x2c8   :  { %1703 = vmatpush.msra.mxu2 %v9845_v44  ;;  %1723 = vmatpush.msra.mxu3 %v9846_v0  ;;  %v9907_v44 = vld [vmem:[#allocation122_spill] sm:$0xff]  ;;  %v9908_v0 = vld [vmem:[#allocation125_spill] sm:$0xff] }
 0x2c9   :  { %1664 = vmatpush.msra.mxu0 %v9847_v4  ;;  %1684 = vmatpush.msra.mxu1 %v9848_v38  ;;  %v9909_v4 = vld [vmem:[#allocation126_spill] sm:$0xff]  ;;  %v9910_v38 = vld [vmem:[#allocation127_spill] sm:$0xff] }
 0x2ca   :  { %1704 = vmatpush.msra.mxu2 %v9849_v41  ;;  %1724 = vmatpush.msra.mxu3 %v9850_v49  ;;  %v9911_v41 = vld [vmem:[#allocation128_spill] sm:$0xff]  ;;  %v9912_v49 = vld [vmem:[#allocation129_spill] sm:$0xff] }
 0x2cb   :  { %1665 = vmatpush.msra.mxu0 %v9851_v18  ;;  %1685 = vmatpush.msra.mxu1 %v9852_v35  ;;  %v9913_v18 = vld [vmem:[#allocation130_spill] sm:$0xff]  ;;  %v9914_v35 = vld [vmem:[#allocation131_spill] sm:$0xff] }
 0x2cc   :  { %1705 = vmatpush.msra.mxu2 %v9853_v57  ;;  %1725 = vmatpush.msra.mxu3 %v9854_v43  ;;  %v9915_v57 = vld [vmem:[#allocation134_spill] sm:$0xff]  ;;  %v9916_v43 = vld [vmem:[#allocation135_spill] sm:$0xff] }
 0x2cd   :  { %1666 = vmatpush.msra.mxu0 %v9855_v16  ;;  %1686 = vmatpush.msra.mxu1 %v9856_v1  ;;  %v9917_v16 = vld [vmem:[#allocation136_spill] sm:$0xff]  ;;  %v9918_v1 = vld [vmem:[#allocation137_spill] sm:$0xff] }
 0x2ce   :  { %1706 = vmatpush.msra.mxu2 %v9857_v62  ;;  %1726 = vmatpush.msra.mxu3 %v9858_v63  ;;  %v9919_v62 = vld [vmem:[#allocation138_spill] sm:$0xff]  ;;  %v9920_v63 = vld [vmem:[#allocation139_spill] sm:$0xff] }
 0x2cf   :  { %1667 = vmatpush.msra.mxu0 %v9859_v26  ;;  %1687 = vmatpush.msra.mxu1 %v9860_v37  ;;  %v9921_v26 = vld [vmem:[#allocation140_spill] sm:$0xff]  ;;  %v9922_v37 = vld [vmem:[#allocation141_spill] sm:$0xff] }
 0x2d0   :  { %1707 = vmatpush.msra.mxu2 %v9861_v50  ;;  %1727 = vmatpush.msra.mxu3 %v9862_v42  ;;  %v9923_v50 = vld [vmem:[#allocation142_spill] sm:$0xff]  ;;  %v9924_v42 = vld [vmem:[#allocation143_spill] sm:$0xff] }
 0x2d1   :  { %1668 = vmatpush.msra.mxu0 %v9863_v51  ;;  %1688 = vmatpush.msra.mxu1 %v9864_v60  ;;  %v9925_v51 = vld [vmem:[#allocation145_spill] sm:$0xff]  ;;  %v9926_v60 = vld [vmem:[#allocation146_spill] sm:$0xff] }
 0x2d2   :  { %1708 = vmatpush.msra.mxu2 %v9865_v48  ;;  %1728 = vmatpush.msra.mxu3 %v9866_v56  ;;  %v9927_v48 = vld [vmem:[#allocation147_spill] sm:$0xff]  ;;  %v9928_v56 = vld [vmem:[#allocation148_spill] sm:$0xff] }
 0x2d3   :  { %1669 = vmatpush.msra.mxu0 %v9867_v46  ;;  %1689 = vmatpush.msra.mxu1 %v9868_v2  ;;  %v9929_v46 = vld [vmem:[#allocation149_spill] sm:$0xff]  ;;  %v9930_v2 = vld [vmem:[#allocation150_spill] sm:$0xff] }
 0x2d4   :  { %1709 = vmatpush.msra.mxu2 %v9869_v3  ;;  %1729 = vmatpush.msra.mxu3 %v9870_v6  ;;  %v9931_v3 = vld [vmem:[#allocation151_spill] sm:$0xff]  ;;  %v9932_v6 = vld [vmem:[#allocation152_spill] sm:$0xff] }
 0x2d5   :  { %1670 = vmatpush.msra.mxu0 %v9871_v7  ;;  %1690 = vmatpush.msra.mxu1 %v9872_v53  ;;  %v9933_v7 = vld [vmem:[#allocation154_spill] sm:$0xff]  ;;  %v9934_v53 = vld [vmem:[#allocation155_spill] sm:$0xff] }
 0x2d6   :  { %1710 = vmatpush.msra.mxu2 %v9873_v9  ;;  %1730 = vmatpush.msra.mxu3 %v9874_v11  ;;  %v9935_v9 = vld [vmem:[#allocation156_spill] sm:$0xff]  ;;  %v9936_v11 = vld [vmem:[#allocation157_spill] sm:$0xff] }
 0x2d7   :  { %1671 = vmatpush.msra.mxu0 %v9875_v12  ;;  %1691 = vmatpush.msra.mxu1 %v9876_v14  ;;  %v9937_v12 = vld [vmem:[#allocation158_spill] sm:$0xff]  ;;  %v9938_v14 = vld [vmem:[#allocation159_spill] sm:$0xff] }
 0x2d8   :  { %1711 = vmatpush.msra.mxu2 %v9877_v17  ;;  %1731 = vmatpush.msra.mxu3 %v9878_v20  ;;  %v9939_v17 = vld [vmem:[#allocation160_spill] sm:$0xff]  ;;  %v9940_v20 = vld [vmem:[#allocation161_spill] sm:$0xff] }
 0x2d9   :  { %1672 = vmatpush.msra.mxu0 %v9879_v55  ;;  %1692 = vmatpush.msra.mxu1 %v9880_v21  ;;  %v9941_v55 = vld [vmem:[#allocation162_spill] sm:$0xff]  ;;  %v9942_v21 = vld [vmem:[#allocation163_spill] sm:$0xff] }
 0x2da   :  { %1712 = vmatpush.msra.mxu2 %v9881_v22  ;;  %1732 = vmatpush.msra.mxu3 %v9882_v15  ;;  %v9943_v22 = vld [vmem:[#allocation164_spill] sm:$0xff]  ;;  %v9944_v15 = vld [vmem:[#allocation165_spill] sm:$0xff] }
 0x2db   :  { %1673 = vmatpush.msra.mxu0 %v9883_v23  ;;  %1693 = vmatpush.msra.mxu1 %v9884_v24  ;;  %v9945_v23 = vld [vmem:[#allocation166_spill] sm:$0xff]  ;;  %v9946_v24 = vld [vmem:[#allocation167_spill] sm:$0xff] }
 0x2dc   :  { %1713 = vmatpush.msra.mxu2 %v9885_v25  ;;  %1733 = vmatpush.msra.mxu3 %v9886_v27  ;;  %v9947_v25 = vld [vmem:[#allocation168_spill] sm:$0xff]  ;;  %v9948_v27 = vld [vmem:[#allocation169_spill] sm:$0xff] }
 0x2dd   :  { %1674 = vmatpush.msra.mxu0 %v9887_v28  ;;  %1694 = vmatpush.msra.mxu1 %v9888_v29  ;;  %v9949_v28 = vld [vmem:[#allocation171_spill] sm:$0xff]  ;;  %v9950_v29 = vld [vmem:[#allocation172_spill] sm:$0xff] }
 0x2de   :  { %1714 = vmatpush.msra.mxu2 %v9889_v30  ;;  %1734 = vmatpush.msra.mxu3 %v9890_v31  ;;  %v9951_v30 = vld [vmem:[#allocation173_spill] sm:$0xff]  ;;  %v9952_v31 = vld [vmem:[#allocation174_spill] sm:$0xff] }
 0x2df   :  { %1675 = vmatpush.msra.mxu0 %v9891_v32  ;;  %1695 = vmatpush.msra.mxu1 %v9892_v40  ;;  %v9953_v32 = vld [vmem:[#allocation175_spill] sm:$0xff]  ;;  %v9954_v40 = vld [vmem:[#allocation176_spill] sm:$0xff] }
 0x2e0   :  { %1715 = vmatpush.msra.mxu2 %v9893_v8  ;;  %1735 = vmatpush.msra.mxu3 %v9894_v52  ;;  %v9955_v8 = vld [vmem:[#allocation177_spill] sm:$0xff]  ;;  %v9956_v52 = vld [vmem:[#allocation178_spill] sm:$0xff] }
 0x2e1   :  { %1676 = vmatpush.msra.mxu0 %v9895_v58  ;;  %1696 = vmatpush.msra.mxu1 %v9896_v5  ;;  %v9957_v58 = vld [vmem:[#allocation180_spill] sm:$0xff]  ;;  %v9958_v5 = vld [vmem:[#allocation181_spill] sm:$0xff] }
 0x2e2   :  { %1716 = vmatpush.msra.mxu2 %v9897_v13  ;;  %1736 = vmatpush.msra.mxu3 %v9898_v54  ;;  %v9959_v13 = vld [vmem:[#allocation182_spill] sm:$0xff]  ;;  %v9960_v54 = vld [vmem:[#allocation183_spill] sm:$0xff] }
 0x2e3   :  { %1677 = vmatpush.msra.mxu0 %v9899_v59  ;;  %1697 = vmatpush.msra.mxu1 %v9900_v39  ;;  %v9961_v59 = vld [vmem:[#allocation184_spill] sm:$0xff]  ;;  %v9962_v39 = vld [vmem:[#allocation185_spill] sm:$0xff] }
 0x2e4   :  { %1717 = vmatpush.msra.mxu2 %v9901_v47  ;;  %1737 = vmatpush.msra.mxu3 %v9902_v36  ;;  %v9963_v47 = vld [vmem:[#allocation186_spill] sm:$0xff]  ;;  %v9964_v36 = vld [vmem:[#allocation187_spill] sm:$0xff] }
 0x2e5   :  { %1678 = vmatpush.msra.mxu0 %v9903_v33  ;;  %1698 = vmatpush.msra.mxu1 %v9904_v10  ;;  %v9965_v33 = vld [vmem:[#allocation188_spill] sm:$0xff]  ;;  %v9966_v10 = vld [vmem:[#allocation189_spill] sm:$0xff] }
 0x2e6   :  { %1718 = vmatpush.msra.mxu2 %v9905_v19  ;;  %1738 = vmatpush.msra.mxu3 %v9906_v61  ;;  %v9967_v19 = vld [vmem:[#allocation190_spill] sm:$0xff]  ;;  %v9968_v61 = vld [vmem:[#allocation191_spill] sm:$0xff] }
 0x2e7   :  { %1743 = vmatpush.msrb.mxu0 %v9907_v44  ;;  %1763 = vmatpush.msrb.mxu1 %v9908_v0  ;;  %v9969_v44 = vld [vmem:[#allocation192_spill] sm:$0xff]  ;;  %v9970_v0 = vld [vmem:[#allocation193_spill] sm:$0xff] }
 0x2e8   :  { %1783 = vmatpush.msrb.mxu2 %v9909_v4  ;;  %1803 = vmatpush.msrb.mxu3 %v9910_v38 }
 0x2e9   :  { %1744 = vmatpush.msrb.mxu0 %v9911_v41  ;;  %1764 = vmatpush.msrb.mxu1 %v9912_v49 }
 0x2ea   :  { %1784 = vmatpush.msrb.mxu2 %v9913_v18  ;;  %1804 = vmatpush.msrb.mxu3 %v9914_v35 }
 0x2eb   :  { %1745 = vmatpush.msrb.mxu0 %v9915_v57  ;;  %1765 = vmatpush.msrb.mxu1 %v9916_v43  ;;  %v9971_v57 = vld [vmem:[#allocation17_spill] sm:$0xff] }
 0x2ec   :  { %1785 = vmatpush.msrb.mxu2 %v9917_v16  ;;  %1805 = vmatpush.msrb.mxu3 %v9918_v1  ;;  %v9972_v16 = vld [vmem:[#allocation18_spill] sm:$0xff] }
 0x2ed   :  { %1746 = vmatpush.msrb.mxu0 %v9919_v62  ;;  %1766 = vmatpush.msrb.mxu1 %v9920_v63 }
 0x2ee   :  { %1786 = vmatpush.msrb.mxu2 %v9921_v26  ;;  %1806 = vmatpush.msrb.mxu3 %v9922_v37 }
 0x2ef   :  { %1747 = vmatpush.msrb.mxu0 %v9923_v50  ;;  %1767 = vmatpush.msrb.mxu1 %v9924_v42  ;;  %v9973_v50 = vld [vmem:[#allocation123_spill] sm:$0xff] }
 0x2f0   :  { %1787 = vmatpush.msrb.mxu2 %v9925_v51  ;;  %1807 = vmatpush.msrb.mxu3 %v9926_v60  ;;  %v9974_v51 = vld [vmem:[#allocation124_spill] sm:$0xff] }
 0x2f1   :  { %1748 = vmatpush.msrb.mxu0 %v9927_v48  ;;  %1768 = vmatpush.msrb.mxu1 %v9928_v56 }
 0x2f2   :  { %1788 = vmatpush.msrb.mxu2 %v9929_v46  ;;  %1808 = vmatpush.msrb.mxu3 %v9930_v2  ;;  %v9975_v2 = vld [vmem:[#allocation132_spill] sm:$0xff] }
 0x2f3   :  { %1749 = vmatpush.msrb.mxu0 %v9931_v3  ;;  %1769 = vmatpush.msrb.mxu1 %v9932_v6  ;;  %v9976_v6 = vld [vmem:[#allocation133_spill] sm:$0xff] }
 0x2f4   :  { %1789 = vmatpush.msrb.mxu2 %v9933_v7  ;;  %1809 = vmatpush.msrb.mxu3 %v9934_v53 }
 0x2f5   :  { %1750 = vmatpush.msrb.mxu0 %v9935_v9  ;;  %1770 = vmatpush.msrb.mxu1 %v9936_v11 }
 0x2f6   :  { %1790 = vmatpush.msrb.mxu2 %v9937_v12  ;;  %1810 = vmatpush.msrb.mxu3 %v9938_v14 }
 0x2f7   :  { %1751 = vmatpush.msrb.mxu0 %v9939_v17  ;;  %1771 = vmatpush.msrb.mxu1 %v9940_v20 }
 0x2f8   :  { %1791 = vmatpush.msrb.mxu2 %v9941_v55  ;;  %1811 = vmatpush.msrb.mxu3 %v9942_v21  ;;  %v9977_v21 = vld [vmem:[#allocation19_spill] sm:$0xff] }
 0x2f9   :  { %1752 = vmatpush.msrb.mxu0 %v9943_v22  ;;  %1772 = vmatpush.msrb.mxu1 %v9944_v15  ;;  %v9978_v15 = vld [vmem:[#allocation144_spill] sm:$0xff] }
 0x2fa   :  { %1792 = vmatpush.msrb.mxu2 %v9945_v23  ;;  %1812 = vmatpush.msrb.mxu3 %v9946_v24 }
 0x2fb   :  { %1753 = vmatpush.msrb.mxu0 %v9947_v25  ;;  %1773 = vmatpush.msrb.mxu1 %v9948_v27 }
 0x2fc   :  { %1793 = vmatpush.msrb.mxu2 %v9949_v28  ;;  %1813 = vmatpush.msrb.mxu3 %v9950_v29  ;;  %v9979_v28 = vld [vmem:[#allocation153_spill] sm:$0xff] }
 0x2fd   :  { %1754 = vmatpush.msrb.mxu0 %v9951_v30  ;;  %1774 = vmatpush.msrb.mxu1 %v9952_v31 }
 0x2fe   :  { %1794 = vmatpush.msrb.mxu2 %v9953_v32  ;;  %1814 = vmatpush.msrb.mxu3 %v9954_v40 }
 0x2ff   :  { %1755 = vmatpush.msrb.mxu0 %v9955_v8  ;;  %1775 = vmatpush.msrb.mxu1 %v9956_v52 }
 0x300   :  { %1795 = vmatpush.msrb.mxu2 %v9957_v58  ;;  %1815 = vmatpush.msrb.mxu3 %v9958_v5 }
 0x301   :  { %1756 = vmatpush.msrb.mxu0 %v9959_v13  ;;  %1776 = vmatpush.msrb.mxu1 %v9960_v54 }
 0x302   :  { %1796 = vmatpush.msrb.mxu2 %v9961_v59  ;;  %1816 = vmatpush.msrb.mxu3 %v9962_v39 }
 0x303   :  { %1757 = vmatpush.msrb.mxu0 %v9963_v47  ;;  %1777 = vmatpush.msrb.mxu1 %v9964_v36  ;;  %v9980_v36 = vld [vmem:[#allocation170_spill] sm:$0xff] }
 0x304   :  { %1797 = vmatpush.msrb.mxu2 %v9965_v33  ;;  %1817 = vmatpush.msrb.mxu3 %v9966_v10  ;;  %v9981_v10 = vld [vmem:[#allocation20_spill] sm:$0xff] }
 0x305   :  { %1758 = vmatpush.msrb.mxu0 %v9967_v19  ;;  %1778 = vmatpush.msrb.mxu1 %v9968_v61 }
 0x306   :  { %1798 = vmatpush.msrb.mxu2 %v9969_v44  ;;  %1818 = vmatpush.msrb.mxu3 %v9970_v0 }
 0x30a   :  { %v1506_v37 = vpop.permute.xlu1 %1505 }
 0x30b   :  { %v1508_v42 = vmul.f32 %v1506_v37, %v9973_v50  ;;  %v1509_v60 = vmul.f32 %v1506_v37, %v9974_v51  ;;  %v1511_v23 = vmul.f32 %v1506_v37, %v9978_v15  ;;  %v1510_v33 = vmul.f32 %v1506_v37, %v9980_v36 }
 0x30d   :  { %v1512_v3 = vadd.f32 %v1508_v42, %v9975_v2  ;;  %v1513_v7 = vadd.f32 %v1509_v60, %v9976_v6  ;;  %v1515_v29 = vadd.f32 %v1511_v23, %v9979_v28 }
 0x31e   :  { %v1294_v4 = vpop.f32.mrf.mxu0  ;;  %v1314_v38 = vpop.f32.mrf.mxu1 }
 0x325   :  { %v1354_v62 = vpop.f32.mrf.mxu3  ;;  %v1334_v53 = vpop.f32.mrf.mxu2 }
 0x328   :  { %v1374_v41 = vpop.f32.mrf.mxu0  ;;  %v1394_v49 = vpop.f32.mrf.mxu1 }
 0x329   :  { %v1375_v18 = vadd.f32 %v1374_v41, %v1294_v4  ;;  %v1395_v35 = vadd.f32 %v1394_v49, %v1314_v38  ;;  %v9982_v38 = vld [vmem:[#allocation179_spill] sm:$0xff] }
 0x32a   :  { %v1514_v41 = vadd.f32 %v1510_v33, %v9982_v38 }
 0x32b   :  { %v1437_v43 = vadd.f32 %v1375_v18, %v9971_v57  ;;  %v1438_v1 = vadd.f32 %v1395_v35, %v9972_v16 }
 0x32d   :  { %v3471_v63 = vmul.f32 -1.442695, %v1437_v43  ;;  %v3472_v26 = vmul.f32 -1.442695, %v1438_v1 }
 0x32f   :  { %3612 = vpow2.f32 %v3471_v63  ;;  %v1434_v48 = vpop.f32.mrf.mxu3  ;;  %v1414_v31 = vpop.f32.mrf.mxu2 }
 0x330   :  { %3614 = vpow2.f32 %v3472_v26  ;;  %v1435_v9 = vadd.f32 %v1434_v48, %v1354_v62  ;;  %v1415_v5 = vadd.f32 %v1414_v31, %v1334_v53 }
 0x332   :  { %v1440_v22 = vadd.f32 %v1435_v9, %v9977_v21  ;;  %v1439_v19 = vadd.f32 %v1415_v5, %v9981_v10 }
 0x334   :  { %v3473_v27 = vmul.f32 -1.442695, %v1440_v22 }
 0x335   :  { %v3613_v56 = vpop.eup %3612 }
 0x336   :  { %v3615_v46 = vpop.eup %3614  ;;  %v6460_v11 = vadd.f32 1.0, %v3613_v56 }
 0x337   :  { %v6462_v12 = vadd.f32 1.0, %v3615_v46 }
 0x338   :  { %3616 = vrcp.f32 %v6460_v11  ;;  %vm1450_vm12 = vweird.f32 %v6460_v11  ;;  %v1454_v26 = vand.u32 2147483647, %v6460_v11  ;;  %v1456_v37 = vand.u32 2147483648, %v6460_v11 }
 0x339   :  { %3618 = vrcp.f32 %v6462_v12  ;;  %vm1469_vm13 = vweird.f32 %v6462_v12  ;;  %v1475_v48 = vand.u32 2147483648, %v6462_v12 }
 0x33a   :  { %vm1455_vm10 = vcmp.eq.f32.partialorder %v1454_v26, 8.507059e+37 }
 0x33e   :  { %v6469_v40 = vpop.eup %3616 }
 0x33f   :  { %v6471_v8 = vpop.eup %3618  ;;  %v1446_v54 = vmul.f32 %v6469_v40, %v6460_v11  ;;  %vm1451_vm15 = vweird.f32 %v6469_v40  ;;  %v1473_v11 = vand.u32 2147483647, %v6462_v12 }
 0x340   :  { %v1465_v47 = vmul.f32 %v6471_v8, %v6462_v12  ;;  %vm1470_vm14 = vweird.f32 %v6471_v8  ;;  %vm6509_vm1 = vmor %vm1450_vm12, %vm1451_vm15 }
 0x341   :  { %v1447_v44 = vsub.f32 1.0, %v1446_v54  ;;  %vm6519_vm3 = vmor %vm1469_vm13, %vm1470_vm14  ;;  %vm1474_vm11 = vcmp.eq.f32.partialorder %v1473_v11, 8.507059e+37  ;;  %v6592_v11 = vld [vmem:[#allocation7 + $0x1a0] sm:$0xff] }
 0x342   :  { %v1533_v14 = vpop.f32.mrf.mxu0  ;;  %v1553_v17 = vpop.f32.mrf.mxu1  ;;  %v1466_v4 = vsub.f32 1.0, %v1465_v47 }
 0x343   :  { %v1596_v20 = vadd.f32 %v1533_v14, %v1512_v3  ;;  %v1597_v55 = vadd.f32 %v1553_v17, %v1513_v7  ;;  %v1448_v43 = vmul.f32 %v6469_v40, %v1447_v44 }
 0x344   :  { %v1467_v60 = vmul.f32 %v6471_v8, %v1466_v4 }
 0x345   :  { %v3474_v24 = vmul.f32 -1.442695, %v1596_v20  ;;  %v3475_v25 = vmul.f32 -1.442695, %v1597_v55  ;;  %v1449_v3 = vadd.f32 %v6469_v40, %v1448_v43  ;;  %v6577_v55 = vld [vmem:[#allocation7 + $0x1c0] sm:$0xff] }
 0x346   :  { %v1468_v22 = vadd.f32 %v6471_v8, %v1467_v60 }
 0x347   :  { %3620 = vpow2.f32 %v3474_v24  ;;  %v1453_v31 = vsel %vm6509_vm1, %v6469_v40, %v1449_v3 }
 0x348   :  { %3622 = vpow2.f32 %v3475_v25  ;;  %v6589_v25 = vld [vmem:[#allocation7 + $0x1d8] sm:$0xff] }
 0x349   :  { %v1593_v30 = vpop.f32.mrf.mxu3  ;;  %3624 = vpow2.f32 %v3473_v27  ;;  %v1573_v0 = vpop.f32.mrf.mxu2  ;;  %v1457_v27 = vor.u32 1.1754944e-38, %v1456_v37 }
 0x34a   :  { %v1599_v32 = vadd.f32 %v1593_v30, %v1515_v29  ;;  %v1598_v1 = vadd.f32 %v1573_v0, %v1514_v41 }
 0x34b   :  { %v1458_v0 = vsel %vm1455_vm10, %v1457_v27, %v1453_v31  ;;  %v6601_v31 = vld [vmem:[#allocation7 + $0x1b8] sm:$0xff] }
 0x34c   :  { %v3476_v52 = vmul.f32 -1.442695, %v1599_v32 }
 0x34d   :  { %v3621_v58 = vpop.eup %3620 }
 0x34e   :  { %v3623_v13 = vpop.eup %3622  ;;  %v6475_v59 = vadd.f32 1.0, %v3621_v58  ;;  %3626 = vpow2.f32 %v3476_v52 }
 0x34f   :  { %v6477_v39 = vadd.f32 1.0, %v3623_v13  ;;  %v3625_v61 = vpop.eup %3624 }
 0x350   :  { %3628 = vrcp.f32 %v6475_v59  ;;  %v6486_v18 = vadd.f32 1.0, %v3625_v61  ;;  %v1615_v53 = vand.u32 2147483648, %v6475_v59  ;;  %v1613_v20 = vand.u32 2147483647, %v6475_v59 }
 0x351   :  { %3630 = vrcp.f32 %v6477_v39  ;;  %v1634_v14 = vand.u32 2147483648, %v6477_v39  ;;  %v1632_v24 = vand.u32 2147483647, %v6477_v39  ;;  %vm1609_vm4 = vweird.f32 %v6475_v59 }
 0x352   :  { %3632 = vtanh.f32 %v1439_v19  ;;  %vm1628_vm5 = vweird.f32 %v6477_v39  ;;  %v1616_v32 = vor.u32 1.1754944e-38, %v1615_v53  ;;  %vm1614_vm8 = vcmp.eq.f32.partialorder %v1613_v20, 8.507059e+37  ;;  %v6562_v53 = vld [vmem:[#allocation7 + $0x1e8] sm:$0xff]  ;;  %v6697_v20 = vld [vmem:[#allocation7 + $0xb8] sm:$0xff] }
 0x353   :  { %v1635_v5 = vor.u32 1.1754944e-38, %v1634_v14  ;;  %vm1633_vm9 = vcmp.eq.f32.partialorder %v1632_v24, 8.507059e+37  ;;  %v1495_v3 = vand.u32 2147483648, %v6486_v18  ;;  %vm1489_vm1 = vweird.f32 %v6486_v18  ;;  %v6567_v14 = vld [vmem:[#allocation7 + $0x1f0] sm:$0xff]  ;;  %10004 = vst [vmem:[#allocation36_spill] sm:$0xff] %v6697_v20 }
 0x354   :  { %v3627_v49 = vpop.eup %3626  ;;  %v6586_v24 = vld [vmem:[#allocation7 + $0x1d0] sm:$0xff] }
 0x355   :  { %v6490_v62 = vadd.f32 1.0, %v3627_v49  ;;  %v1496_v27 = vor.u32 1.1754944e-38, %v1495_v3  ;;  %v6691_v3 = vld [vmem:[#allocation7 + $0xa8] sm:$0xff] }
 0x356   :  { %v3629_v35 = vpop.eup %3628  ;;  %10002 = vst [vmem:[#allocation34_spill] sm:$0xff] %v6691_v3 }
 0x357   :  { %v3631_v63 = vpop.eup %3630  ;;  %v1605_v42 = vmul.f32 %v3629_v35, %v6475_v59  ;;  %3634 = vrcp.f32 %v6490_v62  ;;  %vm1610_vm0 = vweird.f32 %v3629_v35  ;;  %v1472_v59 = vsel %vm6519_vm3, %v6471_v8, %v1468_v22  ;;  %v6580_v22 = vld [vmem:[#allocation7 + $0x1c8] sm:$0xff] }
 0x358   :  { %v1624_v56 = vmul.f32 %v3631_v63, %v6477_v39  ;;  %3636 = vrcp.f32 %v6486_v18  ;;  %v3633_v9 = vpop.eup %3632  ;;  %vm1629_vm2 = vweird.f32 %v3631_v63  ;;  %vm1611_vm6 = vmor %vm1609_vm4, %vm1610_vm0  ;;  %v1476_v39 = vor.u32 1.1754944e-38, %v1475_v48 }
 0x359   :  { %v1606_v46 = vsub.f32 1.0, %v1605_v42  ;;  %3638 = vtanh.f32 %v1598_v1  ;;  %vm1630_vm7 = vmor %vm1628_vm5, %vm1629_vm2  ;;  %v1500_v1 = vmul.f32 %v3633_v9, %v1458_v0  ;;  %vm1648_vm13 = vweird.f32 %v6490_v62  ;;  %v6643_v0 = vld [vmem:[#allocation7 + $0x128] sm:$0xff] }
 0x35a   :  { %v1625_v7 = vsub.f32 1.0, %v1624_v56  ;;  %v1477_v4 = vsel %vm1474_vm11, %v1476_v39, %v1472_v59  ;;  %v1493_v9 = vand.u32 2147483647, %v6486_v18  ;;  %v6619_v59 = vld [vmem:[#allocation7 + $0x168] sm:$0xff]  ;;  %v6628_v39 = vld [vmem:[#allocation7 + $0x140] sm:$0xff] }
 0x35b   :  { %v1607_v17 = vmul.f32 %v3629_v35, %v1606_v46  ;;  %v1499_v43 = vmul.f32 %v1477_v4, %v6241_v45  ;;  %v6646_v4 = vld [vmem:[#allocation7 + $0x130] sm:$0xff] }
 0x35c   :  { %v1626_v23 = vmul.f32 %v3631_v63, %v1625_v7  ;;  %v6559_v7 = vld [vmem:[#allocation7 + $0x1e0] sm:$0xff]  ;;  %vm1494_vm3 = vcmp.eq.f32.partialorder %v1493_v9, 8.507059e+37  ;;  %v6694_v9 = vld [vmem:[#allocation7 + $0xb0] sm:$0xff] }
 0x35d   :  { %v1608_v29 = vadd.f32 %v3629_v35, %v1607_v17  ;;  %v3635_v30 = vpop.eup %3634  ;;  %v6546_v42 = vadd.f32 %v1500_v1, %v1499_v43  ;;  %v6570_v17 = vld [vmem:[#allocation7 + $0x1f8] sm:$0xff]  ;;  %v6658_v43 = vld [vmem:[#allocation7 + $0x110] sm:$0xff]  ;;  %10003 = vst [vmem:[#allocation35_spill] sm:$0xff] %v6694_v9 }
 0x35e   :  { %v1627_v52 = vadd.f32 %v3631_v63, %v1626_v23  ;;  %v6530_v58 = vpop.eup %3636  ;;  %v1644_v12 = vmul.f32 %v3635_v30, %v6490_v62  ;;  %vm1649_vm12 = vweird.f32 %v3635_v30  ;;  %9991 = vst [vmem:[#allocation23_spill] sm:$0xff] %v6658_v43  ;;  %v6661_v1 = vld [vmem:[#allocation7 + $0x118] sm:$0xff] }
 0x35f   :  { %v1612_v13 = vsel %vm1611_vm6, %v3629_v35, %v1608_v29  ;;  %v3639_v54 = vpop.eup %3638  ;;  %v1485_v41 = vmul.f32 %v6530_v58, %v6486_v18  ;;  %vm1650_vm14 = vmor %vm1648_vm13, %vm1649_vm12  ;;  %vm1490_vm0 = vweird.f32 %v6530_v58  ;;  %v6595_v29 = vld [vmem:[#allocation7 + $0x1a8] sm:$0xff]  ;;  %9992 = vst [vmem:[#allocation24_spill] sm:$0xff] %v6661_v1 }
 0x360   :  { %v1617_v40 = vsel %vm1614_vm8, %v1616_v32, %v1612_v13  ;;  %v1631_v47 = vsel %vm1630_vm7, %v3631_v63, %v1627_v52  ;;  %v1645_v61 = vsub.f32 1.0, %v1644_v12  ;;  %v1654_v63 = vand.u32 2147483648, %v6490_v62  ;;  %vm6573_vm2 = vmor %vm1489_vm1, %vm1490_vm0  ;;  %v6604_v52 = vld [vmem:[#allocation7 + $0x180] sm:$0xff]  ;;  %v6610_v13 = vld [vmem:[#allocation7 + $0x190] sm:$0xff] }
 0x361   :  { %v1636_v33 = vsel %vm1633_vm9, %v1635_v5, %v1631_v47  ;;  %v1659_v19 = vmul.f32 %v3639_v54, %v1617_v40  ;;  %v1486_v26 = vsub.f32 1.0, %v1485_v41  ;;  %v6613_v12 = vld [vmem:[#allocation7 + $0x198] sm:$0xff]  ;;  %v6616_v54 = vld [vmem:[#allocation7 + $0x160] sm:$0xff]  ;;  %v6622_v40 = vld [vmem:[#allocation7 + $0x170] sm:$0xff] }
 0x362   :  { %v1658_v44 = vmul.f32 %v1636_v33, %v6234_v34  ;;  %v1646_v49 = vmul.f32 %v3635_v30, %v1645_v61  ;;  %v1652_v34 = vand.u32 2147483647, %v6490_v62  ;;  %v1655_v60 = vor.u32 1.1754944e-38, %v1654_v63  ;;  %v6625_v47 = vld [vmem:[#allocation7 + $0x178] sm:$0xff]  ;;  %v6631_v33 = vld [vmem:[#allocation7 + $0x148] sm:$0xff]  ;;  %v6664_v63 = vld [vmem:[#allocation7 + $0xe0] sm:$0xff] }
 0x363   :  { %v1487_v48 = vmul.f32 %v6530_v58, %v1486_v26  ;;  %v6637_v61 = vld [vmem:[#allocation7 + $0x158] sm:$0xff]  ;;  %9993 = vst [vmem:[#allocation25_spill] sm:$0xff] %v6664_v63  ;;  %v6667_v26 = vld [vmem:[#allocation7 + $0xe8] sm:$0xff] }
 0x364   :  { %v6539_v35 = vadd.f32 %v1659_v19, %v1658_v44  ;;  %v1647_v8 = vadd.f32 %v3635_v30, %v1646_v49  ;;  %vm1653_vm15 = vcmp.eq.f32.partialorder %v1652_v34, 8.507059e+37  ;;  %v6634_v19 = vld [vmem:[#allocation7 + $0x150] sm:$0xff]  ;;  %v6640_v44 = vld [vmem:[#allocation7 + $0x120] sm:$0xff]  ;;  %v6649_v41 = vld [vmem:[#allocation7 + $0x138] sm:$0xff]  ;;  %9994 = vst [vmem:[#allocation26_spill] sm:$0xff] %v6667_v26 }
 0x365   :  { %v1488_v62 = vadd.f32 %v6530_v58, %v1487_v48  ;;  %v6652_v49 = vld [vmem:[#allocation7 + $0x100] sm:$0xff]  ;;  %v6670_v34 = vld [vmem:[#allocation7 + $0xf0] sm:$0xff]  ;;  %v6679_v48 = vld [vmem:[#allocation7 + $0xc8] sm:$0xff] }
 0x366   :  { %3640 = vtanh.f32 %v6539_v35  ;;  %v1651_v37 = vsel %vm1650_vm14, %v3635_v30, %v1647_v8  ;;  %v6598_v30 = vld [vmem:[#allocation7 + $0x1b0] sm:$0xff]  ;;  %9989 = vst [vmem:[#allocation21_spill] sm:$0xff] %v6652_v49  ;;  %v6655_v8 = vld [vmem:[#allocation7 + $0x108] sm:$0xff] }
 0x367   :  { %v1656_v45 = vsel %vm1653_vm15, %v1655_v60, %v1651_v37  ;;  %3642 = vtanh.f32 %v6546_v42  ;;  %v1492_v18 = vsel %vm6573_vm2, %v6530_v58, %v1488_v62  ;;  %v6607_v58 = vld [vmem:[#allocation7 + $0x188] sm:$0xff]  ;;  %9990 = vst [vmem:[#allocation22_spill] sm:$0xff] %v6655_v8  ;;  %v6673_v37 = vld [vmem:[#allocation7 + $0xf8] sm:$0xff]  ;;  %v6676_v60 = vld [vmem:[#allocation7 + $0xc0] sm:$0xff] }
 0x368   :  { %v1497_v32 = vsel %vm1494_vm3, %v1496_v27, %v1492_v18  ;;  %9995 = vst [vmem:[#allocation27_spill] sm:$0xff] %v6670_v34  ;;  %v6688_v62 = vld [vmem:[#allocation7 + $0xa0] sm:$0xff]  ;;  %v6706_v27 = vld [vmem:[#allocation7 + $0x90] sm:$0xff] }
 0x369   :  { %9996 = vst [vmem:[#allocation28_spill] sm:$0xff] %v6673_v37  ;;  %v6700_v18 = vld [vmem:[#allocation7 + $0x80] sm:$0xff] }
 0x36a   :  { %9997 = vst [vmem:[#allocation29_spill] sm:$0xff] %v6676_v60 }
 0x36b   :  { %9998 = vst [vmem:[#allocation30_spill] sm:$0xff] %v6679_v48 }
 0x36c   :  { %v3641_v56 = vpop.eup %3640  ;;  %10001 = vst [vmem:[#allocation33_spill] sm:$0xff] %v6688_v62 }
 0x36d   :  { %v6549_v46 = vmul.f32 %v3641_v56, %v1656_v45  ;;  %v3643_v23 = vpop.eup %3642  ;;  %v6682_v56 = vld [vmem:[#allocation7 + $0xd0] sm:$0xff]  ;;  %v6685_v45 = vld [vmem:[#allocation7 + $0xd8] sm:$0xff]  ;;  %10005 = vst [vmem:[#allocation37_spill] sm:$0xff] %v6700_v18 }
 0x36e   :  { %v1503_v5 = vmul.f32 %v3643_v23, %v1497_v32  ;;  %9999 = vst [vmem:[#allocation31_spill] sm:$0xff] %v6682_v56  ;;  %v6703_v23 = vld [vmem:[#allocation7 + $0x88] sm:$0xff]  ;;  %v6709_v32 = vld [vmem:[#allocation7 + $0x98] sm:$0xff] }
 0x36f   :  { %1679 = vmatmul.f32.vlgmr.msra.gmra.mxu0 %v6549_v46  ;;  %1699 = vmatmul.f32.vlgmr.msra.gmra.mxu1 %v6549_v46  ;;  %10000 = vst [vmem:[#allocation32_spill] sm:$0xff] %v6685_v45 }
 0x370   :  { %1719 = vmatmul.f32.vlgmr.msra.gmra.mxu2 %v6549_v46  ;;  %1739 = vmatmul.f32.vlgmr.msra.gmra.mxu3 %v6549_v46  ;;  %10006 = vst [vmem:[#allocation38_spill] sm:$0xff] %v6703_v23 }
 0x371   :  { %1902 = vmatpush.msra.mxu0 %v6559_v7  ;;  %1922 = vmatpush.msra.mxu1 %v6562_v53  ;;  %10007 = vst [vmem:[#allocation39_spill] sm:$0xff] %v6706_v27 }
 0x372   :  { %1942 = vmatpush.msra.mxu2 %v6567_v14  ;;  %1962 = vmatpush.msra.mxu3 %v6570_v17  ;;  %10008 = vst [vmem:[#allocation40_spill] sm:$0xff] %v6709_v32 }
 0x373   :  { %1903 = vmatpush.msra.mxu0 %v6577_v55  ;;  %1923 = vmatpush.msra.mxu1 %v6580_v22 }
 0x374   :  { %1943 = vmatpush.msra.mxu2 %v6586_v24  ;;  %1963 = vmatpush.msra.mxu3 %v6589_v25 }
 0x375   :  { %1904 = vmatpush.msra.mxu0 %v6592_v11  ;;  %1924 = vmatpush.msra.mxu1 %v6595_v29 }
 0x376   :  { %1944 = vmatpush.msra.mxu2 %v6598_v30  ;;  %1964 = vmatpush.msra.mxu3 %v6601_v31 }
 0x377   :  { %1905 = vmatpush.msra.mxu0 %v6604_v52  ;;  %1925 = vmatpush.msra.mxu1 %v6607_v58 }
 0x378   :  { %1945 = vmatpush.msra.mxu2 %v6610_v13  ;;  %1965 = vmatpush.msra.mxu3 %v6613_v12 }
 0x379   :  { %1759 = vmatmul.f32.vlgmr.msrb.gmra.mxu0 %v1503_v5  ;;  %1779 = vmatmul.f32.vlgmr.msrb.gmra.mxu1 %v1503_v5 }
 0x37a   :  { %1799 = vmatmul.f32.vlgmr.msrb.gmra.mxu2 %v1503_v5  ;;  %1819 = vmatmul.f32.vlgmr.msrb.gmra.mxu3 %v1503_v5  ;;  %v6712_v5 = vld [vmem:[#allocation7 + $0x60] sm:$0xff] }
 0x37b   :  { %1906 = vmatpush.msra.mxu0 %v6616_v54  ;;  %1926 = vmatpush.msra.mxu1 %v6619_v59  ;;  %10009 = vst [vmem:[#allocation41_spill] sm:$0xff] %v6712_v5 }
 0x37c   :  { %1946 = vmatpush.msra.mxu2 %v6622_v40  ;;  %1966 = vmatpush.msra.mxu3 %v6625_v47 }
 0x37d   :  { %1907 = vmatpush.msra.mxu0 %v6628_v39  ;;  %1927 = vmatpush.msra.mxu1 %v6631_v33 }
 0x37e   :  { %1947 = vmatpush.msra.mxu2 %v6634_v19  ;;  %1967 = vmatpush.msra.mxu3 %v6637_v61 }
 0x37f   :  { %1908 = vmatpush.msra.mxu0 %v6640_v44  ;;  %1928 = vmatpush.msra.mxu1 %v6643_v0 }
 0x380   :  { %1948 = vmatpush.msra.mxu2 %v6646_v4  ;;  %1968 = vmatpush.msra.mxu3 %v6649_v41 }
 0x381   :  { %1909 = vmatpush.msra.mxu0 %v6652_v49  ;;  %1929 = vmatpush.msra.mxu1 %v6655_v8 }
 0x382   :  { %1949 = vmatpush.msra.mxu2 %v6658_v43  ;;  %1969 = vmatpush.msra.mxu3 %v6661_v1 }
 0x383   :  { %1910 = vmatpush.msra.mxu0 %v6664_v63  ;;  %1930 = vmatpush.msra.mxu1 %v6667_v26 }
 0x384   :  { %1950 = vmatpush.msra.mxu2 %v6670_v34  ;;  %1970 = vmatpush.msra.mxu3 %v6673_v37 }
 0x385   :  { %1911 = vmatpush.msra.mxu0 %v6676_v60  ;;  %1931 = vmatpush.msra.mxu1 %v6679_v48 }
 0x386   :  { %1951 = vmatpush.msra.mxu2 %v6682_v56  ;;  %1971 = vmatpush.msra.mxu3 %v6685_v45 }
 0x387   :  { %1912 = vmatpush.msra.mxu0 %v6688_v62  ;;  %1932 = vmatpush.msra.mxu1 %v6691_v3 }
 0x388   :  { %1952 = vmatpush.msra.mxu2 %v6694_v9  ;;  %1972 = vmatpush.msra.mxu3 %v6697_v20  ;;  %v6715_v20 = vld [vmem:[#allocation7 + $0x68] sm:$0xff] }
 0x389   :  { %1913 = vmatpush.msra.mxu0 %v6700_v18  ;;  %1933 = vmatpush.msra.mxu1 %v6703_v23  ;;  %10010 = vst [vmem:[#allocation42_spill] sm:$0xff] %v6715_v20  ;;  %v6718_v18 = vld [vmem:[#allocation7 + $0x70] sm:$0xff]  ;;  %v6721_v23 = vld [vmem:[#allocation7 + $0x78] sm:$0xff] }
 0x38a   :  { %1953 = vmatpush.msra.mxu2 %v6706_v27  ;;  %1973 = vmatpush.msra.mxu3 %v6709_v32  ;;  %10011 = vst [vmem:[#allocation43_spill] sm:$0xff] %v6718_v18  ;;  %v6724_v27 = vld [vmem:[#allocation7 + $0x40] sm:$0xff]  ;;  %v6727_v32 = vld [vmem:[#allocation7 + $0x48] sm:$0xff] }
 0x38b   :  { %1914 = vmatpush.msra.mxu0 %v6712_v5  ;;  %1934 = vmatpush.msra.mxu1 %v6715_v20  ;;  %10012 = vst [vmem:[#allocation44_spill] sm:$0xff] %v6721_v23  ;;  %v6730_v5 = vld [vmem:[#allocation7 + $0x50] sm:$0xff]  ;;  %v6733_v20 = vld [vmem:[#allocation7 + $0x58] sm:$0xff] }
 0x38c   :  { %1954 = vmatpush.msra.mxu2 %v6718_v18  ;;  %1974 = vmatpush.msra.mxu3 %v6721_v23  ;;  %10013 = vst [vmem:[#allocation45_spill] sm:$0xff] %v6724_v27  ;;  %v6736_v18 = vld [vmem:[#allocation7 + $0x20] sm:$0xff]  ;;  %v6739_v23 = vld [vmem:[#allocation7 + $0x28] sm:$0xff] }
 0x38d   :  { %1915 = vmatpush.msra.mxu0 %v6724_v27  ;;  %10014 = vst [vmem:[#allocation46_spill] sm:$0xff] %v6727_v32  ;;  %1935 = vmatpush.msra.mxu1 %v6727_v32  ;;  %v6742_v27 = vld [vmem:[#allocation7 + $0x30] sm:$0xff]  ;;  %v6745_v32 = vld [vmem:[#allocation7 + $0x38] sm:$0xff] }
 0x38e   :  { %10015 = vst [vmem:[#allocation47_spill] sm:$0xff] %v6730_v5  ;;  %1955 = vmatpush.msra.mxu2 %v6730_v5  ;;  %1975 = vmatpush.msra.mxu3 %v6733_v20  ;;  %v6748_v5 = vld [vmem:[#allocation7] sm:$0xff] }
 0x38f   :  { %10016 = vst [vmem:[#allocation48_spill] sm:$0xff] %v6733_v20  ;;  %1916 = vmatpush.msra.mxu0 %v6736_v18  ;;  %1936 = vmatpush.msra.mxu1 %v6739_v23  ;;  %v6751_v20 = vld [vmem:[#allocation7 + $0x8] sm:$0xff] }
 0x390   :  { %10017 = vst [vmem:[#allocation49_spill] sm:$0xff] %v6736_v18  ;;  %1956 = vmatpush.msra.mxu2 %v6742_v27  ;;  %1976 = vmatpush.msra.mxu3 %v6745_v32  ;;  %v6754_v18 = vld [vmem:[#allocation7 + $0x10] sm:$0xff] }
 0x391   :  { %10018 = vst [vmem:[#allocation50_spill] sm:$0xff] %v6739_v23  ;;  %1917 = vmatpush.msra.mxu0 %v6748_v5  ;;  %1937 = vmatpush.msra.mxu1 %v6751_v20  ;;  %v6757_v23 = vld [vmem:[#allocation7 + $0x18] sm:$0xff] }
 0x392   :  { %10019 = vst [vmem:[#allocation51_spill] sm:$0xff] %v6742_v27  ;;  %1957 = vmatpush.msra.mxu2 %v6754_v18  ;;  %1977 = vmatpush.msra.mxu3 %v6757_v23  ;;  %v6776_v27 = vld [vmem:[#allocation8 + $0x1f8] sm:$0xff] }
 0x393   :  { %10020 = vst [vmem:[#allocation52_spill] sm:$0xff] %v6745_v32  ;;  %1918 = vmatmul.f32.vlgmr.msra.gmra.mxu0 %v6549_v46  ;;  %1938 = vmatmul.f32.vlgmr.msra.gmra.mxu1 %v6549_v46  ;;  %v6764_v32 = vld [vmem:[#allocation8 + $0x1e0] sm:$0xff] }
 0x394   :  { %10021 = vst [vmem:[#allocation53_spill] sm:$0xff] %v6748_v5  ;;  %1958 = vmatmul.f32.vlgmr.msra.gmra.mxu2 %v6549_v46  ;;  %1978 = vmatmul.f32.vlgmr.msra.gmra.mxu3 %v6549_v46  ;;  %v4532_v5 = vmov 4   ;;  %v6779_v46 = vld [vmem:[#allocation8 + $0x1c0] sm:$0xff] }
 0x395   :  { %10022 = vst [vmem:[#allocation54_spill] sm:$0xff] %v6751_v20  ;;  %3525 = vset.pattern.permute.xlu2 %v4532_v5  ;;  %2049 = vmatpush.msrb.mxu0 %v6764_v32  ;;  %v6767_v20 = vld [vmem:[#allocation3] sm:$0xff]  ;;  %v6782_v5 = vld [vmem:[#allocation8 + $0x1c8] sm:$0xff] }
 0x396   :  { %10023 = vst [vmem:[#allocation55_spill] sm:$0xff] %v6754_v18  ;;  %1891 = vperm.xlu2 %3525, %v6767_v20   ;;  %v6770_v18 = vld [vmem:[#allocation8 + $0x1e8] sm:$0xff]  ;;  %2109 = vmatpush.msrb.mxu3 %v6776_v27 }
 0x397   :  { %10024 = vst [vmem:[#allocation56_spill] sm:$0xff] %v6757_v23  ;;  %2069 = vmatpush.msrb.mxu1 %v6770_v18  ;;  %v6773_v23 = vld [vmem:[#allocation8 + $0x1f0] sm:$0xff]  ;;  %2050 = vmatpush.msrb.mxu0 %v6779_v46 }
 0x398   :  { %10025 = vst [vmem:[#allocation57_spill] sm:$0xff] %v6764_v32  ;;  %2089 = vmatpush.msrb.mxu2 %v6773_v23 }
 0x399   :  { %10026 = vst [vmem:[#allocation58_spill] sm:$0xff] %v6767_v20  ;;  %2070 = vmatpush.msrb.mxu1 %v6782_v5  ;;  %v6785_v20 = vld [vmem:[#allocation8 + $0x1d0] sm:$0xff] }
 0x39a   :  { %10027 = vst [vmem:[#allocation59_spill] sm:$0xff] %v6770_v18  ;;  %2090 = vmatpush.msrb.mxu2 %v6785_v20  ;;  %v6788_v18 = vld [vmem:[#allocation8 + $0x1d8] sm:$0xff] }
 0x39b   :  { %10028 = vst [vmem:[#allocation60_spill] sm:$0xff] %v6773_v23  ;;  %2110 = vmatpush.msrb.mxu3 %v6788_v18  ;;  %v6791_v23 = vld [vmem:[#allocation8 + $0x1a0] sm:$0xff] }
 0x39c   :  { %10029 = vst [vmem:[#allocation61_spill] sm:$0xff] %v6776_v27  ;;  %2051 = vmatpush.msrb.mxu0 %v6791_v23  ;;  %v6794_v27 = vld [vmem:[#allocation8 + $0x1a8] sm:$0xff] }
 0x39d   :  { %10030 = vst [vmem:[#allocation62_spill] sm:$0xff] %v6779_v46  ;;  %2071 = vmatpush.msrb.mxu1 %v6794_v27  ;;  %v6797_v46 = vld [vmem:[#allocation8 + $0x1b0] sm:$0xff] }
 0x39e   :  { %10031 = vst [vmem:[#allocation63_spill] sm:$0xff] %v6782_v5  ;;  %2091 = vmatpush.msrb.mxu2 %v6797_v46  ;;  %v6800_v5 = vld [vmem:[#allocation8 + $0x1b8] sm:$0xff] }
 0x39f   :  { %10032 = vst [vmem:[#allocation64_spill] sm:$0xff] %v6785_v20  ;;  %2111 = vmatpush.msrb.mxu3 %v6800_v5  ;;  %v6803_v20 = vld [vmem:[#allocation8 + $0x180] sm:$0xff] }
 0x3a0   :  { %10033 = vst [vmem:[#allocation65_spill] sm:$0xff] %v6788_v18  ;;  %2052 = vmatpush.msrb.mxu0 %v6803_v20  ;;  %v6806_v18 = vld [vmem:[#allocation8 + $0x188] sm:$0xff] }
 0x3a1   :  { %10034 = vst [vmem:[#allocation66_spill] sm:$0xff] %v6791_v23  ;;  %2072 = vmatpush.msrb.mxu1 %v6806_v18  ;;  %v6809_v23 = vld [vmem:[#allocation8 + $0x190] sm:$0xff] }
 0x3a2   :  { %10035 = vst [vmem:[#allocation67_spill] sm:$0xff] %v6794_v27  ;;  %2092 = vmatpush.msrb.mxu2 %v6809_v23  ;;  %v6812_v27 = vld [vmem:[#allocation8 + $0x198] sm:$0xff] }
 0x3a3   :  { %10036 = vst [vmem:[#allocation68_spill] sm:$0xff] %v6797_v46  ;;  %2112 = vmatpush.msrb.mxu3 %v6812_v27  ;;  %v6815_v46 = vld [vmem:[#allocation8 + $0x160] sm:$0xff] }
 0x3a4   :  { %10037 = vst [vmem:[#allocation69_spill] sm:$0xff] %v6800_v5  ;;  %2053 = vmatpush.msrb.mxu0 %v6815_v46  ;;  %v6818_v5 = vld [vmem:[#allocation8 + $0x168] sm:$0xff] }
 0x3a5   :  { %10038 = vst [vmem:[#allocation70_spill] sm:$0xff] %v6803_v20  ;;  %2073 = vmatpush.msrb.mxu1 %v6818_v5  ;;  %v6821_v20 = vld [vmem:[#allocation8 + $0x170] sm:$0xff] }
 0x3a6   :  { %10039 = vst [vmem:[#allocation71_spill] sm:$0xff] %v6806_v18  ;;  %2093 = vmatpush.msrb.mxu2 %v6821_v20  ;;  %v6824_v18 = vld [vmem:[#allocation8 + $0x178] sm:$0xff] }
 0x3a7   :  { %10040 = vst [vmem:[#allocation72_spill] sm:$0xff] %v6809_v23  ;;  %2113 = vmatpush.msrb.mxu3 %v6824_v18  ;;  %v6827_v23 = vld [vmem:[#allocation8 + $0x140] sm:$0xff] }
 0x3a8   :  { %10041 = vst [vmem:[#allocation73_spill] sm:$0xff] %v6812_v27  ;;  %2054 = vmatpush.msrb.mxu0 %v6827_v23  ;;  %v6830_v27 = vld [vmem:[#allocation8 + $0x148] sm:$0xff] }
 0x3a9   :  { %10042 = vst [vmem:[#allocation74_spill] sm:$0xff] %v6815_v46  ;;  %2074 = vmatpush.msrb.mxu1 %v6830_v27  ;;  %v6833_v46 = vld [vmem:[#allocation8 + $0x150] sm:$0xff] }
 0x3aa   :  { %10043 = vst [vmem:[#allocation75_spill] sm:$0xff] %v6818_v5  ;;  %2094 = vmatpush.msrb.mxu2 %v6833_v46  ;;  %v6836_v5 = vld [vmem:[#allocation8 + $0x158] sm:$0xff] }
 0x3ab   :  { %10044 = vst [vmem:[#allocation76_spill] sm:$0xff] %v6821_v20  ;;  %2114 = vmatpush.msrb.mxu3 %v6836_v5  ;;  %v6839_v20 = vld [vmem:[#allocation8 + $0x120] sm:$0xff] }
 0x3ac   :  { %10045 = vst [vmem:[#allocation77_spill] sm:$0xff] %v6824_v18  ;;  %2055 = vmatpush.msrb.mxu0 %v6839_v20  ;;  %v6842_v18 = vld [vmem:[#allocation8 + $0x128] sm:$0xff] }
 0x3ad   :  { %10046 = vst [vmem:[#allocation78_spill] sm:$0xff] %v6827_v23  ;;  %2075 = vmatpush.msrb.mxu1 %v6842_v18  ;;  %v6845_v23 = vld [vmem:[#allocation8 + $0x130] sm:$0xff] }
 0x3ae   :  { %10047 = vst [vmem:[#allocation79_spill] sm:$0xff] %v6830_v27  ;;  %2095 = vmatpush.msrb.mxu2 %v6845_v23  ;;  %v6848_v27 = vld [vmem:[#allocation8 + $0x138] sm:$0xff] }
 0x3af   :  { %10048 = vst [vmem:[#allocation80_spill] sm:$0xff] %v6833_v46  ;;  %2115 = vmatpush.msrb.mxu3 %v6848_v27  ;;  %v6851_v46 = vld [vmem:[#allocation8 + $0x100] sm:$0xff] }
 0x3b0   :  { %10049 = vst [vmem:[#allocation81_spill] sm:$0xff] %v6836_v5  ;;  %2056 = vmatpush.msrb.mxu0 %v6851_v46  ;;  %v6854_v5 = vld [vmem:[#allocation8 + $0x108] sm:$0xff] }
 0x3b1   :  { %10050 = vst [vmem:[#allocation82_spill] sm:$0xff] %v6839_v20  ;;  %2076 = vmatpush.msrb.mxu1 %v6854_v5  ;;  %v6857_v20 = vld [vmem:[#allocation8 + $0x110] sm:$0xff] }
 0x3b2   :  { %10051 = vst [vmem:[#allocation83_spill] sm:$0xff] %v6842_v18  ;;  %2096 = vmatpush.msrb.mxu2 %v6857_v20  ;;  %v6860_v18 = vld [vmem:[#allocation8 + $0x118] sm:$0xff] }
 0x3b3   :  { %10052 = vst [vmem:[#allocation84_spill] sm:$0xff] %v6845_v23  ;;  %2116 = vmatpush.msrb.mxu3 %v6860_v18  ;;  %v6863_v23 = vld [vmem:[#allocation8 + $0xe0] sm:$0xff] }
 0x3b4   :  { %10053 = vst [vmem:[#allocation85_spill] sm:$0xff] %v6848_v27  ;;  %2057 = vmatpush.msrb.mxu0 %v6863_v23  ;;  %v6866_v27 = vld [vmem:[#allocation8 + $0xe8] sm:$0xff] }
 0x3b5   :  { %10054 = vst [vmem:[#allocation86_spill] sm:$0xff] %v6851_v46  ;;  %2077 = vmatpush.msrb.mxu1 %v6866_v27  ;;  %v6869_v46 = vld [vmem:[#allocation8 + $0xf0] sm:$0xff] }
 0x3b6   :  { %10055 = vst [vmem:[#allocation87_spill] sm:$0xff] %v6854_v5  ;;  %2097 = vmatpush.msrb.mxu2 %v6869_v46  ;;  %v6872_v5 = vld [vmem:[#allocation8 + $0xf8] sm:$0xff] }
 0x3b7   :  { %10056 = vst [vmem:[#allocation88_spill] sm:$0xff] %v6857_v20  ;;  %2117 = vmatpush.msrb.mxu3 %v6872_v5  ;;  %v6875_v20 = vld [vmem:[#allocation8 + $0xc0] sm:$0xff] }
 0x3b8   :  { %10057 = vst [vmem:[#allocation89_spill] sm:$0xff] %v6860_v18  ;;  %2058 = vmatpush.msrb.mxu0 %v6875_v20  ;;  %v6878_v18 = vld [vmem:[#allocation8 + $0xc8] sm:$0xff] }
 0x3b9   :  { %10058 = vst [vmem:[#allocation90_spill] sm:$0xff] %v6863_v23  ;;  %2078 = vmatpush.msrb.mxu1 %v6878_v18  ;;  %v6881_v23 = vld [vmem:[#allocation8 + $0xd0] sm:$0xff] }
 0x3ba   :  { %10059 = vst [vmem:[#allocation91_spill] sm:$0xff] %v6866_v27  ;;  %2098 = vmatpush.msrb.mxu2 %v6881_v23  ;;  %v6884_v27 = vld [vmem:[#allocation8 + $0xd8] sm:$0xff] }
 0x3bb   :  { %10060 = vst [vmem:[#allocation92_spill] sm:$0xff] %v6869_v46  ;;  %2118 = vmatpush.msrb.mxu3 %v6884_v27  ;;  %v6887_v46 = vld [vmem:[#allocation8 + $0xa0] sm:$0xff] }
 0x3bc   :  { %10061 = vst [vmem:[#allocation93_spill] sm:$0xff] %v6872_v5  ;;  %2059 = vmatpush.msrb.mxu0 %v6887_v46  ;;  %v6890_v5 = vld [vmem:[#allocation8 + $0xa8] sm:$0xff] }
 0x3bd   :  { %10062 = vst [vmem:[#allocation94_spill] sm:$0xff] %v6875_v20  ;;  %2079 = vmatpush.msrb.mxu1 %v6890_v5  ;;  %v6893_v20 = vld [vmem:[#allocation8 + $0xb0] sm:$0xff] }
 0x3be   :  { %10063 = vst [vmem:[#allocation95_spill] sm:$0xff] %v6878_v18  ;;  %2099 = vmatpush.msrb.mxu2 %v6893_v20  ;;  %v6896_v18 = vld [vmem:[#allocation8 + $0xb8] sm:$0xff] }
 0x3bf   :  { %10064 = vst [vmem:[#allocation96_spill] sm:$0xff] %v6881_v23  ;;  %2119 = vmatpush.msrb.mxu3 %v6896_v18  ;;  %v6899_v23 = vld [vmem:[#allocation8 + $0x80] sm:$0xff] }
 0x3c0   :  { %10065 = vst [vmem:[#allocation97_spill] sm:$0xff] %v6884_v27  ;;  %2060 = vmatpush.msrb.mxu0 %v6899_v23  ;;  %v6902_v27 = vld [vmem:[#allocation8 + $0x88] sm:$0xff] }
 0x3c1   :  { %10066 = vst [vmem:[#allocation98_spill] sm:$0xff] %v6887_v46  ;;  %2080 = vmatpush.msrb.mxu1 %v6902_v27  ;;  %v6905_v46 = vld [vmem:[#allocation8 + $0x90] sm:$0xff] }
 0x3c2   :  { %10067 = vst [vmem:[#allocation99_spill] sm:$0xff] %v6890_v5  ;;  %2100 = vmatpush.msrb.mxu2 %v6905_v46  ;;  %v6908_v5 = vld [vmem:[#allocation8 + $0x98] sm:$0xff] }
 0x3c3   :  { %10068 = vst [vmem:[#allocation100_spill] sm:$0xff] %v6893_v20  ;;  %2120 = vmatpush.msrb.mxu3 %v6908_v5  ;;  %v6911_v20 = vld [vmem:[#allocation8 + $0x60] sm:$0xff] }
 0x3c4   :  { %10069 = vst [vmem:[#allocation101_spill] sm:$0xff] %v6896_v18  ;;  %2061 = vmatpush.msrb.mxu0 %v6911_v20  ;;  %v6914_v18 = vld [vmem:[#allocation8 + $0x68] sm:$0xff] }
 0x3c5   :  { %10070 = vst [vmem:[#allocation102_spill] sm:$0xff] %v6899_v23  ;;  %2081 = vmatpush.msrb.mxu1 %v6914_v18  ;;  %v6917_v23 = vld [vmem:[#allocation8 + $0x70] sm:$0xff] }
 0x3c6   :  { %10071 = vst [vmem:[#allocation103_spill] sm:$0xff] %v6902_v27  ;;  %2101 = vmatpush.msrb.mxu2 %v6917_v23  ;;  %v6920_v27 = vld [vmem:[#allocation8 + $0x78] sm:$0xff] }
 0x3c7   :  { %10072 = vst [vmem:[#allocation104_spill] sm:$0xff] %v6905_v46  ;;  %2121 = vmatpush.msrb.mxu3 %v6920_v27  ;;  %v6923_v46 = vld [vmem:[#allocation8 + $0x40] sm:$0xff] }
 0x3c8   :  { %10073 = vst [vmem:[#allocation105_spill] sm:$0xff] %v6908_v5  ;;  %2062 = vmatpush.msrb.mxu0 %v6923_v46  ;;  %v6926_v5 = vld [vmem:[#allocation8 + $0x48] sm:$0xff] }
 0x3c9   :  { %10074 = vst [vmem:[#allocation106_spill] sm:$0xff] %v6911_v20  ;;  %2082 = vmatpush.msrb.mxu1 %v6926_v5  ;;  %v6929_v20 = vld [vmem:[#allocation8 + $0x50] sm:$0xff] }
 0x3ca   :  { %10075 = vst [vmem:[#allocation107_spill] sm:$0xff] %v6914_v18  ;;  %2102 = vmatpush.msrb.mxu2 %v6929_v20  ;;  %v6932_v18 = vld [vmem:[#allocation8 + $0x58] sm:$0xff] }
 0x3cb   :  { %10076 = vst [vmem:[#allocation108_spill] sm:$0xff] %v6917_v23  ;;  %2122 = vmatpush.msrb.mxu3 %v6932_v18  ;;  %v6935_v23 = vld [vmem:[#allocation8 + $0x20] sm:$0xff] }
 0x3cc   :  { %10077 = vst [vmem:[#allocation109_spill] sm:$0xff] %v6920_v27  ;;  %2063 = vmatpush.msrb.mxu0 %v6935_v23  ;;  %v6938_v27 = vld [vmem:[#allocation8 + $0x28] sm:$0xff] }
 0x3cd   :  { %10078 = vst [vmem:[#allocation110_spill] sm:$0xff] %v6923_v46  ;;  %2083 = vmatpush.msrb.mxu1 %v6938_v27  ;;  %v6941_v46 = vld [vmem:[#allocation8 + $0x30] sm:$0xff] }
 0x3ce   :  { %10079 = vst [vmem:[#allocation111_spill] sm:$0xff] %v6926_v5  ;;  %2103 = vmatpush.msrb.mxu2 %v6941_v46  ;;  %v6944_v5 = vld [vmem:[#allocation8 + $0x38] sm:$0xff] }
 0x3cf   :  { %10080 = vst [vmem:[#allocation112_spill] sm:$0xff] %v6929_v20  ;;  %2123 = vmatpush.msrb.mxu3 %v6944_v5  ;;  %v6947_v20 = vld [vmem:[#allocation8] sm:$0xff] }
 0x3d0   :  { %10081 = vst [vmem:[#allocation113_spill] sm:$0xff] %v6932_v18  ;;  %2064 = vmatpush.msrb.mxu0 %v6947_v20  ;;  %v6950_v18 = vld [vmem:[#allocation8 + $0x8] sm:$0xff] }
 0x3d1   :  { %10082 = vst [vmem:[#allocation114_spill] sm:$0xff] %v6935_v23  ;;  %2084 = vmatpush.msrb.mxu1 %v6950_v18  ;;  %v6953_v23 = vld [vmem:[#allocation8 + $0x10] sm:$0xff] }
 0x3d2   :  { %10083 = vst [vmem:[#allocation115_spill] sm:$0xff] %v6938_v27  ;;  %2104 = vmatpush.msrb.mxu2 %v6953_v23  ;;  %v6956_v27 = vld [vmem:[#allocation8 + $0x18] sm:$0xff] }
 0x3d3   :  { %10084 = vst [vmem:[#allocation116_spill] sm:$0xff] %v6941_v46  ;;  %2124 = vmatpush.msrb.mxu3 %v6956_v27  ;;  %v6959_v46 = vld [vmem:[#allocation10 + $0x1e0] sm:$0xff] }
 0x3d4   :  { %10085 = vst [vmem:[#allocation117_spill] sm:$0xff] %v6944_v5  ;;  %2129 = vmatpush.msra.mxu0 %v6959_v46  ;;  %v6962_v5 = vld [vmem:[#allocation10 + $0x1e8] sm:$0xff] }
 0x3d5   :  { %10086 = vst [vmem:[#allocation118_spill] sm:$0xff] %v6947_v20  ;;  %2149 = vmatpush.msra.mxu1 %v6962_v5  ;;  %v6965_v20 = vld [vmem:[#allocation10 + $0x1f0] sm:$0xff] }
 0x3d6   :  { %10087 = vst [vmem:[#allocation119_spill] sm:$0xff] %v6950_v18  ;;  %2169 = vmatpush.msra.mxu2 %v6965_v20  ;;  %v6968_v18 = vld [vmem:[#allocation10 + $0x1f8] sm:$0xff] }
 0x3d7   :  { %10088 = vst [vmem:[#allocation120_spill] sm:$0xff] %v6953_v23  ;;  %2189 = vmatpush.msra.mxu3 %v6968_v18  ;;  %v6971_v23 = vld [vmem:[#allocation10 + $0x1c0] sm:$0xff] }
 0x3d8   :  { %10089 = vst [vmem:[#allocation121_spill] sm:$0xff] %v6956_v27  ;;  %2130 = vmatpush.msra.mxu0 %v6971_v23  ;;  %v6974_v27 = vld [vmem:[#allocation10 + $0x1c8] sm:$0xff] }
 0x3d9   :  { %10090 = vst [vmem:[#allocation122_spill] sm:$0xff] %v6959_v46  ;;  %2150 = vmatpush.msra.mxu1 %v6974_v27  ;;  %v6977_v46 = vld [vmem:[#allocation10 + $0x1d0] sm:$0xff] }
 0x3da   :  { %10091 = vst [vmem:[#allocation125_spill] sm:$0xff] %v6962_v5  ;;  %2170 = vmatpush.msra.mxu2 %v6977_v46  ;;  %v6980_v5 = vld [vmem:[#allocation10 + $0x1d8] sm:$0xff] }
 0x3db   :  { %10092 = vst [vmem:[#allocation126_spill] sm:$0xff] %v6965_v20  ;;  %2190 = vmatpush.msra.mxu3 %v6980_v5  ;;  %v6983_v20 = vld [vmem:[#allocation10 + $0x1a0] sm:$0xff] }
 0x3dc   :  { %10093 = vst [vmem:[#allocation127_spill] sm:$0xff] %v6968_v18  ;;  %2131 = vmatpush.msra.mxu0 %v6983_v20  ;;  %v6986_v18 = vld [vmem:[#allocation10 + $0x1a8] sm:$0xff] }
 0x3dd   :  { %10094 = vst [vmem:[#allocation128_spill] sm:$0xff] %v6971_v23  ;;  %2151 = vmatpush.msra.mxu1 %v6986_v18  ;;  %v6989_v23 = vld [vmem:[#allocation10 + $0x1b0] sm:$0xff] }
 0x3de   :  { %10095 = vst [vmem:[#allocation129_spill] sm:$0xff] %v6974_v27  ;;  %2171 = vmatpush.msra.mxu2 %v6989_v23  ;;  %v6992_v27 = vld [vmem:[#allocation10 + $0x1b8] sm:$0xff] }
 0x3df   :  { %10096 = vst [vmem:[#allocation130_spill] sm:$0xff] %v6977_v46  ;;  %2191 = vmatpush.msra.mxu3 %v6992_v27  ;;  %v6995_v46 = vld [vmem:[#allocation10 + $0x180] sm:$0xff] }
 0x3e0   :  { %10097 = vst [vmem:[#allocation131_spill] sm:$0xff] %v6980_v5  ;;  %2132 = vmatpush.msra.mxu0 %v6995_v46  ;;  %v6998_v5 = vld [vmem:[#allocation10 + $0x188] sm:$0xff] }
 0x3e1   :  { %10098 = vst [vmem:[#allocation134_spill] sm:$0xff] %v6983_v20  ;;  %2152 = vmatpush.msra.mxu1 %v6998_v5  ;;  %v7001_v20 = vld [vmem:[#allocation10 + $0x190] sm:$0xff] }
 0x3e2   :  { %10099 = vst [vmem:[#allocation135_spill] sm:$0xff] %v6986_v18  ;;  %2172 = vmatpush.msra.mxu2 %v7001_v20  ;;  %v7004_v18 = vld [vmem:[#allocation10 + $0x198] sm:$0xff] }
 0x3e3   :  { %10100 = vst [vmem:[#allocation136_spill] sm:$0xff] %v6989_v23  ;;  %2192 = vmatpush.msra.mxu3 %v7004_v18  ;;  %v7007_v23 = vld [vmem:[#allocation10 + $0x160] sm:$0xff] }
 0x3e4   :  { %10101 = vst [vmem:[#allocation137_spill] sm:$0xff] %v6992_v27  ;;  %2133 = vmatpush.msra.mxu0 %v7007_v23  ;;  %v7010_v27 = vld [vmem:[#allocation10 + $0x168] sm:$0xff] }
 0x3e5   :  { %10102 = vst [vmem:[#allocation138_spill] sm:$0xff] %v6995_v46  ;;  %2153 = vmatpush.msra.mxu1 %v7010_v27  ;;  %v7013_v46 = vld [vmem:[#allocation10 + $0x170] sm:$0xff] }
 0x3e6   :  { %10103 = vst [vmem:[#allocation139_spill] sm:$0xff] %v6998_v5  ;;  %2173 = vmatpush.msra.mxu2 %v7013_v46  ;;  %v7016_v5 = vld [vmem:[#allocation10 + $0x178] sm:$0xff] }
 0x3e7   :  { %10104 = vst [vmem:[#allocation140_spill] sm:$0xff] %v7001_v20  ;;  %2193 = vmatpush.msra.mxu3 %v7016_v5  ;;  %v7019_v20 = vld [vmem:[#allocation10 + $0x140] sm:$0xff] }
 0x3e8   :  { %10105 = vst [vmem:[#allocation141_spill] sm:$0xff] %v7004_v18  ;;  %2134 = vmatpush.msra.mxu0 %v7019_v20  ;;  %v7022_v18 = vld [vmem:[#allocation10 + $0x148] sm:$0xff] }
 0x3e9   :  { %10106 = vst [vmem:[#allocation142_spill] sm:$0xff] %v7007_v23  ;;  %2154 = vmatpush.msra.mxu1 %v7022_v18  ;;  %v7025_v23 = vld [vmem:[#allocation10 + $0x150] sm:$0xff] }
 0x3ea   :  { %10107 = vst [vmem:[#allocation143_spill] sm:$0xff] %v7010_v27  ;;  %2174 = vmatpush.msra.mxu2 %v7025_v23  ;;  %v7028_v27 = vld [vmem:[#allocation10 + $0x158] sm:$0xff] }
 0x3eb   :  { %10108 = vst [vmem:[#allocation145_spill] sm:$0xff] %v7013_v46  ;;  %2194 = vmatpush.msra.mxu3 %v7028_v27  ;;  %v7031_v46 = vld [vmem:[#allocation10 + $0x120] sm:$0xff] }
 0x3ec   :  { %10109 = vst [vmem:[#allocation146_spill] sm:$0xff] %v7016_v5  ;;  %2135 = vmatpush.msra.mxu0 %v7031_v46  ;;  %v7034_v5 = vld [vmem:[#allocation10 + $0x128] sm:$0xff]  ;;  %v1700_v32 = vpop.f32.mrf.mxu1 }
 0x3ed   :  { %10110 = vst [vmem:[#allocation147_spill] sm:$0xff] %v7019_v20  ;;  %2155 = vmatpush.msra.mxu1 %v7034_v5  ;;  %v7037_v20 = vld [vmem:[#allocation10 + $0x130] sm:$0xff] }
 0x3ee   :  { %10111 = vst [vmem:[#allocation148_spill] sm:$0xff] %v7022_v18  ;;  %2175 = vmatpush.msra.mxu2 %v7037_v20  ;;  %v7040_v18 = vld [vmem:[#allocation10 + $0x138] sm:$0xff] }
 0x3ef   :  { %10112 = vst [vmem:[#allocation149_spill] sm:$0xff] %v7025_v23  ;;  %2195 = vmatpush.msra.mxu3 %v7040_v18  ;;  %v7043_v23 = vld [vmem:[#allocation10 + $0x100] sm:$0xff] }
 0x3f0   :  { %10113 = vst [vmem:[#allocation150_spill] sm:$0xff] %v7028_v27  ;;  %2136 = vmatpush.msra.mxu0 %v7043_v23  ;;  %v7046_v27 = vld [vmem:[#allocation10 + $0x108] sm:$0xff]  ;;  %v1892_v60 = vpop.permute.xlu2 %1891 }
 0x3f1   :  { %10114 = vst [vmem:[#allocation151_spill] sm:$0xff] %v7031_v46  ;;  %2156 = vmatpush.msra.mxu1 %v7046_v27  ;;  %v7049_v46 = vld [vmem:[#allocation10 + $0x110] sm:$0xff] }
 0x3f2   :  { %10115 = vst [vmem:[#allocation152_spill] sm:$0xff] %v7034_v5  ;;  %2176 = vmatpush.msra.mxu2 %v7049_v46  ;;  %v7052_v5 = vld [vmem:[#allocation10 + $0x118] sm:$0xff] }
 0x3f3   :  { %10116 = vst [vmem:[#allocation154_spill] sm:$0xff] %v7037_v20  ;;  %2196 = vmatpush.msra.mxu3 %v7052_v5  ;;  %v7055_v20 = vld [vmem:[#allocation10 + $0xe0] sm:$0xff]  ;;  %v1740_v56 = vpop.f32.mrf.mxu3 }
 0x3f4   :  { %10117 = vst [vmem:[#allocation155_spill] sm:$0xff] %v7040_v18  ;;  %2137 = vmatpush.msra.mxu0 %v7055_v20  ;;  %v7058_v18 = vld [vmem:[#allocation10 + $0xe8] sm:$0xff] }
 0x3f5   :  { %10118 = vst [vmem:[#allocation156_spill] sm:$0xff] %v7043_v23  ;;  %2157 = vmatpush.msra.mxu1 %v7058_v18  ;;  %v7061_v23 = vld [vmem:[#allocation10 + $0xf0] sm:$0xff] }
 0x3f6   :  { %10119 = vst [vmem:[#allocation157_spill] sm:$0xff] %v7046_v27  ;;  %2177 = vmatpush.msra.mxu2 %v7061_v23  ;;  %v7064_v27 = vld [vmem:[#allocation10 + $0xf8] sm:$0xff] }
 0x3f7   :  { %10120 = vst [vmem:[#allocation158_spill] sm:$0xff] %v7049_v46  ;;  %2197 = vmatpush.msra.mxu3 %v7064_v27  ;;  %v7067_v46 = vld [vmem:[#allocation10 + $0xc0] sm:$0xff] }
 0x3f8   :  { %10121 = vst [vmem:[#allocation159_spill] sm:$0xff] %v7052_v5  ;;  %2138 = vmatpush.msra.mxu0 %v7067_v46  ;;  %v7070_v5 = vld [vmem:[#allocation10 + $0xc8] sm:$0xff] }
 0x3f9   :  { %10122 = vst [vmem:[#allocation160_spill] sm:$0xff] %v7055_v20  ;;  %2158 = vmatpush.msra.mxu1 %v7070_v5  ;;  %v7073_v20 = vld [vmem:[#allocation10 + $0xd0] sm:$0xff] }
 0x3fa   :  { %10123 = vst [vmem:[#allocation161_spill] sm:$0xff] %v7058_v18  ;;  %2178 = vmatpush.msra.mxu2 %v7073_v20  ;;  %v7076_v18 = vld [vmem:[#allocation10 + $0xd8] sm:$0xff] }
 0x3fb   :  { %10124 = vst [vmem:[#allocation162_spill] sm:$0xff] %v7061_v23  ;;  %2198 = vmatpush.msra.mxu3 %v7076_v18  ;;  %v7079_v23 = vld [vmem:[#allocation10 + $0xa0] sm:$0xff] }
 0x3fc   :  { %10125 = vst [vmem:[#allocation163_spill] sm:$0xff] %v7064_v27  ;;  %2139 = vmatpush.msra.mxu0 %v7079_v23  ;;  %v7082_v27 = vld [vmem:[#allocation10 + $0xa8] sm:$0xff] }
 0x3fd   :  { %10126 = vst [vmem:[#allocation164_spill] sm:$0xff] %v7067_v46  ;;  %2159 = vmatpush.msra.mxu1 %v7082_v27  ;;  %v7085_v46 = vld [vmem:[#allocation10 + $0xb0] sm:$0xff]  ;;  %v1820_v37 = vpop.f32.mrf.mxu3 }
 0x3fe   :  { %10127 = vst [vmem:[#allocation165_spill] sm:$0xff] %v7070_v5  ;;  %2179 = vmatpush.msra.mxu2 %v7085_v46  ;;  %v7088_v5 = vld [vmem:[#allocation10 + $0xb8] sm:$0xff] }
 0x3ff   :  { %10128 = vst [vmem:[#allocation166_spill] sm:$0xff] %v7073_v20  ;;  %2199 = vmatpush.msra.mxu3 %v7088_v5  ;;  %v7091_v20 = vld [vmem:[#allocation10 + $0x80] sm:$0xff] }
 0x400   :  { %10129 = vst [vmem:[#allocation167_spill] sm:$0xff] %v7076_v18  ;;  %2140 = vmatpush.msra.mxu0 %v7091_v20  ;;  %v7094_v18 = vld [vmem:[#allocation10 + $0x88] sm:$0xff] }
 0x401   :  { %10130 = vst [vmem:[#allocation168_spill] sm:$0xff] %v7079_v23  ;;  %2160 = vmatpush.msra.mxu1 %v7094_v18  ;;  %v7097_v23 = vld [vmem:[#allocation10 + $0x90] sm:$0xff] }
 0x402   :  { %10131 = vst [vmem:[#allocation169_spill] sm:$0xff] %v7082_v27  ;;  %2180 = vmatpush.msra.mxu2 %v7097_v23  ;;  %v7100_v27 = vld [vmem:[#allocation10 + $0x98] sm:$0xff] }
 0x403   :  { %10132 = vst [vmem:[#allocation171_spill] sm:$0xff] %v7085_v46  ;;  %2200 = vmatpush.msra.mxu3 %v7100_v27  ;;  %v7103_v46 = vld [vmem:[#allocation10 + $0x60] sm:$0xff] }
 0x404   :  { %10133 = vst [vmem:[#allocation172_spill] sm:$0xff] %v7088_v5  ;;  %2141 = vmatpush.msra.mxu0 %v7103_v46  ;;  %v7106_v5 = vld [vmem:[#allocation10 + $0x68] sm:$0xff] }
 0x405   :  { %10134 = vst [vmem:[#allocation173_spill] sm:$0xff] %v7091_v20  ;;  %2161 = vmatpush.msra.mxu1 %v7106_v5  ;;  %v7109_v20 = vld [vmem:[#allocation10 + $0x70] sm:$0xff] }
 0x406   :  { %10135 = vst [vmem:[#allocation174_spill] sm:$0xff] %v7094_v18  ;;  %2181 = vmatpush.msra.mxu2 %v7109_v20  ;;  %v7112_v18 = vld [vmem:[#allocation10 + $0x78] sm:$0xff] }
 0x407   :  { %10136 = vst [vmem:[#allocation175_spill] sm:$0xff] %v7097_v23  ;;  %2201 = vmatpush.msra.mxu3 %v7112_v18  ;;  %v7115_v23 = vld [vmem:[#allocation10 + $0x40] sm:$0xff] }
 0x408   :  { %10137 = vst [vmem:[#allocation176_spill] sm:$0xff] %v7100_v27  ;;  %2142 = vmatpush.msra.mxu0 %v7115_v23  ;;  %v7118_v27 = vld [vmem:[#allocation10 + $0x48] sm:$0xff] }
 0x409   :  { %10138 = vst [vmem:[#allocation177_spill] sm:$0xff] %v7103_v46  ;;  %2162 = vmatpush.msra.mxu1 %v7118_v27  ;;  %v7121_v46 = vld [vmem:[#allocation10 + $0x50] sm:$0xff] }
 0x40a   :  { %10139 = vst [vmem:[#allocation178_spill] sm:$0xff] %v7106_v5  ;;  %2182 = vmatpush.msra.mxu2 %v7121_v46  ;;  %v7124_v5 = vld [vmem:[#allocation10 + $0x58] sm:$0xff] }
 0x40b   :  { %10140 = vst [vmem:[#allocation180_spill] sm:$0xff] %v7109_v20  ;;  %2202 = vmatpush.msra.mxu3 %v7124_v5  ;;  %v7127_v20 = vld [vmem:[#allocation10 + $0x20] sm:$0xff] }
 0x40c   :  { %10141 = vst [vmem:[#allocation181_spill] sm:$0xff] %v7112_v18  ;;  %2143 = vmatpush.msra.mxu0 %v7127_v20  ;;  %v7130_v18 = vld [vmem:[#allocation10 + $0x28] sm:$0xff] }
 0x40d   :  { %10142 = vst [vmem:[#allocation182_spill] sm:$0xff] %v7115_v23  ;;  %2163 = vmatpush.msra.mxu1 %v7130_v18  ;;  %v7133_v23 = vld [vmem:[#allocation10 + $0x30] sm:$0xff] }
 0x40e   :  { %10143 = vst [vmem:[#allocation183_spill] sm:$0xff] %v7118_v27  ;;  %2183 = vmatpush.msra.mxu2 %v7133_v23  ;;  %v7136_v27 = vld [vmem:[#allocation10 + $0x38] sm:$0xff] }
 0x40f   :  { %10144 = vst [vmem:[#allocation184_spill] sm:$0xff] %v7121_v46  ;;  %2203 = vmatpush.msra.mxu3 %v7136_v27  ;;  %v7139_v46 = vld [vmem:[#allocation10] sm:$0xff] }
 0x410   :  { %10145 = vst [vmem:[#allocation185_spill] sm:$0xff] %v7124_v5  ;;  %2144 = vmatpush.msra.mxu0 %v7139_v46  ;;  %v7142_v5 = vld [vmem:[#allocation10 + $0x8] sm:$0xff] }
 0x411   :  { %10146 = vst [vmem:[#allocation186_spill] sm:$0xff] %v7127_v20  ;;  %2164 = vmatpush.msra.mxu1 %v7142_v5  ;;  %v7145_v20 = vld [vmem:[#allocation10 + $0x10] sm:$0xff] }
 0x412   :  { %10147 = vst [vmem:[#allocation187_spill] sm:$0xff] %v7130_v18  ;;  %2184 = vmatpush.msra.mxu2 %v7145_v20  ;;  %v7148_v18 = vld [vmem:[#allocation10 + $0x18] sm:$0xff] }
 0x413   :  { %10148 = vst [vmem:[#allocation188_spill] sm:$0xff] %v7133_v23  ;;  %2204 = vmatpush.msra.mxu3 %v7148_v18  ;;  %v1680_v23 = vpop.f32.mrf.mxu0 }
 0x414   :  { %10149 = vst [vmem:[#allocation189_spill] sm:$0xff] %v7136_v27  ;;  %v1780_v27 = vpop.f32.mrf.mxu1 }
 0x415   :  { %10150 = vst [vmem:[#allocation190_spill] sm:$0xff] %v7139_v46  ;;  %v1781_v62 = vadd.f32 %v1780_v27, %v1700_v32  ;;  %v1821_v27 = vadd.f32 %v1820_v37, %v1740_v56 }
 0x416   :  { %10151 = vst [vmem:[#allocation191_spill] sm:$0xff] %v7142_v5 }
 0x417   :  { %10152 = vst [vmem:[#allocation192_spill] sm:$0xff] %v7145_v20  ;;  %v1824_v45 = vadd.f32 %v1781_v62, %v9972_v16  ;;  %v1894_v20 = vmul.f32 %v1892_v60, %v9973_v50  ;;  %v1826_v50 = vadd.f32 %v1821_v27, %v9977_v21 }
 0x418   :  { %10153 = vst [vmem:[#allocation193_spill] sm:$0xff] %v7148_v18  ;;  %v1895_v18 = vmul.f32 %v1892_v60, %v9974_v51  ;;  %v1897_v51 = vmul.f32 %v1892_v60, %v9978_v15 }
 0x419   :  { %v3478_v48 = vmul.f32 -1.442695, %v1824_v45  ;;  %v3479_v37 = vmul.f32 -1.442695, %v1826_v50 }
 0x41b   :  { %v1760_v9 = vpop.f32.mrf.mxu0 }
 0x41c   :  { %v1761_v3 = vadd.f32 %v1760_v9, %v1680_v23  ;;  %v1898_v9 = vadd.f32 %v1894_v20, %v9975_v2  ;;  %v1899_v23 = vadd.f32 %v1895_v18, %v9976_v6 }
 0x41e   :  { %v1823_v46 = vadd.f32 %v1761_v3, %v9971_v57  ;;  %v1720_v3 = vpop.f32.mrf.mxu2 }
 0x420   :  { %v3477_v5 = vmul.f32 -1.442695, %v1823_v46  ;;  %v1939_v46 = vpop.f32.mrf.mxu1 }
 0x422   :  { %3644 = vpow2.f32 %v3477_v5  ;;  %v1983_v5 = vadd.f32 %v1939_v46, %v1899_v23 }
 0x423   :  { %3646 = vpow2.f32 %v3478_v48  ;;  %v1919_v45 = vpop.f32.mrf.mxu0 }
 0x424   :  { %v1982_v48 = vadd.f32 %v1919_v45, %v1898_v9  ;;  %v3481_v20 = vmul.f32 -1.442695, %v1983_v5 }
 0x426   :  { %v3480_v16 = vmul.f32 -1.442695, %v1982_v48  ;;  %v1800_v56 = vpop.f32.mrf.mxu2 }
 0x427   :  { %v1801_v46 = vadd.f32 %v1800_v56, %v1720_v3 }
 0x428   :  { %v3645_v34 = vpop.eup %3644 }
 0x429   :  { %v3647_v26 = vpop.eup %3646  ;;  %v7157_v62 = vadd.f32 1.0, %v3645_v34  ;;  %v1979_v34 = vpop.f32.mrf.mxu3 }
 0x42a   :  { %v7159_v32 = vadd.f32 1.0, %v3647_v26  ;;  %v1901_v26 = vadd.f32 %v1897_v51, %v9979_v28 }
 0x42b   :  { %3648 = vrcp.f32 %v7157_v62  ;;  %vm1836_vm4 = vweird.f32 %v7157_v62 }
 0x42c   :  { %3650 = vrcp.f32 %v7159_v32  ;;  %v1985_v18 = vadd.f32 %v1979_v34, %v1901_v26  ;;  %vm1855_vm5 = vweird.f32 %v7159_v32 }
 0x42d   :  { %3652 = vpow2.f32 %v3480_v16 }
 0x42e   :  { %3654 = vpow2.f32 %v3481_v20  ;;  %v3482_v27 = vmul.f32 -1.442695, %v1985_v18  ;;  %v1896_v20 = vmul.f32 %v1892_v60, %v9980_v36  ;;  %v1959_v34 = vpop.f32.mrf.mxu2 }
 0x42f   :  { %3656 = vpow2.f32 %v3479_v37  ;;  %v1825_v37 = vadd.f32 %v1801_v46, %v9981_v10 }
 0x430   :  { %3658 = vpow2.f32 %v3482_v27  ;;  %v1900_v18 = vadd.f32 %v1896_v20, %v9982_v38 }
 0x431   :  { %v7166_v9 = vpop.eup %3648 }
 0x432   :  { %v7168_v23 = vpop.eup %3650  ;;  %v1832_v5 = vmul.f32 %v7166_v9, %v7157_v62  ;;  %v1984_v60 = vadd.f32 %v1959_v34, %v1900_v18  ;;  %vm1837_vm7 = vweird.f32 %v7166_v9 }
 0x433   :  { %v3653_v45 = vpop.eup %3652  ;;  %v1851_v51 = vmul.f32 %v7168_v23, %v7159_v32  ;;  %vm1856_vm6 = vweird.f32 %v7168_v23  ;;  %vm7206_vm9 = vmor %vm1836_vm4, %vm1837_vm7 }
 0x434   :  { %v3655_v48 = vpop.eup %3654  ;;  %v7172_v16 = vadd.f32 1.0, %v3653_v45  ;;  %v1833_v26 = vsub.f32 1.0, %v1832_v5  ;;  %v1840_v5 = vand.u32 2147483647, %v7157_v62  ;;  %vm7216_vm11 = vmor %vm1855_vm5, %vm1856_vm6 }
 0x435   :  { %v7174_v50 = vadd.f32 1.0, %v3655_v48  ;;  %v3657_v3 = vpop.eup %3656  ;;  %v1852_v56 = vsub.f32 1.0, %v1851_v51  ;;  %v1842_v51 = vand.u32 2147483648, %v7157_v62  ;;  %v1859_v62 = vand.u32 2147483647, %v7159_v32 }
 0x436   :  { %3660 = vrcp.f32 %v7172_v16  ;;  %v3659_v45 = vpop.eup %3658  ;;  %v7183_v27 = vadd.f32 1.0, %v3657_v3  ;;  %v1834_v28 = vmul.f32 %v7166_v9, %v1833_v26  ;;  %v1861_v3 = vand.u32 2147483648, %v7159_v32 }
 0x437   :  { %3662 = vrcp.f32 %v7174_v50  ;;  %v7187_v36 = vadd.f32 1.0, %v3659_v45  ;;  %v2001_v38 = vand.u32 2147483648, %v7172_v16  ;;  %v2020_v10 = vand.u32 2147483648, %v7174_v50 }
 0x438   :  { %3664 = vtanh.f32 %v1825_v37  ;;  %v1853_v37 = vmul.f32 %v7168_v23, %v1852_v56  ;;  %v1835_v18 = vadd.f32 %v7166_v9, %v1834_v28  ;;  %v1999_v21 = vand.u32 2147483647, %v7172_v16 }
 0x439   :  { %3666 = vrcp.f32 %v7187_v36  ;;  %vm1995_vm12 = vweird.f32 %v7172_v16  ;;  %vm2014_vm13 = vweird.f32 %v7174_v50  ;;  %vm1841_vm2 = vcmp.eq.f32.partialorder %v1840_v5, 8.507059e+37 }
 0x43a   :  { %3668 = vrcp.f32 %v7183_v27  ;;  %vm2000_vm0 = vcmp.eq.f32.partialorder %v1999_v21, 8.507059e+37  ;;  %vm1860_vm3 = vcmp.eq.f32.partialorder %v1859_v62, 8.507059e+37  ;;  %vm2034_vm5 = vweird.f32 %v7187_v36 }
 0x43b   :  { %3670 = vtanh.f32 %v1984_v60 }
 0x43c   :  { %v3661_v48 = vpop.eup %3660 }
 0x43d   :  { %v3663_v46 = vpop.eup %3662  ;;  %v1991_v20 = vmul.f32 %v3661_v48, %v7172_v16  ;;  %vm1996_vm8 = vweird.f32 %v3661_v48 }
 0x43e   :  { %v2010_v26 = vmul.f32 %v3663_v46, %v7174_v50  ;;  %v3665_v56 = vpop.eup %3664  ;;  %vm2015_vm10 = vweird.f32 %v3663_v46  ;;  %vm1997_vm14 = vmor %vm1995_vm12, %vm1996_vm8 }
 0x43f   :  { %v1992_v34 = vsub.f32 1.0, %v1991_v20  ;;  %v1854_v20 = vadd.f32 %v7168_v23, %v1853_v37  ;;  %v3667_v57 = vpop.eup %3666  ;;  %v1839_v37 = vsel %vm7206_vm9, %v7166_v9, %v1835_v18  ;;  %vm2016_vm15 = vmor %vm2014_vm13, %vm2015_vm10  ;;  %vm1875_vm9 = vweird.f32 %v7183_v27 }
 0x440   :  { %v2011_v45 = vsub.f32 1.0, %v2010_v26  ;;  %v2018_v26 = vand.u32 2147483647, %v7174_v50  ;;  %v7227_v1 = vpop.eup %3668  ;;  %v1862_v50 = vor.u32 1.1754944e-38, %v1861_v3  ;;  %vm2035_vm4 = vweird.f32 %v3667_v57 }
 0x441   :  { %v1993_v15 = vmul.f32 %v3661_v48, %v1992_v34  ;;  %v1843_v34 = vor.u32 1.1754944e-38, %v1842_v51  ;;  %v2021_v51 = vor.u32 1.1754944e-38, %v2020_v10  ;;  %v3671_v32 = vpop.eup %3670  ;;  %v1858_v6 = vsel %vm7216_vm11, %v7168_v23, %v1854_v20  ;;  %vm2036_vm6 = vmor %vm2034_vm5, %vm2035_vm4 }
 0x442   :  { %v2012_v28 = vmul.f32 %v3663_v46, %v2011_v45  ;;  %v2002_v45 = vor.u32 1.1754944e-38, %v2001_v38  ;;  %vm2019_vm1 = vcmp.eq.f32.partialorder %v2018_v26, 8.507059e+37  ;;  %v1863_v21 = vsel %vm1860_vm3, %v1862_v50, %v1858_v6  ;;  %v10189_v6 = vld [vmem:[#allocation52_spill] sm:$0xff]  ;;  %v10192_v50 = vld [vmem:[#allocation55_spill] sm:$0xff] }
 0x443   :  { %v1994_v2 = vadd.f32 %v3661_v48, %v1993_v15  ;;  %v2030_v15 = vmul.f32 %v3667_v57, %v7187_v36  ;;  %vm1876_vm8 = vweird.f32 %v7227_v1 }
 0x444   :  { %v2013_v63 = vadd.f32 %v3663_v46, %v2012_v28  ;;  %vm1877_vm10 = vmor %vm1875_vm9, %vm1876_vm8 }
 0x445   :  { %v1998_v43 = vsel %vm1997_vm14, %v3661_v48, %v1994_v2  ;;  %v2031_v28 = vsub.f32 1.0, %v2030_v15  ;;  %v1844_v2 = vsel %vm1841_vm2, %v1843_v34, %v1839_v37  ;;  %v1871_v48 = vmul.f32 %v7227_v1, %v7183_v27  ;;  %v10187_v15 = vld [vmem:[#allocation50_spill] sm:$0xff] }
 0x446   :  { %v2003_v9 = vsel %vm2000_vm0, %v2002_v45, %v1998_v43  ;;  %v2017_v16 = vsel %vm2016_vm15, %v3663_v46, %v2013_v63  ;;  %v1885_v43 = vmul.f32 %v1863_v21, %v6546_v42  ;;  %v1886_v63 = vmul.f32 %v3665_v56, %v1844_v2  ;;  %v10185_v45 = vld [vmem:[#allocation48_spill] sm:$0xff]  ;;  %v10196_v2 = vld [vmem:[#allocation59_spill] sm:$0xff] }
 0x447   :  { %v2022_v18 = vsel %vm2019_vm1, %v2021_v51, %v2017_v16  ;;  %v2045_v38 = vmul.f32 %v3671_v32, %v2003_v9  ;;  %v2032_v8 = vmul.f32 %v3667_v57, %v2031_v28  ;;  %v2040_v46 = vand.u32 2147483648, %v7187_v36  ;;  %v10186_v51 = vld [vmem:[#allocation49_spill] sm:$0xff]  ;;  %v10188_v32 = vld [vmem:[#allocation51_spill] sm:$0xff]  ;;  %v10191_v16 = vld [vmem:[#allocation54_spill] sm:$0xff] }
 0x448   :  { %v2044_v10 = vmul.f32 %v2022_v18, %v6539_v35  ;;  %v1872_v5 = vsub.f32 1.0, %v1871_v48  ;;  %v2038_v35 = vand.u32 2147483647, %v7187_v36  ;;  %v7243_v20 = vadd.f32 %v1886_v63, %v1885_v43  ;;  %v10190_v9 = vld [vmem:[#allocation53_spill] sm:$0xff]  ;;  %v10193_v18 = vld [vmem:[#allocation56_spill] sm:$0xff]  ;;  %v10200_v43 = vld [vmem:[#allocation63_spill] sm:$0xff] }
 0x449   :  { %v2033_v23 = vadd.f32 %v3667_v57, %v2032_v8  ;;  %v2041_v26 = vor.u32 1.1754944e-38, %v2040_v46  ;;  %v1879_v34 = vand.u32 2147483647, %v7183_v27  ;;  %v10194_v28 = vld [vmem:[#allocation57_spill] sm:$0xff]  ;;  %v10197_v21 = vld [vmem:[#allocation60_spill] sm:$0xff] }
 0x44a   :  { %v7236_v49 = vadd.f32 %v2045_v38, %v2044_v10  ;;  %vm2039_vm7 = vcmp.eq.f32.partialorder %v2038_v35, 8.507059e+37  ;;  %v1873_v8 = vmul.f32 %v7227_v1, %v1872_v5  ;;  %v4533_v38 = vmov 5   ;;  %v10195_v10 = vld [vmem:[#allocation58_spill] sm:$0xff]  ;;  %v10198_v48 = vld [vmem:[#allocation61_spill] sm:$0xff]  ;;  %v10201_v63 = vld [vmem:[#allocation64_spill] sm:$0xff] }
 0x44b   :  { %v2037_v3 = vsel %vm2036_vm6, %v3667_v57, %v2033_v23  ;;  %v1881_v57 = vand.u32 2147483648, %v7183_v27  ;;  %vm1880_vm11 = vcmp.eq.f32.partialorder %v1879_v34, 8.507059e+37  ;;  %v10184_v27 = vld [vmem:[#allocation47_spill] sm:$0xff]  ;;  %3526 = vset.pattern.permute.xlu2 %v4533_v38  ;;  %v10199_v23 = vld [vmem:[#allocation62_spill] sm:$0xff]  ;;  %v10202_v46 = vld [vmem:[#allocation65_spill] sm:$0xff] }
 0x44c   :  { %3672 = vtanh.f32 %v7236_v49  ;;  %v2042_v42 = vsel %vm2039_vm7, %v2041_v26, %v2037_v3  ;;  %v1874_v36 = vadd.f32 %v7227_v1, %v1873_v8  ;;  %2277 = vperm.xlu2 %3526, %v10195_v10   ;;  %v10203_v5 = vld [vmem:[#allocation66_spill] sm:$0xff]  ;;  %v10204_v35 = vld [vmem:[#allocation67_spill] sm:$0xff]  ;;  %v10205_v3 = vld [vmem:[#allocation68_spill] sm:$0xff] }
 0x44d   :  { %3674 = vtanh.f32 %v7243_v20  ;;  %v10206_v26 = vld [vmem:[#allocation69_spill] sm:$0xff]  ;;  %v10207_v8 = vld [vmem:[#allocation70_spill] sm:$0xff]  ;;  %v10213_v34 = vld [vmem:[#allocation76_spill] sm:$0xff] }
 0x44e   :  { %v1878_v62 = vsel %vm1877_vm10, %v7227_v1, %v1874_v36  ;;  %v10183_v1 = vld [vmem:[#allocation46_spill] sm:$0xff]  ;;  %v10257_v10 = vld [vmem:[#allocation120_spill] sm:$0xff] }
 0x44f   :  { %v10211_v36 = vld [vmem:[#allocation74_spill] sm:$0xff] }
 0x450   :  { %v10255_v38 = vld [vmem:[#allocation118_spill] sm:$0xff] }
 0x452   :  { %v3673_v60 = vpop.eup %3672 }
 0x453   :  { %v7246_v56 = vmul.f32 %v3673_v60, %v2042_v42  ;;  %v3675_v37 = vpop.eup %3674  ;;  %v10208_v60 = vld [vmem:[#allocation71_spill] sm:$0xff]  ;;  %v10209_v42 = vld [vmem:[#allocation72_spill] sm:$0xff] }
 0x455   :  { %2065 = vmatmul.f32.vlgmr.msrb.gmra.mxu0 %v7246_v56  ;;  %2085 = vmatmul.f32.vlgmr.msrb.gmra.mxu1 %v7246_v56 }
 0x456   :  { %2105 = vmatmul.f32.vlgmr.msrb.gmra.mxu2 %v7246_v56  ;;  %2125 = vmatmul.f32.vlgmr.msrb.gmra.mxu3 %v7246_v56 }
 0x457   :  { %2288 = vmatpush.msrb.mxu0 %v6559_v7  ;;  %2308 = vmatpush.msrb.mxu1 %v6562_v53  ;;  %v1882_v7 = vor.u32 1.1754944e-38, %v1881_v57  ;;  %v10212_v57 = vld [vmem:[#allocation75_spill] sm:$0xff] }
 0x458   :  { %2328 = vmatpush.msrb.mxu2 %v6567_v14  ;;  %2348 = vmatpush.msrb.mxu3 %v6570_v17  ;;  %v10158_v17 = vld [vmem:[#allocation21_spill] sm:$0xff] }
 0x459   :  { %2289 = vmatpush.msrb.mxu0 %v6577_v55  ;;  %2309 = vmatpush.msrb.mxu1 %v6580_v22  ;;  %v1883_v53 = vsel %vm1880_vm11, %v1882_v7, %v1878_v62  ;;  %v10159_v55 = vld [vmem:[#allocation22_spill] sm:$0xff]  ;;  %v10160_v22 = vld [vmem:[#allocation23_spill] sm:$0xff]  ;;  %v10214_v62 = vld [vmem:[#allocation77_spill] sm:$0xff] }
 0x45a   :  { %2329 = vmatpush.msrb.mxu2 %v6586_v24  ;;  %2349 = vmatpush.msrb.mxu3 %v6589_v25  ;;  %v1889_v14 = vmul.f32 %v3675_v37, %v1883_v53  ;;  %v10161_v24 = vld [vmem:[#allocation24_spill] sm:$0xff]  ;;  %v10162_v25 = vld [vmem:[#allocation25_spill] sm:$0xff]  ;;  %v10215_v37 = vld [vmem:[#allocation78_spill] sm:$0xff] }
 0x45b   :  { %2290 = vmatpush.msrb.mxu0 %v6592_v11  ;;  %2310 = vmatpush.msrb.mxu1 %v6595_v29  ;;  %v10163_v11 = vld [vmem:[#allocation26_spill] sm:$0xff]  ;;  %v10164_v29 = vld [vmem:[#allocation27_spill] sm:$0xff]  ;;  %v10217_v53 = vld [vmem:[#allocation80_spill] sm:$0xff] }
 0x45c   :  { %2330 = vmatpush.msrb.mxu2 %v6598_v30  ;;  %2350 = vmatpush.msrb.mxu3 %v6601_v31  ;;  %v10165_v30 = vld [vmem:[#allocation28_spill] sm:$0xff]  ;;  %v10166_v31 = vld [vmem:[#allocation29_spill] sm:$0xff]  ;;  %v10216_v7 = vld [vmem:[#allocation79_spill] sm:$0xff] }
 0x45d   :  { %2291 = vmatpush.msrb.mxu0 %v6604_v52  ;;  %2311 = vmatpush.msrb.mxu1 %v6607_v58  ;;  %v10167_v52 = vld [vmem:[#allocation30_spill] sm:$0xff]  ;;  %v10168_v58 = vld [vmem:[#allocation31_spill] sm:$0xff] }
 0x45e   :  { %2331 = vmatpush.msrb.mxu2 %v6610_v13  ;;  %2351 = vmatpush.msrb.mxu3 %v6613_v12  ;;  %v10169_v13 = vld [vmem:[#allocation32_spill] sm:$0xff]  ;;  %v10170_v12 = vld [vmem:[#allocation33_spill] sm:$0xff] }
 0x45f   :  { %2145 = vmatmul.f32.vlgmr.msra.gmra.mxu0 %v1889_v14  ;;  %2165 = vmatmul.f32.vlgmr.msra.gmra.mxu1 %v1889_v14 }
 0x460   :  { %2185 = vmatmul.f32.vlgmr.msra.gmra.mxu2 %v1889_v14  ;;  %2205 = vmatmul.f32.vlgmr.msra.gmra.mxu3 %v1889_v14  ;;  %v10218_v14 = vld [vmem:[#allocation81_spill] sm:$0xff] }
 0x461   :  { %2292 = vmatpush.msrb.mxu0 %v6616_v54  ;;  %2312 = vmatpush.msrb.mxu1 %v6619_v59  ;;  %v10171_v54 = vld [vmem:[#allocation34_spill] sm:$0xff]  ;;  %v10172_v59 = vld [vmem:[#allocation35_spill] sm:$0xff] }
 0x462   :  { %2332 = vmatpush.msrb.mxu2 %v6622_v40  ;;  %2352 = vmatpush.msrb.mxu3 %v6625_v47  ;;  %v10173_v40 = vld [vmem:[#allocation36_spill] sm:$0xff]  ;;  %v10174_v47 = vld [vmem:[#allocation37_spill] sm:$0xff] }
 0x463   :  { %2293 = vmatpush.msrb.mxu0 %v6628_v39  ;;  %2313 = vmatpush.msrb.mxu1 %v6631_v33  ;;  %v10175_v39 = vld [vmem:[#allocation38_spill] sm:$0xff]  ;;  %v10176_v33 = vld [vmem:[#allocation39_spill] sm:$0xff] }
 0x464   :  { %2333 = vmatpush.msrb.mxu2 %v6634_v19  ;;  %2353 = vmatpush.msrb.mxu3 %v6637_v61  ;;  %v10177_v19 = vld [vmem:[#allocation40_spill] sm:$0xff]  ;;  %v10178_v61 = vld [vmem:[#allocation41_spill] sm:$0xff] }
 0x465   :  { %2294 = vmatpush.msrb.mxu0 %v6640_v44  ;;  %2314 = vmatpush.msrb.mxu1 %v6643_v0  ;;  %v10179_v44 = vld [vmem:[#allocation42_spill] sm:$0xff]  ;;  %v10180_v0 = vld [vmem:[#allocation43_spill] sm:$0xff] }
 0x466   :  { %2334 = vmatpush.msrb.mxu2 %v6646_v4  ;;  %2354 = vmatpush.msrb.mxu3 %v6649_v41  ;;  %v10181_v4 = vld [vmem:[#allocation44_spill] sm:$0xff]  ;;  %v10182_v41 = vld [vmem:[#allocation45_spill] sm:$0xff] }
 0x467   :  { %2295 = vmatpush.msrb.mxu0 %v10158_v17  ;;  %2315 = vmatpush.msrb.mxu1 %v10159_v55  ;;  %v10219_v17 = vld [vmem:[#allocation82_spill] sm:$0xff]  ;;  %v10220_v55 = vld [vmem:[#allocation83_spill] sm:$0xff] }
 0x468   :  { %2335 = vmatpush.msrb.mxu2 %v10160_v22  ;;  %2355 = vmatpush.msrb.mxu3 %v10161_v24  ;;  %v10221_v22 = vld [vmem:[#allocation84_spill] sm:$0xff]  ;;  %v10222_v24 = vld [vmem:[#allocation85_spill] sm:$0xff] }
 0x469   :  { %2296 = vmatpush.msrb.mxu0 %v10162_v25  ;;  %2316 = vmatpush.msrb.mxu1 %v10163_v11  ;;  %v10223_v25 = vld [vmem:[#allocation86_spill] sm:$0xff]  ;;  %v10224_v11 = vld [vmem:[#allocation87_spill] sm:$0xff] }
 0x46a   :  { %2336 = vmatpush.msrb.mxu2 %v10164_v29  ;;  %2356 = vmatpush.msrb.mxu3 %v10165_v30  ;;  %v10225_v29 = vld [vmem:[#allocation88_spill] sm:$0xff]  ;;  %v10226_v30 = vld [vmem:[#allocation89_spill] sm:$0xff] }
 0x46b   :  { %2297 = vmatpush.msrb.mxu0 %v10166_v31  ;;  %2317 = vmatpush.msrb.mxu1 %v10167_v52  ;;  %v10227_v31 = vld [vmem:[#allocation90_spill] sm:$0xff]  ;;  %v10228_v52 = vld [vmem:[#allocation91_spill] sm:$0xff] }
 0x46c   :  { %2337 = vmatpush.msrb.mxu2 %v10168_v58  ;;  %2357 = vmatpush.msrb.mxu3 %v10169_v13  ;;  %v10229_v58 = vld [vmem:[#allocation92_spill] sm:$0xff]  ;;  %v10230_v13 = vld [vmem:[#allocation93_spill] sm:$0xff] }
 0x46d   :  { %2298 = vmatpush.msrb.mxu0 %v10170_v12  ;;  %2318 = vmatpush.msrb.mxu1 %v10171_v54  ;;  %v10231_v12 = vld [vmem:[#allocation94_spill] sm:$0xff]  ;;  %v10232_v54 = vld [vmem:[#allocation95_spill] sm:$0xff] }
 0x46e   :  { %2338 = vmatpush.msrb.mxu2 %v10172_v59  ;;  %2358 = vmatpush.msrb.mxu3 %v10173_v40  ;;  %v10233_v59 = vld [vmem:[#allocation96_spill] sm:$0xff]  ;;  %v10234_v40 = vld [vmem:[#allocation97_spill] sm:$0xff] }
 0x46f   :  { %2299 = vmatpush.msrb.mxu0 %v10174_v47  ;;  %2319 = vmatpush.msrb.mxu1 %v10175_v39  ;;  %v10235_v47 = vld [vmem:[#allocation98_spill] sm:$0xff]  ;;  %v10236_v39 = vld [vmem:[#allocation99_spill] sm:$0xff] }
 0x470   :  { %2339 = vmatpush.msrb.mxu2 %v10176_v33  ;;  %2359 = vmatpush.msrb.mxu3 %v10177_v19  ;;  %v10237_v33 = vld [vmem:[#allocation100_spill] sm:$0xff]  ;;  %v10238_v19 = vld [vmem:[#allocation101_spill] sm:$0xff] }
 0x471   :  { %2300 = vmatpush.msrb.mxu0 %v10178_v61  ;;  %2320 = vmatpush.msrb.mxu1 %v10179_v44  ;;  %v10239_v61 = vld [vmem:[#allocation102_spill] sm:$0xff]  ;;  %v10240_v44 = vld [vmem:[#allocation103_spill] sm:$0xff] }
 0x472   :  { %2340 = vmatpush.msrb.mxu2 %v10180_v0  ;;  %2360 = vmatpush.msrb.mxu3 %v10181_v4  ;;  %v10241_v0 = vld [vmem:[#allocation104_spill] sm:$0xff]  ;;  %v10242_v4 = vld [vmem:[#allocation105_spill] sm:$0xff] }
 0x473   :  { %2301 = vmatpush.msrb.mxu0 %v10182_v41  ;;  %2321 = vmatpush.msrb.mxu1 %v10183_v1  ;;  %v10243_v41 = vld [vmem:[#allocation106_spill] sm:$0xff]  ;;  %v10244_v1 = vld [vmem:[#allocation107_spill] sm:$0xff] }
 0x474   :  { %2341 = vmatpush.msrb.mxu2 %v10184_v27  ;;  %2361 = vmatpush.msrb.mxu3 %v10185_v45  ;;  %v10245_v27 = vld [vmem:[#allocation108_spill] sm:$0xff]  ;;  %v10246_v45 = vld [vmem:[#allocation109_spill] sm:$0xff] }
 0x475   :  { %2302 = vmatpush.msrb.mxu0 %v10186_v51  ;;  %2322 = vmatpush.msrb.mxu1 %v10187_v15  ;;  %v10247_v51 = vld [vmem:[#allocation110_spill] sm:$0xff]  ;;  %v10248_v15 = vld [vmem:[#allocation111_spill] sm:$0xff] }
 0x476   :  { %2342 = vmatpush.msrb.mxu2 %v10188_v32  ;;  %2362 = vmatpush.msrb.mxu3 %v10189_v6  ;;  %v10249_v32 = vld [vmem:[#allocation112_spill] sm:$0xff]  ;;  %v10250_v6 = vld [vmem:[#allocation113_spill] sm:$0xff] }
 0x477   :  { %2303 = vmatpush.msrb.mxu0 %v10190_v9  ;;  %2323 = vmatpush.msrb.mxu1 %v10191_v16  ;;  %v10251_v9 = vld [vmem:[#allocation114_spill] sm:$0xff]  ;;  %v10252_v16 = vld [vmem:[#allocation115_spill] sm:$0xff] }
 0x478   :  { %2343 = vmatpush.msrb.mxu2 %v10192_v50  ;;  %2363 = vmatpush.msrb.mxu3 %v10193_v18  ;;  %v10253_v50 = vld [vmem:[#allocation116_spill] sm:$0xff]  ;;  %v10254_v18 = vld [vmem:[#allocation117_spill] sm:$0xff] }
 0x479   :  { %2304 = vmatmul.f32.vlgmr.msrb.gmra.mxu0 %v7246_v56  ;;  %2324 = vmatmul.f32.vlgmr.msrb.gmra.mxu1 %v7246_v56 }
 0x47a   :  { %2344 = vmatmul.f32.vlgmr.msrb.gmra.mxu2 %v7246_v56  ;;  %2364 = vmatmul.f32.vlgmr.msrb.gmra.mxu3 %v7246_v56  ;;  %v10210_v56 = vld [vmem:[#allocation73_spill] sm:$0xff] }
 0x47b   :  { %2435 = vmatpush.msra.mxu0 %v10194_v28  ;;  %2455 = vmatpush.msra.mxu1 %v10196_v2  ;;  %v10256_v28 = vld [vmem:[#allocation119_spill] sm:$0xff]  ;;  %v10258_v2 = vld [vmem:[#allocation121_spill] sm:$0xff] }
 0x47c   :  { %2475 = vmatpush.msra.mxu2 %v10197_v21  ;;  %2495 = vmatpush.msra.mxu3 %v10198_v48  ;;  %v10259_v21 = vld [vmem:[#allocation122_spill] sm:$0xff]  ;;  %v10260_v48 = vld [vmem:[#allocation125_spill] sm:$0xff] }
 0x47d   :  { %2436 = vmatpush.msra.mxu0 %v10199_v23  ;;  %2456 = vmatpush.msra.mxu1 %v10200_v43  ;;  %v10261_v23 = vld [vmem:[#allocation126_spill] sm:$0xff]  ;;  %v10262_v43 = vld [vmem:[#allocation127_spill] sm:$0xff] }
 0x47e   :  { %2476 = vmatpush.msra.mxu2 %v10201_v63  ;;  %2496 = vmatpush.msra.mxu3 %v10202_v46  ;;  %v10263_v63 = vld [vmem:[#allocation128_spill] sm:$0xff]  ;;  %v10264_v46 = vld [vmem:[#allocation129_spill] sm:$0xff] }
 0x47f   :  { %2437 = vmatpush.msra.mxu0 %v10203_v5  ;;  %2457 = vmatpush.msra.mxu1 %v10204_v35  ;;  %v10265_v5 = vld [vmem:[#allocation130_spill] sm:$0xff]  ;;  %v10266_v35 = vld [vmem:[#allocation131_spill] sm:$0xff] }
 0x480   :  { %2477 = vmatpush.msra.mxu2 %v10205_v3  ;;  %2497 = vmatpush.msra.mxu3 %v10206_v26  ;;  %v10267_v3 = vld [vmem:[#allocation134_spill] sm:$0xff]  ;;  %v10268_v26 = vld [vmem:[#allocation135_spill] sm:$0xff] }
 0x481   :  { %2438 = vmatpush.msra.mxu0 %v10207_v8  ;;  %2458 = vmatpush.msra.mxu1 %v10208_v60  ;;  %v10269_v8 = vld [vmem:[#allocation136_spill] sm:$0xff]  ;;  %v10270_v60 = vld [vmem:[#allocation137_spill] sm:$0xff] }
 0x482   :  { %2478 = vmatpush.msra.mxu2 %v10209_v42  ;;  %2498 = vmatpush.msra.mxu3 %v10210_v56  ;;  %v10271_v42 = vld [vmem:[#allocation138_spill] sm:$0xff]  ;;  %v10272_v56 = vld [vmem:[#allocation139_spill] sm:$0xff] }
 0x483   :  { %2439 = vmatpush.msra.mxu0 %v10211_v36  ;;  %2459 = vmatpush.msra.mxu1 %v10212_v57  ;;  %v10273_v36 = vld [vmem:[#allocation140_spill] sm:$0xff]  ;;  %v10274_v57 = vld [vmem:[#allocation141_spill] sm:$0xff] }
 0x484   :  { %2479 = vmatpush.msra.mxu2 %v10213_v34  ;;  %2499 = vmatpush.msra.mxu3 %v10214_v62  ;;  %v10275_v34 = vld [vmem:[#allocation142_spill] sm:$0xff]  ;;  %v10276_v62 = vld [vmem:[#allocation143_spill] sm:$0xff] }
 0x485   :  { %2440 = vmatpush.msra.mxu0 %v10215_v37  ;;  %2460 = vmatpush.msra.mxu1 %v10216_v7  ;;  %v10277_v37 = vld [vmem:[#allocation145_spill] sm:$0xff]  ;;  %v10278_v7 = vld [vmem:[#allocation146_spill] sm:$0xff] }
 0x486   :  { %2480 = vmatpush.msra.mxu2 %v10217_v53  ;;  %2500 = vmatpush.msra.mxu3 %v10218_v14  ;;  %v10279_v53 = vld [vmem:[#allocation147_spill] sm:$0xff]  ;;  %v10280_v14 = vld [vmem:[#allocation148_spill] sm:$0xff] }
 0x487   :  { %2441 = vmatpush.msra.mxu0 %v10219_v17  ;;  %2461 = vmatpush.msra.mxu1 %v10220_v55  ;;  %v10281_v17 = vld [vmem:[#allocation149_spill] sm:$0xff]  ;;  %v10282_v55 = vld [vmem:[#allocation150_spill] sm:$0xff] }
 0x488   :  { %2481 = vmatpush.msra.mxu2 %v10221_v22  ;;  %2501 = vmatpush.msra.mxu3 %v10222_v24  ;;  %v10283_v22 = vld [vmem:[#allocation151_spill] sm:$0xff]  ;;  %v10284_v24 = vld [vmem:[#allocation152_spill] sm:$0xff] }
 0x489   :  { %2442 = vmatpush.msra.mxu0 %v10223_v25  ;;  %2462 = vmatpush.msra.mxu1 %v10224_v11  ;;  %v10285_v25 = vld [vmem:[#allocation154_spill] sm:$0xff]  ;;  %v10286_v11 = vld [vmem:[#allocation155_spill] sm:$0xff] }
 0x48a   :  { %2482 = vmatpush.msra.mxu2 %v10225_v29  ;;  %2502 = vmatpush.msra.mxu3 %v10226_v30  ;;  %v10287_v29 = vld [vmem:[#allocation156_spill] sm:$0xff]  ;;  %v10288_v30 = vld [vmem:[#allocation157_spill] sm:$0xff] }
 0x48b   :  { %2443 = vmatpush.msra.mxu0 %v10227_v31  ;;  %2463 = vmatpush.msra.mxu1 %v10228_v52  ;;  %v10289_v31 = vld [vmem:[#allocation158_spill] sm:$0xff]  ;;  %v10290_v52 = vld [vmem:[#allocation159_spill] sm:$0xff] }
 0x48c   :  { %2483 = vmatpush.msra.mxu2 %v10229_v58  ;;  %2503 = vmatpush.msra.mxu3 %v10230_v13  ;;  %v10291_v58 = vld [vmem:[#allocation160_spill] sm:$0xff]  ;;  %v10292_v13 = vld [vmem:[#allocation161_spill] sm:$0xff] }
 0x48d   :  { %2444 = vmatpush.msra.mxu0 %v10231_v12  ;;  %2464 = vmatpush.msra.mxu1 %v10232_v54  ;;  %v10293_v12 = vld [vmem:[#allocation162_spill] sm:$0xff]  ;;  %v10294_v54 = vld [vmem:[#allocation163_spill] sm:$0xff] }
 0x48e   :  { %2484 = vmatpush.msra.mxu2 %v10233_v59  ;;  %2504 = vmatpush.msra.mxu3 %v10234_v40  ;;  %v10295_v59 = vld [vmem:[#allocation164_spill] sm:$0xff]  ;;  %v10296_v40 = vld [vmem:[#allocation165_spill] sm:$0xff] }
 0x48f   :  { %2445 = vmatpush.msra.mxu0 %v10235_v47  ;;  %2465 = vmatpush.msra.mxu1 %v10236_v39  ;;  %v10297_v47 = vld [vmem:[#allocation166_spill] sm:$0xff]  ;;  %v10298_v39 = vld [vmem:[#allocation167_spill] sm:$0xff] }
 0x490   :  { %2485 = vmatpush.msra.mxu2 %v10237_v33  ;;  %2505 = vmatpush.msra.mxu3 %v10238_v19  ;;  %v10299_v33 = vld [vmem:[#allocation168_spill] sm:$0xff]  ;;  %v10300_v19 = vld [vmem:[#allocation169_spill] sm:$0xff] }
 0x491   :  { %2446 = vmatpush.msra.mxu0 %v10239_v61  ;;  %2466 = vmatpush.msra.mxu1 %v10240_v44  ;;  %v10301_v61 = vld [vmem:[#allocation171_spill] sm:$0xff]  ;;  %v10302_v44 = vld [vmem:[#allocation172_spill] sm:$0xff] }
 0x492   :  { %2486 = vmatpush.msra.mxu2 %v10241_v0  ;;  %2506 = vmatpush.msra.mxu3 %v10242_v4  ;;  %v10303_v0 = vld [vmem:[#allocation173_spill] sm:$0xff]  ;;  %v10304_v4 = vld [vmem:[#allocation174_spill] sm:$0xff] }
 0x493   :  { %2447 = vmatpush.msra.mxu0 %v10243_v41  ;;  %2467 = vmatpush.msra.mxu1 %v10244_v1  ;;  %v10305_v41 = vld [vmem:[#allocation175_spill] sm:$0xff]  ;;  %v10306_v1 = vld [vmem:[#allocation176_spill] sm:$0xff] }
 0x494   :  { %2487 = vmatpush.msra.mxu2 %v10245_v27  ;;  %2507 = vmatpush.msra.mxu3 %v10246_v45  ;;  %v10307_v27 = vld [vmem:[#allocation177_spill] sm:$0xff]  ;;  %v10308_v45 = vld [vmem:[#allocation178_spill] sm:$0xff] }
 0x495   :  { %2448 = vmatpush.msra.mxu0 %v10247_v51  ;;  %2468 = vmatpush.msra.mxu1 %v10248_v15  ;;  %v10309_v51 = vld [vmem:[#allocation180_spill] sm:$0xff]  ;;  %v10310_v15 = vld [vmem:[#allocation181_spill] sm:$0xff] }
 0x496   :  { %2488 = vmatpush.msra.mxu2 %v10249_v32  ;;  %2508 = vmatpush.msra.mxu3 %v10250_v6  ;;  %v10311_v32 = vld [vmem:[#allocation182_spill] sm:$0xff]  ;;  %v10312_v6 = vld [vmem:[#allocation183_spill] sm:$0xff] }
 0x497   :  { %2449 = vmatpush.msra.mxu0 %v10251_v9  ;;  %2469 = vmatpush.msra.mxu1 %v10252_v16  ;;  %v10313_v9 = vld [vmem:[#allocation184_spill] sm:$0xff]  ;;  %v10314_v16 = vld [vmem:[#allocation185_spill] sm:$0xff] }
 0x498   :  { %2489 = vmatpush.msra.mxu2 %v10253_v50  ;;  %2509 = vmatpush.msra.mxu3 %v10254_v18  ;;  %v10315_v50 = vld [vmem:[#allocation186_spill] sm:$0xff]  ;;  %v10316_v18 = vld [vmem:[#allocation187_spill] sm:$0xff] }
 0x499   :  { %2450 = vmatpush.msra.mxu0 %v10255_v38  ;;  %2470 = vmatpush.msra.mxu1 %v10256_v28  ;;  %v10317_v38 = vld [vmem:[#allocation188_spill] sm:$0xff]  ;;  %v10318_v28 = vld [vmem:[#allocation189_spill] sm:$0xff] }
 0x49a   :  { %2490 = vmatpush.msra.mxu2 %v10257_v10  ;;  %2510 = vmatpush.msra.mxu3 %v10258_v2  ;;  %v10319_v10 = vld [vmem:[#allocation190_spill] sm:$0xff]  ;;  %v10320_v2 = vld [vmem:[#allocation191_spill] sm:$0xff] }
 0x49b   :  { %2515 = vmatpush.msrb.mxu0 %v10259_v21  ;;  %2535 = vmatpush.msrb.mxu1 %v10260_v48  ;;  %v10321_v21 = vld [vmem:[#allocation192_spill] sm:$0xff]  ;;  %v10322_v48 = vld [vmem:[#allocation193_spill] sm:$0xff] }
 0x49c   :  { %2555 = vmatpush.msrb.mxu2 %v10261_v23  ;;  %2575 = vmatpush.msrb.mxu3 %v10262_v43 }
 0x49d   :  { %2516 = vmatpush.msrb.mxu0 %v10263_v63  ;;  %2536 = vmatpush.msrb.mxu1 %v10264_v46 }
 0x49e   :  { %2556 = vmatpush.msrb.mxu2 %v10265_v5  ;;  %2576 = vmatpush.msrb.mxu3 %v10266_v35 }
 0x49f   :  { %2517 = vmatpush.msrb.mxu0 %v10267_v3  ;;  %2537 = vmatpush.msrb.mxu1 %v10268_v26  ;;  %v10323_v3 = vld [vmem:[#allocation17_spill] sm:$0xff] }
 0x4a0   :  { %2557 = vmatpush.msrb.mxu2 %v10269_v8  ;;  %2577 = vmatpush.msrb.mxu3 %v10270_v60  ;;  %v10324_v8 = vld [vmem:[#allocation18_spill] sm:$0xff] }
 0x4a1   :  { %2518 = vmatpush.msrb.mxu0 %v10271_v42  ;;  %2538 = vmatpush.msrb.mxu1 %v10272_v56 }
 0x4a2   :  { %2558 = vmatpush.msrb.mxu2 %v10273_v36  ;;  %2578 = vmatpush.msrb.mxu3 %v10274_v57 }
 0x4a3   :  { %2519 = vmatpush.msrb.mxu0 %v10275_v34  ;;  %2539 = vmatpush.msrb.mxu1 %v10276_v62  ;;  %v10325_v34 = vld [vmem:[#allocation123_spill] sm:$0xff] }
 0x4a4   :  { %2559 = vmatpush.msrb.mxu2 %v10277_v37  ;;  %2579 = vmatpush.msrb.mxu3 %v10278_v7  ;;  %v10326_v37 = vld [vmem:[#allocation124_spill] sm:$0xff] }
 0x4a5   :  { %2520 = vmatpush.msrb.mxu0 %v10279_v53  ;;  %2540 = vmatpush.msrb.mxu1 %v10280_v14 }
 0x4a6   :  { %2560 = vmatpush.msrb.mxu2 %v10281_v17  ;;  %2580 = vmatpush.msrb.mxu3 %v10282_v55  ;;  %v2278_v57 = vpop.permute.xlu2 %2277  ;;  %v10327_v55 = vld [vmem:[#allocation132_spill] sm:$0xff] }
 0x4a7   :  { %2521 = vmatpush.msrb.mxu0 %v10283_v22  ;;  %2541 = vmatpush.msrb.mxu1 %v10284_v24  ;;  %v2280_v62 = vmul.f32 %v2278_v57, %v10325_v34  ;;  %v2281_v7 = vmul.f32 %v2278_v57, %v10326_v37  ;;  %v10328_v24 = vld [vmem:[#allocation133_spill] sm:$0xff] }
 0x4a8   :  { %2561 = vmatpush.msrb.mxu2 %v10285_v25  ;;  %2581 = vmatpush.msrb.mxu3 %v10286_v11 }
 0x4a9   :  { %2522 = vmatpush.msrb.mxu0 %v10287_v29  ;;  %2542 = vmatpush.msrb.mxu1 %v10288_v30  ;;  %v2284_v22 = vadd.f32 %v2280_v62, %v10327_v55  ;;  %v2285_v25 = vadd.f32 %v2281_v7, %v10328_v24 }
 0x4aa   :  { %2562 = vmatpush.msrb.mxu2 %v10289_v31  ;;  %2582 = vmatpush.msrb.mxu3 %v10290_v52 }
 0x4ab   :  { %2523 = vmatpush.msrb.mxu0 %v10291_v58  ;;  %2543 = vmatpush.msrb.mxu1 %v10292_v13 }
 0x4ac   :  { %2563 = vmatpush.msrb.mxu2 %v10293_v12  ;;  %2583 = vmatpush.msrb.mxu3 %v10294_v54  ;;  %v10329_v54 = vld [vmem:[#allocation19_spill] sm:$0xff] }
 0x4ad   :  { %2524 = vmatpush.msrb.mxu0 %v10295_v59  ;;  %2544 = vmatpush.msrb.mxu1 %v10296_v40  ;;  %v10330_v40 = vld [vmem:[#allocation144_spill] sm:$0xff] }
 0x4ae   :  { %2564 = vmatpush.msrb.mxu2 %v10297_v47  ;;  %2584 = vmatpush.msrb.mxu3 %v10298_v39  ;;  %v2283_v47 = vmul.f32 %v2278_v57, %v10330_v40 }
 0x4af   :  { %2525 = vmatpush.msrb.mxu0 %v10299_v33  ;;  %2545 = vmatpush.msrb.mxu1 %v10300_v19 }
 0x4b0   :  { %2565 = vmatpush.msrb.mxu2 %v10301_v61  ;;  %2585 = vmatpush.msrb.mxu3 %v10302_v44  ;;  %v10331_v61 = vld [vmem:[#allocation153_spill] sm:$0xff] }
 0x4b1   :  { %2526 = vmatpush.msrb.mxu0 %v10303_v0  ;;  %2546 = vmatpush.msrb.mxu1 %v10304_v4  ;;  %v2287_v44 = vadd.f32 %v2283_v47, %v10331_v61 }
 0x4b2   :  { %2566 = vmatpush.msrb.mxu2 %v10305_v41  ;;  %2586 = vmatpush.msrb.mxu3 %v10306_v1 }
 0x4b3   :  { %2527 = vmatpush.msrb.mxu0 %v10307_v27  ;;  %2547 = vmatpush.msrb.mxu1 %v10308_v45 }
 0x4b4   :  { %2567 = vmatpush.msrb.mxu2 %v10309_v51  ;;  %2587 = vmatpush.msrb.mxu3 %v10310_v15 }
 0x4b5   :  { %2528 = vmatpush.msrb.mxu0 %v10311_v32  ;;  %2548 = vmatpush.msrb.mxu1 %v10312_v6 }
 0x4b6   :  { %2568 = vmatpush.msrb.mxu2 %v10313_v9  ;;  %2588 = vmatpush.msrb.mxu3 %v10314_v16 }
 0x4b7   :  { %2529 = vmatpush.msrb.mxu0 %v10315_v50  ;;  %2549 = vmatpush.msrb.mxu1 %v10316_v18  ;;  %v10332_v18 = vld [vmem:[#allocation170_spill] sm:$0xff] }
 0x4b8   :  { %2569 = vmatpush.msrb.mxu2 %v10317_v38  ;;  %2589 = vmatpush.msrb.mxu3 %v10318_v28  ;;  %v2282_v38 = vmul.f32 %v2278_v57, %v10332_v18  ;;  %v10333_v28 = vld [vmem:[#allocation20_spill] sm:$0xff] }
 0x4b9   :  { %2530 = vmatpush.msrb.mxu0 %v10319_v10  ;;  %2550 = vmatpush.msrb.mxu1 %v10320_v2 }
 0x4ba   :  { %2570 = vmatpush.msrb.mxu2 %v10321_v21  ;;  %2590 = vmatpush.msrb.mxu3 %v10322_v48 }
 0x4d2   :  { %v2066_v23 = vpop.f32.mrf.mxu0  ;;  %v2086_v43 = vpop.f32.mrf.mxu1 }
 0x4d9   :  { %v2126_v42 = vpop.f32.mrf.mxu3  ;;  %v2106_v11 = vpop.f32.mrf.mxu2 }
 0x4dc   :  { %v2146_v63 = vpop.f32.mrf.mxu0  ;;  %v2166_v46 = vpop.f32.mrf.mxu1 }
 0x4dd   :  { %v2147_v5 = vadd.f32 %v2146_v63, %v2066_v23  ;;  %v2167_v35 = vadd.f32 %v2166_v46, %v2086_v43  ;;  %v10334_v43 = vld [vmem:[#allocation179_spill] sm:$0xff] }
 0x4de   :  { %v2286_v63 = vadd.f32 %v2282_v38, %v10334_v43 }
 0x4df   :  { %v2209_v26 = vadd.f32 %v2147_v5, %v10323_v3  ;;  %v2210_v60 = vadd.f32 %v2167_v35, %v10324_v8 }
 0x4e1   :  { %v3483_v56 = vmul.f32 -1.442695, %v2209_v26  ;;  %v3484_v36 = vmul.f32 -1.442695, %v2210_v60 }
 0x4e3   :  { %3676 = vpow2.f32 %v3483_v56  ;;  %v2206_v53 = vpop.f32.mrf.mxu3  ;;  %v2186_v4 = vpop.f32.mrf.mxu2 }
 0x4e4   :  { %3678 = vpow2.f32 %v3484_v36  ;;  %v2207_v29 = vadd.f32 %v2206_v53, %v2126_v42  ;;  %v2187_v15 = vadd.f32 %v2186_v4, %v2106_v11 }
 0x4e6   :  { %v2212_v59 = vadd.f32 %v2207_v29, %v10329_v54  ;;  %v2211_v10 = vadd.f32 %v2187_v15, %v10333_v28 }
 0x4e8   :  { %v3485_v19 = vmul.f32 -1.442695, %v2212_v59 }
 0x4e9   :  { %v3677_v14 = vpop.eup %3676 }
 0x4ea   :  { %v3679_v17 = vpop.eup %3678  ;;  %v7462_v30 = vadd.f32 1.0, %v3677_v14 }
 0x4eb   :  { %v7464_v31 = vadd.f32 1.0, %v3679_v17 }
 0x4ec   :  { %3680 = vrcp.f32 %v7462_v30  ;;  %vm2222_vm12 = vweird.f32 %v7462_v30  ;;  %v2226_v36 = vand.u32 2147483647, %v7462_v30  ;;  %v2228_v57 = vand.u32 2147483648, %v7462_v30 }
 0x4ed   :  { %3682 = vrcp.f32 %v7464_v31  ;;  %vm2241_vm13 = vweird.f32 %v7464_v31  ;;  %v2247_v53 = vand.u32 2147483648, %v7464_v31 }
 0x4ee   :  { %vm2227_vm10 = vcmp.eq.f32.partialorder %v2226_v36, 8.507059e+37 }
 0x4f2   :  { %v7471_v1 = vpop.eup %3680 }
 0x4f3   :  { %v7473_v27 = vpop.eup %3682  ;;  %v2218_v6 = vmul.f32 %v7471_v1, %v7462_v30  ;;  %vm2223_vm15 = vweird.f32 %v7471_v1  ;;  %v2245_v30 = vand.u32 2147483647, %v7464_v31 }
 0x4f4   :  { %v2237_v50 = vmul.f32 %v7473_v27, %v7464_v31  ;;  %vm2242_vm14 = vweird.f32 %v7473_v27  ;;  %vm7511_vm1 = vmor %vm2222_vm12, %vm2223_vm15 }
 0x4f5   :  { %v2219_v21 = vsub.f32 1.0, %v2218_v6  ;;  %vm7521_vm3 = vmor %vm2241_vm13, %vm2242_vm14  ;;  %vm2246_vm11 = vcmp.eq.f32.partialorder %v2245_v30, 8.507059e+37  ;;  %v7594_v30 = vld [vmem:[#allocation7 + $0x1a0] sm:$0xff] }
 0x4f6   :  { %v2305_v52 = vpop.f32.mrf.mxu0  ;;  %v2325_v58 = vpop.f32.mrf.mxu1  ;;  %v2238_v23 = vsub.f32 1.0, %v2237_v50 }
 0x4f7   :  { %v2368_v13 = vadd.f32 %v2305_v52, %v2284_v22  ;;  %v2369_v12 = vadd.f32 %v2325_v58, %v2285_v25  ;;  %v2220_v26 = vmul.f32 %v7471_v1, %v2219_v21 }
 0x4f8   :  { %v2239_v7 = vmul.f32 %v7473_v27, %v2238_v23 }
 0x4f9   :  { %v3486_v39 = vmul.f32 -1.442695, %v2368_v13  ;;  %v3487_v33 = vmul.f32 -1.442695, %v2369_v12  ;;  %v2221_v22 = vadd.f32 %v7471_v1, %v2220_v26  ;;  %v7579_v12 = vld [vmem:[#allocation7 + $0x1c0] sm:$0xff] }
 0x4fa   :  { %v2240_v59 = vadd.f32 %v7473_v27, %v2239_v7 }
 0x4fb   :  { %3684 = vpow2.f32 %v3486_v39  ;;  %v2225_v4 = vsel %vm7511_vm1, %v7471_v1, %v2221_v22 }
 0x4fc   :  { %3686 = vpow2.f32 %v3487_v33  ;;  %v7591_v33 = vld [vmem:[#allocation7 + $0x1d8] sm:$0xff] }
 0x4fd   :  { %v2365_v0 = vpop.f32.mrf.mxu3  ;;  %3688 = vpow2.f32 %v3485_v19  ;;  %v2345_v48 = vpop.f32.mrf.mxu2  ;;  %v2229_v19 = vor.u32 1.1754944e-38, %v2228_v57 }
 0x4fe   :  { %v2371_v41 = vadd.f32 %v2365_v0, %v2287_v44  ;;  %v2370_v60 = vadd.f32 %v2345_v48, %v2286_v63 }
 0x4ff   :  { %v2230_v48 = vsel %vm2227_vm10, %v2229_v19, %v2225_v4  ;;  %v7603_v4 = vld [vmem:[#allocation7 + $0x1b8] sm:$0xff] }
 0x500   :  { %v3488_v45 = vmul.f32 -1.442695, %v2371_v41 }
 0x501   :  { %v3685_v51 = vpop.eup %3684 }
 0x502   :  { %v3687_v32 = vpop.eup %3686  ;;  %v7477_v9 = vadd.f32 1.0, %v3685_v51  ;;  %3690 = vpow2.f32 %v3488_v45 }
 0x503   :  { %v7479_v16 = vadd.f32 1.0, %v3687_v32  ;;  %v3689_v2 = vpop.eup %3688 }
 0x504   :  { %3692 = vrcp.f32 %v7477_v9  ;;  %v7488_v5 = vadd.f32 1.0, %v3689_v2  ;;  %v2387_v11 = vand.u32 2147483648, %v7477_v9  ;;  %v2385_v13 = vand.u32 2147483647, %v7477_v9 }
 0x505   :  { %3694 = vrcp.f32 %v7479_v16  ;;  %v2406_v52 = vand.u32 2147483648, %v7479_v16  ;;  %v2404_v39 = vand.u32 2147483647, %v7479_v16  ;;  %vm2381_vm4 = vweird.f32 %v7477_v9 }
 0x506   :  { %3696 = vtanh.f32 %v2211_v10  ;;  %vm2400_vm5 = vweird.f32 %v7479_v16  ;;  %v2388_v41 = vor.u32 1.1754944e-38, %v2387_v11  ;;  %vm2386_vm8 = vcmp.eq.f32.partialorder %v2385_v13, 8.507059e+37  ;;  %v7564_v11 = vld [vmem:[#allocation7 + $0x1e8] sm:$0xff]  ;;  %v7699_v13 = vld [vmem:[#allocation7 + $0xb8] sm:$0xff] }
 0x507   :  { %v2407_v15 = vor.u32 1.1754944e-38, %v2406_v52  ;;  %vm2405_vm9 = vcmp.eq.f32.partialorder %v2404_v39, 8.507059e+37  ;;  %v2267_v22 = vand.u32 2147483648, %v7488_v5  ;;  %vm2261_vm1 = vweird.f32 %v7488_v5  ;;  %v7569_v52 = vld [vmem:[#allocation7 + $0x1f0] sm:$0xff]  ;;  %10356 = vst [vmem:[#allocation36_spill] sm:$0xff] %v7699_v13 }
 0x508   :  { %v3691_v46 = vpop.eup %3690  ;;  %v7588_v39 = vld [vmem:[#allocation7 + $0x1d0] sm:$0xff] }
 0x509   :  { %v7492_v42 = vadd.f32 1.0, %v3691_v46  ;;  %v2268_v19 = vor.u32 1.1754944e-38, %v2267_v22  ;;  %v7693_v22 = vld [vmem:[#allocation7 + $0xa8] sm:$0xff] }
 0x50a   :  { %v3693_v35 = vpop.eup %3692  ;;  %10354 = vst [vmem:[#allocation34_spill] sm:$0xff] %v7693_v22 }
 0x50b   :  { %v3695_v56 = vpop.eup %3694  ;;  %v2377_v62 = vmul.f32 %v3693_v35, %v7477_v9  ;;  %3698 = vrcp.f32 %v7492_v42  ;;  %vm2382_vm0 = vweird.f32 %v3693_v35  ;;  %v2244_v9 = vsel %vm7521_vm3, %v7473_v27, %v2240_v59  ;;  %v7582_v59 = vld [vmem:[#allocation7 + $0x1c8] sm:$0xff] }
 0x50c   :  { %v2396_v14 = vmul.f32 %v3695_v56, %v7479_v16  ;;  %3700 = vrcp.f32 %v7488_v5  ;;  %v3697_v29 = vpop.eup %3696  ;;  %vm2401_vm2 = vweird.f32 %v3695_v56  ;;  %vm2383_vm6 = vmor %vm2381_vm4, %vm2382_vm0  ;;  %v2248_v16 = vor.u32 1.1754944e-38, %v2247_v53 }
 0x50d   :  { %v2378_v17 = vsub.f32 1.0, %v2377_v62  ;;  %3702 = vtanh.f32 %v2370_v60  ;;  %vm2402_vm7 = vmor %vm2400_vm5, %vm2401_vm2  ;;  %v2272_v60 = vmul.f32 %v3697_v29, %v2230_v48  ;;  %vm2420_vm13 = vweird.f32 %v7492_v42  ;;  %v7645_v48 = vld [vmem:[#allocation7 + $0x128] sm:$0xff] }
 0x50e   :  { %v2397_v25 = vsub.f32 1.0, %v2396_v14  ;;  %v2249_v23 = vsel %vm2246_vm11, %v2248_v16, %v2244_v9  ;;  %v2265_v29 = vand.u32 2147483647, %v7488_v5  ;;  %v7621_v9 = vld [vmem:[#allocation7 + $0x168] sm:$0xff]  ;;  %v7630_v16 = vld [vmem:[#allocation7 + $0x140] sm:$0xff] }
 0x50f   :  { %v2379_v58 = vmul.f32 %v3693_v35, %v2378_v17  ;;  %v2271_v26 = vmul.f32 %v2249_v23, %v7243_v20  ;;  %v7648_v23 = vld [vmem:[#allocation7 + $0x130] sm:$0xff] }
 0x510   :  { %v2398_v47 = vmul.f32 %v3695_v56, %v2397_v25  ;;  %v7561_v25 = vld [vmem:[#allocation7 + $0x1e0] sm:$0xff]  ;;  %vm2266_vm3 = vcmp.eq.f32.partialorder %v2265_v29, 8.507059e+37  ;;  %v7696_v29 = vld [vmem:[#allocation7 + $0xb0] sm:$0xff] }
 0x511   :  { %v2380_v44 = vadd.f32 %v3693_v35, %v2379_v58  ;;  %v3699_v0 = vpop.eup %3698  ;;  %v7548_v62 = vadd.f32 %v2272_v60, %v2271_v26  ;;  %v7572_v58 = vld [vmem:[#allocation7 + $0x1f8] sm:$0xff]  ;;  %v7660_v26 = vld [vmem:[#allocation7 + $0x110] sm:$0xff]  ;;  %10355 = vst [vmem:[#allocation35_spill] sm:$0xff] %v7696_v29 }
 0x512   :  { %v2399_v45 = vadd.f32 %v3695_v56, %v2398_v47  ;;  %v7532_v51 = vpop.eup %3700  ;;  %v2416_v31 = vmul.f32 %v3699_v0, %v7492_v42  ;;  %vm2421_vm12 = vweird.f32 %v3699_v0  ;;  %10343 = vst [vmem:[#allocation23_spill] sm:$0xff] %v7660_v26  ;;  %v7663_v60 = vld [vmem:[#allocation7 + $0x118] sm:$0xff] }
 0x513   :  { %v2384_v32 = vsel %vm2383_vm6, %v3693_v35, %v2380_v44  ;;  %v3703_v6 = vpop.eup %3702  ;;  %v2257_v63 = vmul.f32 %v7532_v51, %v7488_v5  ;;  %vm2422_vm14 = vmor %vm2420_vm13, %vm2421_vm12  ;;  %vm2262_vm0 = vweird.f32 %v7532_v51  ;;  %v7597_v44 = vld [vmem:[#allocation7 + $0x1a8] sm:$0xff]  ;;  %10344 = vst [vmem:[#allocation24_spill] sm:$0xff] %v7663_v60 }
 0x514   :  { %v2389_v1 = vsel %vm2386_vm8, %v2388_v41, %v2384_v32  ;;  %v2403_v50 = vsel %vm2402_vm7, %v3695_v56, %v2399_v45  ;;  %v2417_v2 = vsub.f32 1.0, %v2416_v31  ;;  %v2426_v56 = vand.u32 2147483648, %v7492_v42  ;;  %vm7575_vm2 = vmor %vm2261_vm1, %vm2262_vm0  ;;  %v7606_v45 = vld [vmem:[#allocation7 + $0x180] sm:$0xff]  ;;  %v7612_v32 = vld [vmem:[#allocation7 + $0x190] sm:$0xff] }
 0x515   :  { %v2408_v38 = vsel %vm2405_vm9, %v2407_v15, %v2403_v50  ;;  %v2431_v10 = vmul.f32 %v3703_v6, %v2389_v1  ;;  %v2258_v36 = vsub.f32 1.0, %v2257_v63  ;;  %v7615_v31 = vld [vmem:[#allocation7 + $0x198] sm:$0xff]  ;;  %v7618_v6 = vld [vmem:[#allocation7 + $0x160] sm:$0xff]  ;;  %v7624_v1 = vld [vmem:[#allocation7 + $0x170] sm:$0xff] }
 0x516   :  { %v2430_v21 = vmul.f32 %v2408_v38, %v7236_v49  ;;  %v2418_v46 = vmul.f32 %v3699_v0, %v2417_v2  ;;  %v2424_v49 = vand.u32 2147483647, %v7492_v42  ;;  %v2427_v7 = vor.u32 1.1754944e-38, %v2426_v56  ;;  %v7627_v50 = vld [vmem:[#allocation7 + $0x178] sm:$0xff]  ;;  %v7633_v38 = vld [vmem:[#allocation7 + $0x148] sm:$0xff]  ;;  %v7666_v56 = vld [vmem:[#allocation7 + $0xe0] sm:$0xff] }
 0x517   :  { %v2259_v53 = vmul.f32 %v7532_v51, %v2258_v36  ;;  %v7639_v2 = vld [vmem:[#allocation7 + $0x158] sm:$0xff]  ;;  %10345 = vst [vmem:[#allocation25_spill] sm:$0xff] %v7666_v56  ;;  %v7669_v36 = vld [vmem:[#allocation7 + $0xe8] sm:$0xff] }
 0x518   :  { %v7541_v35 = vadd.f32 %v2431_v10, %v2430_v21  ;;  %v2419_v27 = vadd.f32 %v3699_v0, %v2418_v46  ;;  %vm2425_vm15 = vcmp.eq.f32.partialorder %v2424_v49, 8.507059e+37  ;;  %v7636_v10 = vld [vmem:[#allocation7 + $0x150] sm:$0xff]  ;;  %v7642_v21 = vld [vmem:[#allocation7 + $0x120] sm:$0xff]  ;;  %v7651_v63 = vld [vmem:[#allocation7 + $0x138] sm:$0xff]  ;;  %10346 = vst [vmem:[#allocation26_spill] sm:$0xff] %v7669_v36 }
 0x519   :  { %v2260_v42 = vadd.f32 %v7532_v51, %v2259_v53  ;;  %v7654_v46 = vld [vmem:[#allocation7 + $0x100] sm:$0xff]  ;;  %v7672_v49 = vld [vmem:[#allocation7 + $0xf0] sm:$0xff]  ;;  %v7681_v53 = vld [vmem:[#allocation7 + $0xc8] sm:$0xff] }
 0x51a   :  { %3704 = vtanh.f32 %v7541_v35  ;;  %v2423_v57 = vsel %vm2422_vm14, %v3699_v0, %v2419_v27  ;;  %v7600_v0 = vld [vmem:[#allocation7 + $0x1b0] sm:$0xff]  ;;  %10341 = vst [vmem:[#allocation21_spill] sm:$0xff] %v7654_v46  ;;  %v7657_v27 = vld [vmem:[#allocation7 + $0x108] sm:$0xff] }
 0x51b   :  { %v2428_v20 = vsel %vm2425_vm15, %v2427_v7, %v2423_v57  ;;  %3706 = vtanh.f32 %v7548_v62  ;;  %v2264_v5 = vsel %vm7575_vm2, %v7532_v51, %v2260_v42  ;;  %v7609_v51 = vld [vmem:[#allocation7 + $0x188] sm:$0xff]  ;;  %10342 = vst [vmem:[#allocation22_spill] sm:$0xff] %v7657_v27  ;;  %v7675_v57 = vld [vmem:[#allocation7 + $0xf8] sm:$0xff]  ;;  %v7678_v7 = vld [vmem:[#allocation7 + $0xc0] sm:$0xff] }
 0x51c   :  { %v2269_v41 = vsel %vm2266_vm3, %v2268_v19, %v2264_v5  ;;  %10347 = vst [vmem:[#allocation27_spill] sm:$0xff] %v7672_v49  ;;  %v7690_v42 = vld [vmem:[#allocation7 + $0xa0] sm:$0xff]  ;;  %v7708_v19 = vld [vmem:[#allocation7 + $0x90] sm:$0xff] }
 0x51d   :  { %10348 = vst [vmem:[#allocation28_spill] sm:$0xff] %v7675_v57  ;;  %v7702_v5 = vld [vmem:[#allocation7 + $0x80] sm:$0xff] }
 0x51e   :  { %10349 = vst [vmem:[#allocation29_spill] sm:$0xff] %v7678_v7 }
 0x51f   :  { %10350 = vst [vmem:[#allocation30_spill] sm:$0xff] %v7681_v53 }
 0x520   :  { %v3705_v14 = vpop.eup %3704  ;;  %10353 = vst [vmem:[#allocation33_spill] sm:$0xff] %v7690_v42 }
 0x521   :  { %v7551_v17 = vmul.f32 %v3705_v14, %v2428_v20  ;;  %v3707_v47 = vpop.eup %3706  ;;  %v7684_v14 = vld [vmem:[#allocation7 + $0xd0] sm:$0xff]  ;;  %v7687_v20 = vld [vmem:[#allocation7 + $0xd8] sm:$0xff]  ;;  %10357 = vst [vmem:[#allocation37_spill] sm:$0xff] %v7702_v5 }
 0x522   :  { %v2275_v15 = vmul.f32 %v3707_v47, %v2269_v41  ;;  %10351 = vst [vmem:[#allocation31_spill] sm:$0xff] %v7684_v14  ;;  %v7705_v47 = vld [vmem:[#allocation7 + $0x88] sm:$0xff]  ;;  %v7711_v41 = vld [vmem:[#allocation7 + $0x98] sm:$0xff] }
 0x523   :  { %2451 = vmatmul.f32.vlgmr.msra.gmra.mxu0 %v7551_v17  ;;  %2471 = vmatmul.f32.vlgmr.msra.gmra.mxu1 %v7551_v17  ;;  %10352 = vst [vmem:[#allocation32_spill] sm:$0xff] %v7687_v20 }
 0x524   :  { %2491 = vmatmul.f32.vlgmr.msra.gmra.mxu2 %v7551_v17  ;;  %2511 = vmatmul.f32.vlgmr.msra.gmra.mxu3 %v7551_v17  ;;  %10358 = vst [vmem:[#allocation38_spill] sm:$0xff] %v7705_v47 }
 0x525   :  { %2674 = vmatpush.msra.mxu0 %v7561_v25  ;;  %2694 = vmatpush.msra.mxu1 %v7564_v11  ;;  %10359 = vst [vmem:[#allocation39_spill] sm:$0xff] %v7708_v19 }
 0x526   :  { %2714 = vmatpush.msra.mxu2 %v7569_v52  ;;  %2734 = vmatpush.msra.mxu3 %v7572_v58  ;;  %10360 = vst [vmem:[#allocation40_spill] sm:$0xff] %v7711_v41 }
 0x527   :  { %2675 = vmatpush.msra.mxu0 %v7579_v12  ;;  %2695 = vmatpush.msra.mxu1 %v7582_v59 }
 0x528   :  { %2715 = vmatpush.msra.mxu2 %v7588_v39  ;;  %2735 = vmatpush.msra.mxu3 %v7591_v33 }
 0x529   :  { %2676 = vmatpush.msra.mxu0 %v7594_v30  ;;  %2696 = vmatpush.msra.mxu1 %v7597_v44 }
 0x52a   :  { %2716 = vmatpush.msra.mxu2 %v7600_v0  ;;  %2736 = vmatpush.msra.mxu3 %v7603_v4 }
 0x52b   :  { %2677 = vmatpush.msra.mxu0 %v7606_v45  ;;  %2697 = vmatpush.msra.mxu1 %v7609_v51 }
 0x52c   :  { %2717 = vmatpush.msra.mxu2 %v7612_v32  ;;  %2737 = vmatpush.msra.mxu3 %v7615_v31 }
 0x52d   :  { %2531 = vmatmul.f32.vlgmr.msrb.gmra.mxu0 %v2275_v15  ;;  %2551 = vmatmul.f32.vlgmr.msrb.gmra.mxu1 %v2275_v15 }
 0x52e   :  { %2571 = vmatmul.f32.vlgmr.msrb.gmra.mxu2 %v2275_v15  ;;  %2591 = vmatmul.f32.vlgmr.msrb.gmra.mxu3 %v2275_v15  ;;  %v7714_v15 = vld [vmem:[#allocation7 + $0x60] sm:$0xff] }
 0x52f   :  { %2678 = vmatpush.msra.mxu0 %v7618_v6  ;;  %2698 = vmatpush.msra.mxu1 %v7621_v9  ;;  %10361 = vst [vmem:[#allocation41_spill] sm:$0xff] %v7714_v15 }
 0x530   :  { %2718 = vmatpush.msra.mxu2 %v7624_v1  ;;  %2738 = vmatpush.msra.mxu3 %v7627_v50 }
 0x531   :  { %2679 = vmatpush.msra.mxu0 %v7630_v16  ;;  %2699 = vmatpush.msra.mxu1 %v7633_v38 }
 0x532   :  { %2719 = vmatpush.msra.mxu2 %v7636_v10  ;;  %2739 = vmatpush.msra.mxu3 %v7639_v2 }
 0x533   :  { %2680 = vmatpush.msra.mxu0 %v7642_v21  ;;  %2700 = vmatpush.msra.mxu1 %v7645_v48 }
 0x534   :  { %2720 = vmatpush.msra.mxu2 %v7648_v23  ;;  %2740 = vmatpush.msra.mxu3 %v7651_v63 }
 0x535   :  { %2681 = vmatpush.msra.mxu0 %v7654_v46  ;;  %2701 = vmatpush.msra.mxu1 %v7657_v27 }
 0x536   :  { %2721 = vmatpush.msra.mxu2 %v7660_v26  ;;  %2741 = vmatpush.msra.mxu3 %v7663_v60 }
 0x537   :  { %2682 = vmatpush.msra.mxu0 %v7666_v56  ;;  %2702 = vmatpush.msra.mxu1 %v7669_v36 }
 0x538   :  { %2722 = vmatpush.msra.mxu2 %v7672_v49  ;;  %2742 = vmatpush.msra.mxu3 %v7675_v57 }
 0x539   :  { %2683 = vmatpush.msra.mxu0 %v7678_v7  ;;  %2703 = vmatpush.msra.mxu1 %v7681_v53 }
 0x53a   :  { %2723 = vmatpush.msra.mxu2 %v7684_v14  ;;  %2743 = vmatpush.msra.mxu3 %v7687_v20 }
 0x53b   :  { %2684 = vmatpush.msra.mxu0 %v7690_v42  ;;  %2704 = vmatpush.msra.mxu1 %v7693_v22 }
 0x53c   :  { %2724 = vmatpush.msra.mxu2 %v7696_v29  ;;  %2744 = vmatpush.msra.mxu3 %v7699_v13  ;;  %v7717_v13 = vld [vmem:[#allocation7 + $0x68] sm:$0xff] }
 0x53d   :  { %2685 = vmatpush.msra.mxu0 %v7702_v5  ;;  %2705 = vmatpush.msra.mxu1 %v7705_v47  ;;  %10362 = vst [vmem:[#allocation42_spill] sm:$0xff] %v7717_v13  ;;  %v7720_v5 = vld [vmem:[#allocation7 + $0x70] sm:$0xff]  ;;  %v7723_v47 = vld [vmem:[#allocation7 + $0x78] sm:$0xff] }
 0x53e   :  { %2725 = vmatpush.msra.mxu2 %v7708_v19  ;;  %2745 = vmatpush.msra.mxu3 %v7711_v41  ;;  %10363 = vst [vmem:[#allocation43_spill] sm:$0xff] %v7720_v5  ;;  %v7726_v19 = vld [vmem:[#allocation7 + $0x40] sm:$0xff]  ;;  %v7729_v41 = vld [vmem:[#allocation7 + $0x48] sm:$0xff] }
 0x53f   :  { %2686 = vmatpush.msra.mxu0 %v7714_v15  ;;  %2706 = vmatpush.msra.mxu1 %v7717_v13  ;;  %10364 = vst [vmem:[#allocation44_spill] sm:$0xff] %v7723_v47  ;;  %v7732_v15 = vld [vmem:[#allocation7 + $0x50] sm:$0xff]  ;;  %v7735_v13 = vld [vmem:[#allocation7 + $0x58] sm:$0xff] }
 0x540   :  { %2726 = vmatpush.msra.mxu2 %v7720_v5  ;;  %2746 = vmatpush.msra.mxu3 %v7723_v47  ;;  %10365 = vst [vmem:[#allocation45_spill] sm:$0xff] %v7726_v19  ;;  %v7738_v5 = vld [vmem:[#allocation7 + $0x20] sm:$0xff]  ;;  %v7741_v47 = vld [vmem:[#allocation7 + $0x28] sm:$0xff] }
 0x541   :  { %2687 = vmatpush.msra.mxu0 %v7726_v19  ;;  %10366 = vst [vmem:[#allocation46_spill] sm:$0xff] %v7729_v41  ;;  %2707 = vmatpush.msra.mxu1 %v7729_v41  ;;  %v7744_v19 = vld [vmem:[#allocation7 + $0x30] sm:$0xff]  ;;  %v7747_v41 = vld [vmem:[#allocation7 + $0x38] sm:$0xff] }
 0x542   :  { %10367 = vst [vmem:[#allocation47_spill] sm:$0xff] %v7732_v15  ;;  %2727 = vmatpush.msra.mxu2 %v7732_v15  ;;  %2747 = vmatpush.msra.mxu3 %v7735_v13  ;;  %v7750_v15 = vld [vmem:[#allocation7] sm:$0xff] }
 0x543   :  { %10368 = vst [vmem:[#allocation48_spill] sm:$0xff] %v7735_v13  ;;  %2688 = vmatpush.msra.mxu0 %v7738_v5  ;;  %2708 = vmatpush.msra.mxu1 %v7741_v47  ;;  %v7753_v13 = vld [vmem:[#allocation7 + $0x8] sm:$0xff] }
 0x544   :  { %10369 = vst [vmem:[#allocation49_spill] sm:$0xff] %v7738_v5  ;;  %2728 = vmatpush.msra.mxu2 %v7744_v19  ;;  %2748 = vmatpush.msra.mxu3 %v7747_v41  ;;  %v7756_v5 = vld [vmem:[#allocation7 + $0x10] sm:$0xff] }
 0x545   :  { %10370 = vst [vmem:[#allocation50_spill] sm:$0xff] %v7741_v47  ;;  %2689 = vmatpush.msra.mxu0 %v7750_v15  ;;  %2709 = vmatpush.msra.mxu1 %v7753_v13  ;;  %v7759_v47 = vld [vmem:[#allocation7 + $0x18] sm:$0xff] }
 0x546   :  { %10371 = vst [vmem:[#allocation51_spill] sm:$0xff] %v7744_v19  ;;  %2729 = vmatpush.msra.mxu2 %v7756_v5  ;;  %2749 = vmatpush.msra.mxu3 %v7759_v47  ;;  %v7778_v19 = vld [vmem:[#allocation8 + $0x1f8] sm:$0xff] }
 0x547   :  { %10372 = vst [vmem:[#allocation52_spill] sm:$0xff] %v7747_v41  ;;  %2690 = vmatmul.f32.vlgmr.msra.gmra.mxu0 %v7551_v17  ;;  %2710 = vmatmul.f32.vlgmr.msra.gmra.mxu1 %v7551_v17  ;;  %v7766_v41 = vld [vmem:[#allocation8 + $0x1e0] sm:$0xff] }
 0x548   :  { %10373 = vst [vmem:[#allocation53_spill] sm:$0xff] %v7750_v15  ;;  %2730 = vmatmul.f32.vlgmr.msra.gmra.mxu2 %v7551_v17  ;;  %2750 = vmatmul.f32.vlgmr.msra.gmra.mxu3 %v7551_v17  ;;  %v4534_v15 = vmov 6   ;;  %v7781_v17 = vld [vmem:[#allocation8 + $0x1c0] sm:$0xff] }
 0x549   :  { %10374 = vst [vmem:[#allocation54_spill] sm:$0xff] %v7753_v13  ;;  %3527 = vset.pattern.permute.xlu1 %v4534_v15  ;;  %2821 = vmatpush.msrb.mxu0 %v7766_v41  ;;  %v7769_v13 = vld [vmem:[#allocation3] sm:$0xff]  ;;  %v7784_v15 = vld [vmem:[#allocation8 + $0x1c8] sm:$0xff] }
 0x54a   :  { %10375 = vst [vmem:[#allocation55_spill] sm:$0xff] %v7756_v5  ;;  %2663 = vperm.xlu1 %3527, %v7769_v13   ;;  %v7772_v5 = vld [vmem:[#allocation8 + $0x1e8] sm:$0xff]  ;;  %2881 = vmatpush.msrb.mxu3 %v7778_v19 }
 0x54b   :  { %10376 = vst [vmem:[#allocation56_spill] sm:$0xff] %v7759_v47  ;;  %2841 = vmatpush.msrb.mxu1 %v7772_v5  ;;  %v7775_v47 = vld [vmem:[#allocation8 + $0x1f0] sm:$0xff]  ;;  %2822 = vmatpush.msrb.mxu0 %v7781_v17 }
 0x54c   :  { %10377 = vst [vmem:[#allocation57_spill] sm:$0xff] %v7766_v41  ;;  %2861 = vmatpush.msrb.mxu2 %v7775_v47 }
 0x54d   :  { %10378 = vst [vmem:[#allocation58_spill] sm:$0xff] %v7769_v13  ;;  %2842 = vmatpush.msrb.mxu1 %v7784_v15  ;;  %v7787_v13 = vld [vmem:[#allocation8 + $0x1d0] sm:$0xff] }
 0x54e   :  { %10379 = vst [vmem:[#allocation59_spill] sm:$0xff] %v7772_v5  ;;  %2862 = vmatpush.msrb.mxu2 %v7787_v13  ;;  %v7790_v5 = vld [vmem:[#allocation8 + $0x1d8] sm:$0xff] }
 0x54f   :  { %10380 = vst [vmem:[#allocation60_spill] sm:$0xff] %v7775_v47  ;;  %2882 = vmatpush.msrb.mxu3 %v7790_v5  ;;  %v7793_v47 = vld [vmem:[#allocation8 + $0x1a0] sm:$0xff] }
 0x550   :  { %10381 = vst [vmem:[#allocation61_spill] sm:$0xff] %v7778_v19  ;;  %2823 = vmatpush.msrb.mxu0 %v7793_v47  ;;  %v7796_v19 = vld [vmem:[#allocation8 + $0x1a8] sm:$0xff] }
 0x551   :  { %10382 = vst [vmem:[#allocation62_spill] sm:$0xff] %v7781_v17  ;;  %2843 = vmatpush.msrb.mxu1 %v7796_v19  ;;  %v7799_v17 = vld [vmem:[#allocation8 + $0x1b0] sm:$0xff] }
 0x552   :  { %10383 = vst [vmem:[#allocation63_spill] sm:$0xff] %v7784_v15  ;;  %2863 = vmatpush.msrb.mxu2 %v7799_v17  ;;  %v7802_v15 = vld [vmem:[#allocation8 + $0x1b8] sm:$0xff] }
 0x553   :  { %10384 = vst [vmem:[#allocation64_spill] sm:$0xff] %v7787_v13  ;;  %2883 = vmatpush.msrb.mxu3 %v7802_v15  ;;  %v7805_v13 = vld [vmem:[#allocation8 + $0x180] sm:$0xff] }
 0x554   :  { %10385 = vst [vmem:[#allocation65_spill] sm:$0xff] %v7790_v5  ;;  %2824 = vmatpush.msrb.mxu0 %v7805_v13  ;;  %v7808_v5 = vld [vmem:[#allocation8 + $0x188] sm:$0xff] }
 0x555   :  { %10386 = vst [vmem:[#allocation66_spill] sm:$0xff] %v7793_v47  ;;  %2844 = vmatpush.msrb.mxu1 %v7808_v5  ;;  %v7811_v47 = vld [vmem:[#allocation8 + $0x190] sm:$0xff] }
 0x556   :  { %10387 = vst [vmem:[#allocation67_spill] sm:$0xff] %v7796_v19  ;;  %2864 = vmatpush.msrb.mxu2 %v7811_v47  ;;  %v7814_v19 = vld [vmem:[#allocation8 + $0x198] sm:$0xff] }
 0x557   :  { %10388 = vst [vmem:[#allocation68_spill] sm:$0xff] %v7799_v17  ;;  %2884 = vmatpush.msrb.mxu3 %v7814_v19  ;;  %v7817_v17 = vld [vmem:[#allocation8 + $0x160] sm:$0xff] }
 0x558   :  { %10389 = vst [vmem:[#allocation69_spill] sm:$0xff] %v7802_v15  ;;  %2825 = vmatpush.msrb.mxu0 %v7817_v17  ;;  %v7820_v15 = vld [vmem:[#allocation8 + $0x168] sm:$0xff] }
 0x559   :  { %10390 = vst [vmem:[#allocation70_spill] sm:$0xff] %v7805_v13  ;;  %2845 = vmatpush.msrb.mxu1 %v7820_v15  ;;  %v7823_v13 = vld [vmem:[#allocation8 + $0x170] sm:$0xff] }
 0x55a   :  { %10391 = vst [vmem:[#allocation71_spill] sm:$0xff] %v7808_v5  ;;  %2865 = vmatpush.msrb.mxu2 %v7823_v13  ;;  %v7826_v5 = vld [vmem:[#allocation8 + $0x178] sm:$0xff] }
 0x55b   :  { %10392 = vst [vmem:[#allocation72_spill] sm:$0xff] %v7811_v47  ;;  %2885 = vmatpush.msrb.mxu3 %v7826_v5  ;;  %v7829_v47 = vld [vmem:[#allocation8 + $0x140] sm:$0xff] }
 0x55c   :  { %10393 = vst [vmem:[#allocation73_spill] sm:$0xff] %v7814_v19  ;;  %2826 = vmatpush.msrb.mxu0 %v7829_v47  ;;  %v7832_v19 = vld [vmem:[#allocation8 + $0x148] sm:$0xff] }
 0x55d   :  { %10394 = vst [vmem:[#allocation74_spill] sm:$0xff] %v7817_v17  ;;  %2846 = vmatpush.msrb.mxu1 %v7832_v19  ;;  %v7835_v17 = vld [vmem:[#allocation8 + $0x150] sm:$0xff] }
 0x55e   :  { %10395 = vst [vmem:[#allocation75_spill] sm:$0xff] %v7820_v15  ;;  %2866 = vmatpush.msrb.mxu2 %v7835_v17  ;;  %v7838_v15 = vld [vmem:[#allocation8 + $0x158] sm:$0xff] }
 0x55f   :  { %10396 = vst [vmem:[#allocation76_spill] sm:$0xff] %v7823_v13  ;;  %2886 = vmatpush.msrb.mxu3 %v7838_v15  ;;  %v7841_v13 = vld [vmem:[#allocation8 + $0x120] sm:$0xff] }
 0x560   :  { %10397 = vst [vmem:[#allocation77_spill] sm:$0xff] %v7826_v5  ;;  %2827 = vmatpush.msrb.mxu0 %v7841_v13  ;;  %v7844_v5 = vld [vmem:[#allocation8 + $0x128] sm:$0xff] }
 0x561   :  { %10398 = vst [vmem:[#allocation78_spill] sm:$0xff] %v7829_v47  ;;  %2847 = vmatpush.msrb.mxu1 %v7844_v5  ;;  %v7847_v47 = vld [vmem:[#allocation8 + $0x130] sm:$0xff] }
 0x562   :  { %10399 = vst [vmem:[#allocation79_spill] sm:$0xff] %v7832_v19  ;;  %2867 = vmatpush.msrb.mxu2 %v7847_v47  ;;  %v7850_v19 = vld [vmem:[#allocation8 + $0x138] sm:$0xff] }
 0x563   :  { %10400 = vst [vmem:[#allocation80_spill] sm:$0xff] %v7835_v17  ;;  %2887 = vmatpush.msrb.mxu3 %v7850_v19  ;;  %v7853_v17 = vld [vmem:[#allocation8 + $0x100] sm:$0xff] }
 0x564   :  { %10401 = vst [vmem:[#allocation81_spill] sm:$0xff] %v7838_v15  ;;  %2828 = vmatpush.msrb.mxu0 %v7853_v17  ;;  %v7856_v15 = vld [vmem:[#allocation8 + $0x108] sm:$0xff] }
 0x565   :  { %10402 = vst [vmem:[#allocation82_spill] sm:$0xff] %v7841_v13  ;;  %2848 = vmatpush.msrb.mxu1 %v7856_v15  ;;  %v7859_v13 = vld [vmem:[#allocation8 + $0x110] sm:$0xff] }
 0x566   :  { %10403 = vst [vmem:[#allocation83_spill] sm:$0xff] %v7844_v5  ;;  %2868 = vmatpush.msrb.mxu2 %v7859_v13  ;;  %v7862_v5 = vld [vmem:[#allocation8 + $0x118] sm:$0xff] }
 0x567   :  { %10404 = vst [vmem:[#allocation84_spill] sm:$0xff] %v7847_v47  ;;  %2888 = vmatpush.msrb.mxu3 %v7862_v5  ;;  %v7865_v47 = vld [vmem:[#allocation8 + $0xe0] sm:$0xff] }
 0x568   :  { %10405 = vst [vmem:[#allocation85_spill] sm:$0xff] %v7850_v19  ;;  %2829 = vmatpush.msrb.mxu0 %v7865_v47  ;;  %v7868_v19 = vld [vmem:[#allocation8 + $0xe8] sm:$0xff] }
 0x569   :  { %10406 = vst [vmem:[#allocation86_spill] sm:$0xff] %v7853_v17  ;;  %2849 = vmatpush.msrb.mxu1 %v7868_v19  ;;  %v7871_v17 = vld [vmem:[#allocation8 + $0xf0] sm:$0xff] }
 0x56a   :  { %10407 = vst [vmem:[#allocation87_spill] sm:$0xff] %v7856_v15  ;;  %2869 = vmatpush.msrb.mxu2 %v7871_v17  ;;  %v7874_v15 = vld [vmem:[#allocation8 + $0xf8] sm:$0xff] }
 0x56b   :  { %10408 = vst [vmem:[#allocation88_spill] sm:$0xff] %v7859_v13  ;;  %2889 = vmatpush.msrb.mxu3 %v7874_v15  ;;  %v7877_v13 = vld [vmem:[#allocation8 + $0xc0] sm:$0xff] }
 0x56c   :  { %10409 = vst [vmem:[#allocation89_spill] sm:$0xff] %v7862_v5  ;;  %2830 = vmatpush.msrb.mxu0 %v7877_v13  ;;  %v7880_v5 = vld [vmem:[#allocation8 + $0xc8] sm:$0xff] }
 0x56d   :  { %10410 = vst [vmem:[#allocation90_spill] sm:$0xff] %v7865_v47  ;;  %2850 = vmatpush.msrb.mxu1 %v7880_v5  ;;  %v7883_v47 = vld [vmem:[#allocation8 + $0xd0] sm:$0xff] }
 0x56e   :  { %10411 = vst [vmem:[#allocation91_spill] sm:$0xff] %v7868_v19  ;;  %2870 = vmatpush.msrb.mxu2 %v7883_v47  ;;  %v7886_v19 = vld [vmem:[#allocation8 + $0xd8] sm:$0xff] }
 0x56f   :  { %10412 = vst [vmem:[#allocation92_spill] sm:$0xff] %v7871_v17  ;;  %2890 = vmatpush.msrb.mxu3 %v7886_v19  ;;  %v7889_v17 = vld [vmem:[#allocation8 + $0xa0] sm:$0xff] }
 0x570   :  { %10413 = vst [vmem:[#allocation93_spill] sm:$0xff] %v7874_v15  ;;  %2831 = vmatpush.msrb.mxu0 %v7889_v17  ;;  %v7892_v15 = vld [vmem:[#allocation8 + $0xa8] sm:$0xff] }
 0x571   :  { %10414 = vst [vmem:[#allocation94_spill] sm:$0xff] %v7877_v13  ;;  %2851 = vmatpush.msrb.mxu1 %v7892_v15  ;;  %v7895_v13 = vld [vmem:[#allocation8 + $0xb0] sm:$0xff] }
 0x572   :  { %10415 = vst [vmem:[#allocation95_spill] sm:$0xff] %v7880_v5  ;;  %2871 = vmatpush.msrb.mxu2 %v7895_v13  ;;  %v7898_v5 = vld [vmem:[#allocation8 + $0xb8] sm:$0xff] }
 0x573   :  { %10416 = vst [vmem:[#allocation96_spill] sm:$0xff] %v7883_v47  ;;  %2891 = vmatpush.msrb.mxu3 %v7898_v5  ;;  %v7901_v47 = vld [vmem:[#allocation8 + $0x80] sm:$0xff] }
 0x574   :  { %10417 = vst [vmem:[#allocation97_spill] sm:$0xff] %v7886_v19  ;;  %2832 = vmatpush.msrb.mxu0 %v7901_v47  ;;  %v7904_v19 = vld [vmem:[#allocation8 + $0x88] sm:$0xff] }
 0x575   :  { %10418 = vst [vmem:[#allocation98_spill] sm:$0xff] %v7889_v17  ;;  %2852 = vmatpush.msrb.mxu1 %v7904_v19  ;;  %v7907_v17 = vld [vmem:[#allocation8 + $0x90] sm:$0xff] }
 0x576   :  { %10419 = vst [vmem:[#allocation99_spill] sm:$0xff] %v7892_v15  ;;  %2872 = vmatpush.msrb.mxu2 %v7907_v17  ;;  %v7910_v15 = vld [vmem:[#allocation8 + $0x98] sm:$0xff] }
 0x577   :  { %10420 = vst [vmem:[#allocation100_spill] sm:$0xff] %v7895_v13  ;;  %2892 = vmatpush.msrb.mxu3 %v7910_v15  ;;  %v7913_v13 = vld [vmem:[#allocation8 + $0x60] sm:$0xff] }
 0x578   :  { %10421 = vst [vmem:[#allocation101_spill] sm:$0xff] %v7898_v5  ;;  %2833 = vmatpush.msrb.mxu0 %v7913_v13  ;;  %v7916_v5 = vld [vmem:[#allocation8 + $0x68] sm:$0xff] }
 0x579   :  { %10422 = vst [vmem:[#allocation102_spill] sm:$0xff] %v7901_v47  ;;  %2853 = vmatpush.msrb.mxu1 %v7916_v5  ;;  %v7919_v47 = vld [vmem:[#allocation8 + $0x70] sm:$0xff] }
 0x57a   :  { %10423 = vst [vmem:[#allocation103_spill] sm:$0xff] %v7904_v19  ;;  %2873 = vmatpush.msrb.mxu2 %v7919_v47  ;;  %v7922_v19 = vld [vmem:[#allocation8 + $0x78] sm:$0xff] }
 0x57b   :  { %10424 = vst [vmem:[#allocation104_spill] sm:$0xff] %v7907_v17  ;;  %2893 = vmatpush.msrb.mxu3 %v7922_v19  ;;  %v7925_v17 = vld [vmem:[#allocation8 + $0x40] sm:$0xff] }
 0x57c   :  { %10425 = vst [vmem:[#allocation105_spill] sm:$0xff] %v7910_v15  ;;  %2834 = vmatpush.msrb.mxu0 %v7925_v17  ;;  %v7928_v15 = vld [vmem:[#allocation8 + $0x48] sm:$0xff] }
 0x57d   :  { %10426 = vst [vmem:[#allocation106_spill] sm:$0xff] %v7913_v13  ;;  %2854 = vmatpush.msrb.mxu1 %v7928_v15  ;;  %v7931_v13 = vld [vmem:[#allocation8 + $0x50] sm:$0xff] }
 0x57e   :  { %10427 = vst [vmem:[#allocation107_spill] sm:$0xff] %v7916_v5  ;;  %2874 = vmatpush.msrb.mxu2 %v7931_v13  ;;  %v7934_v5 = vld [vmem:[#allocation8 + $0x58] sm:$0xff] }
 0x57f   :  { %10428 = vst [vmem:[#allocation108_spill] sm:$0xff] %v7919_v47  ;;  %2894 = vmatpush.msrb.mxu3 %v7934_v5  ;;  %v7937_v47 = vld [vmem:[#allocation8 + $0x20] sm:$0xff] }
 0x580   :  { %10429 = vst [vmem:[#allocation109_spill] sm:$0xff] %v7922_v19  ;;  %2835 = vmatpush.msrb.mxu0 %v7937_v47  ;;  %v7940_v19 = vld [vmem:[#allocation8 + $0x28] sm:$0xff] }
 0x581   :  { %10430 = vst [vmem:[#allocation110_spill] sm:$0xff] %v7925_v17  ;;  %2855 = vmatpush.msrb.mxu1 %v7940_v19  ;;  %v7943_v17 = vld [vmem:[#allocation8 + $0x30] sm:$0xff] }
 0x582   :  { %10431 = vst [vmem:[#allocation111_spill] sm:$0xff] %v7928_v15  ;;  %2875 = vmatpush.msrb.mxu2 %v7943_v17  ;;  %v7946_v15 = vld [vmem:[#allocation8 + $0x38] sm:$0xff] }
 0x583   :  { %10432 = vst [vmem:[#allocation112_spill] sm:$0xff] %v7931_v13  ;;  %2895 = vmatpush.msrb.mxu3 %v7946_v15  ;;  %v7949_v13 = vld [vmem:[#allocation8] sm:$0xff] }
 0x584   :  { %10433 = vst [vmem:[#allocation113_spill] sm:$0xff] %v7934_v5  ;;  %2836 = vmatpush.msrb.mxu0 %v7949_v13  ;;  %v7952_v5 = vld [vmem:[#allocation8 + $0x8] sm:$0xff] }
 0x585   :  { %10434 = vst [vmem:[#allocation114_spill] sm:$0xff] %v7937_v47  ;;  %2856 = vmatpush.msrb.mxu1 %v7952_v5  ;;  %v7955_v47 = vld [vmem:[#allocation8 + $0x10] sm:$0xff] }
 0x586   :  { %10435 = vst [vmem:[#allocation115_spill] sm:$0xff] %v7940_v19  ;;  %2876 = vmatpush.msrb.mxu2 %v7955_v47  ;;  %v7958_v19 = vld [vmem:[#allocation8 + $0x18] sm:$0xff] }
 0x587   :  { %10436 = vst [vmem:[#allocation116_spill] sm:$0xff] %v7943_v17  ;;  %2896 = vmatpush.msrb.mxu3 %v7958_v19  ;;  %v7961_v17 = vld [vmem:[#allocation10 + $0x1e0] sm:$0xff] }
 0x588   :  { %10437 = vst [vmem:[#allocation117_spill] sm:$0xff] %v7946_v15  ;;  %2901 = vmatpush.msra.mxu0 %v7961_v17  ;;  %v7964_v15 = vld [vmem:[#allocation10 + $0x1e8] sm:$0xff] }
 0x589   :  { %10438 = vst [vmem:[#allocation118_spill] sm:$0xff] %v7949_v13  ;;  %2921 = vmatpush.msra.mxu1 %v7964_v15  ;;  %v7967_v13 = vld [vmem:[#allocation10 + $0x1f0] sm:$0xff] }
 0x58a   :  { %10439 = vst [vmem:[#allocation119_spill] sm:$0xff] %v7952_v5  ;;  %2941 = vmatpush.msra.mxu2 %v7967_v13  ;;  %v7970_v5 = vld [vmem:[#allocation10 + $0x1f8] sm:$0xff] }
 0x58b   :  { %10440 = vst [vmem:[#allocation120_spill] sm:$0xff] %v7955_v47  ;;  %2961 = vmatpush.msra.mxu3 %v7970_v5  ;;  %v7973_v47 = vld [vmem:[#allocation10 + $0x1c0] sm:$0xff] }
 0x58c   :  { %10441 = vst [vmem:[#allocation121_spill] sm:$0xff] %v7958_v19  ;;  %2902 = vmatpush.msra.mxu0 %v7973_v47  ;;  %v7976_v19 = vld [vmem:[#allocation10 + $0x1c8] sm:$0xff] }
 0x58d   :  { %10442 = vst [vmem:[#allocation122_spill] sm:$0xff] %v7961_v17  ;;  %2922 = vmatpush.msra.mxu1 %v7976_v19  ;;  %v7979_v17 = vld [vmem:[#allocation10 + $0x1d0] sm:$0xff] }
 0x58e   :  { %10443 = vst [vmem:[#allocation125_spill] sm:$0xff] %v7964_v15  ;;  %2942 = vmatpush.msra.mxu2 %v7979_v17  ;;  %v7982_v15 = vld [vmem:[#allocation10 + $0x1d8] sm:$0xff] }
 0x58f   :  { %10444 = vst [vmem:[#allocation126_spill] sm:$0xff] %v7967_v13  ;;  %2962 = vmatpush.msra.mxu3 %v7982_v15  ;;  %v7985_v13 = vld [vmem:[#allocation10 + $0x1a0] sm:$0xff] }
 0x590   :  { %10445 = vst [vmem:[#allocation127_spill] sm:$0xff] %v7970_v5  ;;  %2903 = vmatpush.msra.mxu0 %v7985_v13  ;;  %v7988_v5 = vld [vmem:[#allocation10 + $0x1a8] sm:$0xff] }
 0x591   :  { %10446 = vst [vmem:[#allocation128_spill] sm:$0xff] %v7973_v47  ;;  %2923 = vmatpush.msra.mxu1 %v7988_v5  ;;  %v7991_v47 = vld [vmem:[#allocation10 + $0x1b0] sm:$0xff] }
 0x592   :  { %10447 = vst [vmem:[#allocation129_spill] sm:$0xff] %v7976_v19  ;;  %2943 = vmatpush.msra.mxu2 %v7991_v47  ;;  %v7994_v19 = vld [vmem:[#allocation10 + $0x1b8] sm:$0xff] }
 0x593   :  { %10448 = vst [vmem:[#allocation130_spill] sm:$0xff] %v7979_v17  ;;  %2963 = vmatpush.msra.mxu3 %v7994_v19  ;;  %v7997_v17 = vld [vmem:[#allocation10 + $0x180] sm:$0xff] }
 0x594   :  { %10449 = vst [vmem:[#allocation131_spill] sm:$0xff] %v7982_v15  ;;  %2904 = vmatpush.msra.mxu0 %v7997_v17  ;;  %v8000_v15 = vld [vmem:[#allocation10 + $0x188] sm:$0xff] }
 0x595   :  { %10450 = vst [vmem:[#allocation134_spill] sm:$0xff] %v7985_v13  ;;  %2924 = vmatpush.msra.mxu1 %v8000_v15  ;;  %v8003_v13 = vld [vmem:[#allocation10 + $0x190] sm:$0xff] }
 0x596   :  { %10451 = vst [vmem:[#allocation135_spill] sm:$0xff] %v7988_v5  ;;  %2944 = vmatpush.msra.mxu2 %v8003_v13  ;;  %v8006_v5 = vld [vmem:[#allocation10 + $0x198] sm:$0xff] }
 0x597   :  { %10452 = vst [vmem:[#allocation136_spill] sm:$0xff] %v7991_v47  ;;  %2964 = vmatpush.msra.mxu3 %v8006_v5  ;;  %v8009_v47 = vld [vmem:[#allocation10 + $0x160] sm:$0xff] }
 0x598   :  { %10453 = vst [vmem:[#allocation137_spill] sm:$0xff] %v7994_v19  ;;  %2905 = vmatpush.msra.mxu0 %v8009_v47  ;;  %v8012_v19 = vld [vmem:[#allocation10 + $0x168] sm:$0xff] }
 0x599   :  { %10454 = vst [vmem:[#allocation138_spill] sm:$0xff] %v7997_v17  ;;  %2925 = vmatpush.msra.mxu1 %v8012_v19  ;;  %v8015_v17 = vld [vmem:[#allocation10 + $0x170] sm:$0xff] }
 0x59a   :  { %10455 = vst [vmem:[#allocation139_spill] sm:$0xff] %v8000_v15  ;;  %2945 = vmatpush.msra.mxu2 %v8015_v17  ;;  %v8018_v15 = vld [vmem:[#allocation10 + $0x178] sm:$0xff] }
 0x59b   :  { %10456 = vst [vmem:[#allocation140_spill] sm:$0xff] %v8003_v13  ;;  %2965 = vmatpush.msra.mxu3 %v8018_v15  ;;  %v8021_v13 = vld [vmem:[#allocation10 + $0x140] sm:$0xff] }
 0x59c   :  { %10457 = vst [vmem:[#allocation141_spill] sm:$0xff] %v8006_v5  ;;  %2906 = vmatpush.msra.mxu0 %v8021_v13  ;;  %v8024_v5 = vld [vmem:[#allocation10 + $0x148] sm:$0xff] }
 0x59d   :  { %10458 = vst [vmem:[#allocation142_spill] sm:$0xff] %v8009_v47  ;;  %2926 = vmatpush.msra.mxu1 %v8024_v5  ;;  %v8027_v47 = vld [vmem:[#allocation10 + $0x150] sm:$0xff] }
 0x59e   :  { %10459 = vst [vmem:[#allocation143_spill] sm:$0xff] %v8012_v19  ;;  %2946 = vmatpush.msra.mxu2 %v8027_v47  ;;  %v8030_v19 = vld [vmem:[#allocation10 + $0x158] sm:$0xff] }
 0x59f   :  { %10460 = vst [vmem:[#allocation145_spill] sm:$0xff] %v8015_v17  ;;  %2966 = vmatpush.msra.mxu3 %v8030_v19  ;;  %v8033_v17 = vld [vmem:[#allocation10 + $0x120] sm:$0xff] }
 0x5a0   :  { %10461 = vst [vmem:[#allocation146_spill] sm:$0xff] %v8018_v15  ;;  %2907 = vmatpush.msra.mxu0 %v8033_v17  ;;  %v8036_v15 = vld [vmem:[#allocation10 + $0x128] sm:$0xff]  ;;  %v2472_v41 = vpop.f32.mrf.mxu1 }
 0x5a1   :  { %10462 = vst [vmem:[#allocation147_spill] sm:$0xff] %v8021_v13  ;;  %2927 = vmatpush.msra.mxu1 %v8036_v15  ;;  %v8039_v13 = vld [vmem:[#allocation10 + $0x130] sm:$0xff] }
 0x5a2   :  { %10463 = vst [vmem:[#allocation148_spill] sm:$0xff] %v8024_v5  ;;  %2947 = vmatpush.msra.mxu2 %v8039_v13  ;;  %v8042_v5 = vld [vmem:[#allocation10 + $0x138] sm:$0xff] }
 0x5a3   :  { %10464 = vst [vmem:[#allocation149_spill] sm:$0xff] %v8027_v47  ;;  %2967 = vmatpush.msra.mxu3 %v8042_v5  ;;  %v8045_v47 = vld [vmem:[#allocation10 + $0x100] sm:$0xff] }
 0x5a4   :  { %10465 = vst [vmem:[#allocation150_spill] sm:$0xff] %v8030_v19  ;;  %2908 = vmatpush.msra.mxu0 %v8045_v47  ;;  %v8048_v19 = vld [vmem:[#allocation10 + $0x108] sm:$0xff] }
 0x5a5   :  { %10466 = vst [vmem:[#allocation151_spill] sm:$0xff] %v8033_v17  ;;  %2928 = vmatpush.msra.mxu1 %v8048_v19  ;;  %v8051_v17 = vld [vmem:[#allocation10 + $0x110] sm:$0xff] }
 0x5a6   :  { %10467 = vst [vmem:[#allocation152_spill] sm:$0xff] %v8036_v15  ;;  %2948 = vmatpush.msra.mxu2 %v8051_v17  ;;  %v8054_v15 = vld [vmem:[#allocation10 + $0x118] sm:$0xff] }
 0x5a7   :  { %10468 = vst [vmem:[#allocation154_spill] sm:$0xff] %v8039_v13  ;;  %2968 = vmatpush.msra.mxu3 %v8054_v15  ;;  %v8057_v13 = vld [vmem:[#allocation10 + $0xe0] sm:$0xff]  ;;  %v2512_v14 = vpop.f32.mrf.mxu3 }
 0x5a8   :  { %10469 = vst [vmem:[#allocation155_spill] sm:$0xff] %v8042_v5  ;;  %2909 = vmatpush.msra.mxu0 %v8057_v13  ;;  %v8060_v5 = vld [vmem:[#allocation10 + $0xe8] sm:$0xff] }
 0x5a9   :  { %10470 = vst [vmem:[#allocation156_spill] sm:$0xff] %v8045_v47  ;;  %2929 = vmatpush.msra.mxu1 %v8060_v5  ;;  %v8063_v47 = vld [vmem:[#allocation10 + $0xf0] sm:$0xff] }
 0x5aa   :  { %10471 = vst [vmem:[#allocation157_spill] sm:$0xff] %v8048_v19  ;;  %2949 = vmatpush.msra.mxu2 %v8063_v47  ;;  %v8066_v19 = vld [vmem:[#allocation10 + $0xf8] sm:$0xff] }
 0x5ab   :  { %10472 = vst [vmem:[#allocation158_spill] sm:$0xff] %v8051_v17  ;;  %2969 = vmatpush.msra.mxu3 %v8066_v19  ;;  %v8069_v17 = vld [vmem:[#allocation10 + $0xc0] sm:$0xff] }
 0x5ac   :  { %10473 = vst [vmem:[#allocation159_spill] sm:$0xff] %v8054_v15  ;;  %2910 = vmatpush.msra.mxu0 %v8069_v17  ;;  %v8072_v15 = vld [vmem:[#allocation10 + $0xc8] sm:$0xff] }
 0x5ad   :  { %10474 = vst [vmem:[#allocation160_spill] sm:$0xff] %v8057_v13  ;;  %2930 = vmatpush.msra.mxu1 %v8072_v15  ;;  %v8075_v13 = vld [vmem:[#allocation10 + $0xd0] sm:$0xff] }
 0x5ae   :  { %10475 = vst [vmem:[#allocation161_spill] sm:$0xff] %v8060_v5  ;;  %2950 = vmatpush.msra.mxu2 %v8075_v13  ;;  %v8078_v5 = vld [vmem:[#allocation10 + $0xd8] sm:$0xff] }
 0x5af   :  { %10476 = vst [vmem:[#allocation162_spill] sm:$0xff] %v8063_v47  ;;  %2970 = vmatpush.msra.mxu3 %v8078_v5  ;;  %v8081_v47 = vld [vmem:[#allocation10 + $0xa0] sm:$0xff] }
 0x5b0   :  { %10477 = vst [vmem:[#allocation163_spill] sm:$0xff] %v8066_v19  ;;  %2911 = vmatpush.msra.mxu0 %v8081_v47  ;;  %v8084_v19 = vld [vmem:[#allocation10 + $0xa8] sm:$0xff] }
 0x5b1   :  { %10478 = vst [vmem:[#allocation164_spill] sm:$0xff] %v8069_v17  ;;  %2931 = vmatpush.msra.mxu1 %v8084_v19  ;;  %v8087_v17 = vld [vmem:[#allocation10 + $0xb0] sm:$0xff]  ;;  %v2592_v57 = vpop.f32.mrf.mxu3 }
 0x5b2   :  { %10479 = vst [vmem:[#allocation165_spill] sm:$0xff] %v8072_v15  ;;  %2951 = vmatpush.msra.mxu2 %v8087_v17  ;;  %v8090_v15 = vld [vmem:[#allocation10 + $0xb8] sm:$0xff] }
 0x5b3   :  { %10480 = vst [vmem:[#allocation166_spill] sm:$0xff] %v8075_v13  ;;  %2971 = vmatpush.msra.mxu3 %v8090_v15  ;;  %v8093_v13 = vld [vmem:[#allocation10 + $0x80] sm:$0xff] }
 0x5b4   :  { %10481 = vst [vmem:[#allocation167_spill] sm:$0xff] %v8078_v5  ;;  %2912 = vmatpush.msra.mxu0 %v8093_v13  ;;  %v8096_v5 = vld [vmem:[#allocation10 + $0x88] sm:$0xff] }
 0x5b5   :  { %10482 = vst [vmem:[#allocation168_spill] sm:$0xff] %v8081_v47  ;;  %2932 = vmatpush.msra.mxu1 %v8096_v5  ;;  %v8099_v47 = vld [vmem:[#allocation10 + $0x90] sm:$0xff] }
 0x5b6   :  { %10483 = vst [vmem:[#allocation169_spill] sm:$0xff] %v8084_v19  ;;  %2952 = vmatpush.msra.mxu2 %v8099_v47  ;;  %v8102_v19 = vld [vmem:[#allocation10 + $0x98] sm:$0xff] }
 0x5b7   :  { %10484 = vst [vmem:[#allocation171_spill] sm:$0xff] %v8087_v17  ;;  %2972 = vmatpush.msra.mxu3 %v8102_v19  ;;  %v8105_v17 = vld [vmem:[#allocation10 + $0x60] sm:$0xff] }
 0x5b8   :  { %10485 = vst [vmem:[#allocation172_spill] sm:$0xff] %v8090_v15  ;;  %2913 = vmatpush.msra.mxu0 %v8105_v17  ;;  %v8108_v15 = vld [vmem:[#allocation10 + $0x68] sm:$0xff] }
 0x5b9   :  { %10486 = vst [vmem:[#allocation173_spill] sm:$0xff] %v8093_v13  ;;  %2933 = vmatpush.msra.mxu1 %v8108_v15  ;;  %v8111_v13 = vld [vmem:[#allocation10 + $0x70] sm:$0xff] }
 0x5ba   :  { %10487 = vst [vmem:[#allocation174_spill] sm:$0xff] %v8096_v5  ;;  %2953 = vmatpush.msra.mxu2 %v8111_v13  ;;  %v8114_v5 = vld [vmem:[#allocation10 + $0x78] sm:$0xff] }
 0x5bb   :  { %10488 = vst [vmem:[#allocation175_spill] sm:$0xff] %v8099_v47  ;;  %2973 = vmatpush.msra.mxu3 %v8114_v5  ;;  %v8117_v47 = vld [vmem:[#allocation10 + $0x40] sm:$0xff] }
 0x5bc   :  { %10489 = vst [vmem:[#allocation176_spill] sm:$0xff] %v8102_v19  ;;  %2914 = vmatpush.msra.mxu0 %v8117_v47  ;;  %v8120_v19 = vld [vmem:[#allocation10 + $0x48] sm:$0xff] }
 0x5bd   :  { %10490 = vst [vmem:[#allocation177_spill] sm:$0xff] %v8105_v17  ;;  %2934 = vmatpush.msra.mxu1 %v8120_v19  ;;  %v8123_v17 = vld [vmem:[#allocation10 + $0x50] sm:$0xff] }
 0x5be   :  { %10491 = vst [vmem:[#allocation178_spill] sm:$0xff] %v8108_v15  ;;  %2954 = vmatpush.msra.mxu2 %v8123_v17  ;;  %v8126_v15 = vld [vmem:[#allocation10 + $0x58] sm:$0xff] }
 0x5bf   :  { %10492 = vst [vmem:[#allocation180_spill] sm:$0xff] %v8111_v13  ;;  %2974 = vmatpush.msra.mxu3 %v8126_v15  ;;  %v8129_v13 = vld [vmem:[#allocation10 + $0x20] sm:$0xff] }
 0x5c0   :  { %10493 = vst [vmem:[#allocation181_spill] sm:$0xff] %v8114_v5  ;;  %2915 = vmatpush.msra.mxu0 %v8129_v13  ;;  %v8132_v5 = vld [vmem:[#allocation10 + $0x28] sm:$0xff] }
 0x5c1   :  { %10494 = vst [vmem:[#allocation182_spill] sm:$0xff] %v8117_v47  ;;  %2935 = vmatpush.msra.mxu1 %v8132_v5  ;;  %v8135_v47 = vld [vmem:[#allocation10 + $0x30] sm:$0xff] }
 0x5c2   :  { %10495 = vst [vmem:[#allocation183_spill] sm:$0xff] %v8120_v19  ;;  %2955 = vmatpush.msra.mxu2 %v8135_v47  ;;  %v8138_v19 = vld [vmem:[#allocation10 + $0x38] sm:$0xff] }
 0x5c3   :  { %10496 = vst [vmem:[#allocation184_spill] sm:$0xff] %v8123_v17  ;;  %2975 = vmatpush.msra.mxu3 %v8138_v19  ;;  %v8141_v17 = vld [vmem:[#allocation10] sm:$0xff] }
 0x5c4   :  { %10497 = vst [vmem:[#allocation185_spill] sm:$0xff] %v8126_v15  ;;  %2916 = vmatpush.msra.mxu0 %v8141_v17  ;;  %v8144_v15 = vld [vmem:[#allocation10 + $0x8] sm:$0xff] }
 0x5c5   :  { %10498 = vst [vmem:[#allocation186_spill] sm:$0xff] %v8129_v13  ;;  %2936 = vmatpush.msra.mxu1 %v8144_v15  ;;  %v8147_v13 = vld [vmem:[#allocation10 + $0x10] sm:$0xff] }
 0x5c6   :  { %10499 = vst [vmem:[#allocation187_spill] sm:$0xff] %v8132_v5  ;;  %2956 = vmatpush.msra.mxu2 %v8147_v13  ;;  %v8150_v5 = vld [vmem:[#allocation10 + $0x18] sm:$0xff] }
 0x5c7   :  { %10500 = vst [vmem:[#allocation188_spill] sm:$0xff] %v8135_v47  ;;  %2976 = vmatpush.msra.mxu3 %v8150_v5  ;;  %v2452_v47 = vpop.f32.mrf.mxu0 }
 0x5c8   :  { %10501 = vst [vmem:[#allocation189_spill] sm:$0xff] %v8138_v19  ;;  %v2552_v19 = vpop.f32.mrf.mxu1 }
 0x5c9   :  { %10502 = vst [vmem:[#allocation190_spill] sm:$0xff] %v8141_v17  ;;  %v2553_v42 = vadd.f32 %v2552_v19, %v2472_v41  ;;  %v2593_v19 = vadd.f32 %v2592_v57, %v2512_v14 }
 0x5ca   :  { %10503 = vst [vmem:[#allocation191_spill] sm:$0xff] %v8144_v15 }
 0x5cb   :  { %10504 = vst [vmem:[#allocation192_spill] sm:$0xff] %v8147_v13  ;;  %v2596_v20 = vadd.f32 %v2553_v42, %v10324_v8  ;;  %v2664_v13 = vpop.permute.xlu1 %2663 }
 0x5cc   :  { %10505 = vst [vmem:[#allocation193_spill] sm:$0xff] %v8150_v5  ;;  %v2666_v7 = vmul.f32 %v2664_v13, %v10325_v34  ;;  %v2667_v5 = vmul.f32 %v2664_v13, %v10326_v37  ;;  %v2598_v34 = vadd.f32 %v2593_v19, %v10329_v54  ;;  %v2669_v37 = vmul.f32 %v2664_v13, %v10330_v40 }
 0x5cd   :  { %v3490_v53 = vmul.f32 -1.442695, %v2596_v20 }
 0x5ce   :  { %v3491_v57 = vmul.f32 -1.442695, %v2598_v34 }
 0x5cf   :  { %v2532_v29 = vpop.f32.mrf.mxu0 }
 0x5d0   :  { %v2533_v22 = vadd.f32 %v2532_v29, %v2452_v47  ;;  %v2670_v29 = vadd.f32 %v2666_v7, %v10327_v55  ;;  %v2671_v47 = vadd.f32 %v2667_v5, %v10328_v24 }
 0x5d2   :  { %v2595_v17 = vadd.f32 %v2533_v22, %v10323_v3  ;;  %v2492_v22 = vpop.f32.mrf.mxu2 }
 0x5d4   :  { %v3489_v15 = vmul.f32 -1.442695, %v2595_v17 }
 0x5d6   :  { %3708 = vpow2.f32 %v3489_v15 }
 0x5d7   :  { %3710 = vpow2.f32 %v3490_v53  ;;  %v2691_v20 = vpop.f32.mrf.mxu0  ;;  %v2711_v53 = vpop.f32.mrf.mxu1 }
 0x5d8   :  { %v2754_v17 = vadd.f32 %v2691_v20, %v2670_v29  ;;  %v2755_v15 = vadd.f32 %v2711_v53, %v2671_v47 }
 0x5da   :  { %v3492_v8 = vmul.f32 -1.442695, %v2754_v17  ;;  %v3493_v7 = vmul.f32 -1.442695, %v2755_v15  ;;  %v2572_v14 = vpop.f32.mrf.mxu2 }
 0x5db   :  { %v2573_v53 = vadd.f32 %v2572_v14, %v2492_v22 }
 0x5dc   :  { %v3709_v49 = vpop.eup %3708 }
 0x5dd   :  { %v3711_v36 = vpop.eup %3710  ;;  %v8159_v42 = vadd.f32 1.0, %v3709_v49  ;;  %v2751_v49 = vpop.f32.mrf.mxu3 }
 0x5de   :  { %v8161_v41 = vadd.f32 1.0, %v3711_v36  ;;  %v2673_v36 = vadd.f32 %v2669_v37, %v10331_v61 }
 0x5df   :  { %3712 = vrcp.f32 %v8159_v42  ;;  %vm2608_vm4 = vweird.f32 %v8159_v42 }
 0x5e0   :  { %3714 = vrcp.f32 %v8161_v41  ;;  %v2757_v5 = vadd.f32 %v2751_v49, %v2673_v36  ;;  %vm2627_vm5 = vweird.f32 %v8161_v41 }
 0x5e1   :  { %3716 = vpow2.f32 %v3492_v8 }
 0x5e2   :  { %3718 = vpow2.f32 %v3493_v7  ;;  %v3494_v19 = vmul.f32 -1.442695, %v2757_v5  ;;  %v2668_v7 = vmul.f32 %v2664_v13, %v10332_v18  ;;  %v2731_v49 = vpop.f32.mrf.mxu2 }
 0x5e3   :  { %3720 = vpow2.f32 %v3491_v57  ;;  %v2597_v57 = vadd.f32 %v2573_v53, %v10333_v28 }
 0x5e4   :  { %3722 = vpow2.f32 %v3494_v19  ;;  %v2672_v5 = vadd.f32 %v2668_v7, %v10334_v43 }
 0x5e5   :  { %v8168_v29 = vpop.eup %3712 }
 0x5e6   :  { %v8170_v47 = vpop.eup %3714  ;;  %v2604_v15 = vmul.f32 %v8168_v29, %v8159_v42  ;;  %v2756_v13 = vadd.f32 %v2731_v49, %v2672_v5  ;;  %vm2609_vm7 = vweird.f32 %v8168_v29 }
 0x5e7   :  { %v3717_v20 = vpop.eup %3716  ;;  %v2623_v37 = vmul.f32 %v8170_v47, %v8161_v41  ;;  %vm2628_vm6 = vweird.f32 %v8170_v47  ;;  %vm8208_vm9 = vmor %vm2608_vm4, %vm2609_vm7 }
 0x5e8   :  { %v3719_v17 = vpop.eup %3718  ;;  %v8174_v8 = vadd.f32 1.0, %v3717_v20  ;;  %v2605_v36 = vsub.f32 1.0, %v2604_v15  ;;  %v2612_v15 = vand.u32 2147483647, %v8159_v42  ;;  %vm8218_vm11 = vmor %vm2627_vm5, %vm2628_vm6 }
 0x5e9   :  { %v8176_v34 = vadd.f32 1.0, %v3719_v17  ;;  %v3721_v22 = vpop.eup %3720  ;;  %v2624_v14 = vsub.f32 1.0, %v2623_v37  ;;  %v2614_v37 = vand.u32 2147483648, %v8159_v42  ;;  %v2631_v42 = vand.u32 2147483647, %v8161_v41 }
 0x5ea   :  { %3724 = vrcp.f32 %v8174_v8  ;;  %v3723_v20 = vpop.eup %3722  ;;  %v8185_v19 = vadd.f32 1.0, %v3721_v22  ;;  %v2606_v61 = vmul.f32 %v8168_v29, %v2605_v36  ;;  %v2633_v22 = vand.u32 2147483648, %v8161_v41 }
 0x5eb   :  { %3726 = vrcp.f32 %v8176_v34  ;;  %v8189_v18 = vadd.f32 1.0, %v3723_v20  ;;  %v2773_v43 = vand.u32 2147483648, %v8174_v8  ;;  %v2792_v28 = vand.u32 2147483648, %v8176_v34 }
 0x5ec   :  { %3728 = vtanh.f32 %v2597_v57  ;;  %v2625_v57 = vmul.f32 %v8170_v47, %v2624_v14  ;;  %v2607_v5 = vadd.f32 %v8168_v29, %v2606_v61  ;;  %v2771_v24 = vand.u32 2147483647, %v8174_v8 }
 0x5ed   :  { %3730 = vrcp.f32 %v8189_v18  ;;  %vm2767_vm12 = vweird.f32 %v8174_v8  ;;  %vm2786_vm13 = vweird.f32 %v8176_v34  ;;  %vm2613_vm2 = vcmp.eq.f32.partialorder %v2612_v15, 8.507059e+37 }
 0x5ee   :  { %3732 = vrcp.f32 %v8185_v19  ;;  %vm2772_vm0 = vcmp.eq.f32.partialorder %v2771_v24, 8.507059e+37  ;;  %vm2632_vm3 = vcmp.eq.f32.partialorder %v2631_v42, 8.507059e+37  ;;  %vm2806_vm5 = vweird.f32 %v8189_v18 }
 0x5ef   :  { %3734 = vtanh.f32 %v2756_v13 }
 0x5f0   :  { %v3725_v17 = vpop.eup %3724 }
 0x5f1   :  { %v3727_v53 = vpop.eup %3726  ;;  %v2763_v7 = vmul.f32 %v3725_v17, %v8174_v8  ;;  %vm2768_vm8 = vweird.f32 %v3725_v17 }
 0x5f2   :  { %v2782_v36 = vmul.f32 %v3727_v53, %v8176_v34  ;;  %v3729_v14 = vpop.eup %3728  ;;  %vm2787_vm10 = vweird.f32 %v3727_v53  ;;  %vm2769_vm14 = vmor %vm2767_vm12, %vm2768_vm8 }
 0x5f3   :  { %v2764_v49 = vsub.f32 1.0, %v2763_v7  ;;  %v2626_v7 = vadd.f32 %v8170_v47, %v2625_v57  ;;  %v3731_v3 = vpop.eup %3730  ;;  %v2611_v57 = vsel %vm8208_vm9, %v8168_v29, %v2607_v5  ;;  %vm2788_vm15 = vmor %vm2786_vm13, %vm2787_vm10  ;;  %vm2647_vm9 = vweird.f32 %v8185_v19 }
 0x5f4   :  { %v2783_v20 = vsub.f32 1.0, %v2782_v36  ;;  %v2790_v36 = vand.u32 2147483647, %v8176_v34  ;;  %v8229_v60 = vpop.eup %3732  ;;  %v2634_v34 = vor.u32 1.1754944e-38, %v2633_v22  ;;  %vm2807_vm4 = vweird.f32 %v3731_v3 }
 0x5f5   :  { %v2765_v40 = vmul.f32 %v3725_v17, %v2764_v49  ;;  %v2615_v49 = vor.u32 1.1754944e-38, %v2614_v37  ;;  %v2793_v37 = vor.u32 1.1754944e-38, %v2792_v28  ;;  %v3735_v41 = vpop.eup %3734  ;;  %v2630_v55 = vsel %vm8218_vm11, %v8170_v47, %v2626_v7  ;;  %vm2808_vm6 = vmor %vm2806_vm5, %vm2807_vm4 }
 0x5f6   :  { %v2784_v61 = vmul.f32 %v3727_v53, %v2783_v20  ;;  %v2774_v20 = vor.u32 1.1754944e-38, %v2773_v43  ;;  %vm2791_vm1 = vcmp.eq.f32.partialorder %v2790_v36, 8.507059e+37  ;;  %v2635_v24 = vsel %vm2632_vm3, %v2634_v34, %v2630_v55  ;;  %v10541_v55 = vld [vmem:[#allocation52_spill] sm:$0xff]  ;;  %v10544_v34 = vld [vmem:[#allocation55_spill] sm:$0xff] }
 0x5f7   :  { %v2766_v54 = vadd.f32 %v3725_v17, %v2765_v40  ;;  %v2802_v40 = vmul.f32 %v3731_v3, %v8189_v18  ;;  %vm2648_vm8 = vweird.f32 %v8229_v60 }
 0x5f8   :  { %v2785_v56 = vadd.f32 %v3727_v53, %v2784_v61  ;;  %vm2649_vm10 = vmor %vm2647_vm9, %vm2648_vm8 }
 0x5f9   :  { %v2770_v26 = vsel %vm2769_vm14, %v3725_v17, %v2766_v54  ;;  %v2803_v61 = vsub.f32 1.0, %v2802_v40  ;;  %v2616_v54 = vsel %vm2613_vm2, %v2615_v49, %v2611_v57  ;;  %v2643_v17 = vmul.f32 %v8229_v60, %v8185_v19  ;;  %v10539_v40 = vld [vmem:[#allocation50_spill] sm:$0xff] }
 0x5fa   :  { %v2775_v29 = vsel %vm2772_vm0, %v2774_v20, %v2770_v26  ;;  %v2789_v8 = vsel %vm2788_vm15, %v3727_v53, %v2785_v56  ;;  %v2657_v26 = vmul.f32 %v2635_v24, %v7548_v62  ;;  %v2658_v56 = vmul.f32 %v3729_v14, %v2616_v54  ;;  %v10537_v20 = vld [vmem:[#allocation48_spill] sm:$0xff]  ;;  %v10548_v54 = vld [vmem:[#allocation59_spill] sm:$0xff] }
 0x5fb   :  { %v2794_v5 = vsel %vm2791_vm1, %v2793_v37, %v2789_v8  ;;  %v2817_v43 = vmul.f32 %v3735_v41, %v2775_v29  ;;  %v2804_v27 = vmul.f32 %v3731_v3, %v2803_v61  ;;  %v2812_v53 = vand.u32 2147483648, %v8189_v18  ;;  %v10538_v37 = vld [vmem:[#allocation49_spill] sm:$0xff]  ;;  %v10540_v41 = vld [vmem:[#allocation51_spill] sm:$0xff]  ;;  %v10543_v8 = vld [vmem:[#allocation54_spill] sm:$0xff] }
 0x5fc   :  { %v2816_v28 = vmul.f32 %v2794_v5, %v7541_v35  ;;  %v2644_v15 = vsub.f32 1.0, %v2643_v17  ;;  %v2810_v35 = vand.u32 2147483647, %v8189_v18  ;;  %v8245_v7 = vadd.f32 %v2658_v56, %v2657_v26  ;;  %v10542_v29 = vld [vmem:[#allocation53_spill] sm:$0xff]  ;;  %v10545_v5 = vld [vmem:[#allocation56_spill] sm:$0xff]  ;;  %v10552_v26 = vld [vmem:[#allocation63_spill] sm:$0xff] }
 0x5fd   :  { %v2805_v47 = vadd.f32 %v3731_v3, %v2804_v27  ;;  %v2813_v36 = vor.u32 1.1754944e-38, %v2812_v53  ;;  %v2651_v49 = vand.u32 2147483647, %v8185_v19  ;;  %v10546_v61 = vld [vmem:[#allocation57_spill] sm:$0xff]  ;;  %v10549_v24 = vld [vmem:[#allocation60_spill] sm:$0xff] }
 0x5fe   :  { %v8238_v46 = vadd.f32 %v2817_v43, %v2816_v28  ;;  %vm2811_vm7 = vcmp.eq.f32.partialorder %v2810_v35, 8.507059e+37  ;;  %v2645_v27 = vmul.f32 %v8229_v60, %v2644_v15  ;;  %v4535_v43 = vmov 7   ;;  %v10547_v28 = vld [vmem:[#allocation58_spill] sm:$0xff]  ;;  %v10550_v17 = vld [vmem:[#allocation61_spill] sm:$0xff]  ;;  %v10553_v56 = vld [vmem:[#allocation64_spill] sm:$0xff] }
 0x5ff   :  { %v2809_v22 = vsel %vm2808_vm6, %v3731_v3, %v2805_v47  ;;  %v2653_v3 = vand.u32 2147483648, %v8185_v19  ;;  %vm2652_vm11 = vcmp.eq.f32.partialorder %v2651_v49, 8.507059e+37  ;;  %v10536_v19 = vld [vmem:[#allocation47_spill] sm:$0xff]  ;;  %3528 = vset.pattern.permute.xlu2 %v4535_v43  ;;  %v10551_v47 = vld [vmem:[#allocation62_spill] sm:$0xff]  ;;  %v10554_v53 = vld [vmem:[#allocation65_spill] sm:$0xff]  ;;  %3529 = vset.pattern.permute.xlu0 %v4535_v43 }
 0x600   :  { %3736 = vtanh.f32 %v8238_v46  ;;  %v2814_v62 = vsel %vm2811_vm7, %v2813_v36, %v2809_v22  ;;  %v2646_v18 = vadd.f32 %v8229_v60, %v2645_v27  ;;  %3049 = vperm.xlu2 %3528, %v10547_v28   ;;  %v10555_v15 = vld [vmem:[#allocation66_spill] sm:$0xff]  ;;  %v10556_v35 = vld [vmem:[#allocation67_spill] sm:$0xff]  ;;  %v10557_v22 = vld [vmem:[#allocation68_spill] sm:$0xff] }
 0x601   :  { %3738 = vtanh.f32 %v8245_v7  ;;  %v10558_v36 = vld [vmem:[#allocation69_spill] sm:$0xff]  ;;  %v10559_v27 = vld [vmem:[#allocation70_spill] sm:$0xff]  ;;  %v10565_v49 = vld [vmem:[#allocation76_spill] sm:$0xff] }
 0x602   :  { %v2650_v42 = vsel %vm2649_vm10, %v8229_v60, %v2646_v18  ;;  %v10535_v60 = vld [vmem:[#allocation46_spill] sm:$0xff]  ;;  %v10608_v28 = vld [vmem:[#allocation119_spill] sm:$0xff] }
 0x603   :  { %v10563_v18 = vld [vmem:[#allocation74_spill] sm:$0xff] }
 0x606   :  { %v3737_v13 = vpop.eup %3736 }
 0x607   :  { %v8248_v14 = vmul.f32 %v3737_v13, %v2814_v62  ;;  %v3739_v57 = vpop.eup %3738  ;;  %v10560_v13 = vld [vmem:[#allocation71_spill] sm:$0xff]  ;;  %v10561_v62 = vld [vmem:[#allocation72_spill] sm:$0xff] }
 0x609   :  { %2837 = vmatmul.f32.vlgmr.msrb.gmra.mxu0 %v8248_v14  ;;  %2857 = vmatmul.f32.vlgmr.msrb.gmra.mxu1 %v8248_v14 }
 0x60a   :  { %2877 = vmatmul.f32.vlgmr.msrb.gmra.mxu2 %v8248_v14  ;;  %2897 = vmatmul.f32.vlgmr.msrb.gmra.mxu3 %v8248_v14 }
 0x60b   :  { %3060 = vmatpush.msrb.mxu0 %v7561_v25  ;;  %3080 = vmatpush.msrb.mxu1 %v7564_v11  ;;  %v2654_v25 = vor.u32 1.1754944e-38, %v2653_v3  ;;  %v10564_v3 = vld [vmem:[#allocation75_spill] sm:$0xff] }
 0x60c   :  { %3100 = vmatpush.msrb.mxu2 %v7569_v52  ;;  %3120 = vmatpush.msrb.mxu3 %v7572_v58  ;;  %v10510_v58 = vld [vmem:[#allocation21_spill] sm:$0xff] }
 0x60d   :  { %3061 = vmatpush.msrb.mxu0 %v7579_v12  ;;  %3081 = vmatpush.msrb.mxu1 %v7582_v59  ;;  %v2655_v11 = vsel %vm2652_vm11, %v2654_v25, %v2650_v42  ;;  %v10511_v12 = vld [vmem:[#allocation22_spill] sm:$0xff]  ;;  %v10512_v59 = vld [vmem:[#allocation23_spill] sm:$0xff]  ;;  %v10566_v42 = vld [vmem:[#allocation77_spill] sm:$0xff] }
 0x60e   :  { %3101 = vmatpush.msrb.mxu2 %v7588_v39  ;;  %3121 = vmatpush.msrb.mxu3 %v7591_v33  ;;  %v2661_v52 = vmul.f32 %v3739_v57, %v2655_v11  ;;  %v10513_v39 = vld [vmem:[#allocation24_spill] sm:$0xff]  ;;  %v10514_v33 = vld [vmem:[#allocation25_spill] sm:$0xff]  ;;  %v10567_v57 = vld [vmem:[#allocation78_spill] sm:$0xff] }
 0x60f   :  { %3062 = vmatpush.msrb.mxu0 %v7594_v30  ;;  %3082 = vmatpush.msrb.mxu1 %v7597_v44  ;;  %v10515_v30 = vld [vmem:[#allocation26_spill] sm:$0xff]  ;;  %v10516_v44 = vld [vmem:[#allocation27_spill] sm:$0xff]  ;;  %v10569_v11 = vld [vmem:[#allocation80_spill] sm:$0xff] }
 0x610   :  { %3102 = vmatpush.msrb.mxu2 %v7600_v0  ;;  %3122 = vmatpush.msrb.mxu3 %v7603_v4  ;;  %v10517_v0 = vld [vmem:[#allocation28_spill] sm:$0xff]  ;;  %v10518_v4 = vld [vmem:[#allocation29_spill] sm:$0xff]  ;;  %v10568_v25 = vld [vmem:[#allocation79_spill] sm:$0xff] }
 0x611   :  { %3063 = vmatpush.msrb.mxu0 %v7606_v45  ;;  %3083 = vmatpush.msrb.mxu1 %v7609_v51  ;;  %v10519_v45 = vld [vmem:[#allocation30_spill] sm:$0xff]  ;;  %v10520_v51 = vld [vmem:[#allocation31_spill] sm:$0xff] }
 0x612   :  { %3103 = vmatpush.msrb.mxu2 %v7612_v32  ;;  %3123 = vmatpush.msrb.mxu3 %v7615_v31  ;;  %v10521_v32 = vld [vmem:[#allocation32_spill] sm:$0xff]  ;;  %v10522_v31 = vld [vmem:[#allocation33_spill] sm:$0xff] }
 0x613   :  { %2917 = vmatmul.f32.vlgmr.msra.gmra.mxu0 %v2661_v52  ;;  %2937 = vmatmul.f32.vlgmr.msra.gmra.mxu1 %v2661_v52 }
 0x614   :  { %2957 = vmatmul.f32.vlgmr.msra.gmra.mxu2 %v2661_v52  ;;  %2977 = vmatmul.f32.vlgmr.msra.gmra.mxu3 %v2661_v52  ;;  %v10570_v52 = vld [vmem:[#allocation81_spill] sm:$0xff] }
 0x615   :  { %3064 = vmatpush.msrb.mxu0 %v7618_v6  ;;  %3084 = vmatpush.msrb.mxu1 %v7621_v9  ;;  %v10523_v6 = vld [vmem:[#allocation34_spill] sm:$0xff]  ;;  %v10524_v9 = vld [vmem:[#allocation35_spill] sm:$0xff] }
 0x616   :  { %3104 = vmatpush.msrb.mxu2 %v7624_v1  ;;  %3124 = vmatpush.msrb.mxu3 %v7627_v50  ;;  %v10525_v1 = vld [vmem:[#allocation36_spill] sm:$0xff]  ;;  %v10526_v50 = vld [vmem:[#allocation37_spill] sm:$0xff] }
 0x617   :  { %3065 = vmatpush.msrb.mxu0 %v7630_v16  ;;  %3085 = vmatpush.msrb.mxu1 %v7633_v38  ;;  %v10527_v16 = vld [vmem:[#allocation38_spill] sm:$0xff]  ;;  %v10528_v38 = vld [vmem:[#allocation39_spill] sm:$0xff] }
 0x618   :  { %3105 = vmatpush.msrb.mxu2 %v7636_v10  ;;  %3125 = vmatpush.msrb.mxu3 %v7639_v2  ;;  %v10529_v10 = vld [vmem:[#allocation40_spill] sm:$0xff]  ;;  %v10530_v2 = vld [vmem:[#allocation41_spill] sm:$0xff] }
 0x619   :  { %3066 = vmatpush.msrb.mxu0 %v7642_v21  ;;  %3086 = vmatpush.msrb.mxu1 %v7645_v48  ;;  %v10531_v21 = vld [vmem:[#allocation42_spill] sm:$0xff]  ;;  %v10532_v48 = vld [vmem:[#allocation43_spill] sm:$0xff] }
 0x61a   :  { %3106 = vmatpush.msrb.mxu2 %v7648_v23  ;;  %3126 = vmatpush.msrb.mxu3 %v7651_v63  ;;  %v10533_v23 = vld [vmem:[#allocation44_spill] sm:$0xff]  ;;  %v10534_v63 = vld [vmem:[#allocation45_spill] sm:$0xff] }
 0x61b   :  { %3067 = vmatpush.msrb.mxu0 %v10510_v58  ;;  %3087 = vmatpush.msrb.mxu1 %v10511_v12  ;;  %v10571_v58 = vld [vmem:[#allocation82_spill] sm:$0xff]  ;;  %v10572_v12 = vld [vmem:[#allocation83_spill] sm:$0xff] }
 0x61c   :  { %3107 = vmatpush.msrb.mxu2 %v10512_v59  ;;  %3127 = vmatpush.msrb.mxu3 %v10513_v39  ;;  %v10573_v59 = vld [vmem:[#allocation84_spill] sm:$0xff]  ;;  %v10574_v39 = vld [vmem:[#allocation85_spill] sm:$0xff] }
 0x61d   :  { %3068 = vmatpush.msrb.mxu0 %v10514_v33  ;;  %3088 = vmatpush.msrb.mxu1 %v10515_v30  ;;  %v10575_v33 = vld [vmem:[#allocation86_spill] sm:$0xff]  ;;  %v10576_v30 = vld [vmem:[#allocation87_spill] sm:$0xff] }
 0x61e   :  { %3108 = vmatpush.msrb.mxu2 %v10516_v44  ;;  %3128 = vmatpush.msrb.mxu3 %v10517_v0  ;;  %v10577_v44 = vld [vmem:[#allocation88_spill] sm:$0xff]  ;;  %v10578_v0 = vld [vmem:[#allocation89_spill] sm:$0xff] }
 0x61f   :  { %3069 = vmatpush.msrb.mxu0 %v10518_v4  ;;  %3089 = vmatpush.msrb.mxu1 %v10519_v45  ;;  %v10579_v4 = vld [vmem:[#allocation90_spill] sm:$0xff]  ;;  %v10580_v45 = vld [vmem:[#allocation91_spill] sm:$0xff] }
 0x620   :  { %3109 = vmatpush.msrb.mxu2 %v10520_v51  ;;  %3129 = vmatpush.msrb.mxu3 %v10521_v32  ;;  %v10581_v51 = vld [vmem:[#allocation92_spill] sm:$0xff]  ;;  %v10582_v32 = vld [vmem:[#allocation93_spill] sm:$0xff] }
 0x621   :  { %3070 = vmatpush.msrb.mxu0 %v10522_v31  ;;  %3090 = vmatpush.msrb.mxu1 %v10523_v6  ;;  %v10583_v31 = vld [vmem:[#allocation94_spill] sm:$0xff]  ;;  %v10584_v6 = vld [vmem:[#allocation95_spill] sm:$0xff] }
 0x622   :  { %3110 = vmatpush.msrb.mxu2 %v10524_v9  ;;  %3130 = vmatpush.msrb.mxu3 %v10525_v1  ;;  %v10585_v9 = vld [vmem:[#allocation96_spill] sm:$0xff]  ;;  %v10586_v1 = vld [vmem:[#allocation97_spill] sm:$0xff] }
 0x623   :  { %3071 = vmatpush.msrb.mxu0 %v10526_v50  ;;  %3091 = vmatpush.msrb.mxu1 %v10527_v16  ;;  %v10587_v50 = vld [vmem:[#allocation98_spill] sm:$0xff]  ;;  %v10588_v16 = vld [vmem:[#allocation99_spill] sm:$0xff] }
 0x624   :  { %3111 = vmatpush.msrb.mxu2 %v10528_v38  ;;  %3131 = vmatpush.msrb.mxu3 %v10529_v10  ;;  %v10589_v38 = vld [vmem:[#allocation100_spill] sm:$0xff]  ;;  %v10590_v10 = vld [vmem:[#allocation101_spill] sm:$0xff] }
 0x625   :  { %3072 = vmatpush.msrb.mxu0 %v10530_v2  ;;  %3092 = vmatpush.msrb.mxu1 %v10531_v21  ;;  %v10591_v2 = vld [vmem:[#allocation102_spill] sm:$0xff]  ;;  %v10592_v21 = vld [vmem:[#allocation103_spill] sm:$0xff] }
 0x626   :  { %3112 = vmatpush.msrb.mxu2 %v10532_v48  ;;  %3132 = vmatpush.msrb.mxu3 %v10533_v23  ;;  %v10593_v48 = vld [vmem:[#allocation104_spill] sm:$0xff]  ;;  %v10594_v23 = vld [vmem:[#allocation105_spill] sm:$0xff] }
 0x627   :  { %3073 = vmatpush.msrb.mxu0 %v10534_v63  ;;  %3093 = vmatpush.msrb.mxu1 %v10535_v60  ;;  %v10595_v63 = vld [vmem:[#allocation106_spill] sm:$0xff]  ;;  %v10596_v60 = vld [vmem:[#allocation107_spill] sm:$0xff] }
 0x628   :  { %3113 = vmatpush.msrb.mxu2 %v10536_v19  ;;  %3133 = vmatpush.msrb.mxu3 %v10537_v20  ;;  %v10597_v19 = vld [vmem:[#allocation108_spill] sm:$0xff]  ;;  %v10598_v20 = vld [vmem:[#allocation109_spill] sm:$0xff] }
 0x629   :  { %3074 = vmatpush.msrb.mxu0 %v10538_v37  ;;  %3094 = vmatpush.msrb.mxu1 %v10539_v40  ;;  %v10599_v37 = vld [vmem:[#allocation110_spill] sm:$0xff]  ;;  %v10600_v40 = vld [vmem:[#allocation111_spill] sm:$0xff] }
 0x62a   :  { %3114 = vmatpush.msrb.mxu2 %v10540_v41  ;;  %3134 = vmatpush.msrb.mxu3 %v10541_v55  ;;  %v10601_v41 = vld [vmem:[#allocation112_spill] sm:$0xff]  ;;  %v10602_v55 = vld [vmem:[#allocation113_spill] sm:$0xff] }
 0x62b   :  { %3075 = vmatpush.msrb.mxu0 %v10542_v29  ;;  %3095 = vmatpush.msrb.mxu1 %v10543_v8  ;;  %v10603_v29 = vld [vmem:[#allocation114_spill] sm:$0xff]  ;;  %v10604_v8 = vld [vmem:[#allocation115_spill] sm:$0xff] }
 0x62c   :  { %3115 = vmatpush.msrb.mxu2 %v10544_v34  ;;  %3135 = vmatpush.msrb.mxu3 %v10545_v5  ;;  %v10605_v34 = vld [vmem:[#allocation116_spill] sm:$0xff]  ;;  %v10606_v5 = vld [vmem:[#allocation117_spill] sm:$0xff] }
 0x62d   :  { %3076 = vmatmul.f32.vlgmr.msrb.gmra.mxu0 %v8248_v14  ;;  %3096 = vmatmul.f32.vlgmr.msrb.gmra.mxu1 %v8248_v14 }
 0x62e   :  { %3116 = vmatmul.f32.vlgmr.msrb.gmra.mxu2 %v8248_v14  ;;  %3136 = vmatmul.f32.vlgmr.msrb.gmra.mxu3 %v8248_v14  ;;  %v10562_v14 = vld [vmem:[#allocation73_spill] sm:$0xff] }
 0x62f   :  { %3207 = vmatpush.msra.mxu0 %v10546_v61  ;;  %3227 = vmatpush.msra.mxu1 %v10548_v54  ;;  %v10607_v61 = vld [vmem:[#allocation118_spill] sm:$0xff]  ;;  %v10609_v54 = vld [vmem:[#allocation120_spill] sm:$0xff] }
 0x630   :  { %3247 = vmatpush.msra.mxu2 %v10549_v24  ;;  %3267 = vmatpush.msra.mxu3 %v10550_v17  ;;  %v10610_v24 = vld [vmem:[#allocation121_spill] sm:$0xff]  ;;  %v10611_v17 = vld [vmem:[#allocation122_spill] sm:$0xff] }
 0x631   :  { %3208 = vmatpush.msra.mxu0 %v10551_v47  ;;  %3228 = vmatpush.msra.mxu1 %v10552_v26  ;;  %v10612_v47 = vld [vmem:[#allocation125_spill] sm:$0xff]  ;;  %v10613_v26 = vld [vmem:[#allocation126_spill] sm:$0xff] }
 0x632   :  { %3248 = vmatpush.msra.mxu2 %v10553_v56  ;;  %3268 = vmatpush.msra.mxu3 %v10554_v53  ;;  %v10614_v56 = vld [vmem:[#allocation127_spill] sm:$0xff]  ;;  %v10615_v53 = vld [vmem:[#allocation128_spill] sm:$0xff] }
 0x633   :  { %3209 = vmatpush.msra.mxu0 %v10555_v15  ;;  %3229 = vmatpush.msra.mxu1 %v10556_v35  ;;  %v10616_v15 = vld [vmem:[#allocation129_spill] sm:$0xff]  ;;  %v10617_v35 = vld [vmem:[#allocation130_spill] sm:$0xff] }
 0x634   :  { %3249 = vmatpush.msra.mxu2 %v10557_v22  ;;  %3269 = vmatpush.msra.mxu3 %v10558_v36  ;;  %v10618_v22 = vld [vmem:[#allocation131_spill] sm:$0xff]  ;;  %v10619_v36 = vld [vmem:[#allocation134_spill] sm:$0xff] }
 0x635   :  { %3210 = vmatpush.msra.mxu0 %v10559_v27  ;;  %3230 = vmatpush.msra.mxu1 %v10560_v13  ;;  %v10620_v27 = vld [vmem:[#allocation135_spill] sm:$0xff]  ;;  %v10621_v13 = vld [vmem:[#allocation136_spill] sm:$0xff] }
 0x636   :  { %3250 = vmatpush.msra.mxu2 %v10561_v62  ;;  %3270 = vmatpush.msra.mxu3 %v10562_v14  ;;  %v10622_v62 = vld [vmem:[#allocation137_spill] sm:$0xff]  ;;  %v10623_v14 = vld [vmem:[#allocation138_spill] sm:$0xff] }
 0x637   :  { %3211 = vmatpush.msra.mxu0 %v10563_v18  ;;  %3231 = vmatpush.msra.mxu1 %v10564_v3  ;;  %v10624_v18 = vld [vmem:[#allocation139_spill] sm:$0xff]  ;;  %v10625_v3 = vld [vmem:[#allocation140_spill] sm:$0xff] }
 0x638   :  { %3251 = vmatpush.msra.mxu2 %v10565_v49  ;;  %3271 = vmatpush.msra.mxu3 %v10566_v42  ;;  %v10626_v49 = vld [vmem:[#allocation141_spill] sm:$0xff]  ;;  %v10627_v42 = vld [vmem:[#allocation142_spill] sm:$0xff] }
 0x639   :  { %3212 = vmatpush.msra.mxu0 %v10567_v57  ;;  %3232 = vmatpush.msra.mxu1 %v10568_v25  ;;  %v10628_v57 = vld [vmem:[#allocation143_spill] sm:$0xff]  ;;  %v10629_v25 = vld [vmem:[#allocation145_spill] sm:$0xff] }
 0x63a   :  { %3252 = vmatpush.msra.mxu2 %v10569_v11  ;;  %3272 = vmatpush.msra.mxu3 %v10570_v52  ;;  %v10630_v11 = vld [vmem:[#allocation146_spill] sm:$0xff]  ;;  %v10631_v52 = vld [vmem:[#allocation147_spill] sm:$0xff] }
 0x63b   :  { %3213 = vmatpush.msra.mxu0 %v10571_v58  ;;  %3233 = vmatpush.msra.mxu1 %v10572_v12  ;;  %v10632_v58 = vld [vmem:[#allocation148_spill] sm:$0xff]  ;;  %v10633_v12 = vld [vmem:[#allocation149_spill] sm:$0xff] }
 0x63c   :  { %3253 = vmatpush.msra.mxu2 %v10573_v59  ;;  %3273 = vmatpush.msra.mxu3 %v10574_v39  ;;  %v10634_v59 = vld [vmem:[#allocation150_spill] sm:$0xff]  ;;  %v10635_v39 = vld [vmem:[#allocation151_spill] sm:$0xff] }
 0x63d   :  { %3214 = vmatpush.msra.mxu0 %v10575_v33  ;;  %3234 = vmatpush.msra.mxu1 %v10576_v30  ;;  %v10636_v33 = vld [vmem:[#allocation152_spill] sm:$0xff]  ;;  %v10637_v30 = vld [vmem:[#allocation154_spill] sm:$0xff] }
 0x63e   :  { %3254 = vmatpush.msra.mxu2 %v10577_v44  ;;  %3274 = vmatpush.msra.mxu3 %v10578_v0  ;;  %v10638_v44 = vld [vmem:[#allocation155_spill] sm:$0xff]  ;;  %v10639_v0 = vld [vmem:[#allocation156_spill] sm:$0xff] }
 0x63f   :  { %3215 = vmatpush.msra.mxu0 %v10579_v4  ;;  %3235 = vmatpush.msra.mxu1 %v10580_v45  ;;  %v10640_v4 = vld [vmem:[#allocation157_spill] sm:$0xff]  ;;  %v10641_v45 = vld [vmem:[#allocation158_spill] sm:$0xff] }
 0x640   :  { %3255 = vmatpush.msra.mxu2 %v10581_v51  ;;  %3275 = vmatpush.msra.mxu3 %v10582_v32  ;;  %v10642_v51 = vld [vmem:[#allocation159_spill] sm:$0xff]  ;;  %v10643_v32 = vld [vmem:[#allocation160_spill] sm:$0xff] }
 0x641   :  { %3216 = vmatpush.msra.mxu0 %v10583_v31  ;;  %3236 = vmatpush.msra.mxu1 %v10584_v6  ;;  %v10644_v31 = vld [vmem:[#allocation161_spill] sm:$0xff]  ;;  %v10645_v6 = vld [vmem:[#allocation162_spill] sm:$0xff] }
 0x642   :  { %3256 = vmatpush.msra.mxu2 %v10585_v9  ;;  %3276 = vmatpush.msra.mxu3 %v10586_v1  ;;  %v10646_v9 = vld [vmem:[#allocation163_spill] sm:$0xff]  ;;  %v10647_v1 = vld [vmem:[#allocation164_spill] sm:$0xff] }
 0x643   :  { %3217 = vmatpush.msra.mxu0 %v10587_v50  ;;  %3237 = vmatpush.msra.mxu1 %v10588_v16  ;;  %v10648_v50 = vld [vmem:[#allocation165_spill] sm:$0xff]  ;;  %v10649_v16 = vld [vmem:[#allocation166_spill] sm:$0xff] }
 0x644   :  { %3257 = vmatpush.msra.mxu2 %v10589_v38  ;;  %3277 = vmatpush.msra.mxu3 %v10590_v10  ;;  %v10650_v38 = vld [vmem:[#allocation167_spill] sm:$0xff]  ;;  %v10651_v10 = vld [vmem:[#allocation168_spill] sm:$0xff] }
 0x645   :  { %3218 = vmatpush.msra.mxu0 %v10591_v2  ;;  %3238 = vmatpush.msra.mxu1 %v10592_v21  ;;  %v10652_v2 = vld [vmem:[#allocation169_spill] sm:$0xff]  ;;  %v10653_v21 = vld [vmem:[#allocation171_spill] sm:$0xff] }
 0x646   :  { %3258 = vmatpush.msra.mxu2 %v10593_v48  ;;  %3278 = vmatpush.msra.mxu3 %v10594_v23  ;;  %v10654_v48 = vld [vmem:[#allocation172_spill] sm:$0xff]  ;;  %v10655_v23 = vld [vmem:[#allocation173_spill] sm:$0xff] }
 0x647   :  { %3219 = vmatpush.msra.mxu0 %v10595_v63  ;;  %3239 = vmatpush.msra.mxu1 %v10596_v60  ;;  %v10656_v63 = vld [vmem:[#allocation174_spill] sm:$0xff]  ;;  %v10657_v60 = vld [vmem:[#allocation175_spill] sm:$0xff] }
 0x648   :  { %3259 = vmatpush.msra.mxu2 %v10597_v19  ;;  %3279 = vmatpush.msra.mxu3 %v10598_v20  ;;  %v10658_v19 = vld [vmem:[#allocation176_spill] sm:$0xff]  ;;  %v10659_v20 = vld [vmem:[#allocation177_spill] sm:$0xff] }
 0x649   :  { %3220 = vmatpush.msra.mxu0 %v10599_v37  ;;  %3240 = vmatpush.msra.mxu1 %v10600_v40  ;;  %v10660_v37 = vld [vmem:[#allocation178_spill] sm:$0xff]  ;;  %v10661_v40 = vld [vmem:[#allocation180_spill] sm:$0xff] }
 0x64a   :  { %3260 = vmatpush.msra.mxu2 %v10601_v41  ;;  %3280 = vmatpush.msra.mxu3 %v10602_v55  ;;  %v10662_v41 = vld [vmem:[#allocation181_spill] sm:$0xff]  ;;  %v10663_v55 = vld [vmem:[#allocation182_spill] sm:$0xff] }
 0x64b   :  { %3221 = vmatpush.msra.mxu0 %v10603_v29  ;;  %3241 = vmatpush.msra.mxu1 %v10604_v8  ;;  %v10664_v29 = vld [vmem:[#allocation183_spill] sm:$0xff]  ;;  %v10665_v8 = vld [vmem:[#allocation184_spill] sm:$0xff] }
 0x64c   :  { %3261 = vmatpush.msra.mxu2 %v10605_v34  ;;  %3281 = vmatpush.msra.mxu3 %v10606_v5  ;;  %v10666_v34 = vld [vmem:[#allocation185_spill] sm:$0xff]  ;;  %v10667_v5 = vld [vmem:[#allocation186_spill] sm:$0xff] }
 0x64d   :  { %3222 = vmatpush.msra.mxu0 %v10607_v61  ;;  %3242 = vmatpush.msra.mxu1 %v10608_v28  ;;  %v10668_v61 = vld [vmem:[#allocation187_spill] sm:$0xff]  ;;  %v10669_v28 = vld [vmem:[#allocation188_spill] sm:$0xff] }
 0x64e   :  { %3262 = vmatpush.msra.mxu2 %v10609_v54  ;;  %3282 = vmatpush.msra.mxu3 %v10610_v24  ;;  %v10670_v54 = vld [vmem:[#allocation189_spill] sm:$0xff]  ;;  %v10671_v24 = vld [vmem:[#allocation190_spill] sm:$0xff] }
 0x64f   :  { %3287 = vmatpush.msrb.mxu0 %v10611_v17  ;;  %3307 = vmatpush.msrb.mxu1 %v10612_v47  ;;  %v10672_v17 = vld [vmem:[#allocation191_spill] sm:$0xff]  ;;  %v10673_v47 = vld [vmem:[#allocation192_spill] sm:$0xff] }
 0x650   :  { %3327 = vmatpush.msrb.mxu2 %v10613_v26  ;;  %3347 = vmatpush.msrb.mxu3 %v10614_v56  ;;  %v10674_v26 = vld [vmem:[#allocation193_spill] sm:$0xff] }
 0x651   :  { %3288 = vmatpush.msrb.mxu0 %v10615_v53  ;;  %3308 = vmatpush.msrb.mxu1 %v10616_v15 }
 0x652   :  { %3328 = vmatpush.msrb.mxu2 %v10617_v35  ;;  %3348 = vmatpush.msrb.mxu3 %v10618_v22 }
 0x653   :  { %3289 = vmatpush.msrb.mxu0 %v10619_v36  ;;  %3309 = vmatpush.msrb.mxu1 %v10620_v27 }
 0x654   :  { %3329 = vmatpush.msrb.mxu2 %v10621_v13  ;;  %3349 = vmatpush.msrb.mxu3 %v10622_v62  ;;  %v10675_v13 = vld [vmem:[#allocation17_spill] sm:$0xff] }
 0x655   :  { %3290 = vmatpush.msrb.mxu0 %v10623_v14  ;;  %3310 = vmatpush.msrb.mxu1 %v10624_v18  ;;  %v10676_v14 = vld [vmem:[#allocation18_spill] sm:$0xff] }
 0x656   :  { %3330 = vmatpush.msrb.mxu2 %v10625_v3  ;;  %3350 = vmatpush.msrb.mxu3 %v10626_v49 }
 0x657   :  { %3291 = vmatpush.msrb.mxu0 %v10627_v42  ;;  %3311 = vmatpush.msrb.mxu1 %v10628_v57 }
 0x658   :  { %3331 = vmatpush.msrb.mxu2 %v10629_v25  ;;  %3351 = vmatpush.msrb.mxu3 %v10630_v11  ;;  %v10677_v11 = vld [vmem:[#allocation123_spill] sm:$0xff] }
 0x659   :  { %3292 = vmatpush.msrb.mxu0 %v10631_v52  ;;  %3312 = vmatpush.msrb.mxu1 %v10632_v58  ;;  %v10678_v52 = vld [vmem:[#allocation124_spill] sm:$0xff] }
 0x65a   :  { %3332 = vmatpush.msrb.mxu2 %v10633_v12  ;;  %3352 = vmatpush.msrb.mxu3 %v10634_v59  ;;  %v3050_v57 = vpop.permute.xlu2 %3049 }
 0x65b   :  { %3293 = vmatpush.msrb.mxu0 %v10635_v39  ;;  %3313 = vmatpush.msrb.mxu1 %v10636_v33  ;;  %v3052_v43 = vmul.f32 %v3050_v57, %v10677_v11  ;;  %v3053_v58 = vmul.f32 %v3050_v57, %v10678_v52  ;;  %v10679_v39 = vld [vmem:[#allocation19_spill] sm:$0xff] }
 0x65c   :  { %3333 = vmatpush.msrb.mxu2 %v10637_v30  ;;  %3353 = vmatpush.msrb.mxu3 %v10638_v44  ;;  %v10680_v30 = vld [vmem:[#allocation132_spill] sm:$0xff] }
 0x65d   :  { %3294 = vmatpush.msrb.mxu0 %v10639_v0  ;;  %3314 = vmatpush.msrb.mxu1 %v10640_v4  ;;  %v3056_v44 = vadd.f32 %v3052_v43, %v10680_v30  ;;  %v10681_v0 = vld [vmem:[#allocation133_spill] sm:$0xff] }
 0x65e   :  { %3334 = vmatpush.msrb.mxu2 %v10641_v45  ;;  %3354 = vmatpush.msrb.mxu3 %v10642_v51  ;;  %v3057_v4 = vadd.f32 %v3053_v58, %v10681_v0 }
 0x65f   :  { %3295 = vmatpush.msrb.mxu0 %v10643_v32  ;;  %3315 = vmatpush.msrb.mxu1 %v10644_v31 }
 0x660   :  { %3335 = vmatpush.msrb.mxu2 %v10645_v6  ;;  %3355 = vmatpush.msrb.mxu3 %v10646_v9 }
 0x661   :  { %3296 = vmatpush.msrb.mxu0 %v10647_v1  ;;  %3316 = vmatpush.msrb.mxu1 %v10648_v50 }
 0x662   :  { %3336 = vmatpush.msrb.mxu2 %v10649_v16  ;;  %3356 = vmatpush.msrb.mxu3 %v10650_v38  ;;  %v10682_v16 = vld [vmem:[#allocation144_spill] sm:$0xff] }
 0x663   :  { %3297 = vmatpush.msrb.mxu0 %v10651_v10  ;;  %3317 = vmatpush.msrb.mxu1 %v10652_v2  ;;  %v3055_v38 = vmul.f32 %v3050_v57, %v10682_v16 }
 0x664   :  { %3337 = vmatpush.msrb.mxu2 %v10653_v21  ;;  %3357 = vmatpush.msrb.mxu3 %v10654_v48  ;;  %v10683_v21 = vld [vmem:[#allocation153_spill] sm:$0xff] }
 0x665   :  { %3298 = vmatpush.msrb.mxu0 %v10655_v23  ;;  %3318 = vmatpush.msrb.mxu1 %v10656_v63  ;;  %v3059_v48 = vadd.f32 %v3055_v38, %v10683_v21 }
 0x666   :  { %3338 = vmatpush.msrb.mxu2 %v10657_v60  ;;  %3358 = vmatpush.msrb.mxu3 %v10658_v19 }
 0x667   :  { %3299 = vmatpush.msrb.mxu0 %v10659_v20  ;;  %3319 = vmatpush.msrb.mxu1 %v10660_v37 }
 0x668   :  { %3339 = vmatpush.msrb.mxu2 %v10661_v40  ;;  %3359 = vmatpush.msrb.mxu3 %v10662_v41 }
 0x669   :  { %3300 = vmatpush.msrb.mxu0 %v10663_v55  ;;  %3320 = vmatpush.msrb.mxu1 %v10664_v29 }
 0x66a   :  { %3340 = vmatpush.msrb.mxu2 %v10665_v8  ;;  %3360 = vmatpush.msrb.mxu3 %v10666_v34 }
 0x66b   :  { %3301 = vmatpush.msrb.mxu0 %v10667_v5  ;;  %3321 = vmatpush.msrb.mxu1 %v10668_v61 }
 0x66c   :  { %3341 = vmatpush.msrb.mxu2 %v10669_v28  ;;  %3361 = vmatpush.msrb.mxu3 %v10670_v54  ;;  %v10684_v54 = vld [vmem:[#allocation170_spill] sm:$0xff] }
 0x66d   :  { %3302 = vmatpush.msrb.mxu0 %v10671_v24  ;;  %3322 = vmatpush.msrb.mxu1 %v10672_v17  ;;  %v3054_v24 = vmul.f32 %v3050_v57, %v10684_v54 }
 0x66e   :  { %3342 = vmatpush.msrb.mxu2 %v10673_v47  ;;  %3362 = vmatpush.msrb.mxu3 %v10674_v26  ;;  %v10685_v47 = vld [vmem:[#allocation20_spill] sm:$0xff] }
 0x686   :  { %v2838_v56 = vpop.f32.mrf.mxu0  ;;  %v2858_v53 = vpop.f32.mrf.mxu1 }
 0x68d   :  { %v2898_v27 = vpop.f32.mrf.mxu3  ;;  %v2878_v45 = vpop.f32.mrf.mxu2 }
 0x690   :  { %v2918_v15 = vpop.f32.mrf.mxu0  ;;  %v2938_v35 = vpop.f32.mrf.mxu1 }
 0x691   :  { %v2919_v22 = vadd.f32 %v2918_v15, %v2838_v56  ;;  %v2939_v36 = vadd.f32 %v2938_v35, %v2858_v53 }
 0x693   :  { %v2981_v62 = vadd.f32 %v2919_v22, %v10675_v13  ;;  %v2982_v18 = vadd.f32 %v2939_v36, %v10676_v14  ;;  %v10686_v36 = vld [vmem:[#allocation179_spill] sm:$0xff] }
 0x695   :  { %v3495_v3 = vmul.f32 -1.442695, %v2981_v62  ;;  %v3496_v49 = vmul.f32 -1.442695, %v2982_v18 }
 0x697   :  { %3740 = vpow2.f32 %v3495_v3  ;;  %v2978_v42 = vpop.f32.mrf.mxu3  ;;  %v2958_v60 = vpop.f32.mrf.mxu2 }
 0x698   :  { %3742 = vpow2.f32 %v3496_v49  ;;  %v2979_v25 = vadd.f32 %v2978_v42, %v2898_v27  ;;  %v2959_v29 = vadd.f32 %v2958_v60, %v2878_v45  ;;  %v3058_v27 = vadd.f32 %v3054_v24, %v10686_v36 }
 0x69a   :  { %v2984_v33 = vadd.f32 %v2979_v25, %v10679_v39  ;;  %v2983_v26 = vadd.f32 %v2959_v29, %v10685_v47 }
 0x69c   :  { %v3497_v31 = vmul.f32 -1.442695, %v2984_v33 }
 0x69d   :  { %v3741_v12 = vpop.eup %3740 }
 0x69e   :  { %v3743_v59 = vpop.eup %3742  ;;  %v8467_v51 = vadd.f32 1.0, %v3741_v12 }
 0x69f   :  { %v8469_v32 = vadd.f32 1.0, %v3743_v59 }
 0x6a0   :  { %3744 = vrcp.f32 %v8467_v51  ;;  %v2998_v53 = vand.u32 2147483647, %v8467_v51  ;;  %v3000_v22 = vand.u32 2147483648, %v8467_v51  ;;  %vm2994_vm12 = vweird.f32 %v8467_v51 }
 0x6a1   :  { %3746 = vrcp.f32 %v8469_v32  ;;  %v3019_v35 = vand.u32 2147483648, %v8469_v32  ;;  %vm3013_vm13 = vweird.f32 %v8469_v32  ;;  %v3017_v43 = vand.u32 2147483647, %v8469_v32 }
 0x6a2   :  { %3748 = vpow2.f32 %v3497_v31  ;;  %vm8504_vm14 = vcmp.eq.f32.partialorder %v2998_v53, 8.507059e+37  ;;  %v3001_v12 = vor.u32 1.1754944e-38, %v3000_v22 }
 0x6a3   :  { %v3020_v58 = vor.u32 1.1754944e-38, %v3019_v35  ;;  %vm8527_vm3 = vcmp.eq.f32.partialorder %v3017_v43, 8.507059e+37 }
 0x6a6   :  { %v8475_v63 = vpop.eup %3744 }
 0x6a7   :  { %v8477_v20 = vpop.eup %3746  ;;  %v2990_v55 = vmul.f32 %v8475_v63, %v8467_v51  ;;  %vm2995_vm0 = vweird.f32 %v8475_v63 }
 0x6a8   :  { %v3749_v37 = vpop.eup %3748  ;;  %v3009_v34 = vmul.f32 %v8477_v20, %v8469_v32  ;;  %vm3014_vm15 = vweird.f32 %v8477_v20  ;;  %vm8523_vm2 = vmor %vm2994_vm12, %vm2995_vm0 }
 0x6a9   :  { %v8487_v28 = vadd.f32 1.0, %v3749_v37  ;;  %v2991_v17 = vsub.f32 1.0, %v2990_v55  ;;  %vm8536_vm5 = vmor %vm3013_vm13, %vm3014_vm15 }
 0x6aa   :  { %v3077_v6 = vpop.f32.mrf.mxu0  ;;  %v3097_v9 = vpop.f32.mrf.mxu1  ;;  %v3010_v56 = vsub.f32 1.0, %v3009_v34 }
 0x6ab   :  { %v3140_v1 = vadd.f32 %v3077_v6, %v3056_v44  ;;  %v3141_v50 = vadd.f32 %v3097_v9, %v3057_v4  ;;  %v2992_v18 = vmul.f32 %v8475_v63, %v2991_v17 }
 0x6ac   :  { %v3011_v49 = vmul.f32 %v8477_v20, %v3010_v56 }
 0x6ad   :  { %v3498_v10 = vmul.f32 -1.442695, %v3140_v1  ;;  %v3499_v2 = vmul.f32 -1.442695, %v3141_v50  ;;  %v2993_v33 = vadd.f32 %v8475_v63, %v2992_v18 }
 0x6ae   :  { %v3012_v0 = vadd.f32 %v8477_v20, %v3011_v49 }
 0x6af   :  { %3750 = vpow2.f32 %v3498_v10  ;;  %v2997_v51 = vsel %vm8523_vm2, %v8475_v63, %v2993_v33 }
 0x6b0   :  { %3752 = vpow2.f32 %v3499_v2  ;;  %v3016_v60 = vsel %vm8536_vm5, %v8477_v20, %v3012_v0  ;;  %v3002_v55 = vsel %vm8504_vm14, %v3001_v12, %v2997_v51 }
 0x6b1   :  { %v3137_v23 = vpop.f32.mrf.mxu3  ;;  %v3117_v15 = vpop.f32.mrf.mxu2  ;;  %v3021_v20 = vsel %vm8527_vm3, %v3020_v58, %v3016_v60 }
 0x6b2   :  { %v3143_v19 = vadd.f32 %v3137_v23, %v3059_v48  ;;  %v3142_v42 = vadd.f32 %v3117_v15, %v3058_v27  ;;  %v3043_v17 = vmul.f32 %v3021_v20, %v8245_v7 }
 0x6b4   :  { %v3500_v40 = vmul.f32 -1.442695, %v3143_v19 }
 0x6b5   :  { %v3751_v41 = vpop.eup %3750 }
 0x6b6   :  { %v3753_v8 = vpop.eup %3752  ;;  %v8483_v5 = vadd.f32 1.0, %v3751_v41  ;;  %3754 = vpow2.f32 %v3500_v40 }
 0x6b7   :  { %v8485_v61 = vadd.f32 1.0, %v3753_v8 }
 0x6b8   :  { %3756 = vrcp.f32 %v8483_v5  ;;  %v3159_v45 = vand.u32 2147483648, %v8483_v5  ;;  %v3157_v1 = vand.u32 2147483647, %v8483_v5  ;;  %vm3153_vm6 = vweird.f32 %v8483_v5 }
 0x6b9   :  { %3758 = vrcp.f32 %v8485_v61  ;;  %v3178_v6 = vand.u32 2147483648, %v8485_v61  ;;  %v3176_v10 = vand.u32 2147483647, %v8485_v61  ;;  %vm3172_vm7 = vweird.f32 %v8485_v61 }
 0x6ba   :  { %3760 = vrcp.f32 %v8487_v28  ;;  %v3160_v32 = vor.u32 1.1754944e-38, %v3159_v45  ;;  %vm3158_vm10 = vcmp.eq.f32.partialorder %v3157_v1, 8.507059e+37 }
 0x6bb   :  { %3762 = vtanh.f32 %v2983_v26  ;;  %v3179_v37 = vor.u32 1.1754944e-38, %v3178_v6  ;;  %vm3177_vm11 = vcmp.eq.f32.partialorder %v3176_v10, 8.507059e+37 }
 0x6bc   :  { %v3755_v62 = vpop.eup %3754 }
 0x6bd   :  { %v8501_v57 = vadd.f32 1.0, %v3755_v62 }
 0x6be   :  { %v3757_v3 = vpop.eup %3756 }
 0x6bf   :  { %v3759_v25 = vpop.eup %3758  ;;  %v3149_v52 = vmul.f32 %v3757_v3, %v8483_v5  ;;  %3764 = vrcp.f32 %v8501_v57  ;;  %vm3154_vm1 = vweird.f32 %v3757_v3  ;;  %v3198_v35 = vand.u32 2147483648, %v8501_v57 }
 0x6c0   :  { %v3168_v59 = vmul.f32 %v3759_v25, %v8485_v61  ;;  %v8515_v44 = vpop.eup %3760  ;;  %3766 = vtanh.f32 %v3142_v42  ;;  %vm3173_vm4 = vweird.f32 %v3759_v25  ;;  %vm3155_vm8 = vmor %vm3153_vm6, %vm3154_vm1  ;;  %vm3192_vm13 = vweird.f32 %v8501_v57 }
 0x6c1   :  { %v3150_v30 = vsub.f32 1.0, %v3149_v52  ;;  %v3763_v31 = vpop.eup %3762  ;;  %v3029_v21 = vmul.f32 %v8515_v44, %v8487_v28  ;;  %vm3174_vm9 = vmor %vm3172_vm7, %vm3173_vm4  ;;  %v3196_v22 = vand.u32 2147483647, %v8501_v57  ;;  %v3199_v62 = vor.u32 1.1754944e-38, %v3198_v35 }
 0x6c2   :  { %v3169_v4 = vsub.f32 1.0, %v3168_v59  ;;  %v3044_v26 = vmul.f32 %v3763_v31, %v3002_v55  ;;  %vm3034_vm0 = vweird.f32 %v8515_v44  ;;  %v3039_v42 = vand.u32 2147483648, %v8487_v28 }
 0x6c3   :  { %v3151_v9 = vmul.f32 %v3757_v3, %v3150_v30  ;;  %v3030_v53 = vsub.f32 1.0, %v3029_v21  ;;  %vm3197_vm15 = vcmp.eq.f32.partialorder %v3196_v22, 8.507059e+37  ;;  %vm3033_vm1 = vweird.f32 %v8487_v28 }
 0x6c4   :  { %v3170_v38 = vmul.f32 %v3759_v25, %v3169_v4  ;;  %v8561_v36 = vadd.f32 %v3044_v26, %v3043_v17  ;;  %vm3035_vm2 = vmor %vm3033_vm1, %vm3034_vm0  ;;  %v3040_v43 = vor.u32 1.1754944e-38, %v3039_v42  ;;  %vm3446_vm0 = vcmask 7168  }
 0x6c5   :  { %v3152_v48 = vadd.f32 %v3757_v3, %v3151_v9  ;;  %v3765_v23 = vpop.eup %3764 }
 0x6c6   :  { %v3171_v19 = vadd.f32 %v3759_v25, %v3170_v38  ;;  %v3188_v40 = vmul.f32 %v3765_v23, %v8501_v57  ;;  %v3767_v41 = vpop.eup %3766  ;;  %vm3193_vm12 = vweird.f32 %v3765_v23  ;;  %v3037_v57 = vand.u32 2147483647, %v8487_v28 }
 0x6c7   :  { %v3156_v63 = vsel %vm3155_vm8, %v3757_v3, %v3152_v48  ;;  %vm3194_vm14 = vmor %vm3192_vm13, %vm3193_vm12 }
 0x6c8   :  { %v3161_v29 = vsel %vm3158_vm10, %v3160_v32, %v3156_v63  ;;  %v3175_v8 = vsel %vm3174_vm9, %v3759_v25, %v3171_v19  ;;  %v3189_v61 = vsub.f32 1.0, %v3188_v40  ;;  %vm3038_vm3 = vcmp.eq.f32.partialorder %v3037_v57, 8.507059e+37 }
 0x6c9   :  { %v3180_v34 = vsel %vm3177_vm11, %v3179_v37, %v3175_v8  ;;  %v3203_v5 = vmul.f32 %v3767_v41, %v3161_v29 }
 0x6ca   :  { %v3202_v54 = vmul.f32 %v3180_v34, %v8238_v46  ;;  %v3190_v24 = vmul.f32 %v3765_v23, %v3189_v61  ;;  %v3031_v46 = vmul.f32 %v8515_v44, %v3030_v53 }
 0x6cc   :  { %v3204_v56 = vadd.f32 %v3203_v5, %v3202_v54  ;;  %v3191_v15 = vadd.f32 %v3765_v23, %v3190_v24  ;;  %v3032_v49 = vadd.f32 %v8515_v44, %v3031_v46 }
 0x6ce   :  { %3768 = vtanh.f32 %v3204_v56  ;;  %v3195_v27 = vsel %vm3194_vm14, %v3765_v23, %v3191_v15  ;;  %v3036_v25 = vsel %vm3035_vm2, %v8515_v44, %v3032_v49 }
 0x6cf   :  { %3770 = vtanh.f32 %v8561_v36  ;;  %v3200_v18 = vsel %vm3197_vm15, %v3199_v62, %v3195_v27  ;;  %v3041_v52 = vsel %vm3038_vm3, %v3040_v43, %v3036_v25  ;;  %v3530_v25 = vld [vmem:[%s8589_s7] ss:$0 sm:$0xff] }
 0x6d4   :  { %v3769_v7 = vpop.eup %3768 }
 0x6d5   :  { %v3206_v3 = vmul.f32 %v3769_v7, %v3200_v18  ;;  %v3771_v11 = vpop.eup %3770 }
 0x6d6   :  { %v3047_v58 = vmul.f32 %v3771_v11, %v3041_v52 }
 0x6d7   :  { %3223 = vmatmul.f32.vlgmr.msra.gmra.mxu0 %v3206_v3  ;;  %3243 = vmatmul.f32.vlgmr.msra.gmra.mxu1 %v3206_v3 }
 0x6d8   :  { %3263 = vmatmul.f32.vlgmr.msra.gmra.mxu2 %v3206_v3  ;;  %3283 = vmatmul.f32.vlgmr.msra.gmra.mxu3 %v3206_v3 }
 0x6df   :  { %3303 = vmatmul.f32.vlgmr.msrb.gmra.mxu0 %v3047_v58  ;;  %3323 = vmatmul.f32.vlgmr.msrb.gmra.mxu1 %v3047_v58 }
 0x6e0   :  { %3343 = vmatmul.f32.vlgmr.msrb.gmra.mxu2 %v3047_v58  ;;  %3363 = vmatmul.f32.vlgmr.msrb.gmra.mxu3 %v3047_v58 }
 0x754   :  { %v3224_v12 = vpop.f32.mrf.mxu0  ;;  %v3244_v59 = vpop.f32.mrf.mxu1 }
 0x75b   :  { %v3284_v33 = vpop.f32.mrf.mxu3  ;;  %v3264_v31 = vpop.f32.mrf.mxu2 }
 0x75c   :  { %v3304_v30 = vpop.f32.mrf.mxu0  ;;  %v3324_v0 = vpop.f32.mrf.mxu1 }
 0x75d   :  { %v3305_v28 = vadd.f32 %v3304_v30, %v3224_v12  ;;  %v3325_v4 = vadd.f32 %v3324_v0, %v3244_v59 }
 0x75f   :  { %v3367_v45 = vadd.f32 %v3305_v28, %v10675_v13  ;;  %v3368_v44 = vadd.f32 %v3325_v4, %v10676_v14 }
 0x761   :  { %v3501_v6 = vmul.f32 -1.442695, %v3367_v45  ;;  %v3502_v9 = vmul.f32 -1.442695, %v3368_v44 }
 0x763   :  { %3772 = vpow2.f32 %v3501_v6  ;;  %v3364_v1 = vpop.f32.mrf.mxu3  ;;  %v3344_v48 = vpop.f32.mrf.mxu2 }
 0x764   :  { %3774 = vpow2.f32 %v3502_v9  ;;  %v3365_v50 = vadd.f32 %v3364_v1, %v3284_v33  ;;  %v3345_v13 = vadd.f32 %v3344_v48, %v3264_v31 }
 0x766   :  { %v3370_v16 = vadd.f32 %v3365_v50, %v10679_v39  ;;  %v3369_v32 = vadd.f32 %v3345_v13, %v10685_v47 }
 0x768   :  { %v3503_v38 = vmul.f32 -1.442695, %v3370_v16 }
 0x769   :  { %v3773_v10 = vpop.eup %3772 }
 0x76a   :  { %v3775_v2 = vpop.eup %3774  ;;  %v3374_v51 = vadd.f32 1.0, %v3773_v10  ;;  %3776 = vpow2.f32 %v3503_v38 }
 0x76b   :  { %v3393_v21 = vadd.f32 1.0, %v3775_v2 }
 0x76c   :  { %3778 = vrcp.f32 %v3374_v51  ;;  %v3386_v41 = vand.u32 2147483648, %v3374_v51  ;;  %v3384_v8 = vand.u32 2147483647, %v3374_v51  ;;  %vm3380_vm6 = vweird.f32 %v3374_v51 }
 0x76d   :  { %3780 = vrcp.f32 %v3393_v21  ;;  %v3405_v55 = vand.u32 2147483648, %v3393_v21  ;;  %v3403_v34 = vand.u32 2147483647, %v3393_v21  ;;  %vm3399_vm7 = vweird.f32 %v3393_v21 }
 0x76e   :  { %v3387_v47 = vor.u32 1.1754944e-38, %v3386_v41  ;;  %vm3385_vm9 = vcmp.eq.f32.partialorder %v3384_v8, 8.507059e+37 }
 0x76f   :  { %v3406_v17 = vor.u32 1.1754944e-38, %v3405_v55  ;;  %vm3404_vm11 = vcmp.eq.f32.partialorder %v3403_v34, 8.507059e+37 }
 0x770   :  { %v3777_v14 = vpop.eup %3776 }
 0x771   :  { %v3413_v23 = vadd.f32 1.0, %v3777_v14 }
 0x772   :  { %v3779_v60 = vpop.eup %3778 }
 0x773   :  { %v3781_v19 = vpop.eup %3780  ;;  %v3376_v37 = vmul.f32 %v3779_v60, %v3374_v51  ;;  %3782 = vrcp.f32 %v3413_v23  ;;  %vm3381_vm4 = vweird.f32 %v3779_v60  ;;  %v3425_v3 = vand.u32 2147483648, %v3413_v23 }
 0x774   :  { %v3395_v63 = vmul.f32 %v3781_v19, %v3393_v21  ;;  %3784 = vtanh.f32 %v3369_v32  ;;  %vm3400_vm5 = vweird.f32 %v3781_v19  ;;  %vm3382_vm8 = vmor %vm3380_vm6, %vm3381_vm4  ;;  %vm3419_vm13 = vweird.f32 %v3413_v23 }
 0x775   :  { %v3377_v39 = vsub.f32 1.0, %v3376_v37  ;;  %vm3401_vm10 = vmor %vm3399_vm7, %vm3400_vm5  ;;  %v3423_v49 = vand.u32 2147483647, %v3413_v23  ;;  %v3426_v57 = vor.u32 1.1754944e-38, %v3425_v3 }
 0x776   :  { %v3396_v40 = vsub.f32 1.0, %v3395_v63 }
 0x777   :  { %v3378_v29 = vmul.f32 %v3779_v60, %v3377_v39  ;;  %vm3424_vm15 = vcmp.eq.f32.partialorder %v3423_v49, 8.507059e+37 }
 0x778   :  { %v3397_v20 = vmul.f32 %v3781_v19, %v3396_v40 }
 0x779   :  { %v3783_v5 = vpop.eup %3782  ;;  %v3379_v61 = vadd.f32 %v3779_v60, %v3378_v29 }
 0x77a   :  { %v3398_v54 = vadd.f32 %v3781_v19, %v3397_v20  ;;  %v3415_v24 = vmul.f32 %v3783_v5, %v3413_v23  ;;  %v3785_v56 = vpop.eup %3784  ;;  %vm3420_vm12 = vweird.f32 %v3783_v5 }
 0x77b   :  { %v3383_v26 = vsel %vm3382_vm8, %v3779_v60, %v3379_v61  ;;  %vm3421_vm14 = vmor %vm3419_vm13, %vm3420_vm12 }
 0x77c   :  { %v3388_v53 = vsel %vm3385_vm9, %v3387_v47, %v3383_v26  ;;  %v3402_v15 = vsel %vm3401_vm10, %v3781_v19, %v3398_v54  ;;  %v3416_v35 = vsub.f32 1.0, %v3415_v24 }
 0x77d   :  { %v3430_v22 = vmul.f32 %v3785_v56, %v3388_v53  ;;  %v3407_v27 = vsel %vm3404_vm11, %v3406_v17, %v3402_v15 }
 0x77e   :  { %v3417_v46 = vmul.f32 %v3783_v5, %v3416_v35  ;;  %v3429_v62 = vmul.f32 %v3407_v27, %v8561_v36  ;;  %v3531_v36 = vld [vmem:[#allocation2] ss:$0 sm:$0xff] }
 0x780   :  { %v3431_v7 = vadd.f32 %v3430_v22, %v3429_v62  ;;  %v3418_v18 = vadd.f32 %v3783_v5, %v3417_v46 }
 0x782   :  { %3786 = vtanh.f32 %v3431_v7  ;;  %v3422_v42 = vsel %vm3421_vm14, %v3783_v5, %v3418_v18 }
 0x783   :  { %v3427_v43 = vsel %vm3424_vm15, %v3426_v57, %v3422_v42 }
 0x788   :  { %v3787_v11 = vpop.eup %3786 }
 0x789   :  { %v3433_v52 = vmul.f32 %v3787_v11, %v3427_v43 }
 0x78b   :  { %v3438_v58 = vmul.f32 %v3530_v25, %v3433_v52 }
 0x78d   :  { %3439 = vadd.xlane.f32.xlu0 %v3438_v58 }
 0x800   :  { %v3440_v12 = vpop.xlane.xlu0 %3439 }
 0x801   :  { %v3445_v59 = vadd.f32 %v3531_v36, %v3440_v12 }
 0x803   :  { %3447 = vst.msk [vmem:[%s8591_s9] sm:$0xff] %vm3446_vm0, %v3445_v59 }
 0x804   :  { %3452 = vsyncpa [#allocation4], 1 }
 0x805   :  { %3453 = vsyncpa [#allocation6], 1 }
 0x806   :  { %3454 = vsyncpa [#allocation9], 1 }
 0x807   :  { %3455 = vsyncpa [#allocation12], 1 }

</bundles_post_ra>
